<compile_context>
chip_gen: v7x
topology: tpu7x:2x2x1
jax: 0.10.0
libtpu: 0.0.40
codegen_flags: <defaults>
</compile_context>

<pallas_src>
import functools

import jax
import jax.numpy as jnp
from jax.experimental import pallas as pl
from jax.experimental.pallas import tpu as pltpu


# ---------------------------------------------------------------------------
# shared in-kernel epilogue: bias + ReLU + 4x4 max-pool over raster-order rows
# ---------------------------------------------------------------------------
def _bias_relu_pool4_store(acc, bias, tmp_ref, o_ref, *, rows_h, W, rs):
    """acc: (rows_h * rs, Cout) conv outputs in raster order, row stride rs>=W
    (columns x >= W are junk and are dropped before the x-pool).

    Writes (rows_h//4 * W//4, Cout) pooled rows (raster order) into o_ref.
    """
    cout = acc.shape[-1]
    acc = jnp.maximum(acc + bias, 0.0)

    # --- pool over y: 4 tile-aligned sublane slices (rs is a multiple of 8) ---
    a3 = acc.reshape(rows_h // 4, 4 * rs, cout)
    ymax = jnp.maximum(
        jnp.maximum(a3[:, 0 * rs:1 * rs, :], a3[:, 1 * rs:2 * rs, :]),
        jnp.maximum(a3[:, 2 * rs:3 * rs, :], a3[:, 3 * rs:4 * rs, :]))

    # drop padded junk columns, flatten back to lane-dense 2-D rows
    tmp_ref[...] = ymax[:, :W, :].reshape((rows_h // 4) * W, cout)

    # --- pool over x: 4 sublane-strided loads (stride 4) + elementwise max ---
    npool = (rows_h // 4) * (W // 4)
    pooled = jnp.maximum(
        jnp.maximum(tmp_ref[pl.ds(0, npool, stride=4), :],
                    tmp_ref[pl.ds(1, npool, stride=4), :]),
        jnp.maximum(tmp_ref[pl.ds(2, npool, stride=4), :],
                    tmp_ref[pl.ds(3, npool, stride=4), :]))
    o_ref[...] = pooled.astype(o_ref.dtype)


# ---------------------------------------------------------------------------
# conv1: im2col rows (K=27) -> fused matmul + bias + ReLU + 4x4 max-pool
# ---------------------------------------------------------------------------
def _matmul_relu_pool_kernel(a_ref, w_ref, b_ref, o_ref, tmp_ref, *,
                             rows_h, W, rs):
    acc = jnp.dot(a_ref[...], w_ref[...], preferred_element_type=jnp.float32)
    _bias_relu_pool4_store(acc, b_ref[...], tmp_ref, o_ref,
                           rows_h=rows_h, W=W, rs=rs)


def conv1_relu_pool4(x, w_mat, b):
    """x: (B,H,W,3) NHWC f32 -> (B,H//4,W//4,Cout).

    Cin=3 is lane-sparse, so the patch gather (K=27) is one small XLA fusion
    and the kernel runs a single lane-dense MXU matmul fused with the epilogue.
    """
    B, H, W, _ = x.shape
    K, Cout = w_mat.shape
    xp = jnp.pad(x, ((0, 0), (1, 1), (1, 1), (0, 0)))
    cols = [xp[:, dy:dy + H, dx:dx + W, :] for dy in range(3) for dx in range(3)]
    a = jnp.concatenate(cols, axis=-1).reshape(B, H * W, K)   # (B, H*W, 27)

    rows_h = 32 if H % 32 == 0 else H          # image rows per grid step
    tm = rows_h * W
    npool_blk = (rows_h // 4) * (W // 4)

    out = pl.pallas_call(
        functools.partial(_matmul_relu_pool_kernel, rows_h=rows_h, W=W, rs=W),
        out_shape=jax.ShapeDtypeStruct((B, (H // 4) * (W // 4), Cout),
                                       jnp.float32),
        grid=(B, H // rows_h),
        in_specs=[
            pl.BlockSpec((None, tm, K), lambda b_, i: (b_, i, 0)),
            pl.BlockSpec((K, Cout), lambda b_, i: (0, 0)),
            pl.BlockSpec((1, Cout), lambda b_, i: (0, 0)),
        ],
        out_specs=pl.BlockSpec((None, npool_blk, Cout),
                               lambda b_, i: (b_, i, 0)),
        scratch_shapes=[pltpu.VMEM(((rows_h // 4) * W, Cout), jnp.float32)],
        compiler_params=pltpu.CompilerParams(
            dimension_semantics=("parallel", "parallel")),
    )(a, w_mat, b.reshape(1, Cout))
    return out.reshape(B, H // 4, W // 4, Cout)


# ---------------------------------------------------------------------------
# conv2: in-kernel 3x3 taps (9 shifted-row matmuls) + bias + ReLU + max-pool
# ---------------------------------------------------------------------------
def _conv3x3_taps_relu_pool_kernel(x_ref, w_ref, b_ref, o_ref, tmp_ref, *,
                                   H, W, rs, Cout):
    """x_ref: ((H+3)*rs, Cin) zero-padded image flattened in raster order
    (1 top / 2 bottom pad rows, 1 left / rs-W-1 right pad cols, row stride rs).
    Builds the conv as 9 shifted-row MXU matmuls -- no im2col tensor in HBM."""
    N = H * rs
    acc = jnp.zeros((N, Cout), jnp.float32)
    for dy in range(3):
        for dx in range(3):
            off = dy * rs + dx
            xs = x_ref[pl.ds(off, N), :]                      # (N, Cin)
            acc = acc + jnp.dot(xs, w_ref[dy * 3 + dx],
                                preferred_element_type=jnp.float32)
    _bias_relu_pool4_store(acc, b_ref[...], tmp_ref, o_ref,
                           rows_h=H, W=W, rs=rs)


def conv2_relu_pool4(x, w_taps, b):
    """x: (B,H,W,Cin) NHWC f32 (Cin lane-dense) -> (B,H//4,W//4,Cout)."""
    B, H, W, Cin = x.shape
    Cout = w_taps.shape[-1]
    rs = ((W + 2 + 7) // 8) * 8                 # padded row stride, mult. of 8
    xp = jnp.pad(x, ((0, 0), (1, 2), (1, rs - W - 1), (0, 0)))  # (B, H+3, rs, Cin)
    xf = xp.reshape(B, (H + 3) * rs, Cin)
    npool = (H // 4) * (W // 4)

    out = pl.pallas_call(
        functools.partial(_conv3x3_taps_relu_pool_kernel,
                          H=H, W=W, rs=rs, Cout=Cout),
        out_shape=jax.ShapeDtypeStruct((B, npool, Cout), jnp.float32),
        grid=(B,),
        in_specs=[
            pl.BlockSpec((None, (H + 3) * rs, Cin), lambda b_: (b_, 0, 0)),
            pl.BlockSpec((9, Cin, Cout), lambda b_: (0, 0, 0)),
            pl.BlockSpec((1, Cout), lambda b_: (0, 0)),
        ],
        out_specs=pl.BlockSpec((None, npool, Cout), lambda b_: (b_, 0, 0)),
        scratch_shapes=[pltpu.VMEM(((H // 4) * W, Cout), jnp.float32)],
        compiler_params=pltpu.CompilerParams(
            dimension_semantics=("parallel",)),
    )(xf, w_taps, b.reshape(1, Cout))
    return out.reshape(B, H // 4, W // 4, Cout)


# ---------------------------------------------------------------------------
# fused fc1 + ReLU + fc2, K-tiled over fc1's output dim (bf16 weights)
# ---------------------------------------------------------------------------
def _fc1_relu_fc2_kernel(x_ref, w1_ref, b1_ref, w2_ref, b2_ref, o_ref):
    @pl.when(pl.program_id(0) == 0)
    def _():
        o_ref[...] = jnp.zeros_like(o_ref) + b2_ref[...]
    h = jnp.dot(x_ref[...].astype(jnp.bfloat16), w1_ref[...],
                preferred_element_type=jnp.float32)
    h = jnp.maximum(h + b1_ref[...], 0.0)
    o_ref[...] += jnp.dot(h.astype(jnp.bfloat16), w2_ref[...],
                          preferred_element_type=jnp.float32)


def fc1_relu_fc2(x, w1, b1, w2, b2, *, ct=256):
    B, Din = x.shape
    Dh = w1.shape[1]
    Dout = w2.shape[1]
    if Dh % ct != 0:
        ct = Dh
    T = Dh // ct
    return pl.pallas_call(
        _fc1_relu_fc2_kernel,
        out_shape=jax.ShapeDtypeStruct((B, Dout), jnp.float32),
        grid=(T,),
        in_specs=[
            pl.BlockSpec((B, Din), lambda t: (0, 0)),
            pl.BlockSpec((Din, ct), lambda t: (0, t)),
            pl.BlockSpec((1, ct), lambda t: (0, t)),
            pl.BlockSpec((ct, Dout), lambda t: (t, 0)),
            pl.BlockSpec((1, Dout), lambda t: (0, 0)),
        ],
        out_specs=pl.BlockSpec((B, Dout), lambda t: (0, 0)),
        compiler_params=pltpu.CompilerParams(
            dimension_semantics=("arbitrary",)),
    )(x, w1, b1.reshape(1, Dh), w2, b2.reshape(1, Dout))


# ---------------------------------------------------------------------------
# Parameter construction (torch layouts, then converted for the kernels)
# ---------------------------------------------------------------------------
def init_params(key, n_classes=100):
    ks = jax.random.split(key, 8)
    scale = 0.05
    # torch conv weight layout: (Cout, Cin, kH, kW)
    w1 = jax.random.normal(ks[0], (64, 3, 3, 3), jnp.float32) * scale
    b1 = jax.random.normal(ks[1], (64,), jnp.float32) * scale
    w2 = jax.random.normal(ks[2], (128, 64, 3, 3), jnp.float32) * scale
    b2 = jax.random.normal(ks[3], (128,), jnp.float32) * scale
    # torch linear weights stored transposed as (in, out); fc1's input features
    # are indexed in torch NCHW-flatten order: c * 16 + (y * 4 + x)
    wf1 = jax.random.normal(ks[4], (2048, 1024), jnp.float32) * scale
    bf1 = jax.random.normal(ks[5], (1024,), jnp.float32) * scale
    wf2 = jax.random.normal(ks[6], (1024, n_classes), jnp.float32) * scale
    bf2 = jax.random.normal(ks[7], (n_classes,), jnp.float32) * scale

    def conv_w_mat(w):      # (Cout,Cin,kH,kW) -> (kH*kW*Cin, Cout)
        cout, cin, kh, kw = w.shape
        return jnp.transpose(w, (2, 3, 1, 0)).reshape(kh * kw * cin, cout)

    def conv_w_taps(w):     # (Cout,Cin,kH,kW) -> (9, Cin, Cout)
        cout, cin, kh, kw = w.shape
        return jnp.transpose(w, (2, 3, 1, 0)).reshape(kh * kw, cin, cout)

    # Fold the NCHW-flatten -> NHWC-flatten permutation into fc1's rows so the
    # kernels never transpose the pooled activation back to NCHW:
    #   row (pos*128 + c) of the used weight == row (c*16 + pos) of torch's.
    wf1_nhwc = wf1.reshape(128, 16, 1024).transpose(1, 0, 2).reshape(2048, 1024)

    return dict(
        w1=conv_w_mat(w1), b1=b1,
        w2=conv_w_taps(w2), b2=b2,
        wf1=wf1_nhwc.astype(jnp.bfloat16), bf1=bf1,
        wf2=wf2.astype(jnp.bfloat16), bf2=bf2,
    )


# ---------------------------------------------------------------------------
# Forward pass
# ---------------------------------------------------------------------------
@jax.jit
def forward(x_nchw, params):
    x = jnp.transpose(x_nchw, (0, 2, 3, 1))                    # (B,64,64,3) NHWC
    x = conv1_relu_pool4(x, params["w1"], params["b1"])        # (B,16,16,64)
    x = conv2_relu_pool4(x, params["w2"], params["b2"])        # (B,4,4,128)
    B = x.shape[0]
    x = x.reshape(B, -1)             # NHWC flatten; fc1 rows are pre-permuted
    return fc1_relu_fc2(x, params["wf1"], params["bf1"],
                        params["wf2"], params["bf2"])          # (B, n_classes)


if __name__ == "__main__":
    key = jax.random.PRNGKey(0)
    kx, kp = jax.random.split(key)
    # fc1 input of 2048 = 128 * (H/16) * (W/16) implies 64x64 spatial input
    x = jax.random.normal(kx, (2, 3, 64, 64), jnp.float32)     # NCHW like torch
    params = init_params(kp, n_classes=100)
    out = forward(x, params)
    jax.block_until_ready(out)
    assert out.shape == (2, 100)
    print("KERNEL_OK")
</pallas_src>

<mosaic_0001>
module attributes {stable_mosaic.version = 11 : i64} {
  func.func @_matmul_relu_pool_kernel(%arg0: i32, %arg1: i32, %arg2: memref<1x2048x27xf32, #tpu.memory_space<vmem>>, %arg3: memref<27x64xf32, #tpu.memory_space<vmem>>, %arg4: memref<1x64xf32, #tpu.memory_space<vmem>>, %arg5: memref<1x128x64xf32, #tpu.memory_space<vmem>>, %arg6: memref<512x64xf32, #tpu.memory_space<vmem>>) attributes {dimension_semantics = [#tpu.dimension_semantics<parallel>, #tpu.dimension_semantics<parallel>], iteration_bounds = array<i64: 2, 2>, scalar_prefetch = 0 : i64, scratch_operands = 1 : i64, tpu.core_type = #tpu.core_type<tc>, window_params = [{transform_indices = @transform_0, window_bounds = array<i64: 1, 2048, 27>}, {pipeline_mode = #tpu.pipeline_mode<synchronous>, transform_indices = @transform_1, window_bounds = array<i64: 27, 64>}, {pipeline_mode = #tpu.pipeline_mode<synchronous>, transform_indices = @transform_2, window_bounds = array<i64: 1, 64>}, {transform_indices = @transform_3, window_bounds = array<i64: 1, 128, 64>}]} {
    %c0 = arith.constant 0 : index
    %c0_0 = arith.constant 0 : index
    %c0_1 = arith.constant 0 : index
    %0 = vector.load %arg2[%c0, %c0_0, %c0_1] : memref<1x2048x27xf32, #tpu.memory_space<vmem>>, vector<1x2048x27xf32>
    %1 = vector.shape_cast %0 : vector<1x2048x27xf32> to vector<2048x27xf32>
    %c0_2 = arith.constant 0 : index
    %c0_3 = arith.constant 0 : index
    %2 = vector.load %arg3[%c0_2, %c0_3] : memref<27x64xf32, #tpu.memory_space<vmem>>, vector<27x64xf32>
    %cst = arith.constant dense<0.000000e+00> : vector<2048x64xf32>
    %3 = tpu.matmul %1, %2, %cst {dimension_numbers = #tpu.dot_dimension_numbers<[1], [0], [0], [1], [0, 0, 1, 1], [], []>} : vector<2048x27xf32>, vector<27x64xf32>, vector<2048x64xf32> -> vector<2048x64xf32>
    %c0_4 = arith.constant 0 : index
    %c0_5 = arith.constant 0 : index
    %4 = vector.load %arg4[%c0_4, %c0_5] : memref<1x64xf32, #tpu.memory_space<vmem>>, vector<1x64xf32>
    %5 = vector.broadcast %4 : vector<1x64xf32> to vector<2048x64xf32>
    %6 = arith.addf %3, %5 : vector<2048x64xf32>
    %cst_6 = arith.constant 0.000000e+00 : f32
    %7 = vector.broadcast %cst_6 : f32 to vector<2048x64xf32>
    %8 = arith.maximumf %6, %7 : vector<2048x64xf32>
    %9 = vector.shape_cast %8 : vector<2048x64xf32> to vector<8x256x64xf32>
    %10 = vector.extract_strided_slice %9 {offsets = [0, 0, 0], sizes = [8, 64, 64], strides = [1, 1, 1]} : vector<8x256x64xf32> to vector<8x64x64xf32>
    %11 = vector.extract_strided_slice %9 {offsets = [0, 64, 0], sizes = [8, 64, 64], strides = [1, 1, 1]} : vector<8x256x64xf32> to vector<8x64x64xf32>
    %12 = arith.maximumf %10, %11 : vector<8x64x64xf32>
    %13 = vector.extract_strided_slice %9 {offsets = [0, 128, 0], sizes = [8, 64, 64], strides = [1, 1, 1]} : vector<8x256x64xf32> to vector<8x64x64xf32>
    %14 = vector.extract_strided_slice %9 {offsets = [0, 192, 0], sizes = [8, 64, 64], strides = [1, 1, 1]} : vector<8x256x64xf32> to vector<8x64x64xf32>
    %15 = arith.maximumf %13, %14 : vector<8x64x64xf32>
    %16 = arith.maximumf %12, %15 : vector<8x64x64xf32>
    %17 = vector.shape_cast %16 : vector<8x64x64xf32> to vector<512x64xf32>
    %c0_7 = arith.constant 0 : index
    %c0_8 = arith.constant 0 : index
    %18 = vector.load %arg6[%c0_7, %c0_8] : memref<512x64xf32, #tpu.memory_space<vmem>>, vector<512x64xf32>
    tpu.vector_store %arg6[%c0_7, %c0_8], %17 {strides = array<i32>} : memref<512x64xf32, #tpu.memory_space<vmem>>, vector<512x64xf32>,
    %c0_9 = arith.constant 0 : index
    %c0_10 = arith.constant 0 : index
    %19 = tpu.strided_load %arg6[%c0_9, %c0_10] {strides = array<i32: 4, 1>} : memref<512x64xf32, #tpu.memory_space<vmem>>, vector<128x64xf32>
    %c1 = arith.constant 1 : index
    %c0_11 = arith.constant 0 : index
    %20 = tpu.strided_load %arg6[%c1, %c0_11] {strides = array<i32: 4, 1>} : memref<512x64xf32, #tpu.memory_space<vmem>>, vector<128x64xf32>
    %21 = arith.maximumf %19, %20 : vector<128x64xf32>
    %c2 = arith.constant 2 : index
    %c0_12 = arith.constant 0 : index
    %22 = tpu.strided_load %arg6[%c2, %c0_12] {strides = array<i32: 4, 1>} : memref<512x64xf32, #tpu.memory_space<vmem>>, vector<128x64xf32>
    %c3 = arith.constant 3 : index
    %c0_13 = arith.constant 0 : index
    %23 = tpu.strided_load %arg6[%c3, %c0_13] {strides = array<i32: 4, 1>} : memref<512x64xf32, #tpu.memory_space<vmem>>, vector<128x64xf32>
    %24 = arith.maximumf %22, %23 : vector<128x64xf32>
    %25 = arith.maximumf %21, %24 : vector<128x64xf32>
    %c0_14 = arith.constant 0 : index
    %c0_15 = arith.constant 0 : index
    %c0_16 = arith.constant 0 : index
    %26 = vector.load %arg5[%c0_14, %c0_15, %c0_16] : memref<1x128x64xf32, #tpu.memory_space<vmem>>, vector<1x128x64xf32>
    %27 = vector.shape_cast %26 : vector<1x128x64xf32> to vector<128x64xf32>
    %28 = vector.shape_cast %25 : vector<128x64xf32> to vector<1x128x64xf32>
    tpu.vector_store %arg5[%c0_14, %c0_15, %c0_16], %28 {strides = array<i32>} : memref<1x128x64xf32, #tpu.memory_space<vmem>>, vector<1x128x64xf32>,
    return
  }
  func.func @transform_0(%arg0: i32, %arg1: i32) -> (i32, i32, i32) {
    %c0_i32 = arith.constant 0 : i32
    %c0_i32_0 = arith.constant 0 : i32
    return %arg0, %arg1, %c0_i32 : i32, i32, i32
  }
  func.func @transform_1(%arg0: i32, %arg1: i32) -> (i32, i32) {
    %c0_i32 = arith.constant 0 : i32
    %c0_i32_0 = arith.constant 0 : i32
    %c0_i32_1 = arith.constant 0 : i32
    return %c0_i32, %c0_i32_0 : i32, i32
  }
  func.func @transform_2(%arg0: i32, %arg1: i32) -> (i32, i32) {
    %c0_i32 = arith.constant 0 : i32
    %c0_i32_0 = arith.constant 0 : i32
    %c0_i32_1 = arith.constant 0 : i32
    return %c0_i32, %c0_i32_0 : i32, i32
  }
  func.func @transform_3(%arg0: i32, %arg1: i32) -> (i32, i32, i32) {
    %c0_i32 = arith.constant 0 : i32
    %c0_i32_0 = arith.constant 0 : i32
    return %arg0, %arg1, %c0_i32 : i32, i32, i32
  }
}

module attributes {stable_mosaic.version = 11 : i64} {
  func.func @_conv3x3_taps_relu_pool_kernel(%arg0: i32, %arg1: memref<1x456x64xf32, #tpu.memory_space<vmem>>, %arg2: memref<9x64x128xf32, #tpu.memory_space<vmem>>, %arg3: memref<1x128xf32, #tpu.memory_space<vmem>>, %arg4: memref<1x16x128xf32, #tpu.memory_space<vmem>>, %arg5: memref<64x128xf32, #tpu.memory_space<vmem>>) attributes {dimension_semantics = [#tpu.dimension_semantics<parallel>], iteration_bounds = array<i64: 2>, scalar_prefetch = 0 : i64, scratch_operands = 1 : i64, tpu.core_type = #tpu.core_type<tc>, window_params = [{transform_indices = @transform_0, window_bounds = array<i64: 1, 456, 64>}, {pipeline_mode = #tpu.pipeline_mode<synchronous>, transform_indices = @transform_1, window_bounds = array<i64: 9, 64, 128>}, {pipeline_mode = #tpu.pipeline_mode<synchronous>, transform_indices = @transform_2, window_bounds = array<i64: 1, 128>}, {transform_indices = @transform_3, window_bounds = array<i64: 1, 16, 128>}]} {
    %cst = arith.constant 0.000000e+00 : f32
    %0 = vector.broadcast %cst : f32 to vector<384x128xf32>
    %c0 = arith.constant 0 : index
    %c0_0 = arith.constant 0 : index
    %c0_1 = arith.constant 0 : index
    %1 = vector.load %arg1[%c0, %c0_0, %c0_1] : memref<1x456x64xf32, #tpu.memory_space<vmem>>, vector<1x384x64xf32>
    %2 = vector.shape_cast %1 : vector<1x384x64xf32> to vector<384x64xf32>
    %c0_2 = arith.constant 0 : index
    %c0_3 = arith.constant 0 : index
    %c0_4 = arith.constant 0 : index
    %3 = vector.load %arg2[%c0_2, %c0_3, %c0_4] : memref<9x64x128xf32, #tpu.memory_space<vmem>>, vector<1x64x128xf32>
    %4 = vector.shape_cast %3 : vector<1x64x128xf32> to vector<64x128xf32>
    %cst_5 = arith.constant dense<0.000000e+00> : vector<384x128xf32>
    %5 = tpu.matmul %2, %4, %cst_5 {dimension_numbers = #tpu.dot_dimension_numbers<[1], [0], [0], [1], [0, 0, 1, 1], [], []>} : vector<384x64xf32>, vector<64x128xf32>, vector<384x128xf32> -> vector<384x128xf32>
    %6 = arith.addf %0, %5 : vector<384x128xf32>
    %c0_6 = arith.constant 0 : index
    %c1 = arith.constant 1 : index
    %c0_7 = arith.constant 0 : index
    %7 = vector.load %arg1[%c0_6, %c1, %c0_7] : memref<1x456x64xf32, #tpu.memory_space<vmem>>, vector<1x384x64xf32>
    %8 = vector.shape_cast %7 : vector<1x384x64xf32> to vector<384x64xf32>
    %c1_8 = arith.constant 1 : index
    %c0_9 = arith.constant 0 : index
    %c0_10 = arith.constant 0 : index
    %9 = vector.load %arg2[%c1_8, %c0_9, %c0_10] : memref<9x64x128xf32, #tpu.memory_space<vmem>>, vector<1x64x128xf32>
    %10 = vector.shape_cast %9 : vector<1x64x128xf32> to vector<64x128xf32>
    %cst_11 = arith.constant dense<0.000000e+00> : vector<384x128xf32>
    %11 = tpu.matmul %8, %10, %cst_11 {dimension_numbers = #tpu.dot_dimension_numbers<[1], [0], [0], [1], [0, 0, 1, 1], [], []>} : vector<384x64xf32>, vector<64x128xf32>, vector<384x128xf32> -> vector<384x128xf32>
    %12 = arith.addf %6, %11 : vector<384x128xf32>
    %c0_12 = arith.constant 0 : index
    %c2 = arith.constant 2 : index
    %c0_13 = arith.constant 0 : index
    %13 = vector.load %arg1[%c0_12, %c2, %c0_13] : memref<1x456x64xf32, #tpu.memory_space<vmem>>, vector<1x384x64xf32>
    %14 = vector.shape_cast %13 : vector<1x384x64xf32> to vector<384x64xf32>
    %c2_14 = arith.constant 2 : index
    %c0_15 = arith.constant 0 : index
    %c0_16 = arith.constant 0 : index
    %15 = vector.load %arg2[%c2_14, %c0_15, %c0_16] : memref<9x64x128xf32, #tpu.memory_space<vmem>>, vector<1x64x128xf32>
    %16 = vector.shape_cast %15 : vector<1x64x128xf32> to vector<64x128xf32>
    %cst_17 = arith.constant dense<0.000000e+00> : vector<384x128xf32>
    %17 = tpu.matmul %14, %16, %cst_17 {dimension_numbers = #tpu.dot_dimension_numbers<[1], [0], [0], [1], [0, 0, 1, 1], [], []>} : vector<384x64xf32>, vector<64x128xf32>, vector<384x128xf32> -> vector<384x128xf32>
    %18 = arith.addf %12, %17 : vector<384x128xf32>
    %c0_18 = arith.constant 0 : index
    %c24 = arith.constant 24 : index
    %c0_19 = arith.constant 0 : index
    %19 = vector.load %arg1[%c0_18, %c24, %c0_19] : memref<1x456x64xf32, #tpu.memory_space<vmem>>, vector<1x384x64xf32>
    %20 = vector.shape_cast %19 : vector<1x384x64xf32> to vector<384x64xf32>
    %c3 = arith.constant 3 : index
    %c0_20 = arith.constant 0 : index
    %c0_21 = arith.constant 0 : index
    %21 = vector.load %arg2[%c3, %c0_20, %c0_21] : memref<9x64x128xf32, #tpu.memory_space<vmem>>, vector<1x64x128xf32>
    %22 = vector.shape_cast %21 : vector<1x64x128xf32> to vector<64x128xf32>
    %cst_22 = arith.constant dense<0.000000e+00> : vector<384x128xf32>
    %23 = tpu.matmul %20, %22, %cst_22 {dimension_numbers = #tpu.dot_dimension_numbers<[1], [0], [0], [1], [0, 0, 1, 1], [], []>} : vector<384x64xf32>, vector<64x128xf32>, vector<384x128xf32> -> vector<384x128xf32>
    %24 = arith.addf %18, %23 : vector<384x128xf32>
    %c0_23 = arith.constant 0 : index
    %c25 = arith.constant 25 : index
    %c0_24 = arith.constant 0 : index
    %25 = vector.load %arg1[%c0_23, %c25, %c0_24] : memref<1x456x64xf32, #tpu.memory_space<vmem>>, vector<1x384x64xf32>
    %26 = vector.shape_cast %25 : vector<1x384x64xf32> to vector<384x64xf32>
    %c4 = arith.constant 4 : index
    %c0_25 = arith.constant 0 : index
    %c0_26 = arith.constant 0 : index
    %27 = vector.load %arg2[%c4, %c0_25, %c0_26] : memref<9x64x128xf32, #tpu.memory_space<vmem>>, vector<1x64x128xf32>
    %28 = vector.shape_cast %27 : vector<1x64x128xf32> to vector<64x128xf32>
    %cst_27 = arith.constant dense<0.000000e+00> : vector<384x128xf32>
    %29 = tpu.matmul %26, %28, %cst_27 {dimension_numbers = #tpu.dot_dimension_numbers<[1], [0], [0], [1], [0, 0, 1, 1], [], []>} : vector<384x64xf32>, vector<64x128xf32>, vector<384x128xf32> -> vector<384x128xf32>
    %30 = arith.addf %24, %29 : vector<384x128xf32>
    %c0_28 = arith.constant 0 : index
    %c26 = arith.constant 26 : index
    %c0_29 = arith.constant 0 : index
    %31 = vector.load %arg1[%c0_28, %c26, %c0_29] : memref<1x456x64xf32, #tpu.memory_space<vmem>>, vector<1x384x64xf32>
    %32 = vector.shape_cast %31 : vector<1x384x64xf32> to vector<384x64xf32>
    %c5 = arith.constant 5 : index
    %c0_30 = arith.constant 0 : index
    %c0_31 = arith.constant 0 : index
    %33 = vector.load %arg2[%c5, %c0_30, %c0_31] : memref<9x64x128xf32, #tpu.memory_space<vmem>>, vector<1x64x128xf32>
    %34 = vector.shape_cast %33 : vector<1x64x128xf32> to vector<64x128xf32>
    %cst_32 = arith.constant dense<0.000000e+00> : vector<384x128xf32>
    %35 = tpu.matmul %32, %34, %cst_32 {dimension_numbers = #tpu.dot_dimension_numbers<[1], [0], [0], [1], [0, 0, 1, 1], [], []>} : vector<384x64xf32>, vector<64x128xf32>, vector<384x128xf32> -> vector<384x128xf32>
    %36 = arith.addf %30, %35 : vector<384x128xf32>
    %c0_33 = arith.constant 0 : index
    %c48 = arith.constant 48 : index
    %c0_34 = arith.constant 0 : index
    %37 = vector.load %arg1[%c0_33, %c48, %c0_34] : memref<1x456x64xf32, #tpu.memory_space<vmem>>, vector<1x384x64xf32>
    %38 = vector.shape_cast %37 : vector<1x384x64xf32> to vector<384x64xf32>
    %c6 = arith.constant 6 : index
    %c0_35 = arith.constant 0 : index
    %c0_36 = arith.constant 0 : index
    %39 = vector.load %arg2[%c6, %c0_35, %c0_36] : memref<9x64x128xf32, #tpu.memory_space<vmem>>, vector<1x64x128xf32>
    %40 = vector.shape_cast %39 : vector<1x64x128xf32> to vector<64x128xf32>
    %cst_37 = arith.constant dense<0.000000e+00> : vector<384x128xf32>
    %41 = tpu.matmul %38, %40, %cst_37 {dimension_numbers = #tpu.dot_dimension_numbers<[1], [0], [0], [1], [0, 0, 1, 1], [], []>} : vector<384x64xf32>, vector<64x128xf32>, vector<384x128xf32> -> vector<384x128xf32>
    %42 = arith.addf %36, %41 : vector<384x128xf32>
    %c0_38 = arith.constant 0 : index
    %c49 = arith.constant 49 : index
    %c0_39 = arith.constant 0 : index
    %43 = vector.load %arg1[%c0_38, %c49, %c0_39] : memref<1x456x64xf32, #tpu.memory_space<vmem>>, vector<1x384x64xf32>
    %44 = vector.shape_cast %43 : vector<1x384x64xf32> to vector<384x64xf32>
    %c7 = arith.constant 7 : index
    %c0_40 = arith.constant 0 : index
    %c0_41 = arith.constant 0 : index
    %45 = vector.load %arg2[%c7, %c0_40, %c0_41] : memref<9x64x128xf32, #tpu.memory_space<vmem>>, vector<1x64x128xf32>
    %46 = vector.shape_cast %45 : vector<1x64x128xf32> to vector<64x128xf32>
    %cst_42 = arith.constant dense<0.000000e+00> : vector<384x128xf32>
    %47 = tpu.matmul %44, %46, %cst_42 {dimension_numbers = #tpu.dot_dimension_numbers<[1], [0], [0], [1], [0, 0, 1, 1], [], []>} : vector<384x64xf32>, vector<64x128xf32>, vector<384x128xf32> -> vector<384x128xf32>
    %48 = arith.addf %42, %47 : vector<384x128xf32>
    %c0_43 = arith.constant 0 : index
    %c50 = arith.constant 50 : index
    %c0_44 = arith.constant 0 : index
    %49 = vector.load %arg1[%c0_43, %c50, %c0_44] : memref<1x456x64xf32, #tpu.memory_space<vmem>>, vector<1x384x64xf32>
    %50 = vector.shape_cast %49 : vector<1x384x64xf32> to vector<384x64xf32>
    %c8 = arith.constant 8 : index
    %c0_45 = arith.constant 0 : index
    %c0_46 = arith.constant 0 : index
    %51 = vector.load %arg2[%c8, %c0_45, %c0_46] : memref<9x64x128xf32, #tpu.memory_space<vmem>>, vector<1x64x128xf32>
    %52 = vector.shape_cast %51 : vector<1x64x128xf32> to vector<64x128xf32>
    %cst_47 = arith.constant dense<0.000000e+00> : vector<384x128xf32>
    %53 = tpu.matmul %50, %52, %cst_47 {dimension_numbers = #tpu.dot_dimension_numbers<[1], [0], [0], [1], [0, 0, 1, 1], [], []>} : vector<384x64xf32>, vector<64x128xf32>, vector<384x128xf32> -> vector<384x128xf32>
    %54 = arith.addf %48, %53 : vector<384x128xf32>
    %c0_48 = arith.constant 0 : index
    %c0_49 = arith.constant 0 : index
    %55 = vector.load %arg3[%c0_48, %c0_49] : memref<1x128xf32, #tpu.memory_space<vmem>>, vector<1x128xf32>
    %56 = vector.broadcast %55 : vector<1x128xf32> to vector<384x128xf32>
    %57 = arith.addf %54, %56 : vector<384x128xf32>
    %cst_50 = arith.constant 0.000000e+00 : f32
    %58 = vector.broadcast %cst_50 : f32 to vector<384x128xf32>
    %59 = arith.maximumf %57, %58 : vector<384x128xf32>
    %60 = vector.shape_cast %59 : vector<384x128xf32> to vector<4x96x128xf32>
    %61 = vector.extract_strided_slice %60 {offsets = [0, 0, 0], sizes = [4, 24, 128], strides = [1, 1, 1]} : vector<4x96x128xf32> to vector<4x24x128xf32>
    %62 = vector.extract_strided_slice %60 {offsets = [0, 24, 0], sizes = [4, 24, 128], strides = [1, 1, 1]} : vector<4x96x128xf32> to vector<4x24x128xf32>
    %63 = arith.maximumf %61, %62 : vector<4x24x128xf32>
    %64 = vector.extract_strided_slice %60 {offsets = [0, 48, 0], sizes = [4, 24, 128], strides = [1, 1, 1]} : vector<4x96x128xf32> to vector<4x24x128xf32>
    %65 = vector.extract_strided_slice %60 {offsets = [0, 72, 0], sizes = [4, 24, 128], strides = [1, 1, 1]} : vector<4x96x128xf32> to vector<4x24x128xf32>
    %66 = arith.maximumf %64, %65 : vector<4x24x128xf32>
    %67 = arith.maximumf %63, %66 : vector<4x24x128xf32>
    %68 = vector.extract_strided_slice %67 {offsets = [0, 0, 0], sizes = [4, 16, 128], strides = [1, 1, 1]} : vector<4x24x128xf32> to vector<4x16x128xf32>
    %69 = vector.shape_cast %68 : vector<4x16x128xf32> to vector<64x128xf32>
    %c0_51 = arith.constant 0 : index
    %c0_52 = arith.constant 0 : index
    %70 = vector.load %arg5[%c0_51, %c0_52] : memref<64x128xf32, #tpu.memory_space<vmem>>, vector<64x128xf32>
    tpu.vector_store %arg5[%c0_51, %c0_52], %69 {strides = array<i32>} : memref<64x128xf32, #tpu.memory_space<vmem>>, vector<64x128xf32>,
    %c0_53 = arith.constant 0 : index
    %c0_54 = arith.constant 0 : index
    %71 = tpu.strided_load %arg5[%c0_53, %c0_54] {strides = array<i32: 4, 1>} : memref<64x128xf32, #tpu.memory_space<vmem>>, vector<16x128xf32>
    %c1_55 = arith.constant 1 : index
    %c0_56 = arith.constant 0 : index
    %72 = tpu.strided_load %arg5[%c1_55, %c0_56] {strides = array<i32: 4, 1>} : memref<64x128xf32, #tpu.memory_space<vmem>>, vector<16x128xf32>
    %73 = arith.maximumf %71, %72 : vector<16x128xf32>
    %c2_57 = arith.constant 2 : index
    %c0_58 = arith.constant 0 : index
    %74 = tpu.strided_load %arg5[%c2_57, %c0_58] {strides = array<i32: 4, 1>} : memref<64x128xf32, #tpu.memory_space<vmem>>, vector<16x128xf32>
    %c3_59 = arith.constant 3 : index
    %c0_60 = arith.constant 0 : index
    %75 = tpu.strided_load %arg5[%c3_59, %c0_60] {strides = array<i32: 4, 1>} : memref<64x128xf32, #tpu.memory_space<vmem>>, vector<16x128xf32>
    %76 = arith.maximumf %74, %75 : vector<16x128xf32>
    %77 = arith.maximumf %73, %76 : vector<16x128xf32>
    %c0_61 = arith.constant 0 : index
    %c0_62 = arith.constant 0 : index
    %c0_63 = arith.constant 0 : index
    %78 = vector.load %arg4[%c0_61, %c0_62, %c0_63] : memref<1x16x128xf32, #tpu.memory_space<vmem>>, vector<1x16x128xf32>
    %79 = vector.shape_cast %78 : vector<1x16x128xf32> to vector<16x128xf32>
    %80 = vector.shape_cast %77 : vector<16x128xf32> to vector<1x16x128xf32>
    tpu.vector_store %arg4[%c0_61, %c0_62, %c0_63], %80 {strides = array<i32>} : memref<1x16x128xf32, #tpu.memory_space<vmem>>, vector<1x16x128xf32>,
    return
  }
  func.func @transform_0(%arg0: i32) -> (i32, i32, i32) {
    %c0_i32 = arith.constant 0 : i32
    %c0_i32_0 = arith.constant 0 : i32
    %c0_i32_1 = arith.constant 0 : i32
    return %arg0, %c0_i32, %c0_i32_0 : i32, i32, i32
  }
  func.func @transform_1(%arg0: i32) -> (i32, i32, i32) {
    %c0_i32 = arith.constant 0 : i32
    %c0_i32_0 = arith.constant 0 : i32
    %c0_i32_1 = arith.constant 0 : i32
    %c0_i32_2 = arith.constant 0 : i32
    return %c0_i32, %c0_i32_0, %c0_i32_1 : i32, i32, i32
  }
  func.func @transform_2(%arg0: i32) -> (i32, i32) {
    %c0_i32 = arith.constant 0 : i32
    %c0_i32_0 = arith.constant 0 : i32
    %c0_i32_1 = arith.constant 0 : i32
    return %c0_i32, %c0_i32_0 : i32, i32
  }
  func.func @transform_3(%arg0: i32) -> (i32, i32, i32) {
    %c0_i32 = arith.constant 0 : i32
    %c0_i32_0 = arith.constant 0 : i32
    %c0_i32_1 = arith.constant 0 : i32
    return %arg0, %c0_i32, %c0_i32_0 : i32, i32, i32
  }
}

module attributes {stable_mosaic.version = 11 : i64} {
  func.func @_fc1_relu_fc2_kernel(%arg0: i32, %arg1: memref<2x2048xf32, #tpu.memory_space<vmem>>, %arg2: memref<2048x256xbf16, #tpu.memory_space<vmem>>, %arg3: memref<1x256xf32, #tpu.memory_space<vmem>>, %arg4: memref<256x100xbf16, #tpu.memory_space<vmem>>, %arg5: memref<1x100xf32, #tpu.memory_space<vmem>>, %arg6: memref<2x100xf32, #tpu.memory_space<vmem>>) attributes {dimension_semantics = [#tpu.dimension_semantics<arbitrary>], iteration_bounds = array<i64: 4>, scalar_prefetch = 0 : i64, scratch_operands = 0 : i64, tpu.core_type = #tpu.core_type<tc>, window_params = [{pipeline_mode = #tpu.pipeline_mode<synchronous>, transform_indices = @transform_0, window_bounds = array<i64: 2, 2048>}, {transform_indices = @transform_1, window_bounds = array<i64: 2048, 256>}, {transform_indices = @transform_2, window_bounds = array<i64: 1, 256>}, {transform_indices = @transform_3, window_bounds = array<i64: 256, 100>}, {pipeline_mode = #tpu.pipeline_mode<synchronous>, transform_indices = @transform_4, window_bounds = array<i64: 1, 100>}, {pipeline_mode = #tpu.pipeline_mode<synchronous>, transform_indices = @transform_5, window_bounds = array<i64: 2, 100>}]} {
    %c0_i32 = arith.constant 0 : i32
    %0 = arith.cmpi eq, %arg0, %c0_i32 : i32
    %1 = arith.extui %0 : i1 to i32
    %c0_i32_0 = arith.constant 0 : i32
    %2 = arith.cmpi ne, %1, %c0_i32_0 : i32
    scf.if %2 {
      %cst_14 = arith.constant 0.000000e+00 : f32
      %18 = vector.broadcast %cst_14 : f32 to vector<2x100xf32>
      %c0_15 = arith.constant 0 : index
      %c0_16 = arith.constant 0 : index
      %19 = vector.load %arg5[%c0_15, %c0_16] : memref<1x100xf32, #tpu.memory_space<vmem>>, vector<1x100xf32>
      %20 = vector.broadcast %19 : vector<1x100xf32> to vector<2x100xf32>
      %21 = arith.addf %18, %20 : vector<2x100xf32>
      %c0_17 = arith.constant 0 : index
      %c0_18 = arith.constant 0 : index
      %22 = vector.load %arg6[%c0_17, %c0_18] : memref<2x100xf32, #tpu.memory_space<vmem>>, vector<2x100xf32>
      tpu.vector_store %arg6[%c0_17, %c0_18], %21 {strides = array<i32>} : memref<2x100xf32, #tpu.memory_space<vmem>>, vector<2x100xf32>,
    } else {
    }
    %c0 = arith.constant 0 : index
    %c0_1 = arith.constant 0 : index
    %3 = vector.load %arg1[%c0, %c0_1] : memref<2x2048xf32, #tpu.memory_space<vmem>>, vector<2x2048xf32>
    %4 = arith.truncf %3 : vector<2x2048xf32> to vector<2x2048xbf16>
    %c0_2 = arith.constant 0 : index
    %c0_3 = arith.constant 0 : index
    %5 = vector.load %arg2[%c0_2, %c0_3] : memref<2048x256xbf16, #tpu.memory_space<vmem>>, vector<2048x256xbf16>
    %cst = arith.constant dense<0.000000e+00> : vector<2x256xf32>
    %6 = tpu.matmul %4, %5, %cst {dimension_numbers = #tpu.dot_dimension_numbers<[1], [0], [0], [1], [0, 0, 1, 1], [], []>} : vector<2x2048xbf16>, vector<2048x256xbf16>, vector<2x256xf32> -> vector<2x256xf32>
    %c0_4 = arith.constant 0 : index
    %c0_5 = arith.constant 0 : index
    %7 = vector.load %arg3[%c0_4, %c0_5] : memref<1x256xf32, #tpu.memory_space<vmem>>, vector<1x256xf32>
    %8 = vector.broadcast %7 : vector<1x256xf32> to vector<2x256xf32>
    %9 = arith.addf %6, %8 : vector<2x256xf32>
    %cst_6 = arith.constant 0.000000e+00 : f32
    %10 = vector.broadcast %cst_6 : f32 to vector<2x256xf32>
    %11 = arith.maximumf %9, %10 : vector<2x256xf32>
    %c0_7 = arith.constant 0 : index
    %c0_8 = arith.constant 0 : index
    %12 = vector.load %arg6[%c0_7, %c0_8] : memref<2x100xf32, #tpu.memory_space<vmem>>, vector<2x100xf32>
    %13 = arith.truncf %11 : vector<2x256xf32> to vector<2x256xbf16>
    %c0_9 = arith.constant 0 : index
    %c0_10 = arith.constant 0 : index
    %14 = vector.load %arg4[%c0_9, %c0_10] : memref<256x100xbf16, #tpu.memory_space<vmem>>, vector<256x100xbf16>
    %cst_11 = arith.constant dense<0.000000e+00> : vector<2x100xf32>
    %15 = tpu.matmul %13, %14, %cst_11 {dimension_numbers = #tpu.dot_dimension_numbers<[1], [0], [0], [1], [0, 0, 1, 1], [], []>} : vector<2x256xbf16>, vector<256x100xbf16>, vector<2x100xf32> -> vector<2x100xf32>
    %16 = arith.addf %12, %15 : vector<2x100xf32>
    %c0_12 = arith.constant 0 : index
    %c0_13 = arith.constant 0 : index
    %17 = vector.load %arg6[%c0_12, %c0_13] : memref<2x100xf32, #tpu.memory_space<vmem>>, vector<2x100xf32>
    tpu.vector_store %arg6[%c0_12, %c0_13], %16 {strides = array<i32>} : memref<2x100xf32, #tpu.memory_space<vmem>>, vector<2x100xf32>,
    return
  }
  func.func @transform_0(%arg0: i32) -> (i32, i32) {
    %c0_i32 = arith.constant 0 : i32
    %c0_i32_0 = arith.constant 0 : i32
    %c0_i32_1 = arith.constant 0 : i32
    return %c0_i32, %c0_i32_0 : i32, i32
  }
  func.func @transform_1(%arg0: i32) -> (i32, i32) {
    %c0_i32 = arith.constant 0 : i32
    %c0_i32_0 = arith.constant 0 : i32
    return %c0_i32, %arg0 : i32, i32
  }
  func.func @transform_2(%arg0: i32) -> (i32, i32) {
    %c0_i32 = arith.constant 0 : i32
    %c0_i32_0 = arith.constant 0 : i32
    return %c0_i32, %arg0 : i32, i32
  }
  func.func @transform_3(%arg0: i32) -> (i32, i32) {
    %c0_i32 = arith.constant 0 : i32
    %c0_i32_0 = arith.constant 0 : i32
    return %arg0, %c0_i32 : i32, i32
  }
  func.func @transform_4(%arg0: i32) -> (i32, i32) {
    %c0_i32 = arith.constant 0 : i32
    %c0_i32_0 = arith.constant 0 : i32
    %c0_i32_1 = arith.constant 0 : i32
    return %c0_i32, %c0_i32_0 : i32, i32
  }
  func.func @transform_5(%arg0: i32) -> (i32, i32) {
    %c0_i32 = arith.constant 0 : i32
    %c0_i32_0 = arith.constant 0 : i32
    %c0_i32_1 = arith.constant 0 : i32
    return %c0_i32, %c0_i32_0 : i32, i32
  }
}

</mosaic_0001>

<bundles_post_ra>
// kernel: forward.3
= control target key start
LH: loop header
LB: loop body
LE: loop exit
PB: predicated region body
PF: predicated region fallthrough
CT: control target
= control target key end

     0   :  { %s4430_s12 = smov 0   ;;  %s4432_s13 = smov 0   ;;  %s5921_s0 = inlined_call_operand.vmem [shape: f32[2,4096,27], index: 0, kind: input, shape index: {}]   ;;  %s5922_s1 = inlined_call_operand.vmem [shape: f32[27,64], index: 1, kind: input, shape index: {}]   ;;  %s5923_s2 = inlined_call_operand.vmem [shape: f32[1,64], index: 2, kind: input, shape index: {}]   ;;  %s5924_s3 = inlined_call_operand.vmem [shape: f32[2,256,64], index: 3, kind: output, shape index: {}]  }
   0x1   :  { %s4434_s14 = smov 0   ;;  %s4436_s15 = smov 0  }
   0x2   :  { %s4438_s16 = smov 0  }
   0x3 LB: > { %s22_s17 = sadd.s32 1, %s4399_s14  ;;  %s25_s18 = sadd.s32 1, %s4403_s15  ;;  %s4407_s16 = sphi %s4438_s16, %s13_s16   ;;  %s4403_s15 = sphi %s4436_s15, %s5929_s15   ;;  %s4399_s14 = sphi %s4434_s14, %s5928_s14   ;;  %s4395_s13 = sphi %s4432_s13, %s5927_s13   ;;  %s4391_s12 = sphi %s4430_s12, %s5926_s12  }
   0x4   : > { %p23_p0 = scmp.ge.s32.totalorder %s22_s17, 2  ;;  %p3393_p1 = scmp.ge.s32.totalorder %s4407_s16, 1 }
   0x5   : > { %p158_p2 = scmp.lt.s32.totalorder %s4407_s16, 5 }
   0x6   : > { %s5931_s17 = smov (%p23_p0, %s22_s17), 0  ;;  %s5933_s18 = smov (!%p23_p0, %s25_s18), %s4403_s15 }
   0x7   : > { %p159_p3 = pnand %p3393_p1, %p158_p2  ;;  %p27_p4 = scmp.ge.s32.totalorder %s5933_s18, 2 }
   0x8   : > { %v466_v0 = vld [vmem:[%s5922_s1] sm:$0xff] (!%p159_p3)  ;;  %v467_v1 = vld [vmem:[%s5922_s1 + $0x8] sm:$0xff] (!%p159_p3)  ;;  %v468_v2 = vld [vmem:[%s5922_s1 + $0x10] sm:$0xff] (!%p159_p3)  ;;  %vm1246_vm0 = vcmask (!%p159_p3), 1042432   ;;  %s3394_s25 = sshll.u32 (!%p159_p3), %s4391_s12, 8  ;;  %p191_p5 = scmp.lt.s32.totalorder (!%p159_p3), %s4395_s13, 1 }
   0x9   : > { %s5935_s18 = smov (%p27_p4, %s5933_s18), 0  ;;  %162 = sbr.rel (%p159_p3) target bundleno = 512 (0x200), region = 32 }
   0xa   : > { %v4312_v3 = vpack.c.bf16 (!%p159_p3), %v467_v1, %v466_v0  ;;  %v469_v4 = vld [vmem:[%s5922_s1 + $0x18] sm:$0x7] (!%p159_p3)  ;;  %p193_p6 = scmp.lt.s32.totalorder (!%p159_p3), %s3394_s25, 511  ;;  %vm4409_vm1 = vmmov (!%p159_p3), 1   ;;  %vm477_vm3 = vcmask (!%p159_p3), 220160   ;;  %vm3043_vm4 = vcmask (!%p159_p3), 523264  }
   0xb   : > { %v4316_v5 = vpack.c.bf16 (!%p159_p3), %v469_v4, %v468_v2  ;;  %vm4317_vm2 = vmpackc.low (!%p159_p3), %vm1246_vm0, %vm4409_vm1  ;;  %s3397_s9 = sshll.u32 (!%p159_p3), %s4391_s12, 4 }
   0xc   : > { %4313 = vmatprep.subr.bf16.mxu0 (!%p159_p3), %v4312_v3  ;;  %4322 = vmatprep.subr.bf16.mxu1 (!%p159_p3), %v4312_v3  ;;  %p5169_p7 = scmp.lt.s32.totalorder (!%p159_p3), %s3397_s9, 31 }
   0xd   : > { %4315 = vmatpush3.bf16.msra.mxu0 (!%p159_p3), %v4312_v3  ;;  %4324 = vmatpush3.bf16.msra.mxu1 (!%p159_p3), %v4312_v3 }
   0xe   : > { %4318 = vmatprep.subr.msk.bf16.mxu0 (!%p159_p3), %vm4317_vm2, %v4316_v5  ;;  %4323 = vmatprep.subr.msk.bf16.mxu1 (!%p159_p3), %vm4317_vm2, %v4316_v5 }
  0x10   : > { %s5937_s13 = smov (!%p191_p5, %s4395_s13), 1  ;;  %s5939_s25 = smov (!%p193_p6, %s3394_s25), 511 }
  0x11   : > { %s3395_s28 = sshll.u32 %s5937_s13, 9  ;;  %4321 = vmatpush3.bf16.msk.msra.mxu0 %vm4317_vm2, %v4316_v5  ;;  %4325 = vmatpush3.bf16.msk.msra.mxu1 %vm4317_vm2, %v4316_v5  ;;  %s5941_s9 = smov (!%p5169_p7, %s3397_s9), 31 }
  0x12   : > { %s196_s29 = sadd.s32 %s3395_s28, %s5939_s25  ;;  %s3398_s11 = sshll.u32 %s5937_s13, 5 }
  0x13   : > { %s3396_s30 = sshll.u32 %s196_s29, 3  ;;  %s5208_s12 = sadd.s32 %s3398_s11, %s5941_s9 }
  0x14   : > { %s4481_s6 = scalar_lea.vmem %s5921_s0, %s3396_s30  ;;  %s3399_s13 = sshll.u32 %s5208_s12, 3 }
  0x15   : > { %v210_v6 = vld [vmem:[%s4481_s6] sm:$0xff]  ;;  %v211_v8 = vld [vmem:[%s4481_s6 + $0x8] sm:$0xff]  ;;  %v212_v10 = vld [vmem:[%s4481_s6 + $0x10] sm:$0xff]  ;;  %s5234_s21 = scalar_lea.vmem %s5924_s3, %s3399_s13 }
  0x16   : > { %v338_v7 = vld [vmem:[%s4481_s6 + $0x400] sm:$0xff]  ;;  %3928 = vmatprep.mubr.msk.f32.mxu0 %vm477_vm3, %v210_v6  ;;  %v339_v9 = vld [vmem:[%s4481_s6 + $0x408] sm:$0xff]  ;;  %v340_v11 = vld [vmem:[%s4481_s6 + $0x410] sm:$0xff] }
  0x17   : > { %4120 = vmatprep.mubr.msk.f32.mxu1 %vm477_vm3, %v338_v7  ;;  %3929 = vmatmul.mubr.msk.f32.vlgmr.msra.gmra.mrb[0].mxu0 %vm477_vm3, %v211_v8  ;;  %v213_v12 = vld [vmem:[%s4481_s6 + $0x18] sm:$0xff]  ;;  %v214_v14 = vld [vmem:[%s4481_s6 + $0x20] sm:$0xff]  ;;  %v215_v16 = vld [vmem:[%s4481_s6 + $0x28] sm:$0xff] }
  0x18   : > { %4121 = vmatmul.mubr.msk.f32.vlgmr.msra.gmra.mrb[0].mxu1 %vm477_vm3, %v339_v9  ;;  %3931 = vmatprep.mubr.msk.f32.mxu0 %vm477_vm3, %v212_v10  ;;  %v341_v13 = vld [vmem:[%s4481_s6 + $0x418] sm:$0xff]  ;;  %v342_v15 = vld [vmem:[%s4481_s6 + $0x420] sm:$0xff]  ;;  %v343_v17 = vld [vmem:[%s4481_s6 + $0x428] sm:$0xff] }
  0x19   : > { %4123 = vmatprep.mubr.msk.f32.mxu1 %vm477_vm3, %v340_v11  ;;  %v216_v18 = vld [vmem:[%s4481_s6 + $0x30] sm:$0xff]  ;;  %v217_v20 = vld [vmem:[%s4481_s6 + $0x38] sm:$0xff]  ;;  %v218_v22 = vld [vmem:[%s4481_s6 + $0x40] sm:$0xff] }
  0x1a   : > { %v344_v19 = vld [vmem:[%s4481_s6 + $0x430] sm:$0xff]  ;;  %v345_v21 = vld [vmem:[%s4481_s6 + $0x438] sm:$0xff]  ;;  %v346_v23 = vld [vmem:[%s4481_s6 + $0x440] sm:$0xff] }
  0x1b   : > { %3932 = vmatmul.mubr.msk.f32.gmra.mrb[2].mxu0 %vm477_vm3, %v213_v12  ;;  %v219_v24 = vld [vmem:[%s4481_s6 + $0x48] sm:$0xff]  ;;  %v220_v26 = vld [vmem:[%s4481_s6 + $0x50] sm:$0xff]  ;;  %v221_v28 = vld [vmem:[%s4481_s6 + $0x58] sm:$0xff] }
  0x1c   : > { %4124 = vmatmul.mubr.msk.f32.gmra.mrb[2].mxu1 %vm477_vm3, %v341_v13  ;;  %3934 = vmatprep.mubr.msk.f32.mxu0 %vm477_vm3, %v214_v14  ;;  %v347_v25 = vld [vmem:[%s4481_s6 + $0x448] sm:$0xff]  ;;  %v348_v27 = vld [vmem:[%s4481_s6 + $0x450] sm:$0xff]  ;;  %v349_v29 = vld [vmem:[%s4481_s6 + $0x458] sm:$0xff] }
  0x1d   : > { %4126 = vmatprep.mubr.msk.f32.mxu1 %vm477_vm3, %v342_v15  ;;  %v222_v30 = vld [vmem:[%s4481_s6 + $0x60] sm:$0xff]  ;;  %v223_v32 = vld [vmem:[%s4481_s6 + $0x68] sm:$0xff]  ;;  %v224_v34 = vld [vmem:[%s4481_s6 + $0x70] sm:$0xff] }
  0x1e   : > { %v350_v31 = vld [vmem:[%s4481_s6 + $0x460] sm:$0xff]  ;;  %v351_v33 = vld [vmem:[%s4481_s6 + $0x468] sm:$0xff]  ;;  %v352_v35 = vld [vmem:[%s4481_s6 + $0x470] sm:$0xff] }
  0x1f   : > { %3935 = vmatmul.mubr.msk.f32.gmra.mrb[4].mxu0 %vm477_vm3, %v215_v16  ;;  %v225_v36 = vld [vmem:[%s4481_s6 + $0x78] sm:$0xff]  ;;  %v226_v38 = vld [vmem:[%s4481_s6 + $0x80] sm:$0xff]  ;;  %v227_v40 = vld [vmem:[%s4481_s6 + $0x88] sm:$0xff] }
  0x20   : > { %4127 = vmatmul.mubr.msk.f32.gmra.mrb[4].mxu1 %vm477_vm3, %v343_v17  ;;  %3937 = vmatprep.mubr.msk.f32.mxu0 %vm477_vm3, %v216_v18  ;;  %v353_v37 = vld [vmem:[%s4481_s6 + $0x478] sm:$0xff]  ;;  %v354_v39 = vld [vmem:[%s4481_s6 + $0x480] sm:$0xff]  ;;  %v355_v41 = vld [vmem:[%s4481_s6 + $0x488] sm:$0xff] }
  0x21   : > { %4129 = vmatprep.mubr.msk.f32.mxu1 %vm477_vm3, %v344_v19  ;;  %v228_v42 = vld [vmem:[%s4481_s6 + $0x90] sm:$0xff]  ;;  %v229_v44 = vld [vmem:[%s4481_s6 + $0x98] sm:$0xff]  ;;  %v230_v46 = vld [vmem:[%s4481_s6 + $0xa0] sm:$0xff] }
  0x22   : > { %v356_v43 = vld [vmem:[%s4481_s6 + $0x490] sm:$0xff]  ;;  %v357_v45 = vld [vmem:[%s4481_s6 + $0x498] sm:$0xff]  ;;  %v358_v47 = vld [vmem:[%s4481_s6 + $0x4a0] sm:$0xff] }
  0x23   : > { %3938 = vmatmul.mubr.msk.f32.gmra.mrb[6].mxu0 %vm477_vm3, %v217_v20  ;;  %v231_v48 = vld [vmem:[%s4481_s6 + $0xa8] sm:$0xff]  ;;  %v232_v50 = vld [vmem:[%s4481_s6 + $0xb0] sm:$0xff]  ;;  %v233_v52 = vld [vmem:[%s4481_s6 + $0xb8] sm:$0xff] }
  0x24   : > { %4130 = vmatmul.mubr.msk.f32.gmra.mrb[6].mxu1 %vm477_vm3, %v345_v21  ;;  %3940 = vmatprep.mubr.msk.f32.mxu0 %vm477_vm3, %v218_v22  ;;  %v359_v49 = vld [vmem:[%s4481_s6 + $0x4a8] sm:$0xff]  ;;  %v360_v51 = vld [vmem:[%s4481_s6 + $0x4b0] sm:$0xff]  ;;  %v361_v53 = vld [vmem:[%s4481_s6 + $0x4b8] sm:$0xff] }
  0x25   : > { %4132 = vmatprep.mubr.msk.f32.mxu1 %vm477_vm3, %v346_v23  ;;  %v234_v54 = vld [vmem:[%s4481_s6 + $0xc0] sm:$0xff]  ;;  %v235_v56 = vld [vmem:[%s4481_s6 + $0xc8] sm:$0xff]  ;;  %v236_v58 = vld [vmem:[%s4481_s6 + $0xd0] sm:$0xff] }
  0x26   : > { %v362_v55 = vld [vmem:[%s4481_s6 + $0x4c0] sm:$0xff]  ;;  %v363_v57 = vld [vmem:[%s4481_s6 + $0x4c8] sm:$0xff]  ;;  %v364_v59 = vld [vmem:[%s4481_s6 + $0x4d0] sm:$0xff] }
  0x27   : > { %3941 = vmatmul.mubr.msk.f32.gmra.mrb[8].mxu0 %vm477_vm3, %v219_v24  ;;  %v237_v60 = vld [vmem:[%s4481_s6 + $0xd8] sm:$0xff]  ;;  %v238_v62 = vld [vmem:[%s4481_s6 + $0xe0] sm:$0xff]  ;;  %v239_v0 = vld [vmem:[%s4481_s6 + $0xe8] sm:$0xff] }
  0x28   : > { %4133 = vmatmul.mubr.msk.f32.gmra.mrb[8].mxu1 %vm477_vm3, %v347_v25  ;;  %3943 = vmatprep.mubr.msk.f32.mxu0 %vm477_vm3, %v220_v26  ;;  %v365_v61 = vld [vmem:[%s4481_s6 + $0x4d8] sm:$0xff]  ;;  %v366_v63 = vld [vmem:[%s4481_s6 + $0x4e0] sm:$0xff]  ;;  %v367_v1 = vld [vmem:[%s4481_s6 + $0x4e8] sm:$0xff] }
  0x29   : > { %4135 = vmatprep.mubr.msk.f32.mxu1 %vm477_vm3, %v348_v27  ;;  %v240_v2 = vld [vmem:[%s4481_s6 + $0xf0] sm:$0xff]  ;;  %v241_v4 = vld [vmem:[%s4481_s6 + $0xf8] sm:$0xff]  ;;  %v242_v6 = vld [vmem:[%s4481_s6 + $0x100] sm:$0xff] }
  0x2a   : > { %v368_v3 = vld [vmem:[%s4481_s6 + $0x4f0] sm:$0xff]  ;;  %v369_v5 = vld [vmem:[%s4481_s6 + $0x4f8] sm:$0xff]  ;;  %v370_v7 = vld [vmem:[%s4481_s6 + $0x500] sm:$0xff] }
  0x2b   : > { %3944 = vmatmul.mubr.msk.f32.gmra.mrb[10].mxu0 %vm477_vm3, %v221_v28  ;;  %v243_v8 = vld [vmem:[%s4481_s6 + $0x108] sm:$0xff]  ;;  %v244_v10 = vld [vmem:[%s4481_s6 + $0x110] sm:$0xff]  ;;  %v245_v12 = vld [vmem:[%s4481_s6 + $0x118] sm:$0xff] }
  0x2c   : > { %4136 = vmatmul.mubr.msk.f32.gmra.mrb[10].mxu1 %vm477_vm3, %v349_v29  ;;  %3946 = vmatprep.mubr.msk.f32.mxu0 %vm477_vm3, %v222_v30  ;;  %v371_v9 = vld [vmem:[%s4481_s6 + $0x508] sm:$0xff]  ;;  %v372_v11 = vld [vmem:[%s4481_s6 + $0x510] sm:$0xff]  ;;  %v373_v13 = vld [vmem:[%s4481_s6 + $0x518] sm:$0xff] }
  0x2d   : > { %4138 = vmatprep.mubr.msk.f32.mxu1 %vm477_vm3, %v350_v31  ;;  %v246_v14 = vld [vmem:[%s4481_s6 + $0x120] sm:$0xff]  ;;  %v247_v16 = vld [vmem:[%s4481_s6 + $0x128] sm:$0xff]  ;;  %v248_v18 = vld [vmem:[%s4481_s6 + $0x130] sm:$0xff] }
  0x2e   : > { %v374_v15 = vld [vmem:[%s4481_s6 + $0x520] sm:$0xff]  ;;  %v375_v17 = vld [vmem:[%s4481_s6 + $0x528] sm:$0xff]  ;;  %v376_v19 = vld [vmem:[%s4481_s6 + $0x530] sm:$0xff] }
  0x2f   : > { %3947 = vmatmul.mubr.msk.f32.gmra.mrb[12].mxu0 %vm477_vm3, %v223_v32  ;;  %v249_v20 = vld [vmem:[%s4481_s6 + $0x138] sm:$0xff]  ;;  %v250_v22 = vld [vmem:[%s4481_s6 + $0x140] sm:$0xff]  ;;  %v251_v24 = vld [vmem:[%s4481_s6 + $0x148] sm:$0xff] }
  0x30   : > { %4139 = vmatmul.mubr.msk.f32.gmra.mrb[12].mxu1 %vm477_vm3, %v351_v33  ;;  %3949 = vmatprep.mubr.msk.f32.mxu0 %vm477_vm3, %v224_v34  ;;  %v377_v21 = vld [vmem:[%s4481_s6 + $0x538] sm:$0xff]  ;;  %v378_v23 = vld [vmem:[%s4481_s6 + $0x540] sm:$0xff]  ;;  %v379_v25 = vld [vmem:[%s4481_s6 + $0x548] sm:$0xff] }
  0x31   : > { %4141 = vmatprep.mubr.msk.f32.mxu1 %vm477_vm3, %v352_v35  ;;  %v252_v26 = vld [vmem:[%s4481_s6 + $0x150] sm:$0xff]  ;;  %v253_v28 = vld [vmem:[%s4481_s6 + $0x158] sm:$0xff]  ;;  %v254_v30 = vld [vmem:[%s4481_s6 + $0x160] sm:$0xff] }
  0x32   : > { %v380_v27 = vld [vmem:[%s4481_s6 + $0x550] sm:$0xff]  ;;  %v381_v29 = vld [vmem:[%s4481_s6 + $0x558] sm:$0xff]  ;;  %v382_v31 = vld [vmem:[%s4481_s6 + $0x560] sm:$0xff] }
  0x33   : > { %3950 = vmatmul.mubr.msk.f32.gmra.mrb[14].mxu0 %vm477_vm3, %v225_v36  ;;  %v255_v32 = vld [vmem:[%s4481_s6 + $0x168] sm:$0xff]  ;;  %v256_v34 = vld [vmem:[%s4481_s6 + $0x170] sm:$0xff]  ;;  %v257_v36 = vld [vmem:[%s4481_s6 + $0x178] sm:$0xff] }
  0x34   : > { %4142 = vmatmul.mubr.msk.f32.gmra.mrb[14].mxu1 %vm477_vm3, %v353_v37  ;;  %3952 = vmatprep.mubr.msk.f32.mxu0 %vm477_vm3, %v226_v38  ;;  %v383_v33 = vld [vmem:[%s4481_s6 + $0x568] sm:$0xff]  ;;  %v384_v35 = vld [vmem:[%s4481_s6 + $0x570] sm:$0xff]  ;;  %v385_v37 = vld [vmem:[%s4481_s6 + $0x578] sm:$0xff] }
  0x35   : > { %4144 = vmatprep.mubr.msk.f32.mxu1 %vm477_vm3, %v354_v39  ;;  %v258_v38 = vld [vmem:[%s4481_s6 + $0x180] sm:$0xff] }
  0x36   : > { %v386_v39 = vld [vmem:[%s4481_s6 + $0x580] sm:$0xff] }
  0x37   : > { %3953 = vmatmul.mubr.msk.f32.gmra.mrb[16].mxu0 %vm477_vm3, %v227_v40  ;;  %v259_v40 = vld [vmem:[%s4481_s6 + $0x188] sm:$0xff] }
  0x38   : > { %4145 = vmatmul.mubr.msk.f32.gmra.mrb[16].mxu1 %vm477_vm3, %v355_v41  ;;  %3955 = vmatprep.mubr.msk.f32.mxu0 %vm477_vm3, %v228_v42  ;;  %v387_v41 = vld [vmem:[%s4481_s6 + $0x588] sm:$0xff]  ;;  %v260_v42 = vld [vmem:[%s4481_s6 + $0x190] sm:$0xff] }
  0x39   : > { %4147 = vmatprep.mubr.msk.f32.mxu1 %vm477_vm3, %v356_v43  ;;  %v388_v43 = vld [vmem:[%s4481_s6 + $0x590] sm:$0xff] }
  0x3b   : > { %3956 = vmatmul.mubr.msk.f32.gmra.mrb[18].mxu0 %vm477_vm3, %v229_v44  ;;  %v261_v44 = vld [vmem:[%s4481_s6 + $0x198] sm:$0xff] }
  0x3c   : > { %4148 = vmatmul.mubr.msk.f32.gmra.mrb[18].mxu1 %vm477_vm3, %v357_v45  ;;  %3958 = vmatprep.mubr.msk.f32.mxu0 %vm477_vm3, %v230_v46  ;;  %v389_v45 = vld [vmem:[%s4481_s6 + $0x598] sm:$0xff]  ;;  %v262_v46 = vld [vmem:[%s4481_s6 + $0x1a0] sm:$0xff] }
  0x3d   : > { %4150 = vmatprep.mubr.msk.f32.mxu1 %vm477_vm3, %v358_v47  ;;  %v390_v47 = vld [vmem:[%s4481_s6 + $0x5a0] sm:$0xff] }
  0x3f   : > { %3959 = vmatmul.mubr.msk.f32.gmra.mrb[20].mxu0 %vm477_vm3, %v231_v48  ;;  %v263_v48 = vld [vmem:[%s4481_s6 + $0x1a8] sm:$0xff] }
  0x40   : > { %4151 = vmatmul.mubr.msk.f32.gmra.mrb[20].mxu1 %vm477_vm3, %v359_v49  ;;  %3961 = vmatprep.mubr.msk.f32.mxu0 %vm477_vm3, %v232_v50  ;;  %v391_v49 = vld [vmem:[%s4481_s6 + $0x5a8] sm:$0xff]  ;;  %v264_v50 = vld [vmem:[%s4481_s6 + $0x1b0] sm:$0xff] }
  0x41   : > { %4153 = vmatprep.mubr.msk.f32.mxu1 %vm477_vm3, %v360_v51  ;;  %v392_v51 = vld [vmem:[%s4481_s6 + $0x5b0] sm:$0xff] }
  0x43   : > { %3962 = vmatmul.mubr.msk.f32.gmra.mrb[22].mxu0 %vm477_vm3, %v233_v52  ;;  %v265_v52 = vld [vmem:[%s4481_s6 + $0x1b8] sm:$0xff] }
  0x44   : > { %4154 = vmatmul.mubr.msk.f32.gmra.mrb[22].mxu1 %vm477_vm3, %v361_v53  ;;  %3964 = vmatprep.mubr.msk.f32.mxu0 %vm477_vm3, %v234_v54  ;;  %v393_v53 = vld [vmem:[%s4481_s6 + $0x5b8] sm:$0xff]  ;;  %v266_v54 = vld [vmem:[%s4481_s6 + $0x1c0] sm:$0xff] }
  0x45   : > { %4156 = vmatprep.mubr.msk.f32.mxu1 %vm477_vm3, %v362_v55  ;;  %v394_v55 = vld [vmem:[%s4481_s6 + $0x5c0] sm:$0xff] }
  0x47   : > { %3965 = vmatmul.mubr.msk.f32.gmra.mrb[24].mxu0 %vm477_vm3, %v235_v56  ;;  %v267_v56 = vld [vmem:[%s4481_s6 + $0x1c8] sm:$0xff] }
  0x48   : > { %4157 = vmatmul.mubr.msk.f32.gmra.mrb[24].mxu1 %vm477_vm3, %v363_v57  ;;  %3967 = vmatprep.mubr.msk.f32.mxu0 %vm477_vm3, %v236_v58  ;;  %v395_v57 = vld [vmem:[%s4481_s6 + $0x5c8] sm:$0xff]  ;;  %v268_v58 = vld [vmem:[%s4481_s6 + $0x1d0] sm:$0xff] }
  0x49   : > { %4159 = vmatprep.mubr.msk.f32.mxu1 %vm477_vm3, %v364_v59  ;;  %v396_v59 = vld [vmem:[%s4481_s6 + $0x5d0] sm:$0xff] }
  0x4b   : > { %3968 = vmatmul.mubr.msk.f32.gmra.mrb[26].mxu0 %vm477_vm3, %v237_v60  ;;  %v269_v60 = vld [vmem:[%s4481_s6 + $0x1d8] sm:$0xff] }
  0x4c   : > { %4160 = vmatmul.mubr.msk.f32.gmra.mrb[26].mxu1 %vm477_vm3, %v365_v61  ;;  %3970 = vmatprep.mubr.msk.f32.mxu0 %vm477_vm3, %v238_v62  ;;  %v397_v61 = vld [vmem:[%s4481_s6 + $0x5d8] sm:$0xff]  ;;  %v270_v62 = vld [vmem:[%s4481_s6 + $0x1e0] sm:$0xff] }
  0x4d   : > { %4162 = vmatprep.mubr.msk.f32.mxu1 %vm477_vm3, %v366_v63  ;;  %v398_v63 = vld [vmem:[%s4481_s6 + $0x5e0] sm:$0xff] }
  0x4f   : > { %3971 = vmatmul.mubr.msk.f32.gmra.mrb[28].mxu0 %vm477_vm3, %v239_v0  ;;  %v271_v0 = vld [vmem:[%s4481_s6 + $0x1e8] sm:$0xff] }
  0x50   : > { %4163 = vmatmul.mubr.msk.f32.gmra.mrb[28].mxu1 %vm477_vm3, %v367_v1  ;;  %3973 = vmatprep.mubr.msk.f32.mxu0 %vm477_vm3, %v240_v2  ;;  %v399_v1 = vld [vmem:[%s4481_s6 + $0x5e8] sm:$0xff]  ;;  %v272_v2 = vld [vmem:[%s4481_s6 + $0x1f0] sm:$0xff] }
  0x51   : > { %4165 = vmatprep.mubr.msk.f32.mxu1 %vm477_vm3, %v368_v3  ;;  %v400_v3 = vld [vmem:[%s4481_s6 + $0x5f0] sm:$0xff] }
  0x53   : > { %3974 = vmatmul.mubr.msk.f32.gmra.mrb[30].mxu0 %vm477_vm3, %v241_v4  ;;  %v273_v4 = vld [vmem:[%s4481_s6 + $0x1f8] sm:$0xff] }
  0x54   : > { %4166 = vmatmul.mubr.msk.f32.gmra.mrb[30].mxu1 %vm477_vm3, %v369_v5  ;;  %3976 = vmatprep.mubr.msk.f32.mxu0 %vm477_vm3, %v242_v6  ;;  %v401_v5 = vld [vmem:[%s4481_s6 + $0x5f8] sm:$0xff]  ;;  %v274_v6 = vld [vmem:[%s4481_s6 + $0x200] sm:$0xff] }
  0x55   : > { %4168 = vmatprep.mubr.msk.f32.mxu1 %vm477_vm3, %v370_v7  ;;  %v402_v7 = vld [vmem:[%s4481_s6 + $0x600] sm:$0xff] }
  0x57   : > { %3977 = vmatmul.mubr.msk.f32.gmra.mrb[32].mxu0 %vm477_vm3, %v243_v8  ;;  %v275_v8 = vld [vmem:[%s4481_s6 + $0x208] sm:$0xff] }
  0x58   : > { %4169 = vmatmul.mubr.msk.f32.gmra.mrb[32].mxu1 %vm477_vm3, %v371_v9  ;;  %3979 = vmatprep.mubr.msk.f32.mxu0 %vm477_vm3, %v244_v10  ;;  %v403_v9 = vld [vmem:[%s4481_s6 + $0x608] sm:$0xff]  ;;  %v276_v10 = vld [vmem:[%s4481_s6 + $0x210] sm:$0xff] }
  0x59   : > { %4171 = vmatprep.mubr.msk.f32.mxu1 %vm477_vm3, %v372_v11  ;;  %v404_v11 = vld [vmem:[%s4481_s6 + $0x610] sm:$0xff] }
  0x5b   : > { %3980 = vmatmul.mubr.msk.f32.gmra.mrb[34].mxu0 %vm477_vm3, %v245_v12  ;;  %v277_v12 = vld [vmem:[%s4481_s6 + $0x218] sm:$0xff] }
  0x5c   : > { %4172 = vmatmul.mubr.msk.f32.gmra.mrb[34].mxu1 %vm477_vm3, %v373_v13  ;;  %3982 = vmatprep.mubr.msk.f32.mxu0 %vm477_vm3, %v246_v14  ;;  %v405_v13 = vld [vmem:[%s4481_s6 + $0x618] sm:$0xff]  ;;  %v278_v14 = vld [vmem:[%s4481_s6 + $0x220] sm:$0xff] }
  0x5d   : > { %4174 = vmatprep.mubr.msk.f32.mxu1 %vm477_vm3, %v374_v15  ;;  %v406_v15 = vld [vmem:[%s4481_s6 + $0x620] sm:$0xff] }
  0x5f   : > { %3983 = vmatmul.mubr.msk.f32.gmra.mrb[36].mxu0 %vm477_vm3, %v247_v16  ;;  %v279_v16 = vld [vmem:[%s4481_s6 + $0x228] sm:$0xff] }
  0x60   : > { %4175 = vmatmul.mubr.msk.f32.gmra.mrb[36].mxu1 %vm477_vm3, %v375_v17  ;;  %3985 = vmatprep.mubr.msk.f32.mxu0 %vm477_vm3, %v248_v18  ;;  %v407_v17 = vld [vmem:[%s4481_s6 + $0x628] sm:$0xff]  ;;  %v280_v18 = vld [vmem:[%s4481_s6 + $0x230] sm:$0xff] }
  0x61   : > { %4177 = vmatprep.mubr.msk.f32.mxu1 %vm477_vm3, %v376_v19  ;;  %v408_v19 = vld [vmem:[%s4481_s6 + $0x630] sm:$0xff] }
  0x63   : > { %3986 = vmatmul.mubr.msk.f32.gmra.mrb[38].mxu0 %vm477_vm3, %v249_v20  ;;  %v281_v20 = vld [vmem:[%s4481_s6 + $0x238] sm:$0xff] }
  0x64   : > { %4178 = vmatmul.mubr.msk.f32.gmra.mrb[38].mxu1 %vm477_vm3, %v377_v21  ;;  %3988 = vmatprep.mubr.msk.f32.mxu0 %vm477_vm3, %v250_v22  ;;  %v409_v21 = vld [vmem:[%s4481_s6 + $0x638] sm:$0xff]  ;;  %v282_v22 = vld [vmem:[%s4481_s6 + $0x240] sm:$0xff] }
  0x65   : > { %4180 = vmatprep.mubr.msk.f32.mxu1 %vm477_vm3, %v378_v23  ;;  %v410_v23 = vld [vmem:[%s4481_s6 + $0x640] sm:$0xff] }
  0x67   : > { %3989 = vmatmul.mubr.msk.f32.gmra.mrb[40].mxu0 %vm477_vm3, %v251_v24  ;;  %v283_v24 = vld [vmem:[%s4481_s6 + $0x248] sm:$0xff] }
  0x68   : > { %4181 = vmatmul.mubr.msk.f32.gmra.mrb[40].mxu1 %vm477_vm3, %v379_v25  ;;  %3991 = vmatprep.mubr.msk.f32.mxu0 %vm477_vm3, %v252_v26  ;;  %v411_v25 = vld [vmem:[%s4481_s6 + $0x648] sm:$0xff]  ;;  %v284_v26 = vld [vmem:[%s4481_s6 + $0x250] sm:$0xff] }
  0x69   : > { %4183 = vmatprep.mubr.msk.f32.mxu1 %vm477_vm3, %v380_v27  ;;  %v412_v27 = vld [vmem:[%s4481_s6 + $0x650] sm:$0xff] }
  0x6b   : > { %3992 = vmatmul.mubr.msk.f32.gmra.mrb[42].mxu0 %vm477_vm3, %v253_v28  ;;  %v285_v28 = vld [vmem:[%s4481_s6 + $0x258] sm:$0xff] }
  0x6c   : > { %4184 = vmatmul.mubr.msk.f32.gmra.mrb[42].mxu1 %vm477_vm3, %v381_v29  ;;  %3994 = vmatprep.mubr.msk.f32.mxu0 %vm477_vm3, %v254_v30  ;;  %v413_v29 = vld [vmem:[%s4481_s6 + $0x658] sm:$0xff]  ;;  %v286_v30 = vld [vmem:[%s4481_s6 + $0x260] sm:$0xff] }
  0x6d   : > { %4186 = vmatprep.mubr.msk.f32.mxu1 %vm477_vm3, %v382_v31  ;;  %v414_v31 = vld [vmem:[%s4481_s6 + $0x660] sm:$0xff] }
  0x6f   : > { %3995 = vmatmul.mubr.msk.f32.gmra.mrb[44].mxu0 %vm477_vm3, %v255_v32  ;;  %v287_v32 = vld [vmem:[%s4481_s6 + $0x268] sm:$0xff] }
  0x70   : > { %4187 = vmatmul.mubr.msk.f32.gmra.mrb[44].mxu1 %vm477_vm3, %v383_v33  ;;  %3997 = vmatprep.mubr.msk.f32.mxu0 %vm477_vm3, %v256_v34  ;;  %v415_v33 = vld [vmem:[%s4481_s6 + $0x668] sm:$0xff]  ;;  %v288_v34 = vld [vmem:[%s4481_s6 + $0x270] sm:$0xff] }
  0x71   : > { %4189 = vmatprep.mubr.msk.f32.mxu1 %vm477_vm3, %v384_v35  ;;  %v416_v35 = vld [vmem:[%s4481_s6 + $0x670] sm:$0xff] }
  0x73   : > { %3998 = vmatmul.mubr.msk.f32.gmra.mrb[46].mxu0 %vm477_vm3, %v257_v36  ;;  %v289_v36 = vld [vmem:[%s4481_s6 + $0x278] sm:$0xff] }
  0x74   : > { %4190 = vmatmul.mubr.msk.f32.gmra.mrb[46].mxu1 %vm477_vm3, %v385_v37  ;;  %4000 = vmatprep.mubr.msk.f32.mxu0 %vm477_vm3, %v258_v38  ;;  %v417_v37 = vld [vmem:[%s4481_s6 + $0x678] sm:$0xff]  ;;  %v290_v38 = vld [vmem:[%s4481_s6 + $0x280] sm:$0xff] }
  0x75   : > { %4192 = vmatprep.mubr.msk.f32.mxu1 %vm477_vm3, %v386_v39  ;;  %v418_v39 = vld [vmem:[%s4481_s6 + $0x680] sm:$0xff] }
  0x77   : > { %4001 = vmatmul.mubr.msk.f32.gmra.mrb[48].mxu0 %vm477_vm3, %v259_v40  ;;  %v291_v40 = vld [vmem:[%s4481_s6 + $0x288] sm:$0xff] }
  0x78   : > { %4193 = vmatmul.mubr.msk.f32.gmra.mrb[48].mxu1 %vm477_vm3, %v387_v41  ;;  %4003 = vmatprep.mubr.msk.f32.mxu0 %vm477_vm3, %v260_v42  ;;  %v419_v41 = vld [vmem:[%s4481_s6 + $0x688] sm:$0xff]  ;;  %v292_v42 = vld [vmem:[%s4481_s6 + $0x290] sm:$0xff] }
  0x79   : > { %4195 = vmatprep.mubr.msk.f32.mxu1 %vm477_vm3, %v388_v43  ;;  %v420_v43 = vld [vmem:[%s4481_s6 + $0x690] sm:$0xff] }
  0x7b   : > { %4004 = vmatmul.mubr.msk.f32.gmra.mrb[50].mxu0 %vm477_vm3, %v261_v44  ;;  %v293_v44 = vld [vmem:[%s4481_s6 + $0x298] sm:$0xff] }
  0x7c   : > { %4196 = vmatmul.mubr.msk.f32.gmra.mrb[50].mxu1 %vm477_vm3, %v389_v45  ;;  %4006 = vmatprep.mubr.msk.f32.mxu0 %vm477_vm3, %v262_v46  ;;  %v421_v45 = vld [vmem:[%s4481_s6 + $0x698] sm:$0xff]  ;;  %v294_v46 = vld [vmem:[%s4481_s6 + $0x2a0] sm:$0xff] }
  0x7d   : > { %4198 = vmatprep.mubr.msk.f32.mxu1 %vm477_vm3, %v390_v47  ;;  %v422_v47 = vld [vmem:[%s4481_s6 + $0x6a0] sm:$0xff] }
  0x7f   : > { %4007 = vmatmul.mubr.msk.f32.gmra.mrb[52].mxu0 %vm477_vm3, %v263_v48  ;;  %v295_v48 = vld [vmem:[%s4481_s6 + $0x2a8] sm:$0xff] }
  0x80   : > { %4199 = vmatmul.mubr.msk.f32.gmra.mrb[52].mxu1 %vm477_vm3, %v391_v49  ;;  %4009 = vmatprep.mubr.msk.f32.mxu0 %vm477_vm3, %v264_v50  ;;  %v423_v49 = vld [vmem:[%s4481_s6 + $0x6a8] sm:$0xff]  ;;  %v296_v50 = vld [vmem:[%s4481_s6 + $0x2b0] sm:$0xff] }
  0x81   : > { %4201 = vmatprep.mubr.msk.f32.mxu1 %vm477_vm3, %v392_v51  ;;  %v424_v51 = vld [vmem:[%s4481_s6 + $0x6b0] sm:$0xff] }
  0x83   : > { %4010 = vmatmul.mubr.msk.f32.gmra.mrb[54].mxu0 %vm477_vm3, %v265_v52  ;;  %v297_v52 = vld [vmem:[%s4481_s6 + $0x2b8] sm:$0xff] }
  0x84   : > { %4202 = vmatmul.mubr.msk.f32.gmra.mrb[54].mxu1 %vm477_vm3, %v393_v53  ;;  %4012 = vmatprep.mubr.msk.f32.mxu0 %vm477_vm3, %v266_v54  ;;  %v425_v53 = vld [vmem:[%s4481_s6 + $0x6b8] sm:$0xff]  ;;  %v298_v54 = vld [vmem:[%s4481_s6 + $0x2c0] sm:$0xff] }
  0x85   : > { %4204 = vmatprep.mubr.msk.f32.mxu1 %vm477_vm3, %v394_v55  ;;  %v426_v55 = vld [vmem:[%s4481_s6 + $0x6c0] sm:$0xff] }
  0x87   : > { %4013 = vmatmul.mubr.msk.f32.gmra.mrb[56].mxu0 %vm477_vm3, %v267_v56  ;;  %v299_v56 = vld [vmem:[%s4481_s6 + $0x2c8] sm:$0xff] }
  0x88   : > { %4205 = vmatmul.mubr.msk.f32.gmra.mrb[56].mxu1 %vm477_vm3, %v395_v57  ;;  %4015 = vmatprep.mubr.msk.f32.mxu0 %vm477_vm3, %v268_v58  ;;  %v427_v57 = vld [vmem:[%s4481_s6 + $0x6c8] sm:$0xff]  ;;  %v300_v58 = vld [vmem:[%s4481_s6 + $0x2d0] sm:$0xff] }
  0x89   : > { %4207 = vmatprep.mubr.msk.f32.mxu1 %vm477_vm3, %v396_v59  ;;  %v428_v59 = vld [vmem:[%s4481_s6 + $0x6d0] sm:$0xff] }
  0x8b   : > { %4016 = vmatmul.mubr.msk.f32.gmra.mrb[58].mxu0 %vm477_vm3, %v269_v60  ;;  %v301_v60 = vld [vmem:[%s4481_s6 + $0x2d8] sm:$0xff] }
  0x8c   : > { %4208 = vmatmul.mubr.msk.f32.gmra.mrb[58].mxu1 %vm477_vm3, %v397_v61  ;;  %4018 = vmatprep.mubr.msk.f32.mxu0 %vm477_vm3, %v270_v62  ;;  %v429_v61 = vld [vmem:[%s4481_s6 + $0x6d8] sm:$0xff]  ;;  %v302_v62 = vld [vmem:[%s4481_s6 + $0x2e0] sm:$0xff] }
  0x8d   : > { %4210 = vmatprep.mubr.msk.f32.mxu1 %vm477_vm3, %v398_v63  ;;  %v430_v63 = vld [vmem:[%s4481_s6 + $0x6e0] sm:$0xff] }
  0x8f   : > { %4019 = vmatmul.mubr.msk.f32.gmra.mrb[60].mxu0 %vm477_vm3, %v271_v0  ;;  %v303_v0 = vld [vmem:[%s4481_s6 + $0x2e8] sm:$0xff] }
  0x90   : > { %4211 = vmatmul.mubr.msk.f32.gmra.mrb[60].mxu1 %vm477_vm3, %v399_v1  ;;  %4021 = vmatprep.mubr.msk.f32.mxu0 %vm477_vm3, %v272_v2  ;;  %v431_v1 = vld [vmem:[%s4481_s6 + $0x6e8] sm:$0xff]  ;;  %v304_v2 = vld [vmem:[%s4481_s6 + $0x2f0] sm:$0xff] }
  0x91   : > { %4213 = vmatprep.mubr.msk.f32.mxu1 %vm477_vm3, %v400_v3  ;;  %v432_v3 = vld [vmem:[%s4481_s6 + $0x6f0] sm:$0xff] }
  0x93   : > { %4022 = vmatmul.mubr.msk.f32.gmra.mrb[62].mxu0 %vm477_vm3, %v273_v4  ;;  %v305_v4 = vld [vmem:[%s4481_s6 + $0x2f8] sm:$0xff] }
  0x94   : > { %4214 = vmatmul.mubr.msk.f32.gmra.mrb[62].mxu1 %vm477_vm3, %v401_v5  ;;  %4024 = vmatprep.mubr.msk.f32.mxu0 %vm477_vm3, %v274_v6  ;;  %v433_v5 = vld [vmem:[%s4481_s6 + $0x6f8] sm:$0xff]  ;;  %v306_v6 = vld [vmem:[%s4481_s6 + $0x300] sm:$0xff] }
  0x95   : > { %4216 = vmatprep.mubr.msk.f32.mxu1 %vm477_vm3, %v402_v7  ;;  %v434_v7 = vld [vmem:[%s4481_s6 + $0x700] sm:$0xff] }
  0x97   : > { %4025 = vmatmul.mubr.msk.f32.gmra.mrb[64].mxu0 %vm477_vm3, %v275_v8  ;;  %v307_v8 = vld [vmem:[%s4481_s6 + $0x308] sm:$0xff] }
  0x98   : > { %4217 = vmatmul.mubr.msk.f32.gmra.mrb[64].mxu1 %vm477_vm3, %v403_v9  ;;  %4027 = vmatprep.mubr.msk.f32.mxu0 %vm477_vm3, %v276_v10  ;;  %v435_v9 = vld [vmem:[%s4481_s6 + $0x708] sm:$0xff]  ;;  %v308_v10 = vld [vmem:[%s4481_s6 + $0x310] sm:$0xff] }
  0x99   : > { %4219 = vmatprep.mubr.msk.f32.mxu1 %vm477_vm3, %v404_v11  ;;  %v436_v11 = vld [vmem:[%s4481_s6 + $0x710] sm:$0xff] }
  0x9b   : > { %4028 = vmatmul.mubr.msk.f32.gmra.mrb[66].mxu0 %vm477_vm3, %v277_v12  ;;  %v309_v12 = vld [vmem:[%s4481_s6 + $0x318] sm:$0xff] }
  0x9c   : > { %4220 = vmatmul.mubr.msk.f32.gmra.mrb[66].mxu1 %vm477_vm3, %v405_v13  ;;  %4030 = vmatprep.mubr.msk.f32.mxu0 %vm477_vm3, %v278_v14  ;;  %v437_v13 = vld [vmem:[%s4481_s6 + $0x718] sm:$0xff]  ;;  %v310_v14 = vld [vmem:[%s4481_s6 + $0x320] sm:$0xff] }
  0x9d   : > { %4222 = vmatprep.mubr.msk.f32.mxu1 %vm477_vm3, %v406_v15  ;;  %v438_v15 = vld [vmem:[%s4481_s6 + $0x720] sm:$0xff] }
  0x9f   : > { %4031 = vmatmul.mubr.msk.f32.gmra.mrb[68].mxu0 %vm477_vm3, %v279_v16  ;;  %v311_v16 = vld [vmem:[%s4481_s6 + $0x328] sm:$0xff] }
  0xa0   : > { %4223 = vmatmul.mubr.msk.f32.gmra.mrb[68].mxu1 %vm477_vm3, %v407_v17  ;;  %4033 = vmatprep.mubr.msk.f32.mxu0 %vm477_vm3, %v280_v18  ;;  %v439_v17 = vld [vmem:[%s4481_s6 + $0x728] sm:$0xff]  ;;  %v312_v18 = vld [vmem:[%s4481_s6 + $0x330] sm:$0xff] }
  0xa1   : > { %4225 = vmatprep.mubr.msk.f32.mxu1 %vm477_vm3, %v408_v19  ;;  %v440_v19 = vld [vmem:[%s4481_s6 + $0x730] sm:$0xff] }
  0xa3   : > { %4034 = vmatmul.mubr.msk.f32.gmra.mrb[70].mxu0 %vm477_vm3, %v281_v20  ;;  %v313_v20 = vld [vmem:[%s4481_s6 + $0x338] sm:$0xff] }
  0xa4   : > { %4226 = vmatmul.mubr.msk.f32.gmra.mrb[70].mxu1 %vm477_vm3, %v409_v21  ;;  %4036 = vmatprep.mubr.msk.f32.mxu0 %vm477_vm3, %v282_v22  ;;  %v441_v21 = vld [vmem:[%s4481_s6 + $0x738] sm:$0xff]  ;;  %v314_v22 = vld [vmem:[%s4481_s6 + $0x340] sm:$0xff] }
  0xa5   : > { %4228 = vmatprep.mubr.msk.f32.mxu1 %vm477_vm3, %v410_v23  ;;  %v442_v23 = vld [vmem:[%s4481_s6 + $0x740] sm:$0xff] }
  0xa7   : > { %4037 = vmatmul.mubr.msk.f32.gmra.mrb[72].mxu0 %vm477_vm3, %v283_v24  ;;  %v315_v24 = vld [vmem:[%s4481_s6 + $0x348] sm:$0xff] }
  0xa8   : > { %4229 = vmatmul.mubr.msk.f32.gmra.mrb[72].mxu1 %vm477_vm3, %v411_v25  ;;  %4039 = vmatprep.mubr.msk.f32.mxu0 %vm477_vm3, %v284_v26  ;;  %v443_v25 = vld [vmem:[%s4481_s6 + $0x748] sm:$0xff]  ;;  %v316_v26 = vld [vmem:[%s4481_s6 + $0x350] sm:$0xff] }
  0xa9   : > { %4231 = vmatprep.mubr.msk.f32.mxu1 %vm477_vm3, %v412_v27  ;;  %v444_v27 = vld [vmem:[%s4481_s6 + $0x750] sm:$0xff] }
  0xab   : > { %4040 = vmatmul.mubr.msk.f32.gmra.mrb[74].mxu0 %vm477_vm3, %v285_v28  ;;  %v317_v28 = vld [vmem:[%s4481_s6 + $0x358] sm:$0xff] }
  0xac   : > { %4232 = vmatmul.mubr.msk.f32.gmra.mrb[74].mxu1 %vm477_vm3, %v413_v29  ;;  %4042 = vmatprep.mubr.msk.f32.mxu0 %vm477_vm3, %v286_v30  ;;  %v445_v29 = vld [vmem:[%s4481_s6 + $0x758] sm:$0xff]  ;;  %v318_v30 = vld [vmem:[%s4481_s6 + $0x360] sm:$0xff] }
  0xad   : > { %4234 = vmatprep.mubr.msk.f32.mxu1 %vm477_vm3, %v414_v31  ;;  %v446_v31 = vld [vmem:[%s4481_s6 + $0x760] sm:$0xff] }
  0xaf   : > { %4043 = vmatmul.mubr.msk.f32.gmra.mrb[76].mxu0 %vm477_vm3, %v287_v32 }
  0xb0   : > { %4235 = vmatmul.mubr.msk.f32.gmra.mrb[76].mxu1 %vm477_vm3, %v415_v33  ;;  %4045 = vmatprep.mubr.msk.f32.mxu0 %vm477_vm3, %v288_v34 }
  0xb1   : > { %4237 = vmatprep.mubr.msk.f32.mxu1 %vm477_vm3, %v416_v35 }
  0xb3   : > { %4046 = vmatmul.mubr.msk.f32.gmra.mrb[78].mxu0 %vm477_vm3, %v289_v36  ;;  %v319_v36 = vld [vmem:[%s4481_s6 + $0x368] sm:$0xff] }
  0xb4   : > { %4238 = vmatmul.mubr.msk.f32.gmra.mrb[78].mxu1 %vm477_vm3, %v417_v37  ;;  %4048 = vmatprep.mubr.msk.f32.mxu0 %vm477_vm3, %v290_v38  ;;  %v447_v37 = vld [vmem:[%s4481_s6 + $0x768] sm:$0xff]  ;;  %v320_v38 = vld [vmem:[%s4481_s6 + $0x370] sm:$0xff] }
  0xb5   : > { %4240 = vmatprep.mubr.msk.f32.mxu1 %vm477_vm3, %v418_v39  ;;  %v448_v39 = vld [vmem:[%s4481_s6 + $0x770] sm:$0xff] }
  0xb7   : > { %4049 = vmatmul.mubr.msk.f32.gmra.mrb[80].mxu0 %vm477_vm3, %v291_v40 }
  0xb8   : > { %4241 = vmatmul.mubr.msk.f32.gmra.mrb[80].mxu1 %vm477_vm3, %v419_v41  ;;  %4051 = vmatprep.mubr.msk.f32.mxu0 %vm477_vm3, %v292_v42 }
  0xb9   : > { %4243 = vmatprep.mubr.msk.f32.mxu1 %vm477_vm3, %v420_v43 }
  0xbb   : > { %4052 = vmatmul.mubr.msk.f32.gmra.mrb[82].mxu0 %vm477_vm3, %v293_v44  ;;  %v321_v44 = vld [vmem:[%s4481_s6 + $0x378] sm:$0xff] }
  0xbc   : > { %4244 = vmatmul.mubr.msk.f32.gmra.mrb[82].mxu1 %vm477_vm3, %v421_v45  ;;  %4054 = vmatprep.mubr.msk.f32.mxu0 %vm477_vm3, %v294_v46  ;;  %v449_v45 = vld [vmem:[%s4481_s6 + $0x778] sm:$0xff]  ;;  %v322_v46 = vld [vmem:[%s4481_s6 + $0x380] sm:$0xff] }
  0xbd   : > { %4246 = vmatprep.mubr.msk.f32.mxu1 %vm477_vm3, %v422_v47  ;;  %v450_v47 = vld [vmem:[%s4481_s6 + $0x780] sm:$0xff] }
  0xbf   : > { %4055 = vmatmul.mubr.msk.f32.gmra.mrb[84].mxu0 %vm477_vm3, %v295_v48 }
  0xc0   : > { %4247 = vmatmul.mubr.msk.f32.gmra.mrb[84].mxu1 %vm477_vm3, %v423_v49  ;;  %4057 = vmatprep.mubr.msk.f32.mxu0 %vm477_vm3, %v296_v50  ;;  %v4934_v50 = vld [vmem:[%s5923_s2] ss:$0 sm:$0xff] }
  0xc1   : > { %4249 = vmatprep.mubr.msk.f32.mxu1 %vm477_vm3, %v424_v51 }
  0xc3   : > { %4058 = vmatmul.mubr.msk.f32.gmra.mrb[86].mxu0 %vm477_vm3, %v297_v52 }
  0xc4   : > { %4250 = vmatmul.mubr.msk.f32.gmra.mrb[86].mxu1 %vm477_vm3, %v425_v53  ;;  %4060 = vmatprep.mubr.msk.f32.mxu0 %vm477_vm3, %v298_v54  ;;  %v323_v53 = vld [vmem:[%s4481_s6 + $0x388] sm:$0xff] }
  0xc5   : > { %4252 = vmatprep.mubr.msk.f32.mxu1 %vm477_vm3, %v426_v55  ;;  %v451_v54 = vld [vmem:[%s4481_s6 + $0x788] sm:$0xff]  ;;  %v324_v55 = vld [vmem:[%s4481_s6 + $0x390] sm:$0xff] }
  0xc7   : > { %4061 = vmatmul.mubr.msk.f32.gmra.mrb[88].mxu0 %vm477_vm3, %v299_v56  ;;  %v452_v56 = vld [vmem:[%s4481_s6 + $0x790] sm:$0xff] }
  0xc8   : > { %4253 = vmatmul.mubr.msk.f32.gmra.mrb[88].mxu1 %vm477_vm3, %v427_v57  ;;  %4063 = vmatprep.mubr.msk.f32.mxu0 %vm477_vm3, %v300_v58 }
  0xc9   : > { %4255 = vmatprep.mubr.msk.f32.mxu1 %vm477_vm3, %v428_v59 }
  0xcb   : > { %4064 = vmatmul.mubr.msk.f32.gmra.mrb[90].mxu0 %vm477_vm3, %v301_v60 }
  0xcc   : > { %4256 = vmatmul.mubr.msk.f32.gmra.mrb[90].mxu1 %vm477_vm3, %v429_v61  ;;  %4066 = vmatprep.mubr.msk.f32.mxu0 %vm477_vm3, %v302_v62 }
  0xcd   : > { %4258 = vmatprep.mubr.msk.f32.mxu1 %vm477_vm3, %v430_v63 }
  0xcf   : > { %4067 = vmatmul.mubr.msk.f32.gmra.mrb[92].mxu0 %vm477_vm3, %v303_v0 }
  0xd0   : > { %4259 = vmatmul.mubr.msk.f32.gmra.mrb[92].mxu1 %vm477_vm3, %v431_v1  ;;  %4069 = vmatprep.mubr.msk.f32.mxu0 %vm477_vm3, %v304_v2 }
  0xd1   : > { %4261 = vmatprep.mubr.msk.f32.mxu1 %vm477_vm3, %v432_v3 }
  0xd3   : > { %4070 = vmatmul.mubr.msk.f32.gmra.mrb[94].mxu0 %vm477_vm3, %v305_v4 }
  0xd4   : > { %4262 = vmatmul.mubr.msk.f32.gmra.mrb[94].mxu1 %vm477_vm3, %v433_v5  ;;  %4072 = vmatprep.mubr.msk.f32.mxu0 %vm477_vm3, %v306_v6  ;;  %v325_v5 = vld [vmem:[%s4481_s6 + $0x398] sm:$0xff] }
  0xd5   : > { %4264 = vmatprep.mubr.msk.f32.mxu1 %vm477_vm3, %v434_v7  ;;  %v453_v6 = vld [vmem:[%s4481_s6 + $0x798] sm:$0xff]  ;;  %v326_v7 = vld [vmem:[%s4481_s6 + $0x3a0] sm:$0xff] }
  0xd7   : > { %4073 = vmatmul.mubr.msk.f32.gmra.mrb[96].mxu0 %vm477_vm3, %v307_v8  ;;  %v454_v8 = vld [vmem:[%s4481_s6 + $0x7a0] sm:$0xff] }
  0xd8   : > { %4265 = vmatmul.mubr.msk.f32.gmra.mrb[96].mxu1 %vm477_vm3, %v435_v9  ;;  %4075 = vmatprep.mubr.msk.f32.mxu0 %vm477_vm3, %v308_v10 }
  0xd9   : > { %4267 = vmatprep.mubr.msk.f32.mxu1 %vm477_vm3, %v436_v11 }
  0xdb   : > { %4076 = vmatmul.mubr.msk.f32.gmra.mrb[98].mxu0 %vm477_vm3, %v309_v12 }
  0xdc   : > { %4268 = vmatmul.mubr.msk.f32.gmra.mrb[98].mxu1 %vm477_vm3, %v437_v13  ;;  %4078 = vmatprep.mubr.msk.f32.mxu0 %vm477_vm3, %v310_v14 }
  0xdd   : > { %4270 = vmatprep.mubr.msk.f32.mxu1 %vm477_vm3, %v438_v15 }
  0xdf   : > { %4079 = vmatmul.mubr.msk.f32.gmra.mrb[100].mxu0 %vm477_vm3, %v311_v16 }
  0xe0   : > { %4271 = vmatmul.mubr.msk.f32.gmra.mrb[100].mxu1 %vm477_vm3, %v439_v17  ;;  %4081 = vmatprep.mubr.msk.f32.mxu0 %vm477_vm3, %v312_v18 }
  0xe1   : > { %4273 = vmatprep.mubr.msk.f32.mxu1 %vm477_vm3, %v440_v19 }
  0xe3   : > { %4082 = vmatmul.mubr.msk.f32.gmra.mrb[102].mxu0 %vm477_vm3, %v313_v20 }
  0xe4   : > { %4274 = vmatmul.mubr.msk.f32.gmra.mrb[102].mxu1 %vm477_vm3, %v441_v21  ;;  %4084 = vmatprep.mubr.msk.f32.mxu0 %vm477_vm3, %v314_v22 }
  0xe5   : > { %4276 = vmatprep.mubr.msk.f32.mxu1 %vm477_vm3, %v442_v23 }
  0xe7   : > { %4085 = vmatmul.mubr.msk.f32.gmra.mrb[104].mxu0 %vm477_vm3, %v315_v24 }
  0xe8   : > { %4277 = vmatmul.mubr.msk.f32.gmra.mrb[104].mxu1 %vm477_vm3, %v443_v25  ;;  %4087 = vmatprep.mubr.msk.f32.mxu0 %vm477_vm3, %v316_v26  ;;  %v327_v25 = vld [vmem:[%s4481_s6 + $0x3a8] sm:$0xff] }
  0xe9   : > { %4279 = vmatprep.mubr.msk.f32.mxu1 %vm477_vm3, %v444_v27 }
  0xea   : > { %v3930_v32 = vpop.f32.mrb[0].mxu0 }
  0xeb   : > { %v4122_v33 = vpop.f32.mrb[0].mxu1  ;;  %v1316_v34 = vpop.f32.mrb[1].mxu0  ;;  %4088 = vmatmul.mubr.msk.f32.gmra.mrb[106].mxu0 %vm477_vm3, %v317_v28  ;;  %v1322_v57 = vadd.f32 %v3930_v32, %v4934_v50 }
  0xec   : > { %v1956_v35 = vpop.f32.mrb[1].mxu1  ;;  %4280 = vmatmul.mubr.msk.f32.gmra.mrb[106].mxu1 %vm477_vm3, %v445_v29  ;;  %4090 = vmatprep.mubr.msk.f32.mxu0 %vm477_vm3, %v318_v30  ;;  %v1962_v58 = vadd.f32 %v4122_v33, %v4934_v50  ;;  %v1317_v59 = vadd.f32 %v4934_v50, %v1316_v34  ;;  %v455_v30 = vld [vmem:[%s4481_s6 + $0x7a8] sm:$0xff] }
  0xed   : > { %4282 = vmatprep.mubr.msk.f32.mxu1 %vm477_vm3, %v446_v31  ;;  %v1957_v60 = vadd.f32 %v4934_v50, %v1956_v35  ;;  %v2596_v9 = vmax.f32 %v1322_v57, 0.0  ;;  %v458_v57 = vld [vmem:[%s4481_s6 + $0x7c0] sm:$0xff] }
  0xee   : > { %v3933_v40 = vpop.f32.mrb[2].mxu0  ;;  %v2724_v10 = vmax.f32 %v1962_v58, 0.0  ;;  %v2595_v11 = vmax.f32 %v1317_v59, 0.0 }
  0xef   : > { %v4125_v41 = vpop.f32.mrb[2].mxu1  ;;  %v1326_v42 = vpop.f32.mrb[3].mxu0  ;;  %4091 = vmatmul.mubr.msk.f32.gmra.mrb[108].mxu0 %vm477_vm3, %v319_v36  ;;  %v4953_v63 = vadd.f32 %v3933_v40, %v4934_v50  ;;  %v2723_v12 = vmax.f32 %v1957_v60, 0.0 }
  0xf0   : > { %v1966_v43 = vpop.f32.mrb[3].mxu1  ;;  %4283 = vmatmul.mubr.msk.f32.gmra.mrb[108].mxu1 %vm477_vm3, %v447_v37  ;;  %4093 = vmatprep.mubr.msk.f32.mxu0 %vm477_vm3, %v320_v38  ;;  %v4956_v0 = vadd.f32 %v4125_v41, %v4934_v50  ;;  %v4965_v3 = vadd.f32 %v4934_v50, %v1326_v42  ;;  %v328_v37 = vld [vmem:[%s4481_s6 + $0x3b0] sm:$0xff] }
  0xf1   : > { %4285 = vmatprep.mubr.msk.f32.mxu1 %vm477_vm3, %v448_v39  ;;  %v4968_v4 = vadd.f32 %v4934_v50, %v1966_v43  ;;  %v2598_v15 = vmax.f32 %v4953_v63, 0.0  ;;  %v456_v38 = vld [vmem:[%s4481_s6 + $0x7b0] sm:$0xff] }
  0xf2   : > { %v3936_v48 = vpop.f32.mrb[4].mxu0  ;;  %v2726_v16 = vmax.f32 %v4956_v0, 0.0  ;;  %v2597_v21 = vmax.f32 %v4965_v3, 0.0 }
  0xf3   : > { %v4128_v49 = vpop.f32.mrb[4].mxu1  ;;  %v1336_v51 = vpop.f32.mrb[5].mxu0  ;;  %4094 = vmatmul.mubr.msk.f32.gmra.mrb[110].mxu0 %vm477_vm3, %v321_v44  ;;  %v2725_v22 = vmax.f32 %v4968_v4, 0.0  ;;  %v4990_v26 = vadd.f32 %v3936_v48, %v4934_v50 }
  0xf4   : > { %v1976_v52 = vpop.f32.mrb[5].mxu1  ;;  %4286 = vmatmul.mubr.msk.f32.gmra.mrb[110].mxu1 %vm477_vm3, %v449_v45  ;;  %4096 = vmatprep.mubr.msk.f32.mxu0 %vm477_vm3, %v322_v46  ;;  %v4993_v27 = vadd.f32 %v4128_v49, %v4934_v50  ;;  %v4997_v31 = vadd.f32 %v4934_v50, %v1336_v51  ;;  %v329_v49 = vld [vmem:[%s4481_s6 + $0x3b8] sm:$0xff] }
  0xf5   : > { %4288 = vmatprep.mubr.msk.f32.mxu1 %vm477_vm3, %v450_v47  ;;  %v5000_v32 = vadd.f32 %v4934_v50, %v1976_v52  ;;  %v457_v51 = vld [vmem:[%s4481_s6 + $0x7b8] sm:$0xff]  ;;  %v2600_v52 = vmax.f32 %v4990_v26, 0.0 }
  0xf6   : > { %v4948_v61 = vpop.f32.mrb[6].mxu0  ;;  %v2599_v58 = vmax.f32 %v4997_v31, 0.0 }
  0xf7   : > { %v4950_v62 = vpop.f32.mrb[6].mxu1  ;;  %v4958_v1 = vpop.f32.mrb[7].mxu0  ;;  %4097 = vmatmul.mubr.msk.f32.gmra.mrb[112].mxu0 %vm477_vm3, %v323_v53  ;;  %v2728_v53 = vmax.f32 %v4993_v27, 0.0  ;;  %v2727_v59 = vmax.f32 %v5000_v32, 0.0 }
  0xf8   : > { %v4961_v2 = vpop.f32.mrb[7].mxu1  ;;  %4289 = vmatmul.mubr.msk.f32.gmra.mrb[112].mxu1 %vm477_vm3, %v451_v54  ;;  %4099 = vmatprep.mubr.msk.f32.mxu0 %vm477_vm3, %v324_v55 }
  0xf9   : > { %4291 = vmatprep.mubr.msk.f32.mxu1 %vm477_vm3, %v452_v56  ;;  %v330_v56 = vld [vmem:[%s4481_s6 + $0x3c0] sm:$0xff] }
  0xfa   : > { %v3942_v13 = vpop.f32.mrb[8].mxu0 }
  0xfb   : > { %v4134_v14 = vpop.f32.mrb[8].mxu1  ;;  %v1362_v17 = vadd.f32 %v3942_v13, %v4934_v50  ;;  %v1356_v19 = vpop.f32.mrb[9].mxu0  ;;  %4100 = vmatmul.mubr.msk.f32.gmra.mrb[114].mxu0 %vm477_vm3, %v325_v5 }
  0xfc   : > { %v2002_v18 = vadd.f32 %v4134_v14, %v4934_v50  ;;  %v1996_v20 = vpop.f32.mrb[9].mxu1  ;;  %4292 = vmatmul.mubr.msk.f32.gmra.mrb[114].mxu1 %vm477_vm3, %v453_v6  ;;  %v1357_v23 = vadd.f32 %v4934_v50, %v1356_v19  ;;  %4102 = vmatprep.mubr.msk.f32.mxu0 %vm477_vm3, %v326_v7  ;;  %v331_v14 = vld [vmem:[%s4481_s6 + $0x3c8] sm:$0xff] }
  0xfd   : > { %v1997_v24 = vadd.f32 %v4934_v50, %v1996_v20  ;;  %4294 = vmatprep.mubr.msk.f32.mxu1 %vm477_vm3, %v454_v8  ;;  %v2604_v28 = vmax.f32 %v1362_v17, 0.0  ;;  %v459_v19 = vld [vmem:[%s4481_s6 + $0x7c8] sm:$0xff]  ;;  %v1347_v20 = vadd.f32 %v4934_v50, %v4958_v1 }
  0xfe   : > { %v2732_v29 = vmax.f32 %v2002_v18, 0.0  ;;  %v2603_v33 = vmax.f32 %v1357_v23, 0.0  ;;  %v3945_v35 = vpop.f32.mrb[10].mxu0 }
  0xff   : > { %v2731_v34 = vmax.f32 %v1997_v24, 0.0  ;;  %v4137_v36 = vpop.f32.mrb[10].mxu1  ;;  %v5004_v39 = vmax.f32 %v2596_v9, %v2604_v28  ;;  %v1372_v41 = vadd.f32 %v3945_v35, %v4934_v50  ;;  %v1366_v43 = vpop.f32.mrb[11].mxu0  ;;  %4103 = vmatmul.mubr.msk.f32.gmra.mrb[116].mxu0 %vm477_vm3, %v327_v25  ;;  %v460_v25 = vld [vmem:[%s4481_s6 + $0x7d0] sm:$0xff]  ;;  %v461_v35 = vld [vmem:[%s4481_s6 + $0x7d8] sm:$0xff] }
 0x100   : > { %v5006_v40 = vmax.f32 %v2724_v10, %v2732_v29  ;;  %v2012_v42 = vadd.f32 %v4137_v36, %v4934_v50  ;;  %v2006_v44 = vpop.f32.mrb[11].mxu1  ;;  %v5011_v45 = vmax.f32 %v2595_v11, %v2603_v33  ;;  %v1367_v47 = vadd.f32 %v4934_v50, %v1366_v43  ;;  %4295 = vmatmul.mubr.msk.f32.gmra.mrb[116].mxu1 %vm477_vm3, %v455_v30  ;;  %v462_v43 = vld [vmem:[%s4481_s6 + $0x7e0] sm:$0xff] }
 0x101   : > { %v5013_v46 = vmax.f32 %v2723_v12, %v2731_v34  ;;  %v2007_v48 = vadd.f32 %v4934_v50, %v2006_v44  ;;  %v2606_v54 = vmax.f32 %v1372_v41, 0.0  ;;  %4105 = vmatprep.mubr.msk.f32.mxu0 %vm477_vm3, %v328_v37  ;;  %4297 = vmatprep.mubr.msk.f32.mxu1 %vm477_vm3, %v456_v38  ;;  %v333_v34 = vld [vmem:[%s4481_s6 + $0x3d8] sm:$0xff]  ;;  %v2601_v44 = vmax.f32 %v1347_v20, 0.0 }
 0x102   : > { %v2734_v55 = vmax.f32 %v2012_v42, 0.0  ;;  %v2605_v60 = vmax.f32 %v1367_v47, 0.0  ;;  %v3948_v0 = vpop.f32.mrb[12].mxu0  ;;  %v334_v42 = vld [vmem:[%s4481_s6 + $0x3e0] sm:$0xff] }
 0x103   : > { %v2733_v63 = vmax.f32 %v2007_v48, 0.0  ;;  %v4140_v3 = vpop.f32.mrb[12].mxu1  ;;  %v5028_v4 = vmax.f32 %v2598_v15, %v2606_v54  ;;  %v1382_v6 = vadd.f32 %v3948_v0, %v4934_v50  ;;  %v1376_v8 = vpop.f32.mrb[13].mxu0  ;;  %4106 = vmatmul.mubr.msk.f32.gmra.mrb[118].mxu0 %vm477_vm3, %v329_v49  ;;  %v1352_v15 = vadd.f32 %v4948_v61, %v4934_v50 }
 0x104   : > { %v5030_v5 = vmax.f32 %v2726_v16, %v2734_v55  ;;  %v2022_v7 = vadd.f32 %v4140_v3, %v4934_v50  ;;  %v2016_v9 = vpop.f32.mrb[13].mxu1  ;;  %v5035_v10 = vmax.f32 %v2597_v21, %v2605_v60  ;;  %v1377_v12 = vadd.f32 %v4934_v50, %v1376_v8  ;;  %4298 = vmatmul.mubr.msk.f32.gmra.mrb[118].mxu1 %vm477_vm3, %v457_v51  ;;  %v463_v60 = vld [vmem:[%s4481_s6 + $0x7e8] sm:$0xff] }
 0x105   : > { %v5037_v11 = vmax.f32 %v2725_v22, %v2733_v63  ;;  %v2017_v13 = vadd.f32 %v4934_v50, %v2016_v9  ;;  %v1992_v16 = vadd.f32 %v4950_v62, %v4934_v50  ;;  %v2608_v17 = vmax.f32 %v1382_v6, 0.0  ;;  %4108 = vmatprep.mubr.msk.f32.mxu0 %vm477_vm3, %v330_v56  ;;  %4300 = vmatprep.mubr.msk.f32.mxu1 %vm477_vm3, %v458_v57  ;;  %v332_v62 = vld [vmem:[%s4481_s6 + $0x3d0] sm:$0xff]  ;;  %v337_v9 = vld [vmem:[%s4481_s6 + $0x3f8] sm:$0xff] }
 0x106   : > { %v2736_v18 = vmax.f32 %v2022_v7, 0.0  ;;  %v1987_v21 = vadd.f32 %v4934_v50, %v4961_v2  ;;  %v2607_v22 = vmax.f32 %v1377_v12, 0.0  ;;  %v3951_v24 = vpop.f32.mrb[14].mxu0  ;;  %v2602_v36 = vmax.f32 %v1352_v15, 0.0  ;;  %v336_v63 = vld [vmem:[%s4481_s6 + $0x3f0] sm:$0xff]  ;;  %v465_v12 = vld [vmem:[%s4481_s6 + $0x7f8] sm:$0xff] }
 0x107   : > { %v2735_v23 = vmax.f32 %v2017_v13, 0.0  ;;  %v4143_v61 = vpop.f32.mrb[14].mxu1  ;;  %v5056_v26 = vmax.f32 %v2600_v52, %v2608_v17  ;;  %v1392_v28 = vadd.f32 %v3951_v24, %v4934_v50  ;;  %v1386_v1 = vpop.f32.mrb[15].mxu0  ;;  %4109 = vmatmul.mubr.msk.f32.gmra.mrb[120].mxu0 %vm477_vm3, %v331_v14  ;;  %v2730_v37 = vmax.f32 %v1992_v16, 0.0  ;;  %v464_v6 = vld [vmem:[%s4481_s6 + $0x7f0] sm:$0xff] }
 0x108   : > { %v5058_v27 = vmax.f32 %v2728_v53, %v2736_v18  ;;  %v2032_v29 = vadd.f32 %v4143_v61, %v4934_v50  ;;  %v2026_v2 = vpop.f32.mrb[15].mxu1  ;;  %v5063_v30 = vmax.f32 %v2599_v58, %v2607_v22  ;;  %v1387_v32 = vadd.f32 %v4934_v50, %v1386_v1  ;;  %4301 = vmatmul.mubr.msk.f32.gmra.mrb[120].mxu1 %vm477_vm3, %v459_v19 }
 0x109   : > { %v5065_v31 = vmax.f32 %v2727_v59, %v2735_v23  ;;  %v2027_v33 = vadd.f32 %v4934_v50, %v2026_v2  ;;  %v2610_v38 = vmax.f32 %v1392_v28, 0.0  ;;  %4111 = vmatprep.mubr.msk.f32.mxu0 %vm477_vm3, %v332_v62  ;;  %4303 = vmatprep.mubr.msk.f32.mxu1 %vm477_vm3, %v460_v25  ;;  %v2729_v47 = vmax.f32 %v1987_v21, 0.0  ;;  %v335_v59 = vld [vmem:[%s4481_s6 + $0x3e8] sm:$0xff] }
 0x10a   : > { %v2738_v41 = vmax.f32 %v2032_v29, 0.0  ;;  %v2609_v48 = vmax.f32 %v1387_v32, 0.0  ;;  %v3954_v51 = vpop.f32.mrb[16].mxu0 }
 0x10b   : > { %v2737_v49 = vmax.f32 %v2027_v33, 0.0  ;;  %v4146_v52 = vpop.f32.mrb[16].mxu1  ;;  %v5076_v53 = vmax.f32 %v2602_v36, %v2610_v38  ;;  %v1396_v55 = vpop.f32.mrb[17].mxu0  ;;  %4112 = vmatmul.mubr.msk.f32.gmra.mrb[122].mxu0 %vm477_vm3, %v333_v34  ;;  %v1402_v15 = vadd.f32 %v3954_v51, %v4934_v50 }
 0x10c   : > { %v5078_v54 = vmax.f32 %v2730_v37, %v2738_v41  ;;  %v2036_v56 = vpop.f32.mrb[17].mxu1  ;;  %v5081_v57 = vmax.f32 %v2601_v44, %v2609_v48  ;;  %4304 = vmatmul.mubr.msk.f32.gmra.mrb[122].mxu1 %vm477_vm3, %v461_v35  ;;  %4114 = vmatprep.mubr.msk.f32.mxu0 %vm477_vm3, %v334_v42  ;;  %v2042_v16 = vadd.f32 %v4146_v52, %v4934_v50 }
 0x10d   : > { %v5083_v58 = vmax.f32 %v2729_v47, %v2737_v49  ;;  %4306 = vmatprep.mubr.msk.f32.mxu1 %vm477_vm3, %v462_v43  ;;  %v1397_v19 = vadd.f32 %v4934_v50, %v1396_v55  ;;  %v2037_v20 = vadd.f32 %v4934_v50, %v2036_v56  ;;  %v2612_v25 = vmax.f32 %v1402_v15, 0.0 }
 0x10e   : > { %v3957_v0 = vpop.f32.mrb[18].mxu0  ;;  %v2740_v28 = vmax.f32 %v2042_v16, 0.0 }
 0x10f   : > { %v4149_v3 = vpop.f32.mrb[18].mxu1  ;;  %v1406_v7 = vpop.f32.mrb[19].mxu0  ;;  %4115 = vmatmul.mubr.msk.f32.gmra.mrb[124].mxu0 %vm477_vm3, %v335_v59  ;;  %v5105_v21 = vadd.f32 %v3957_v0, %v4934_v50  ;;  %v2611_v33 = vmax.f32 %v1397_v19, 0.0  ;;  %v2739_v34 = vmax.f32 %v2037_v20, 0.0 }
 0x110   : > { %v2046_v8 = vpop.f32.mrb[19].mxu1  ;;  %4307 = vmatmul.mubr.msk.f32.gmra.mrb[124].mxu1 %vm477_vm3, %v463_v60  ;;  %4117 = vmatprep.mubr.msk.f32.mxu0 %vm477_vm3, %v336_v63  ;;  %v5108_v22 = vadd.f32 %v4149_v3, %v4934_v50  ;;  %v5111_v23 = vadd.f32 %v4934_v50, %v1406_v7 }
 0x111   : > { %4309 = vmatprep.mubr.msk.f32.mxu1 %vm477_vm3, %v464_v6  ;;  %v5114_v24 = vadd.f32 %v4934_v50, %v2046_v8  ;;  %v2614_v37 = vmax.f32 %v5105_v21, 0.0 }
 0x112   : > { %v3960_v13 = vpop.f32.mrb[20].mxu0  ;;  %v2742_v38 = vmax.f32 %v5108_v22, 0.0  ;;  %v2613_v43 = vmax.f32 %v5111_v23, 0.0 }
 0x113   : > { %v4152_v14 = vpop.f32.mrb[20].mxu1  ;;  %v1416_v17 = vpop.f32.mrb[21].mxu0  ;;  %4118 = vmatmul.mubr.msk.f32.gmra.mrb[126].mxu0 %vm477_vm3, %v337_v9  ;;  %v5117_v29 = vadd.f32 %v3960_v13, %v4934_v50  ;;  %v2741_v44 = vmax.f32 %v5114_v24, 0.0 }
 0x114   : > { %v2056_v18 = vpop.f32.mrb[21].mxu1  ;;  %4310 = vmatmul.mubr.msk.f32.gmra.mrb[126].mxu1 %vm477_vm3, %v465_v12  ;;  %v5120_v1 = vadd.f32 %v4152_v14, %v4934_v50  ;;  %v5123_v35 = vadd.f32 %v4934_v50, %v1416_v17 }
 0x115   : > { %v5126_v36 = vadd.f32 %v4934_v50, %v2056_v18  ;;  %v2616_v52 = vmax.f32 %v5117_v29, 0.0 }
 0x116   : > { %v3963_v61 = vpop.f32.mrb[22].mxu0  ;;  %v2744_v55 = vmax.f32 %v5120_v1, 0.0  ;;  %v2615_v0 = vmax.f32 %v5123_v35, 0.0 }
 0x117   : > { %v4155_v62 = vpop.f32.mrb[22].mxu1  ;;  %v1426_v2 = vpop.f32.mrb[23].mxu0  ;;  %v5131_v41 = vadd.f32 %v3963_v61, %v4934_v50  ;;  %v2743_v3 = vmax.f32 %v5126_v36, 0.0 }
 0x118   : > { %v2066_v32 = vpop.f32.mrb[23].mxu1  ;;  %v5134_v42 = vadd.f32 %v4155_v62, %v4934_v50  ;;  %v5139_v47 = vadd.f32 %v4934_v50, %v1426_v2 }
 0x119   : > { %v5142_v48 = vadd.f32 %v4934_v50, %v2066_v32  ;;  %v2618_v8 = vmax.f32 %v5131_v41, 0.0 }
 0x11a   : > { %v3966_v49 = vpop.f32.mrb[24].mxu0  ;;  %v2746_v9 = vmax.f32 %v5134_v42, 0.0  ;;  %v2617_v14 = vmax.f32 %v5139_v47, 0.0 }
 0x11b   : > { %v4158_v51 = vpop.f32.mrb[24].mxu1  ;;  %v1442_v56 = vadd.f32 %v3966_v49, %v4934_v50  ;;  %v1436_v60 = vpop.f32.mrb[25].mxu0  ;;  %v2745_v15 = vmax.f32 %v5142_v48, 0.0 }
 0x11c   : > { %v2082_v59 = vadd.f32 %v4158_v51, %v4934_v50  ;;  %v2076_v63 = vpop.f32.mrb[25].mxu1  ;;  %v1437_v6 = vadd.f32 %v4934_v50, %v1436_v60 }
 0x11d   : > { %v2077_v7 = vadd.f32 %v4934_v50, %v2076_v63  ;;  %v2620_v12 = vmax.f32 %v1442_v56, 0.0 }
 0x11e   : > { %v2748_v13 = vmax.f32 %v2082_v59, 0.0  ;;  %v2619_v16 = vmax.f32 %v1437_v6, 0.0  ;;  %v3969_v18 = vpop.f32.mrb[26].mxu0 }
 0x11f   : > { %v2747_v17 = vmax.f32 %v2077_v7, 0.0  ;;  %v4161_v19 = vpop.f32.mrb[26].mxu1  ;;  %v2916_v20 = vmax.f32 %v2612_v25, %v2620_v12  ;;  %v1452_v22 = vadd.f32 %v3969_v18, %v4934_v50  ;;  %v1446_v24 = vpop.f32.mrb[27].mxu0 }
 0x120   : > { %v2948_v21 = vmax.f32 %v2740_v28, %v2748_v13  ;;  %v2092_v23 = vadd.f32 %v4161_v19, %v4934_v50  ;;  %v2086_v61 = vpop.f32.mrb[27].mxu1  ;;  %v2915_v62 = vmax.f32 %v2611_v33, %v2619_v16  ;;  %v1447_v32 = vadd.f32 %v4934_v50, %v1446_v24 }
 0x121   : > { %v2947_v2 = vmax.f32 %v2739_v34, %v2747_v17  ;;  %v2087_v49 = vadd.f32 %v4934_v50, %v2086_v61  ;;  %v2980_v51 = vmax.f32 %v5004_v39, %v2916_v20  ;;  %v2622_v25 = vmax.f32 %v1452_v22, 0.0 }
 0x122   : > { %v3012_v56 = vmax.f32 %v5006_v40, %v2948_v21  ;;  %v2750_v28 = vmax.f32 %v2092_v23, 0.0  ;;  %v2979_v59 = vmax.f32 %v5011_v45, %v2915_v62  ;;  %v2621_v63 = vmax.f32 %v1447_v32, 0.0  ;;  %v3972_v33 = vpop.f32.mrb[28].mxu0 }
 0x123   : > { %v3011_v60 = vmax.f32 %v5013_v46, %v2947_v2  ;;  %v2749_v6 = vmax.f32 %v2087_v49, 0.0  ;;  %v4164_v34 = vpop.f32.mrb[28].mxu1  ;;  %3045 = vst.msk [vmem:[#allocation2 + $0x8] sm:$0xff] %vm3043_vm4, %v2980_v51  ;;  %v2918_v7 = vmax.f32 %v2614_v37, %v2622_v25  ;;  %v1462_v39 = vadd.f32 %v3972_v33, %v4934_v50  ;;  %v1456_v45 = vpop.f32.mrb[29].mxu0 }
 0x124   : > { %3077 = vst.msk [vmem:[#allocation2 + $0x108] sm:$0xff] %vm3043_vm4, %v3012_v56  ;;  %v2950_v12 = vmax.f32 %v2742_v38, %v2750_v28  ;;  %v2102_v40 = vadd.f32 %v4164_v34, %v4934_v50  ;;  %v2096_v46 = vpop.f32.mrb[29].mxu1  ;;  %3044 = vst.msk [vmem:[#allocation2] sm:$0xff] %vm3043_vm4, %v2979_v59  ;;  %v2917_v13 = vmax.f32 %v2613_v43, %v2621_v63 }
 0x125   : > { %3076 = vst.msk [vmem:[#allocation2 + $0x100] sm:$0xff] %vm3043_vm4, %v3011_v60  ;;  %v2949_v37 = vmax.f32 %v2741_v44, %v2749_v6  ;;  %v1457_v38 = vadd.f32 %v4934_v50, %v1456_v45  ;;  %v2097_v16 = vadd.f32 %v4934_v50, %v2096_v46  ;;  %v2982_v17 = vmax.f32 %v5028_v4, %v2918_v7 }
 0x126   : > { %v3014_v18 = vmax.f32 %v5030_v5, %v2950_v12  ;;  %v2624_v19 = vmax.f32 %v1462_v39, 0.0  ;;  %v2752_v20 = vmax.f32 %v2102_v40, 0.0  ;;  %v2981_v21 = vmax.f32 %v5035_v10, %v2917_v13  ;;  %v3975_v24 = vpop.f32.mrb[30].mxu0 }
 0x127   : > { %v3013_v22 = vmax.f32 %v5037_v11, %v2949_v37  ;;  %v2623_v23 = vmax.f32 %v1457_v38, 0.0  ;;  %v2751_v43 = vmax.f32 %v2097_v16, 0.0  ;;  %v4167_v61 = vpop.f32.mrb[30].mxu1  ;;  %3047 = vst.msk [vmem:[#allocation2 + $0x18] sm:$0xff] %vm3043_vm4, %v2982_v17  ;;  %v1472_v10 = vadd.f32 %v3975_v24, %v4934_v50  ;;  %v1466_v44 = vpop.f32.mrb[31].mxu0 }
 0x128   : > { %3079 = vst.msk [vmem:[#allocation2 + $0x118] sm:$0xff] %vm3043_vm4, %v3014_v18  ;;  %v2920_v4 = vmax.f32 %v2616_v52, %v2624_v19  ;;  %v2952_v5 = vmax.f32 %v2744_v55, %v2752_v20  ;;  %v2112_v11 = vadd.f32 %v4167_v61, %v4934_v50  ;;  %v2106_v62 = vpop.f32.mrb[31].mxu1  ;;  %3046 = vst.msk [vmem:[#allocation2 + $0x10] sm:$0xff] %vm3043_vm4, %v2981_v21 }
 0x129   : > { %3078 = vst.msk [vmem:[#allocation2 + $0x110] sm:$0xff] %vm3043_vm4, %v3013_v22  ;;  %v2919_v2 = vmax.f32 %v2615_v0, %v2623_v23  ;;  %v2951_v29 = vmax.f32 %v2743_v3, %v2751_v43  ;;  %v1467_v1 = vadd.f32 %v4934_v50, %v1466_v44  ;;  %v2107_v52 = vadd.f32 %v4934_v50, %v2106_v62 }
 0x12a   : > { %v2984_v55 = vmax.f32 %v5056_v26, %v2920_v4  ;;  %v3016_v32 = vmax.f32 %v5058_v27, %v2952_v5  ;;  %v2626_v49 = vmax.f32 %v1472_v10, 0.0  ;;  %v2754_v51 = vmax.f32 %v2112_v11, 0.0  ;;  %v3978_v0 = vpop.f32.mrb[32].mxu0 }
 0x12b   : > { %v2983_v56 = vmax.f32 %v5063_v30, %v2919_v2  ;;  %v3015_v25 = vmax.f32 %v5065_v31, %v2951_v29  ;;  %v2625_v28 = vmax.f32 %v1467_v1, 0.0  ;;  %v2753_v35 = vmax.f32 %v2107_v52, 0.0  ;;  %v4170_v59 = vpop.f32.mrb[32].mxu1  ;;  %v1476_v30 = vpop.f32.mrb[33].mxu0 }
 0x12c   : > { %3049 = vst.msk [vmem:[#allocation2 + $0x28] sm:$0xff] %vm3043_vm4, %v2984_v55  ;;  %3081 = vst.msk [vmem:[#allocation2 + $0x128] sm:$0xff] %vm3043_vm4, %v3016_v32  ;;  %v2922_v26 = vmax.f32 %v2618_v8, %v2626_v49  ;;  %v2954_v27 = vmax.f32 %v2746_v9, %v2754_v51  ;;  %v2116_v36 = vpop.f32.mrb[33].mxu1  ;;  %v5237_v12 = vadd.f32 %v3978_v0, %v4934_v50 }
 0x12d   : > { %3048 = vst.msk [vmem:[#allocation2 + $0x20] sm:$0xff] %vm3043_vm4, %v2983_v56  ;;  %3080 = vst.msk [vmem:[#allocation2 + $0x120] sm:$0xff] %vm3043_vm4, %v3015_v25  ;;  %v2921_v31 = vmax.f32 %v2617_v14, %v2625_v28  ;;  %v2953_v3 = vmax.f32 %v2745_v15, %v2753_v35  ;;  %v2122_v17 = vadd.f32 %v4170_v59, %v4934_v50 }
 0x12e   : > { %v2986_v60 = vmax.f32 %v5076_v53, %v2922_v26  ;;  %v3018_v41 = vmax.f32 %v5078_v54, %v2954_v27  ;;  %v3981_v9 = vpop.f32.mrb[34].mxu0  ;;  %v5243_v18 = vadd.f32 %v4934_v50, %v1476_v30  ;;  %v2628_v19 = vmax.f32 %v5237_v12, 0.0 }
 0x12f   : > { %v2985_v42 = vmax.f32 %v5081_v57, %v2921_v31  ;;  %v3017_v8 = vmax.f32 %v5083_v58, %v2953_v3  ;;  %v4173_v63 = vpop.f32.mrb[34].mxu1  ;;  %v3108_v6 = vld [vmem:[#allocation2] ss:$4 sm:$0xff]  ;;  %v3140_v33 = vld [vmem:[#allocation2 + $0x1] ss:$4 sm:$0xff]  ;;  %v1486_v39 = vpop.f32.mrb[35].mxu0  ;;  %v2117_v20 = vadd.f32 %v4934_v50, %v2116_v36  ;;  %v5254_v61 = vadd.f32 %v3981_v9, %v4934_v50 }
 0x130   : > { %v3188_v34 = vld [vmem:[#allocation2 + $0x2] ss:$4 sm:$0xff]  ;;  %3051 = vst.msk [vmem:[#allocation2 + $0x38] sm:$0xff] %vm3043_vm4, %v2986_v60  ;;  %3083 = vst.msk [vmem:[#allocation2 + $0x138] sm:$0xff] %vm3043_vm4, %v3018_v41  ;;  %v3171_v47 = vmax.f32 %v3108_v6, %v3140_v33  ;;  %v3220_v48 = vld [vmem:[#allocation2 + $0x3] ss:$4 sm:$0xff]  ;;  %v5257_v4 = vadd.f32 %v4173_v63, %v4934_v50  ;;  %v5260_v5 = vadd.f32 %v4934_v50, %v1486_v39 }
 0x131   : > { %v3124_v14 = vld [vmem:[#allocation2 + $0x100] ss:$4 sm:$0xff]  ;;  %v3156_v53 = vld [vmem:[#allocation2 + $0x101] ss:$4 sm:$0xff]  ;;  %3050 = vst.msk [vmem:[#allocation2 + $0x30] sm:$0xff] %vm3043_vm4, %v2985_v42  ;;  %3082 = vst.msk [vmem:[#allocation2 + $0x130] sm:$0xff] %vm3043_vm4, %v3017_v8  ;;  %v3251_v54 = vmax.f32 %v3188_v34, %v3220_v48 }
 0x132   : > { %v3179_v57 = vmax.f32 %v3124_v14, %v3156_v53  ;;  %v3204_v58 = vld [vmem:[#allocation2 + $0x102] ss:$4 sm:$0xff]  ;;  %v3236_v15 = vld [vmem:[#allocation2 + $0x103] ss:$4 sm:$0xff]  ;;  %v2126_v40 = vpop.f32.mrb[35].mxu1  ;;  %v3984_v46 = vpop.f32.mrb[36].mxu0 }
 0x133   : > { %v3259_v7 = vmax.f32 %v3204_v58, %v3236_v15  ;;  %v3267_v45 = vmax.f32 %v3171_v47, %v3251_v54  ;;  %v4176_v13 = vpop.f32.mrb[36].mxu1  ;;  %v1496_v38 = vpop.f32.mrb[37].mxu0  ;;  %v5263_v2 = vadd.f32 %v4934_v50, %v2126_v40  ;;  %v2756_v32 = vmax.f32 %v2122_v17, 0.0 }
 0x134   : > { %v2136_v16 = vpop.f32.mrb[37].mxu1  ;;  %v2627_v49 = vmax.f32 %v5243_v18, 0.0  ;;  %v2755_v56 = vmax.f32 %v2117_v20, 0.0  ;;  %v5267_v25 = vadd.f32 %v3984_v46, %v4934_v50  ;;  %v5270_v28 = vadd.f32 %v4176_v13, %v4934_v50 }
 0x135   : > { %v3275_v37 = vmax.f32 %v3179_v57, %v3259_v7  ;;  %3283 = vst.msk [vmem:[%s5234_s21] sm:$0xff] %vm3043_vm4, %v3267_v45  ;;  %v2630_v26 = vmax.f32 %v5254_v61, 0.0  ;;  %v2758_v27 = vmax.f32 %v5257_v4, 0.0  ;;  %v2629_v30 = vmax.f32 %v5260_v5, 0.0 }
 0x136   : > { %v5249_v21 = vpop.f32.mrb[38].mxu0  ;;  %v2757_v60 = vmax.f32 %v5263_v2, 0.0  ;;  %v1497_v63 = vadd.f32 %v4934_v50, %v1496_v38  ;;  %v2137_v6 = vadd.f32 %v4934_v50, %v2136_v16  ;;  %v2632_v47 = vmax.f32 %v5267_v25, 0.0 }
 0x137   : > { %3291 = vst.msk [vmem:[%s5234_s21 + $0x40] sm:$0xff] %vm3043_vm4, %v3275_v37  ;;  %v5251_v22 = vpop.f32.mrb[38].mxu1  ;;  %v1506_v35 = vpop.f32.mrb[39].mxu0  ;;  %v2760_v48 = vmax.f32 %v5270_v28, 0.0  ;;  %v1512_v20 = vadd.f32 %v5249_v21, %v4934_v50 }
 0x138   : > { %v3110_v23 = vld [vmem:[#allocation2 + $0x20] ss:$4 sm:$0xff]  ;;  %v3142_v43 = vld [vmem:[#allocation2 + $0x21] ss:$4 sm:$0xff]  ;;  %v3190_v24 = vld [vmem:[#allocation2 + $0x22] ss:$4 sm:$0xff] }
 0x139   : > { %v3172_v10 = vmax.f32 %v3110_v23, %v3142_v43  ;;  %v3222_v11 = vld [vmem:[#allocation2 + $0x23] ss:$4 sm:$0xff]  ;;  %v3126_v44 = vld [vmem:[#allocation2 + $0x120] ss:$4 sm:$0xff]  ;;  %v3158_v62 = vld [vmem:[#allocation2 + $0x121] ss:$4 sm:$0xff]  ;;  %v2152_v23 = vadd.f32 %v5251_v22, %v4934_v50 }
 0x13a   : > { %v3252_v29 = vmax.f32 %v3190_v24, %v3222_v11  ;;  %v3180_v1 = vmax.f32 %v3126_v44, %v3158_v62  ;;  %v3206_v52 = vld [vmem:[#allocation2 + $0x122] ss:$4 sm:$0xff]  ;;  %v3238_v55 = vld [vmem:[#allocation2 + $0x123] ss:$4 sm:$0xff]  ;;  %v2146_v0 = vpop.f32.mrb[39].mxu1  ;;  %v3990_v36 = vpop.f32.mrb[40].mxu0 }
 0x13b   : > { %v3260_v51 = vmax.f32 %v3206_v52, %v3238_v55  ;;  %v4182_v31 = vpop.f32.mrb[40].mxu1  ;;  %v1522_v41 = vadd.f32 %v3990_v36, %v4934_v50  ;;  %v1516_v8 = vpop.f32.mrb[41].mxu0  ;;  %v2759_v52 = vmax.f32 %v2137_v6, 0.0 }
 0x13c   : > { %v3268_v59 = vmax.f32 %v3172_v10, %v3252_v29  ;;  %v2162_v42 = vadd.f32 %v4182_v31, %v4934_v50  ;;  %v2156_v9 = vpop.f32.mrb[41].mxu1  ;;  %v1517_v33 = vadd.f32 %v4934_v50, %v1516_v8  ;;  %v2762_v8 = vmax.f32 %v2152_v23, 0.0 }
 0x13d   : > { %v3276_v3 = vmax.f32 %v3180_v1, %v3260_v51  ;;  %v2157_v34 = vadd.f32 %v4934_v50, %v2156_v9  ;;  %v2636_v14 = vmax.f32 %v1522_v41, 0.0  ;;  %v2631_v1 = vmax.f32 %v1497_v63, 0.0 }
 0x13e   : > { %3284 = vst.msk [vmem:[%s5234_s21 + $0x8] sm:$0xff] %vm3043_vm4, %v3268_v59  ;;  %v2764_v53 = vmax.f32 %v2162_v42, 0.0  ;;  %v3993_v54 = vpop.f32.mrb[42].mxu0  ;;  %v2635_v58 = vmax.f32 %v1517_v33, 0.0  ;;  %v2147_v51 = vadd.f32 %v4934_v50, %v2146_v0  ;;  %v2634_v42 = vmax.f32 %v1512_v20, 0.0 }
 0x13f   : > { %3292 = vst.msk [vmem:[%s5234_s21 + $0x48] sm:$0xff] %vm3043_vm4, %v3276_v3  ;;  %v4185_v57 = vpop.f32.mrb[42].mxu1  ;;  %v2763_v15 = vmax.f32 %v2157_v34, 0.0  ;;  %v1532_v7 = vadd.f32 %v3993_v54, %v4934_v50  ;;  %v1526_v39 = vpop.f32.mrb[43].mxu0  ;;  %v5290_v45 = vmax.f32 %v2628_v19, %v2636_v14 }
 0x140   : > { %v2172_v12 = vadd.f32 %v4185_v57, %v4934_v50  ;;  %v2166_v40 = vpop.f32.mrb[43].mxu1  ;;  %v5292_v46 = vmax.f32 %v2756_v32, %v2764_v53  ;;  %v1527_v13 = vadd.f32 %v4934_v50, %v1526_v39  ;;  %v5296_v38 = vmax.f32 %v2627_v49, %v2635_v58 }
 0x141   : > { %v2167_v37 = vadd.f32 %v4934_v50, %v2166_v40  ;;  %v5298_v16 = vmax.f32 %v2755_v56, %v2763_v15  ;;  %v2638_v17 = vmax.f32 %v1532_v7, 0.0  ;;  %v1507_v49 = vadd.f32 %v4934_v50, %v1506_v35 }
 0x142   : > { %v2766_v18 = vmax.f32 %v2172_v12, 0.0  ;;  %v2637_v19 = vmax.f32 %v1527_v13, 0.0  ;;  %v3996_v24 = vpop.f32.mrb[44].mxu0  ;;  %v2761_v33 = vmax.f32 %v2147_v51, 0.0 }
 0x143   : > { %v2765_v43 = vmax.f32 %v2167_v37, 0.0  ;;  %v4188_v61 = vpop.f32.mrb[44].mxu1  ;;  %v5304_v4 = vmax.f32 %v2630_v26, %v2638_v17  ;;  %v1542_v10 = vadd.f32 %v3996_v24, %v4934_v50  ;;  %v1536_v44 = vpop.f32.mrb[45].mxu0  ;;  %v2633_v6 = vmax.f32 %v1507_v49, 0.0 }
 0x144   : > { %v5306_v5 = vmax.f32 %v2758_v27, %v2766_v18  ;;  %v2182_v11 = vadd.f32 %v4188_v61, %v4934_v50  ;;  %v2176_v62 = vpop.f32.mrb[45].mxu1  ;;  %v5310_v2 = vmax.f32 %v2629_v30, %v2637_v19  ;;  %v1537_v22 = vadd.f32 %v4934_v50, %v1536_v44 }
 0x145   : > { %v5312_v21 = vmax.f32 %v2757_v60, %v2765_v43  ;;  %v2177_v29 = vadd.f32 %v4934_v50, %v2176_v62  ;;  %v2640_v55 = vmax.f32 %v1542_v10, 0.0 }
 0x146   : > { %v2768_v32 = vmax.f32 %v2182_v11, 0.0  ;;  %v2639_v56 = vmax.f32 %v1537_v22, 0.0  ;;  %v3999_v28 = vpop.f32.mrb[46].mxu0 }
 0x147   : > { %v2767_v25 = vmax.f32 %v2177_v29, 0.0  ;;  %v4191_v59 = vpop.f32.mrb[46].mxu1  ;;  %v5318_v26 = vmax.f32 %v2632_v47, %v2640_v55  ;;  %v1552_v30 = vadd.f32 %v3999_v28, %v4934_v50  ;;  %v1546_v31 = vpop.f32.mrb[47].mxu0 }
 0x148   : > { %v5320_v27 = vmax.f32 %v2760_v48, %v2768_v32  ;;  %v2192_v36 = vadd.f32 %v4191_v59, %v4934_v50  ;;  %v2186_v3 = vpop.f32.mrb[47].mxu1  ;;  %v5324_v60 = vmax.f32 %v2631_v1, %v2639_v56  ;;  %v1547_v35 = vadd.f32 %v4934_v50, %v1546_v31 }
 0x149   : > { %v5326_v41 = vmax.f32 %v2759_v52, %v2767_v25  ;;  %v2187_v0 = vadd.f32 %v4934_v50, %v2186_v3  ;;  %v2642_v9 = vmax.f32 %v1552_v30, 0.0 }
 0x14a   : > { %v2770_v63 = vmax.f32 %v2192_v36, 0.0  ;;  %v2641_v34 = vmax.f32 %v1547_v35, 0.0  ;;  %v4002_v48 = vpop.f32.mrb[48].mxu0 }
 0x14b   : > { %v2769_v47 = vmax.f32 %v2187_v0, 0.0  ;;  %v4194_v14 = vpop.f32.mrb[48].mxu1  ;;  %v5330_v53 = vmax.f32 %v2634_v42, %v2642_v9  ;;  %v1556_v57 = vpop.f32.mrb[49].mxu0  ;;  %v1562_v18 = vadd.f32 %v4002_v48, %v4934_v50 }
 0x14c   : > { %v5332_v54 = vmax.f32 %v2762_v8, %v2770_v63  ;;  %v2196_v58 = vpop.f32.mrb[49].mxu1  ;;  %v5334_v15 = vmax.f32 %v2633_v6, %v2641_v34  ;;  %v2202_v20 = vadd.f32 %v4194_v14, %v4934_v50  ;;  %v1557_v43 = vadd.f32 %v4934_v50, %v1556_v57 }
 0x14d   : > { %v5336_v7 = vmax.f32 %v2761_v33, %v2769_v47  ;;  %v2197_v24 = vadd.f32 %v4934_v50, %v2196_v58  ;;  %v2644_v29 = vmax.f32 %v1562_v18, 0.0  ;;  %v5391_v58 = vld [vmem:[%s5923_s2] ss:$0 sm:$0xff] }
 0x14e   : > { %v4005_v12 = vpop.f32.mrb[50].mxu0  ;;  %v2772_v1 = vmax.f32 %v2202_v20, 0.0  ;;  %v2643_v51 = vmax.f32 %v1557_v43, 0.0 }
 0x14f   : > { %v4197_v39 = vpop.f32.mrb[50].mxu1  ;;  %v1566_v40 = vpop.f32.mrb[51].mxu0  ;;  %v5343_v61 = vadd.f32 %v4005_v12, %v4934_v50  ;;  %v2771_v56 = vmax.f32 %v2197_v24, 0.0 }
 0x150   : > { %v2206_v13 = vpop.f32.mrb[51].mxu1  ;;  %v5346_v10 = vadd.f32 %v4197_v39, %v4934_v50  ;;  %v5349_v11 = vadd.f32 %v4934_v50, %v1566_v40 }
 0x151   : > { %v5352_v44 = vadd.f32 %v4934_v50, %v2206_v13  ;;  %v2646_v59 = vmax.f32 %v5343_v61, 0.0 }
 0x152   : > { %v4008_v37 = vpop.f32.mrb[52].mxu0  ;;  %v2774_v30 = vmax.f32 %v5346_v10, 0.0  ;;  %v2645_v3 = vmax.f32 %v5349_v11, 0.0 }
 0x153   : > { %v4200_v17 = vpop.f32.mrb[52].mxu1  ;;  %v1576_v23 = vpop.f32.mrb[53].mxu0  ;;  %v5355_v52 = vadd.f32 %v4008_v37, %v4934_v50  ;;  %v2773_v35 = vmax.f32 %v5352_v44, 0.0 }
 0x154   : > { %v2216_v19 = vpop.f32.mrb[53].mxu1  ;;  %v5358_v55 = vadd.f32 %v4200_v17, %v4934_v50  ;;  %v5361_v25 = vadd.f32 %v4934_v50, %v1576_v23 }
 0x155   : > { %v5364_v28 = vadd.f32 %v4934_v50, %v2216_v19  ;;  %v2648_v63 = vmax.f32 %v5355_v52, 0.0 }
 0x156   : > { %v4011_v62 = vpop.f32.mrb[54].mxu0  ;;  %v2776_v6 = vmax.f32 %v5358_v55, 0.0  ;;  %v2647_v14 = vmax.f32 %v5361_v25, 0.0 }
 0x157   : > { %v4203_v22 = vpop.f32.mrb[54].mxu1  ;;  %v1586_v32 = vpop.f32.mrb[55].mxu0  ;;  %v5369_v36 = vadd.f32 %v4011_v62, %v4934_v50  ;;  %v2775_v57 = vmax.f32 %v5364_v28, 0.0 }
 0x158   : > { %v2226_v49 = vpop.f32.mrb[55].mxu1  ;;  %v5372_v31 = vadd.f32 %v4203_v22, %v4934_v50  ;;  %v5377_v0 = vadd.f32 %v4934_v50, %v1586_v32 }
 0x159   : > { %v5380_v42 = vadd.f32 %v4934_v50, %v2226_v49  ;;  %v2650_v40 = vmax.f32 %v5369_v36, 0.0 }
 0x15a   : > { %v4014_v8 = vpop.f32.mrb[56].mxu0  ;;  %v2778_v13 = vmax.f32 %v5372_v31, 0.0  ;;  %v2649_v17 = vmax.f32 %v5377_v0, 0.0 }
 0x15b   : > { %v4206_v9 = vpop.f32.mrb[56].mxu1  ;;  %v1602_v33 = vadd.f32 %v4014_v8, %v4934_v50  ;;  %v1596_v47 = vpop.f32.mrb[57].mxu0  ;;  %v2777_v18 = vmax.f32 %v5380_v42, 0.0 }
 0x15c   : > { %v2242_v34 = vadd.f32 %v4206_v9, %v4934_v50  ;;  %v2236_v48 = vpop.f32.mrb[57].mxu1  ;;  %v1597_v12 = vadd.f32 %v5391_v58, %v1596_v47 }
 0x15d   : > { %v2237_v39 = vadd.f32 %v5391_v58, %v2236_v48  ;;  %v2652_v50 = vmax.f32 %v1602_v33, 0.0 }
 0x15e   : > { %v2780_v37 = vmax.f32 %v2242_v34, 0.0  ;;  %v2651_v20 = vmax.f32 %v1597_v12, 0.0  ;;  %v4017_v19 = vpop.f32.mrb[58].mxu0 }
 0x15f   : > { %v2779_v23 = vmax.f32 %v2237_v39, 0.0  ;;  %v4209_v43 = vpop.f32.mrb[58].mxu1  ;;  %v2924_v24 = vmax.f32 %v2644_v29, %v2652_v50  ;;  %v1612_v10 = vadd.f32 %v5391_v58, %v4017_v19  ;;  %v1606_v44 = vpop.f32.mrb[59].mxu0 }
 0x160   : > { %v2956_v61 = vmax.f32 %v2772_v1, %v2780_v37  ;;  %v2252_v11 = vadd.f32 %v5391_v58, %v4209_v43  ;;  %v2246_v62 = vpop.f32.mrb[59].mxu1  ;;  %v2923_v22 = vmax.f32 %v2643_v51, %v2651_v20  ;;  %v1607_v49 = vadd.f32 %v5391_v58, %v1606_v44 }
 0x161   : > { %v2955_v32 = vmax.f32 %v2771_v56, %v2779_v23  ;;  %v2247_v8 = vadd.f32 %v5391_v58, %v2246_v62  ;;  %v2988_v9 = vmax.f32 %v5290_v45, %v2924_v24  ;;  %v2654_v34 = vmax.f32 %v1612_v10, 0.0 }
 0x162   : > { %v3020_v33 = vmax.f32 %v5292_v46, %v2956_v61  ;;  %v2782_v47 = vmax.f32 %v2252_v11, 0.0  ;;  %v2987_v29 = vmax.f32 %v5296_v38, %v2923_v22  ;;  %v2653_v48 = vmax.f32 %v1607_v49, 0.0  ;;  %v4020_v39 = vpop.f32.mrb[60].mxu0 }
 0x163   : > { %v3019_v1 = vmax.f32 %v5298_v16, %v2955_v32  ;;  %v2781_v12 = vmax.f32 %v2247_v8, 0.0  ;;  %v4212_v50 = vpop.f32.mrb[60].mxu1  ;;  %3053 = vst.msk [vmem:[#allocation2 + $0x48] sm:$0xff] %vm3043_vm4, %v2988_v9  ;;  %v2926_v51 = vmax.f32 %v2646_v59, %v2654_v34  ;;  %v1622_v45 = vadd.f32 %v5391_v58, %v4020_v39  ;;  %v1616_v37 = vpop.f32.mrb[61].mxu0 }
 0x164   : > { %3085 = vst.msk [vmem:[#allocation2 + $0x148] sm:$0xff] %vm3043_vm4, %v3020_v33  ;;  %v2958_v56 = vmax.f32 %v2774_v30, %v2782_v47  ;;  %v2262_v46 = vadd.f32 %v5391_v58, %v4212_v50  ;;  %v2256_v20 = vpop.f32.mrb[61].mxu1  ;;  %3052 = vst.msk [vmem:[#allocation2 + $0x40] sm:$0xff] %vm3043_vm4, %v2987_v29  ;;  %v2925_v38 = vmax.f32 %v2645_v3, %v2653_v48 }
 0x165   : > { %3084 = vst.msk [vmem:[#allocation2 + $0x140] sm:$0xff] %vm3043_vm4, %v3019_v1  ;;  %v2957_v16 = vmax.f32 %v2773_v35, %v2781_v12  ;;  %v1617_v23 = vadd.f32 %v5391_v58, %v1616_v37  ;;  %v2257_v19 = vadd.f32 %v5391_v58, %v2256_v20  ;;  %v2990_v43 = vmax.f32 %v5304_v4, %v2926_v51 }
 0x166   : > { %v3022_v59 = vmax.f32 %v5306_v5, %v2958_v56  ;;  %v2656_v30 = vmax.f32 %v1622_v45, 0.0  ;;  %v2784_v24 = vmax.f32 %v2262_v46, 0.0  ;;  %v2989_v61 = vmax.f32 %v5310_v2, %v2925_v38  ;;  %v4023_v62 = vpop.f32.mrb[62].mxu0 }
 0x167   : > { %v3021_v10 = vmax.f32 %v5312_v21, %v2957_v16  ;;  %v2655_v11 = vmax.f32 %v1617_v23, 0.0  ;;  %v2783_v44 = vmax.f32 %v2257_v19, 0.0  ;;  %v4215_v22 = vpop.f32.mrb[62].mxu1  ;;  %3055 = vst.msk [vmem:[#allocation2 + $0x58] sm:$0xff] %vm3043_vm4, %v2990_v43  ;;  %v1632_v5 = vadd.f32 %v5391_v58, %v4023_v62  ;;  %v1626_v35 = vpop.f32.mrb[63].mxu0 }
 0x168   : > { %3087 = vst.msk [vmem:[#allocation2 + $0x158] sm:$0xff] %vm3043_vm4, %v3022_v59  ;;  %v2928_v3 = vmax.f32 %v2648_v63, %v2656_v30  ;;  %v2960_v4 = vmax.f32 %v2776_v6, %v2784_v24  ;;  %v2272_v2 = vadd.f32 %v5391_v58, %v4215_v22  ;;  %v2266_v21 = vpop.f32.mrb[63].mxu1  ;;  %3054 = vst.msk [vmem:[#allocation2 + $0x50] sm:$0xff] %vm3043_vm4, %v2989_v61 }
 0x169   : > { %3086 = vst.msk [vmem:[#allocation2 + $0x150] sm:$0xff] %vm3043_vm4, %v3021_v10  ;;  %v2927_v32 = vmax.f32 %v2647_v14, %v2655_v11  ;;  %v2959_v52 = vmax.f32 %v2775_v57, %v2783_v44  ;;  %v1627_v63 = vadd.f32 %v5391_v58, %v1626_v35  ;;  %v2267_v55 = vadd.f32 %v5391_v58, %v2266_v21 }
 0x16a   : > { %v2992_v6 = vmax.f32 %v5318_v26, %v2928_v3  ;;  %v3024_v49 = vmax.f32 %v5320_v27, %v2960_v4  ;;  %v2658_v8 = vmax.f32 %v1632_v5, 0.0  ;;  %v2786_v9 = vmax.f32 %v2272_v2, 0.0  ;;  %v4026_v14 = vpop.f32.mrb[64].mxu0 }
 0x16b   : > { %v2991_v33 = vmax.f32 %v5324_v60, %v2927_v32  ;;  %v3023_v34 = vmax.f32 %v5326_v41, %v2959_v52  ;;  %v2657_v47 = vmax.f32 %v1627_v63, 0.0  ;;  %v2785_v25 = vmax.f32 %v2267_v55, 0.0  ;;  %v4218_v29 = vpop.f32.mrb[64].mxu1  ;;  %v1636_v27 = vpop.f32.mrb[65].mxu0 }
 0x16c   : > { %3057 = vst.msk [vmem:[#allocation2 + $0x68] sm:$0xff] %vm3043_vm4, %v2992_v6  ;;  %3089 = vst.msk [vmem:[#allocation2 + $0x168] sm:$0xff] %vm3043_vm4, %v3024_v49  ;;  %v2930_v28 = vmax.f32 %v2650_v40, %v2658_v8  ;;  %v2962_v26 = vmax.f32 %v2778_v13, %v2786_v9  ;;  %v2276_v57 = vpop.f32.mrb[65].mxu1  ;;  %v5460_v56 = vadd.f32 %v5391_v58, %v4026_v14 }
 0x16d   : > { %3056 = vst.msk [vmem:[#allocation2 + $0x60] sm:$0xff] %vm3043_vm4, %v2991_v33  ;;  %3088 = vst.msk [vmem:[#allocation2 + $0x160] sm:$0xff] %vm3043_vm4, %v3023_v34  ;;  %v2929_v60 = vmax.f32 %v2649_v17, %v2657_v47  ;;  %v2961_v41 = vmax.f32 %v2777_v18, %v2785_v25  ;;  %v2282_v43 = vadd.f32 %v5391_v58, %v4218_v29 }
 0x16e   : > { %v2994_v1 = vmax.f32 %v5330_v53, %v2930_v28  ;;  %v3026_v36 = vmax.f32 %v5332_v54, %v2962_v26  ;;  %v4029_v13 = vpop.f32.mrb[66].mxu0  ;;  %v5466_v59 = vadd.f32 %v5391_v58, %v1636_v27  ;;  %v2660_v30 = vmax.f32 %v5460_v56, 0.0 }
 0x16f   : > { %v2993_v40 = vmax.f32 %v5334_v15, %v2929_v60  ;;  %v3025_v31 = vmax.f32 %v5336_v7, %v2961_v41  ;;  %v4221_v48 = vpop.f32.mrb[66].mxu1  ;;  %v3112_v12 = vld [vmem:[#allocation2 + $0x40] ss:$4 sm:$0xff]  ;;  %v3144_v39 = vld [vmem:[#allocation2 + $0x41] ss:$4 sm:$0xff]  ;;  %v1646_v45 = vpop.f32.mrb[67].mxu0  ;;  %v2277_v24 = vadd.f32 %v5391_v58, %v2276_v57  ;;  %v5477_v22 = vadd.f32 %v5391_v58, %v4029_v13 }
 0x170   : > { %v3192_v50 = vld [vmem:[#allocation2 + $0x42] ss:$4 sm:$0xff]  ;;  %3059 = vst.msk [vmem:[#allocation2 + $0x78] sm:$0xff] %vm3043_vm4, %v2994_v1  ;;  %3091 = vst.msk [vmem:[#allocation2 + $0x178] sm:$0xff] %vm3043_vm4, %v3026_v36  ;;  %v3173_v0 = vmax.f32 %v3112_v12, %v3144_v39  ;;  %v3224_v42 = vld [vmem:[#allocation2 + $0x43] ss:$4 sm:$0xff]  ;;  %v5480_v3 = vadd.f32 %v5391_v58, %v4221_v48  ;;  %v5483_v4 = vadd.f32 %v5391_v58, %v1646_v45 }
 0x171   : > { %v3128_v17 = vld [vmem:[#allocation2 + $0x140] ss:$4 sm:$0xff]  ;;  %v3160_v18 = vld [vmem:[#allocation2 + $0x141] ss:$4 sm:$0xff]  ;;  %3058 = vst.msk [vmem:[#allocation2 + $0x70] sm:$0xff] %vm3043_vm4, %v2993_v40  ;;  %3090 = vst.msk [vmem:[#allocation2 + $0x170] sm:$0xff] %vm3043_vm4, %v3025_v31  ;;  %v3253_v53 = vmax.f32 %v3192_v50, %v3224_v42 }
 0x172   : > { %v3181_v54 = vmax.f32 %v3128_v17, %v3160_v18  ;;  %v3208_v15 = vld [vmem:[#allocation2 + $0x142] ss:$4 sm:$0xff]  ;;  %v3240_v7 = vld [vmem:[#allocation2 + $0x143] ss:$4 sm:$0xff]  ;;  %v2286_v46 = vpop.f32.mrb[67].mxu1  ;;  %v4032_v20 = vpop.f32.mrb[68].mxu0 }
 0x173   : > { %v3261_v51 = vmax.f32 %v3208_v15, %v3240_v7  ;;  %v3269_v37 = vmax.f32 %v3173_v0, %v3253_v53  ;;  %v4224_v38 = vpop.f32.mrb[68].mxu1  ;;  %v1656_v23 = vpop.f32.mrb[69].mxu0  ;;  %v5486_v32 = vadd.f32 %v5391_v58, %v2286_v46  ;;  %v2788_v49 = vmax.f32 %v2282_v43, 0.0 }
 0x174   : > { %v2296_v19 = vpop.f32.mrb[69].mxu1  ;;  %v2659_v8 = vmax.f32 %v5466_v59, 0.0  ;;  %v2787_v33 = vmax.f32 %v2277_v24, 0.0  ;;  %v5490_v34 = vadd.f32 %v5391_v58, %v4032_v20  ;;  %v5493_v47 = vadd.f32 %v5391_v58, %v4224_v38 }
 0x175   : > { %v3277_v16 = vmax.f32 %v3181_v54, %v3261_v51  ;;  %3285 = vst.msk [vmem:[%s5234_s21 + $0x10] sm:$0xff] %vm3043_vm4, %v3269_v37  ;;  %v2662_v28 = vmax.f32 %v5477_v22, 0.0  ;;  %v2790_v26 = vmax.f32 %v5480_v3, 0.0  ;;  %v2661_v27 = vmax.f32 %v5483_v4, 0.0 }
 0x176   : > { %v5472_v61 = vpop.f32.mrb[70].mxu0  ;;  %v2789_v1 = vmax.f32 %v5486_v32, 0.0  ;;  %v1657_v48 = vadd.f32 %v5391_v58, %v1656_v23  ;;  %v2297_v12 = vadd.f32 %v5391_v58, %v2296_v19  ;;  %v2664_v0 = vmax.f32 %v5490_v34, 0.0 }
 0x177   : > { %3293 = vst.msk [vmem:[%s5234_s21 + $0x50] sm:$0xff] %vm3043_vm4, %v3277_v16  ;;  %v5474_v10 = vpop.f32.mrb[70].mxu1  ;;  %v1666_v25 = vpop.f32.mrb[71].mxu0  ;;  %v2792_v42 = vmax.f32 %v5493_v47, 0.0  ;;  %v1672_v24 = vadd.f32 %v5391_v58, %v5472_v61 }
 0x178   : > { %v3114_v11 = vld [vmem:[#allocation2 + $0x60] ss:$4 sm:$0xff]  ;;  %v3146_v44 = vld [vmem:[#allocation2 + $0x61] ss:$4 sm:$0xff]  ;;  %v3194_v62 = vld [vmem:[#allocation2 + $0x62] ss:$4 sm:$0xff] }
 0x179   : > { %v3174_v5 = vmax.f32 %v3114_v11, %v3146_v44  ;;  %v3226_v2 = vld [vmem:[#allocation2 + $0x63] ss:$4 sm:$0xff]  ;;  %v3130_v35 = vld [vmem:[#allocation2 + $0x160] ss:$4 sm:$0xff]  ;;  %v3162_v21 = vld [vmem:[#allocation2 + $0x161] ss:$4 sm:$0xff]  ;;  %v2312_v11 = vadd.f32 %v5391_v58, %v5474_v10 }
 0x17a   : > { %v3254_v52 = vmax.f32 %v3194_v62, %v3226_v2  ;;  %v3182_v63 = vmax.f32 %v3130_v35, %v3162_v21  ;;  %v3210_v55 = vld [vmem:[#allocation2 + $0x162] ss:$4 sm:$0xff]  ;;  %v3242_v6 = vld [vmem:[#allocation2 + $0x163] ss:$4 sm:$0xff]  ;;  %v2306_v14 = vpop.f32.mrb[71].mxu1  ;;  %v4038_v57 = vpop.f32.mrb[72].mxu0 }
 0x17b   : > { %v3262_v9 = vmax.f32 %v3210_v55, %v3242_v6  ;;  %v4230_v60 = vpop.f32.mrb[72].mxu1  ;;  %v1682_v36 = vadd.f32 %v5391_v58, %v4038_v57  ;;  %v1676_v31 = vpop.f32.mrb[73].mxu0  ;;  %v2791_v55 = vmax.f32 %v2297_v12, 0.0 }
 0x17c   : > { %v3270_v29 = vmax.f32 %v3174_v5, %v3254_v52  ;;  %v2322_v40 = vadd.f32 %v5391_v58, %v4230_v60  ;;  %v2316_v13 = vpop.f32.mrb[73].mxu1  ;;  %v1677_v39 = vadd.f32 %v5391_v58, %v1676_v31  ;;  %v2794_v31 = vmax.f32 %v2312_v11, 0.0 }
 0x17d   : > { %v3278_v41 = vmax.f32 %v3182_v63, %v3262_v9  ;;  %v2317_v50 = vadd.f32 %v5391_v58, %v2316_v13  ;;  %v2668_v17 = vmax.f32 %v1682_v36, 0.0  ;;  %v2663_v63 = vmax.f32 %v1657_v48, 0.0 }
 0x17e   : > { %3286 = vst.msk [vmem:[%s5234_s21 + $0x18] sm:$0xff] %vm3043_vm4, %v3270_v29  ;;  %v2796_v18 = vmax.f32 %v2322_v40, 0.0  ;;  %v4041_v53 = vpop.f32.mrb[74].mxu0  ;;  %v2667_v15 = vmax.f32 %v1677_v39, 0.0  ;;  %v2307_v9 = vadd.f32 %v5391_v58, %v2306_v14  ;;  %v2666_v40 = vmax.f32 %v1672_v24, 0.0 }
 0x17f   : > { %3294 = vst.msk [vmem:[%s5234_s21 + $0x58] sm:$0xff] %vm3043_vm4, %v3278_v41  ;;  %v4233_v54 = vpop.f32.mrb[74].mxu1  ;;  %v2795_v7 = vmax.f32 %v2317_v50, 0.0  ;;  %v1692_v51 = vadd.f32 %v5391_v58, %v4041_v53  ;;  %v1686_v45 = vpop.f32.mrb[75].mxu0  ;;  %v5513_v37 = vmax.f32 %v2660_v30, %v2668_v17 }
 0x180   : > { %v2332_v56 = vadd.f32 %v5391_v58, %v4233_v54  ;;  %v2326_v46 = vpop.f32.mrb[75].mxu1  ;;  %v5515_v20 = vmax.f32 %v2788_v49, %v2796_v18  ;;  %v1687_v38 = vadd.f32 %v5391_v58, %v1686_v45  ;;  %v5519_v23 = vmax.f32 %v2659_v8, %v2667_v15 }
 0x181   : > { %v2327_v16 = vadd.f32 %v5391_v58, %v2326_v46  ;;  %v5521_v19 = vmax.f32 %v2787_v33, %v2795_v7  ;;  %v2670_v43 = vmax.f32 %v1692_v51, 0.0  ;;  %v1667_v8 = vadd.f32 %v5391_v58, %v1666_v25 }
 0x182   : > { %v2798_v59 = vmax.f32 %v2332_v56, 0.0  ;;  %v2669_v30 = vmax.f32 %v1687_v38, 0.0  ;;  %v4044_v62 = vpop.f32.mrb[76].mxu0  ;;  %v2793_v39 = vmax.f32 %v2307_v9, 0.0 }
 0x183   : > { %v2797_v44 = vmax.f32 %v2327_v16, 0.0  ;;  %v4236_v22 = vpop.f32.mrb[76].mxu1  ;;  %v5527_v3 = vmax.f32 %v2662_v28, %v2670_v43  ;;  %v1702_v5 = vadd.f32 %v5391_v58, %v4044_v62  ;;  %v1696_v35 = vpop.f32.mrb[77].mxu0  ;;  %v2665_v12 = vmax.f32 %v1667_v8, 0.0 }
 0x184   : > { %v5529_v4 = vmax.f32 %v2790_v26, %v2798_v59  ;;  %v2342_v2 = vadd.f32 %v5391_v58, %v4236_v22  ;;  %v2336_v21 = vpop.f32.mrb[77].mxu1  ;;  %v5533_v32 = vmax.f32 %v2661_v27, %v2669_v30  ;;  %v1697_v10 = vadd.f32 %v5391_v58, %v1696_v35 }
 0x185   : > { %v5535_v61 = vmax.f32 %v2789_v1, %v2797_v44  ;;  %v2337_v52 = vadd.f32 %v5391_v58, %v2336_v21  ;;  %v2672_v6 = vmax.f32 %v1702_v5, 0.0 }
 0x186   : > { %v2800_v49 = vmax.f32 %v2342_v2, 0.0  ;;  %v2671_v33 = vmax.f32 %v1697_v10, 0.0  ;;  %v4047_v47 = vpop.f32.mrb[78].mxu0 }
 0x187   : > { %v2799_v34 = vmax.f32 %v2337_v52, 0.0  ;;  %v4239_v29 = vpop.f32.mrb[78].mxu1  ;;  %v5541_v28 = vmax.f32 %v2664_v0, %v2672_v6  ;;  %v1712_v27 = vadd.f32 %v5391_v58, %v4047_v47  ;;  %v1706_v60 = vpop.f32.mrb[79].mxu0 }
 0x188   : > { %v5543_v26 = vmax.f32 %v2792_v42, %v2800_v49  ;;  %v2352_v57 = vadd.f32 %v5391_v58, %v4239_v29  ;;  %v2346_v41 = vpop.f32.mrb[79].mxu1  ;;  %v5547_v1 = vmax.f32 %v2663_v63, %v2671_v33  ;;  %v1707_v25 = vadd.f32 %v5391_v58, %v1706_v60 }
 0x189   : > { %v5549_v36 = vmax.f32 %v2791_v55, %v2799_v34  ;;  %v2347_v14 = vadd.f32 %v5391_v58, %v2346_v41  ;;  %v2674_v13 = vmax.f32 %v1712_v27, 0.0 }
 0x18a   : > { %v2802_v48 = vmax.f32 %v2352_v57, 0.0  ;;  %v2673_v50 = vmax.f32 %v1707_v25, 0.0  ;;  %v4050_v42 = vpop.f32.mrb[80].mxu0 }
 0x18b   : > { %v2801_v0 = vmax.f32 %v2347_v14, 0.0  ;;  %v4242_v17 = vpop.f32.mrb[80].mxu1  ;;  %v5553_v18 = vmax.f32 %v2666_v40, %v2674_v13  ;;  %v1716_v54 = vpop.f32.mrb[81].mxu0  ;;  %v1722_v59 = vadd.f32 %v5391_v58, %v4050_v42 }
 0x18c   : > { %v5555_v53 = vmax.f32 %v2794_v31, %v2802_v48  ;;  %v2356_v15 = vpop.f32.mrb[81].mxu1  ;;  %v5557_v7 = vmax.f32 %v2665_v12, %v2673_v50  ;;  %v2362_v24 = vadd.f32 %v5391_v58, %v4242_v17  ;;  %v1717_v44 = vadd.f32 %v5391_v58, %v1716_v54 }
 0x18d   : > { %v5559_v51 = vmax.f32 %v2793_v39, %v2801_v0  ;;  %v2357_v62 = vadd.f32 %v5391_v58, %v2356_v15  ;;  %v2676_v52 = vmax.f32 %v1722_v59, 0.0 }
 0x18e   : > { %v4053_v56 = vpop.f32.mrb[82].mxu0  ;;  %v2804_v63 = vmax.f32 %v2362_v24, 0.0  ;;  %v2675_v9 = vmax.f32 %v1717_v44, 0.0 }
 0x18f   : > { %v4245_v45 = vpop.f32.mrb[82].mxu1  ;;  %v1726_v46 = vpop.f32.mrb[83].mxu0  ;;  %v5566_v22 = vadd.f32 %v5391_v58, %v4053_v56  ;;  %v2803_v33 = vmax.f32 %v2357_v62, 0.0 }
 0x190   : > { %v2366_v38 = vpop.f32.mrb[83].mxu1  ;;  %v5569_v5 = vadd.f32 %v5391_v58, %v4245_v45  ;;  %v5572_v2 = vadd.f32 %v5391_v58, %v1726_v46 }
 0x191   : > { %v5575_v35 = vadd.f32 %v5391_v58, %v2366_v38  ;;  %v2678_v29 = vmax.f32 %v5566_v22, 0.0 }
 0x192   : > { %v4056_v16 = vpop.f32.mrb[84].mxu0  ;;  %v2806_v27 = vmax.f32 %v5569_v5, 0.0  ;;  %v2677_v41 = vmax.f32 %v5572_v2, 0.0 }
 0x193   : > { %v4248_v43 = vpop.f32.mrb[84].mxu1  ;;  %v1736_v11 = vpop.f32.mrb[85].mxu0  ;;  %v5578_v55 = vadd.f32 %v5391_v58, %v4056_v16  ;;  %v2805_v25 = vmax.f32 %v5575_v35, 0.0 }
 0x194   : > { %v2376_v30 = vpop.f32.mrb[85].mxu1  ;;  %v5581_v6 = vadd.f32 %v5391_v58, %v4248_v43  ;;  %v5584_v34 = vadd.f32 %v5391_v58, %v1736_v11 }
 0x195   : > { %v5587_v47 = vadd.f32 %v5391_v58, %v2376_v30  ;;  %v2680_v48 = vmax.f32 %v5578_v55, 0.0 }
 0x196   : > { %v4059_v21 = vpop.f32.mrb[86].mxu0  ;;  %v2808_v12 = vmax.f32 %v5581_v6, 0.0  ;;  %v2679_v17 = vmax.f32 %v5584_v34, 0.0 }
 0x197   : > { %v4251_v10 = vpop.f32.mrb[86].mxu1  ;;  %v1746_v49 = vpop.f32.mrb[87].mxu0  ;;  %v5592_v57 = vadd.f32 %v5391_v58, %v4059_v21  ;;  %v2807_v54 = vmax.f32 %v5587_v47, 0.0 }
 0x198   : > { %v2386_v8 = vpop.f32.mrb[87].mxu1  ;;  %v5595_v60 = vadd.f32 %v5391_v58, %v4251_v10  ;;  %v5600_v14 = vadd.f32 %v5391_v58, %v1746_v49 }
 0x199   : > { %v5603_v40 = vadd.f32 %v5391_v58, %v2386_v8  ;;  %v2682_v45 = vmax.f32 %v5592_v57, 0.0 }
 0x19a   : > { %v4062_v31 = vpop.f32.mrb[88].mxu0  ;;  %v2810_v46 = vmax.f32 %v5595_v60, 0.0  ;;  %v2681_v43 = vmax.f32 %v5600_v14, 0.0 }
 0x19b   : > { %v4254_v13 = vpop.f32.mrb[88].mxu1  ;;  %v1762_v39 = vadd.f32 %v5391_v58, %v4062_v31  ;;  %v1756_v0 = vpop.f32.mrb[89].mxu0  ;;  %v2809_v59 = vmax.f32 %v5603_v40, 0.0 }
 0x19c   : > { %v2402_v50 = vadd.f32 %v5391_v58, %v4254_v13  ;;  %v2396_v42 = vpop.f32.mrb[89].mxu1  ;;  %v1757_v15 = vadd.f32 %v5391_v58, %v1756_v0 }
 0x19d   : > { %v2397_v56 = vadd.f32 %v5391_v58, %v2396_v42  ;;  %v2684_v38 = vmax.f32 %v1762_v39, 0.0 }
 0x19e   : > { %v2812_v16 = vmax.f32 %v2402_v50, 0.0  ;;  %v2683_v24 = vmax.f32 %v1757_v15, 0.0  ;;  %v4065_v30 = vpop.f32.mrb[90].mxu0 }
 0x19f   : > { %v2811_v11 = vmax.f32 %v2397_v56, 0.0  ;;  %v4257_v44 = vpop.f32.mrb[90].mxu1  ;;  %v2932_v62 = vmax.f32 %v2676_v52, %v2684_v38  ;;  %v1772_v5 = vadd.f32 %v5391_v58, %v4065_v30  ;;  %v1766_v35 = vpop.f32.mrb[91].mxu0 }
 0x1a0   : > { %v2964_v22 = vmax.f32 %v2804_v63, %v2812_v16  ;;  %v2412_v2 = vadd.f32 %v5391_v58, %v4257_v44  ;;  %v2406_v21 = vpop.f32.mrb[91].mxu1  ;;  %v2931_v10 = vmax.f32 %v2675_v9, %v2683_v24  ;;  %v1767_v8 = vadd.f32 %v5391_v58, %v1766_v35 }
 0x1a1   : > { %v2963_v49 = vmax.f32 %v2803_v33, %v2811_v11  ;;  %v2407_v31 = vadd.f32 %v5391_v58, %v2406_v21  ;;  %v2996_v13 = vmax.f32 %v5513_v37, %v2932_v62  ;;  %v2686_v50 = vmax.f32 %v1772_v5, 0.0 }
 0x1a2   : > { %v3028_v39 = vmax.f32 %v5515_v20, %v2964_v22  ;;  %v2814_v0 = vmax.f32 %v2412_v2, 0.0  ;;  %v2995_v52 = vmax.f32 %v5519_v23, %v2931_v10  ;;  %v2685_v42 = vmax.f32 %v1767_v8, 0.0  ;;  %v4068_v56 = vpop.f32.mrb[92].mxu0 }
 0x1a3   : > { %v3027_v63 = vmax.f32 %v5521_v19, %v2963_v49  ;;  %v2813_v15 = vmax.f32 %v2407_v31, 0.0  ;;  %v4260_v38 = vpop.f32.mrb[92].mxu1  ;;  %3061 = vst.msk [vmem:[#allocation2 + $0x88] sm:$0xff] %vm3043_vm4, %v2996_v13  ;;  %v2934_v9 = vmax.f32 %v2678_v29, %v2686_v50  ;;  %v1782_v37 = vadd.f32 %v5391_v58, %v4068_v56  ;;  %v1776_v16 = vpop.f32.mrb[93].mxu0 }
 0x1a4   : > { %3093 = vst.msk [vmem:[#allocation2 + $0x188] sm:$0xff] %vm3043_vm4, %v3028_v39  ;;  %v2966_v33 = vmax.f32 %v2806_v27, %v2814_v0  ;;  %v2422_v20 = vadd.f32 %v5391_v58, %v4260_v38  ;;  %v2416_v24 = vpop.f32.mrb[93].mxu1  ;;  %3060 = vst.msk [vmem:[#allocation2 + $0x80] sm:$0xff] %vm3043_vm4, %v2995_v52  ;;  %v2933_v23 = vmax.f32 %v2677_v41, %v2685_v42 }
 0x1a5   : > { %3092 = vst.msk [vmem:[#allocation2 + $0x180] sm:$0xff] %vm3043_vm4, %v3027_v63  ;;  %v2965_v19 = vmax.f32 %v2805_v25, %v2813_v15  ;;  %v1777_v11 = vadd.f32 %v5391_v58, %v1776_v16  ;;  %v2417_v30 = vadd.f32 %v5391_v58, %v2416_v24  ;;  %v2998_v44 = vmax.f32 %v5527_v3, %v2934_v9 }
 0x1a6   : > { %v3030_v29 = vmax.f32 %v5529_v4, %v2966_v33  ;;  %v2688_v27 = vmax.f32 %v1782_v37, 0.0  ;;  %v2816_v62 = vmax.f32 %v2422_v20, 0.0  ;;  %v2997_v22 = vmax.f32 %v5533_v32, %v2933_v23  ;;  %v4071_v21 = vpop.f32.mrb[94].mxu0 }
 0x1a7   : > { %v3029_v5 = vmax.f32 %v5535_v61, %v2965_v19  ;;  %v2687_v2 = vmax.f32 %v1777_v11, 0.0  ;;  %v2815_v35 = vmax.f32 %v2417_v30, 0.0  ;;  %v4263_v10 = vpop.f32.mrb[94].mxu1  ;;  %3063 = vst.msk [vmem:[#allocation2 + $0x98] sm:$0xff] %vm3043_vm4, %v2998_v44  ;;  %v1792_v4 = vadd.f32 %v5391_v58, %v4071_v21  ;;  %v1786_v25 = vpop.f32.mrb[95].mxu0 }
 0x1a8   : > { %3095 = vst.msk [vmem:[#allocation2 + $0x198] sm:$0xff] %vm3043_vm4, %v3030_v29  ;;  %v2936_v41 = vmax.f32 %v2680_v48, %v2688_v27  ;;  %v2968_v3 = vmax.f32 %v2808_v12, %v2816_v62  ;;  %v2432_v32 = vadd.f32 %v5391_v58, %v4263_v10  ;;  %v2426_v61 = vpop.f32.mrb[95].mxu1  ;;  %3062 = vst.msk [vmem:[#allocation2 + $0x90] sm:$0xff] %vm3043_vm4, %v2997_v22 }
 0x1a9   : > { %3094 = vst.msk [vmem:[#allocation2 + $0x190] sm:$0xff] %vm3043_vm4, %v3029_v5  ;;  %v2935_v49 = vmax.f32 %v2679_v17, %v2687_v2  ;;  %v2967_v55 = vmax.f32 %v2807_v54, %v2815_v35  ;;  %v1787_v48 = vadd.f32 %v5391_v58, %v1786_v25  ;;  %v2427_v6 = vadd.f32 %v5391_v58, %v2426_v61 }
 0x1aa   : > { %v3000_v12 = vmax.f32 %v5541_v28, %v2936_v41  ;;  %v3032_v8 = vmax.f32 %v5543_v26, %v2968_v3  ;;  %v2690_v31 = vmax.f32 %v1792_v4, 0.0  ;;  %v2818_v13 = vmax.f32 %v2432_v32, 0.0  ;;  %v4074_v17 = vpop.f32.mrb[96].mxu0 }
 0x1ab   : > { %v2999_v39 = vmax.f32 %v5547_v1, %v2935_v49  ;;  %v3031_v50 = vmax.f32 %v5549_v36, %v2967_v55  ;;  %v2689_v0 = vmax.f32 %v1787_v48, 0.0  ;;  %v2817_v34 = vmax.f32 %v2427_v6, 0.0  ;;  %v4266_v52 = vpop.f32.mrb[96].mxu1  ;;  %v1796_v26 = vpop.f32.mrb[97].mxu0 }
 0x1ac   : > { %3065 = vst.msk [vmem:[#allocation2 + $0xa8] sm:$0xff] %vm3043_vm4, %v3000_v12  ;;  %3097 = vst.msk [vmem:[#allocation2 + $0x1a8] sm:$0xff] %vm3043_vm4, %v3032_v8  ;;  %v2938_v47 = vmax.f32 %v2682_v45, %v2690_v31  ;;  %v2970_v28 = vmax.f32 %v2810_v46, %v2818_v13  ;;  %v2436_v54 = vpop.f32.mrb[97].mxu1  ;;  %v5678_v33 = vadd.f32 %v5391_v58, %v4074_v17 }
 0x1ad   : > { %3064 = vst.msk [vmem:[#allocation2 + $0xa0] sm:$0xff] %vm3043_vm4, %v2999_v39  ;;  %3096 = vst.msk [vmem:[#allocation2 + $0x1a0] sm:$0xff] %vm3043_vm4, %v3031_v50  ;;  %v2937_v1 = vmax.f32 %v2681_v43, %v2689_v0  ;;  %v2969_v36 = vmax.f32 %v2809_v59, %v2817_v34  ;;  %v2442_v44 = vadd.f32 %v5391_v58, %v4266_v52 }
 0x1ae   : > { %v3002_v63 = vmax.f32 %v5553_v18, %v2938_v47  ;;  %v3034_v57 = vmax.f32 %v5555_v53, %v2970_v28  ;;  %v4077_v46 = vpop.f32.mrb[98].mxu0  ;;  %v5684_v29 = vadd.f32 %v5391_v58, %v1796_v26  ;;  %v2692_v27 = vmax.f32 %v5678_v33, 0.0 }
 0x1af   : > { %v3001_v45 = vmax.f32 %v5557_v7, %v2937_v1  ;;  %v3033_v60 = vmax.f32 %v5559_v51, %v2969_v36  ;;  %v4269_v42 = vpop.f32.mrb[98].mxu1  ;;  %v3116_v15 = vld [vmem:[#allocation2 + $0x80] ss:$4 sm:$0xff]  ;;  %v3148_v56 = vld [vmem:[#allocation2 + $0x81] ss:$4 sm:$0xff]  ;;  %v1806_v37 = vpop.f32.mrb[99].mxu0  ;;  %v2437_v62 = vadd.f32 %v5391_v58, %v2436_v54  ;;  %v5695_v10 = vadd.f32 %v5391_v58, %v4077_v46 }
 0x1b0   : > { %v3196_v38 = vld [vmem:[#allocation2 + $0x82] ss:$4 sm:$0xff]  ;;  %3067 = vst.msk [vmem:[#allocation2 + $0xb8] sm:$0xff] %vm3043_vm4, %v3002_v63  ;;  %3099 = vst.msk [vmem:[#allocation2 + $0x1b8] sm:$0xff] %vm3043_vm4, %v3034_v57  ;;  %v3175_v14 = vmax.f32 %v3116_v15, %v3148_v56  ;;  %v3228_v40 = vld [vmem:[#allocation2 + $0x83] ss:$4 sm:$0xff]  ;;  %v5698_v41 = vadd.f32 %v5391_v58, %v4269_v42  ;;  %v5701_v3 = vadd.f32 %v5391_v58, %v1806_v37 }
 0x1b1   : > { %v3132_v43 = vld [vmem:[#allocation2 + $0x180] ss:$4 sm:$0xff]  ;;  %v3164_v59 = vld [vmem:[#allocation2 + $0x181] ss:$4 sm:$0xff]  ;;  %3066 = vst.msk [vmem:[#allocation2 + $0xb0] sm:$0xff] %vm3043_vm4, %v3001_v45  ;;  %3098 = vst.msk [vmem:[#allocation2 + $0x1b0] sm:$0xff] %vm3043_vm4, %v3033_v60  ;;  %v3255_v18 = vmax.f32 %v3196_v38, %v3228_v40 }
 0x1b2   : > { %v3183_v53 = vmax.f32 %v3132_v43, %v3164_v59  ;;  %v3212_v7 = vld [vmem:[#allocation2 + $0x182] ss:$4 sm:$0xff]  ;;  %v3244_v51 = vld [vmem:[#allocation2 + $0x183] ss:$4 sm:$0xff]  ;;  %v2446_v20 = vpop.f32.mrb[99].mxu1  ;;  %v4080_v24 = vpop.f32.mrb[100].mxu0 }
 0x1b3   : > { %v3263_v9 = vmax.f32 %v3212_v7, %v3244_v51  ;;  %v3271_v16 = vmax.f32 %v3175_v14, %v3255_v18  ;;  %v4272_v23 = vpop.f32.mrb[100].mxu1  ;;  %v1816_v11 = vpop.f32.mrb[101].mxu0  ;;  %v5704_v49 = vadd.f32 %v5391_v58, %v2446_v20  ;;  %v2820_v8 = vmax.f32 %v2442_v44, 0.0 }
 0x1b4   : > { %v2456_v30 = vpop.f32.mrb[101].mxu1  ;;  %v2691_v31 = vmax.f32 %v5684_v29, 0.0  ;;  %v2819_v39 = vmax.f32 %v2437_v62, 0.0  ;;  %v5708_v50 = vadd.f32 %v5391_v58, %v4080_v24  ;;  %v5711_v0 = vadd.f32 %v5391_v58, %v4272_v23 }
 0x1b5   : > { %v3279_v19 = vmax.f32 %v3183_v53, %v3263_v9  ;;  %3287 = vst.msk [vmem:[%s5234_s21 + $0x20] sm:$0xff] %vm3043_vm4, %v3271_v16  ;;  %v2694_v47 = vmax.f32 %v5695_v10, 0.0  ;;  %v2822_v28 = vmax.f32 %v5698_v41, 0.0  ;;  %v2693_v26 = vmax.f32 %v5701_v3, 0.0 }
 0x1b6   : > { %v5690_v22 = vpop.f32.mrb[102].mxu0  ;;  %v2821_v63 = vmax.f32 %v5704_v49, 0.0  ;;  %v1817_v42 = vadd.f32 %v5391_v58, %v1816_v11  ;;  %v2457_v15 = vadd.f32 %v5391_v58, %v2456_v30  ;;  %v2696_v14 = vmax.f32 %v5708_v50, 0.0 }
 0x1b7   : > { %3295 = vst.msk [vmem:[%s5234_s21 + $0x60] sm:$0xff] %vm3043_vm4, %v3279_v19  ;;  %v5692_v5 = vpop.f32.mrb[102].mxu1  ;;  %v1826_v34 = vpop.f32.mrb[103].mxu0  ;;  %v2824_v40 = vmax.f32 %v5711_v0, 0.0  ;;  %v1832_v62 = vadd.f32 %v5391_v58, %v5690_v22 }
 0x1b8   : > { %v3118_v2 = vld [vmem:[#allocation2 + $0xa0] ss:$4 sm:$0xff]  ;;  %v3150_v35 = vld [vmem:[#allocation2 + $0xa1] ss:$4 sm:$0xff]  ;;  %v3198_v21 = vld [vmem:[#allocation2 + $0xa2] ss:$4 sm:$0xff] }
 0x1b9   : > { %v3176_v4 = vmax.f32 %v3118_v2, %v3150_v35  ;;  %v3230_v32 = vld [vmem:[#allocation2 + $0xa3] ss:$4 sm:$0xff]  ;;  %v3134_v25 = vld [vmem:[#allocation2 + $0x1a0] ss:$4 sm:$0xff]  ;;  %v3166_v61 = vld [vmem:[#allocation2 + $0x1a1] ss:$4 sm:$0xff]  ;;  %v2472_v2 = vadd.f32 %v5391_v58, %v5692_v5 }
 0x1ba   : > { %v3256_v55 = vmax.f32 %v3198_v21, %v3230_v32  ;;  %v3184_v48 = vmax.f32 %v3134_v25, %v3166_v61  ;;  %v3214_v6 = vld [vmem:[#allocation2 + $0x1a2] ss:$4 sm:$0xff]  ;;  %v3246_v12 = vld [vmem:[#allocation2 + $0x1a3] ss:$4 sm:$0xff]  ;;  %v2466_v17 = vpop.f32.mrb[103].mxu1  ;;  %v4086_v54 = vpop.f32.mrb[104].mxu0 }
 0x1bb   : > { %v3264_v13 = vmax.f32 %v3214_v6, %v3246_v12  ;;  %v4278_v1 = vpop.f32.mrb[104].mxu1  ;;  %v1842_v57 = vadd.f32 %v5391_v58, %v4086_v54  ;;  %v1836_v60 = vpop.f32.mrb[105].mxu0  ;;  %v2823_v6 = vmax.f32 %v2457_v15, 0.0 }
 0x1bc   : > { %v3272_v52 = vmax.f32 %v3176_v4, %v3256_v55  ;;  %v2482_v45 = vadd.f32 %v5391_v58, %v4278_v1  ;;  %v2476_v46 = vpop.f32.mrb[105].mxu1  ;;  %v1837_v56 = vadd.f32 %v5391_v58, %v1836_v60  ;;  %v2698_v60 = vmax.f32 %v1832_v62, 0.0 }
 0x1bd   : > { %v3280_v36 = vmax.f32 %v3184_v48, %v3264_v13  ;;  %v2477_v38 = vadd.f32 %v5391_v58, %v2476_v46  ;;  %v2700_v43 = vmax.f32 %v1842_v57, 0.0  ;;  %v2695_v48 = vmax.f32 %v1817_v42, 0.0 }
 0x1be   : > { %3288 = vst.msk [vmem:[%s5234_s21 + $0x28] sm:$0xff] %vm3043_vm4, %v3272_v52  ;;  %v2828_v59 = vmax.f32 %v2482_v45, 0.0  ;;  %v4089_v18 = vpop.f32.mrb[106].mxu0  ;;  %v2699_v7 = vmax.f32 %v1837_v56, 0.0  ;;  %v2467_v13 = vadd.f32 %v5391_v58, %v2466_v17  ;;  %v2826_v46 = vmax.f32 %v2472_v2, 0.0 }
 0x1bf   : > { %3296 = vst.msk [vmem:[%s5234_s21 + $0x68] sm:$0xff] %vm3043_vm4, %v3280_v36  ;;  %v4281_v53 = vpop.f32.mrb[106].mxu1  ;;  %v2827_v51 = vmax.f32 %v2477_v38, 0.0  ;;  %v1852_v9 = vadd.f32 %v5391_v58, %v4089_v18  ;;  %v1846_v37 = vpop.f32.mrb[107].mxu0  ;;  %v5731_v16 = vmax.f32 %v2692_v27, %v2700_v43 }
 0x1c0   : > { %v2492_v33 = vadd.f32 %v5391_v58, %v4281_v53  ;;  %v2486_v20 = vpop.f32.mrb[107].mxu1  ;;  %v5733_v24 = vmax.f32 %v2820_v8, %v2828_v59  ;;  %v1847_v23 = vadd.f32 %v5391_v58, %v1846_v37  ;;  %v5737_v11 = vmax.f32 %v2691_v31, %v2699_v7 }
 0x1c1   : > { %v2487_v19 = vadd.f32 %v5391_v58, %v2486_v20  ;;  %v5739_v30 = vmax.f32 %v2819_v39, %v2827_v51  ;;  %v2702_v44 = vmax.f32 %v1852_v9, 0.0  ;;  %v1827_v31 = vadd.f32 %v5391_v58, %v1826_v34  ;;  %v5772_v34 = vld [vmem:[%s5923_s2] ss:$0 sm:$0xff] }
 0x1c2   : > { %v2830_v29 = vmax.f32 %v2492_v33, 0.0  ;;  %v2701_v27 = vmax.f32 %v1847_v23, 0.0  ;;  %v4092_v21 = vpop.f32.mrb[108].mxu0  ;;  %v2825_v56 = vmax.f32 %v2467_v13, 0.0 }
 0x1c3   : > { %v2829_v35 = vmax.f32 %v2487_v19, 0.0  ;;  %v4284_v10 = vpop.f32.mrb[108].mxu1  ;;  %v5745_v41 = vmax.f32 %v2694_v47, %v2702_v44  ;;  %v1862_v4 = vadd.f32 %v5391_v58, %v4092_v21  ;;  %v1856_v25 = vpop.f32.mrb[109].mxu0 }
 0x1c4   : > { %v5747_v3 = vmax.f32 %v2822_v28, %v2830_v29  ;;  %v2502_v32 = vadd.f32 %v5391_v58, %v4284_v10  ;;  %v2496_v61 = vpop.f32.mrb[109].mxu1  ;;  %v5751_v49 = vmax.f32 %v2693_v26, %v2701_v27  ;;  %v1857_v5 = vadd.f32 %v5391_v58, %v1856_v25 }
 0x1c5   : > { %v5753_v22 = vmax.f32 %v2821_v63, %v2829_v35  ;;  %v2497_v55 = vadd.f32 %v5391_v58, %v2496_v61  ;;  %v2704_v12 = vmax.f32 %v1862_v4, 0.0 }
 0x1c6   : > { %v2832_v8 = vmax.f32 %v2502_v32, 0.0  ;;  %v2703_v39 = vmax.f32 %v1857_v5, 0.0  ;;  %v4095_v0 = vpop.f32.mrb[110].mxu0 }
 0x1c7   : > { %v2831_v50 = vmax.f32 %v2497_v55, 0.0  ;;  %v4287_v52 = vpop.f32.mrb[110].mxu1  ;;  %v5759_v47 = vmax.f32 %v2696_v14, %v2704_v12  ;;  %v1872_v26 = vadd.f32 %v5391_v58, %v4095_v0  ;;  %v1866_v1 = vpop.f32.mrb[111].mxu0 }
 0x1c8   : > { %v5761_v28 = vmax.f32 %v2824_v40, %v2832_v8  ;;  %v2512_v54 = vadd.f32 %v5391_v58, %v4287_v52  ;;  %v2506_v36 = vpop.f32.mrb[111].mxu1  ;;  %v5765_v63 = vmax.f32 %v2695_v48, %v2703_v39  ;;  %v1867_v17 = vadd.f32 %v5772_v34, %v1866_v1 }
 0x1c9   : > { %v5767_v57 = vmax.f32 %v2823_v6, %v2831_v50  ;;  %v2507_v45 = vadd.f32 %v5772_v34, %v2506_v36  ;;  %v2706_v42 = vmax.f32 %v1872_v26, 0.0  ;;  %v2697_v58 = vmax.f32 %v1827_v31, 0.0 }
 0x1ca   : > { %v2834_v15 = vmax.f32 %v2512_v54, 0.0  ;;  %v2705_v38 = vmax.f32 %v1867_v17, 0.0  ;;  %v4098_v40 = vpop.f32.mrb[112].mxu0 }
 0x1cb   : > { %v2833_v14 = vmax.f32 %v2507_v45, 0.0  ;;  %v4290_v43 = vpop.f32.mrb[112].mxu1  ;;  %v5776_v59 = vmax.f32 %v2698_v60, %v2706_v42  ;;  %v1876_v53 = vpop.f32.mrb[113].mxu0  ;;  %v1882_v62 = vadd.f32 %v5772_v34, %v4098_v40 }
 0x1cc   : > { %v5778_v18 = vmax.f32 %v2826_v46, %v2834_v15  ;;  %v2516_v7 = vpop.f32.mrb[113].mxu1  ;;  %v5780_v51 = vmax.f32 %v2697_v58, %v2705_v38  ;;  %v2522_v2 = vadd.f32 %v5772_v34, %v4290_v43  ;;  %v1877_v35 = vadd.f32 %v5772_v34, %v1876_v53 }
 0x1cd   : > { %v5782_v9 = vmax.f32 %v2825_v56, %v2833_v14  ;;  %v2517_v21 = vadd.f32 %v5772_v34, %v2516_v7  ;;  %v2708_v6 = vmax.f32 %v1882_v62, 0.0 }
 0x1ce   : > { %v4101_v33 = vpop.f32.mrb[114].mxu0  ;;  %v2836_v12 = vmax.f32 %v2522_v2, 0.0  ;;  %v2707_v39 = vmax.f32 %v1877_v35, 0.0 }
 0x1cf   : > { %v4293_v37 = vpop.f32.mrb[114].mxu1  ;;  %v1886_v20 = vpop.f32.mrb[115].mxu0  ;;  %v5789_v10 = vadd.f32 %v5772_v34, %v4101_v33  ;;  %v2835_v50 = vmax.f32 %v2517_v21, 0.0 }
 0x1d0   : > { %v2526_v23 = vpop.f32.mrb[115].mxu1  ;;  %v5792_v4 = vadd.f32 %v5772_v34, %v4293_v37  ;;  %v5795_v32 = vadd.f32 %v5772_v34, %v1886_v20 }
 0x1d1   : > { %v5798_v61 = vadd.f32 %v5772_v34, %v2526_v23  ;;  %v2710_v26 = vmax.f32 %v5789_v10, 0.0 }
 0x1d2   : > { %v4104_v19 = vpop.f32.mrb[116].mxu0  ;;  %v2838_v54 = vmax.f32 %v5792_v4, 0.0  ;;  %v2709_v1 = vmax.f32 %v5795_v32, 0.0 }
 0x1d3   : > { %v4296_v44 = vpop.f32.mrb[116].mxu1  ;;  %v1896_v29 = vpop.f32.mrb[117].mxu0  ;;  %v5801_v5 = vadd.f32 %v5772_v34, %v4104_v19  ;;  %v2837_v45 = vmax.f32 %v5798_v61, 0.0 }
 0x1d4   : > { %v2536_v27 = vpop.f32.mrb[117].mxu1  ;;  %v5804_v8 = vadd.f32 %v5772_v34, %v4296_v44  ;;  %v5807_v31 = vadd.f32 %v5772_v34, %v1896_v29 }
 0x1d5   : > { %v5810_v0 = vadd.f32 %v5772_v34, %v2536_v27  ;;  %v2712_v60 = vmax.f32 %v5801_v5, 0.0 }
 0x1d6   : > { %v4107_v25 = vpop.f32.mrb[118].mxu0  ;;  %v2840_v56 = vmax.f32 %v5804_v8, 0.0  ;;  %v2711_v38 = vmax.f32 %v5807_v31, 0.0 }
 0x1d7   : > { %v4299_v55 = vpop.f32.mrb[118].mxu1  ;;  %v1906_v48 = vpop.f32.mrb[119].mxu0  ;;  %v5813_v52 = vadd.f32 %v5772_v34, %v4107_v25  ;;  %v2839_v53 = vmax.f32 %v5810_v0, 0.0 }
 0x1d8   : > { %v2546_v13 = vpop.f32.mrb[119].mxu1  ;;  %v5819_v36 = vadd.f32 %v5772_v34, %v4299_v55  ;;  %v5824_v46 = vadd.f32 %v5772_v34, %v1906_v48 }
 0x1d9   : > { %v2714_v7 = vmax.f32 %v5813_v52, 0.0  ;;  %v5836_v23 = vadd.f32 %v5772_v34, %v2546_v13 }
 0x1da   : > { %v4110_v17 = vpop.f32.mrb[120].mxu0  ;;  %v2842_v20 = vmax.f32 %v5819_v36, 0.0  ;;  %v2713_v62 = vmax.f32 %v5824_v46, 0.0 }
 0x1db   : > { %v1922_v42 = vadd.f32 %v5772_v34, %v4110_v17  ;;  %v4302_v15 = vpop.f32.mrb[120].mxu1  ;;  %v1916_v58 = vpop.f32.mrb[121].mxu0 }
 0x1dc   : > { %v2562_v14 = vadd.f32 %v5772_v34, %v4302_v15  ;;  %v1917_v40 = vadd.f32 %v5772_v34, %v1916_v58  ;;  %v2556_v43 = vpop.f32.mrb[121].mxu1 }
 0x1dd   : > { %v2716_v33 = vmax.f32 %v1922_v42, 0.0  ;;  %v2557_v37 = vadd.f32 %v5772_v34, %v2556_v43 }
 0x1de   : > { %v2844_v19 = vmax.f32 %v2562_v14, 0.0  ;;  %v2715_v44 = vmax.f32 %v1917_v40, 0.0  ;;  %v4113_v29 = vpop.f32.mrb[122].mxu0 }
 0x1df   : > { %v2940_v2 = vmax.f32 %v2708_v6, %v2716_v33  ;;  %v2843_v27 = vmax.f32 %v2557_v37, 0.0  ;;  %v1932_v35 = vadd.f32 %v5772_v34, %v4113_v29  ;;  %v4305_v21 = vpop.f32.mrb[122].mxu1  ;;  %v1926_v10 = vpop.f32.mrb[123].mxu0 }
 0x1e0   : > { %v2972_v4 = vmax.f32 %v2836_v12, %v2844_v19  ;;  %v2939_v32 = vmax.f32 %v2707_v39, %v2715_v44  ;;  %v2572_v25 = vadd.f32 %v5772_v34, %v4305_v21  ;;  %v1927_v61 = vadd.f32 %v5772_v34, %v1926_v10  ;;  %v2566_v55 = vpop.f32.mrb[123].mxu1 }
 0x1e1   : > { %v3004_v48 = vmax.f32 %v5731_v16, %v2940_v2  ;;  %v2971_v13 = vmax.f32 %v2835_v50, %v2843_v27  ;;  %v2718_v17 = vmax.f32 %v1932_v35, 0.0  ;;  %v2567_v42 = vadd.f32 %v5772_v34, %v2566_v55 }
 0x1e2   : > { %v3036_v6 = vmax.f32 %v5733_v24, %v2972_v4  ;;  %v3003_v15 = vmax.f32 %v5737_v11, %v2939_v32  ;;  %v2846_v58 = vmax.f32 %v2572_v25, 0.0  ;;  %v2717_v14 = vmax.f32 %v1927_v61, 0.0  ;;  %v4116_v40 = vpop.f32.mrb[124].mxu0 }
 0x1e3   : > { %3069 = vst.msk [vmem:[#allocation2 + $0xc8] sm:$0xff] %vm3043_vm4, %v3004_v48  ;;  %v3035_v12 = vmax.f32 %v5739_v30, %v2971_v13  ;;  %v2942_v39 = vmax.f32 %v2710_v26, %v2718_v17  ;;  %v2845_v43 = vmax.f32 %v2567_v42, 0.0  ;;  %v1942_v33 = vadd.f32 %v5772_v34, %v4116_v40  ;;  %v4308_v16 = vpop.f32.mrb[124].mxu1  ;;  %v1936_v50 = vpop.f32.mrb[125].mxu0 }
 0x1e4   : > { %3101 = vst.msk [vmem:[#allocation2 + $0x1c8] sm:$0xff] %vm3043_vm4, %v3036_v6  ;;  %3068 = vst.msk [vmem:[#allocation2 + $0xc0] sm:$0xff] %vm3043_vm4, %v3003_v15  ;;  %v2974_v24 = vmax.f32 %v2838_v54, %v2846_v58  ;;  %v2941_v37 = vmax.f32 %v2709_v1, %v2717_v14  ;;  %v2582_v11 = vadd.f32 %v5772_v34, %v4308_v16  ;;  %v2576_v44 = vpop.f32.mrb[125].mxu1  ;;  %v2841_v17 = vmax.f32 %v5836_v23, 0.0 }
 0x1e5   : > { %v1937_v19 = vadd.f32 %v5772_v34, %v1936_v50  ;;  %3100 = vst.msk [vmem:[#allocation2 + $0x1c0] sm:$0xff] %vm3043_vm4, %v3035_v12  ;;  %v3006_v30 = vmax.f32 %v5745_v41, %v2942_v39  ;;  %v2973_v26 = vmax.f32 %v2837_v45, %v2845_v43  ;;  %v2720_v29 = vmax.f32 %v1942_v33, 0.0 }
 0x1e6   : > { %v2577_v2 = vadd.f32 %v5772_v34, %v2576_v44  ;;  %v3038_v27 = vmax.f32 %v5747_v3, %v2974_v24  ;;  %v3005_v35 = vmax.f32 %v5751_v49, %v2941_v37  ;;  %v2848_v21 = vmax.f32 %v2582_v11, 0.0  ;;  %v4119_v1 = vpop.f32.mrb[126].mxu0 }
 0x1e7   : > { %v2719_v54 = vmax.f32 %v1937_v19, 0.0  ;;  %3071 = vst.msk [vmem:[#allocation2 + $0xd8] sm:$0xff] %vm3043_vm4, %v3006_v30  ;;  %v3037_v10 = vmax.f32 %v5753_v22, %v2973_v26  ;;  %v2944_v4 = vmax.f32 %v2712_v60, %v2720_v29  ;;  %v1952_v41 = vadd.f32 %v5772_v34, %v4119_v1  ;;  %v4311_v45 = vpop.f32.mrb[126].mxu1  ;;  %v1946_v25 = vpop.f32.mrb[127].mxu0 }
 0x1e8   : > { %v2847_v32 = vmax.f32 %v2577_v2, 0.0  ;;  %3103 = vst.msk [vmem:[#allocation2 + $0x1d8] sm:$0xff] %vm3043_vm4, %v3038_v27  ;;  %3070 = vst.msk [vmem:[#allocation2 + $0xd0] sm:$0xff] %vm3043_vm4, %v3005_v35  ;;  %v2976_v3 = vmax.f32 %v2840_v56, %v2848_v21  ;;  %v2592_v22 = vadd.f32 %v5772_v34, %v4311_v45  ;;  %v1947_v5 = vadd.f32 %v5772_v34, %v1946_v25  ;;  %v2586_v60 = vpop.f32.mrb[127].mxu1 }
 0x1e9   : > { %v2943_v49 = vmax.f32 %v2711_v38, %v2719_v54  ;;  %3102 = vst.msk [vmem:[#allocation2 + $0x1d0] sm:$0xff] %vm3043_vm4, %v3037_v10  ;;  %v3008_v61 = vmax.f32 %v5759_v47, %v2944_v4  ;;  %v2722_v48 = vmax.f32 %v1952_v41, 0.0  ;;  %v2587_v13 = vadd.f32 %v5772_v34, %v2586_v60 }
 0x1ea   : > { %v2975_v55 = vmax.f32 %v2839_v53, %v2847_v32  ;;  %v3040_v8 = vmax.f32 %v5761_v28, %v2976_v3  ;;  %v2850_v56 = vmax.f32 %v2592_v22, 0.0  ;;  %v2721_v38 = vmax.f32 %v1947_v5, 0.0 }
 0x1eb   : > { %v3007_v31 = vmax.f32 %v5765_v63, %v2943_v49  ;;  %3073 = vst.msk [vmem:[#allocation2 + $0xe8] sm:$0xff] %vm3043_vm4, %v3008_v61  ;;  %v2946_v47 = vmax.f32 %v2714_v7, %v2722_v48  ;;  %v2849_v0 = vmax.f32 %v2587_v13, 0.0 }
 0x1ec   : > { %v3039_v42 = vmax.f32 %v5767_v57, %v2975_v55  ;;  %3105 = vst.msk [vmem:[#allocation2 + $0x1e8] sm:$0xff] %vm3043_vm4, %v3040_v8  ;;  %v2978_v28 = vmax.f32 %v2842_v20, %v2850_v56  ;;  %v2945_v63 = vmax.f32 %v2713_v62, %v2721_v38 }
 0x1ed   : > { %3072 = vst.msk [vmem:[#allocation2 + $0xe0] sm:$0xff] %vm3043_vm4, %v3007_v31  ;;  %v3010_v34 = vmax.f32 %v5776_v59, %v2946_v47  ;;  %v2977_v53 = vmax.f32 %v2841_v17, %v2849_v0 }
 0x1ee   : > { %3104 = vst.msk [vmem:[#allocation2 + $0x1e0] sm:$0xff] %vm3043_vm4, %v3039_v42  ;;  %v3042_v57 = vmax.f32 %v5778_v18, %v2978_v28  ;;  %v3009_v52 = vmax.f32 %v5780_v51, %v2945_v63 }
 0x1ef   : > { %v3120_v7 = vld [vmem:[#allocation2 + $0xc0] ss:$4 sm:$0xff]  ;;  %v3152_v23 = vld [vmem:[#allocation2 + $0xc1] ss:$4 sm:$0xff]  ;;  %v3200_v6 = vld [vmem:[#allocation2 + $0xc2] ss:$4 sm:$0xff]  ;;  %v3041_v36 = vmax.f32 %v5782_v9, %v2977_v53 }
 0x1f0   : > { %3075 = vst.msk [vmem:[#allocation2 + $0xf8] sm:$0xff] %vm3043_vm4, %v3010_v34  ;;  %v3177_v46 = vmax.f32 %v3120_v7, %v3152_v23  ;;  %v3232_v20 = vld [vmem:[#allocation2 + $0xc3] ss:$4 sm:$0xff]  ;;  %v3136_v62 = vld [vmem:[#allocation2 + $0x1c0] ss:$4 sm:$0xff]  ;;  %3107 = vst.msk [vmem:[#allocation2 + $0x1f8] sm:$0xff] %vm3043_vm4, %v3042_v57 }
 0x1f1   : > { %v3168_v15 = vld [vmem:[#allocation2 + $0x1c1] ss:$4 sm:$0xff]  ;;  %3074 = vst.msk [vmem:[#allocation2 + $0xf0] sm:$0xff] %vm3043_vm4, %v3009_v52  ;;  %v3257_v59 = vmax.f32 %v3200_v6, %v3232_v20  ;;  %v3216_v51 = vld [vmem:[#allocation2 + $0x1c2] ss:$4 sm:$0xff]  ;;  %3106 = vst.msk [vmem:[#allocation2 + $0x1f0] sm:$0xff] %vm3043_vm4, %v3041_v36 }
 0x1f2   : > { %v3185_v18 = vmax.f32 %v3136_v62, %v3168_v15  ;;  %v3248_v58 = vld [vmem:[#allocation2 + $0x1c3] ss:$4 sm:$0xff] }
 0x1f3   : > { %v3265_v14 = vmax.f32 %v3216_v51, %v3248_v58  ;;  %v3273_v40 = vmax.f32 %v3177_v46, %v3257_v59 }
 0x1f5   : > { %v3281_v12 = vmax.f32 %v3185_v18, %v3265_v14  ;;  %3289 = vst.msk [vmem:[%s5234_s21 + $0x30] sm:$0xff] %vm3043_vm4, %v3273_v40 }
 0x1f7   : > { %3297 = vst.msk [vmem:[%s5234_s21 + $0x70] sm:$0xff] %vm3043_vm4, %v3281_v12 }
 0x1f8   : > { %v3122_v9 = vld [vmem:[#allocation2 + $0xe0] ss:$4 sm:$0xff]  ;;  %v3154_v39 = vld [vmem:[#allocation2 + $0xe1] ss:$4 sm:$0xff]  ;;  %v3202_v43 = vld [vmem:[#allocation2 + $0xe2] ss:$4 sm:$0xff] }
 0x1f9   : > { %v3178_v33 = vmax.f32 %v3122_v9, %v3154_v39  ;;  %v3234_v16 = vld [vmem:[#allocation2 + $0xe3] ss:$4 sm:$0xff]  ;;  %v3138_v50 = vld [vmem:[#allocation2 + $0x1e0] ss:$4 sm:$0xff]  ;;  %v3170_v24 = vld [vmem:[#allocation2 + $0x1e1] ss:$4 sm:$0xff] }
 0x1fa   : > { %v3258_v37 = vmax.f32 %v3202_v43, %v3234_v16  ;;  %v3186_v11 = vmax.f32 %v3138_v50, %v3170_v24  ;;  %v3218_v19 = vld [vmem:[#allocation2 + $0x1e2] ss:$4 sm:$0xff]  ;;  %v3250_v44 = vld [vmem:[#allocation2 + $0x1e3] ss:$4 sm:$0xff] }
 0x1fb   : > { %v3266_v30 = vmax.f32 %v3218_v19, %v3250_v44 }
 0x1fc   : > { %v3274_v26 = vmax.f32 %v3178_v33, %v3258_v37 }
 0x1fd   : > { %v3282_v29 = vmax.f32 %v3186_v11, %v3266_v30 }
 0x1fe   : > { %3290 = vst.msk [vmem:[%s5234_s21 + $0x38] sm:$0xff] %vm3043_vm4, %v3274_v26 }
 0x1ff   : > { %3298 = vst.msk [vmem:[%s5234_s21 + $0x78] sm:$0xff] %vm3043_vm4, %v3282_v29 }
 0x200 PF: > { %s13_s16 = sadd.s32 1, %s4407_s16   ;;  %s5926_s12 = smov %s4399_s14 }
 0x201   : > { %p10_p8 = scmp.ge.s32.totalorder %s13_s16, 6   ;;  %s5927_s13 = smov %s4403_s15 }
 0x202   : > { %s5928_s14 = smov %s5931_s17  ;;  %s5929_s15 = smov %s5935_s18 }
 0x203   :  { %12 = sbr.rel (!%p10_p8) target bundleno = 3 (0x3), region = 125 }

// kernel: forward.4
= control target key start
LH: loop header
LB: loop body
LE: loop exit
PB: predicated region body
PF: predicated region fallthrough
CT: control target
= control target key end

     0   :  { %s7107_s12 = smov 0   ;;  %s9000_s0 = inlined_call_operand.vmem [shape: f32[2,456,64], index: 0, kind: input, shape index: {}]   ;;  %s9001_s1 = inlined_call_operand.vmem [shape: f32[9,64,128], index: 1, kind: input, shape index: {}]   ;;  %s9002_s2 = inlined_call_operand.vmem [shape: f32[1,128], index: 2, kind: input, shape index: {}]   ;;  %s9003_s3 = inlined_call_operand.vmem [shape: f32[2,16,128], index: 3, kind: output, shape index: {}]  }
   0x1 LB: > { %s4986_s13 = sadd.s32 4294967295, %s7085_s12   ;;  %p4990_p0 = scmp.ge.s32.totalorder %s7085_s12, 1  ;;  %s7085_s12 = sphi %s7107_s12, %s13_s12  }
   0x2   : > { %p137_p1 = scmp.lt.s32.totalorder %s7085_s12, 3 }
   0x4   : > { %p138_p2 = pnand %p4990_p0, %p137_p1 }
   0x6   : > { %141 = sbr.rel (%p138_p2) target bundleno = 705 (0x2c1), region = 32 }
   0xd   : > { %v4994_v0 = vld [vmem:[%s9001_s1 + $0x40] sm:$0xff]  ;;  %v4995_v1 = vld [vmem:[%s9001_s1 + $0x48] sm:$0xff]  ;;  %p161_p3 = scmp.lt.s32.totalorder %s4986_s13, 1  ;;  %v4996_v5 = vld [vmem:[%s9001_s1 + $0x50] sm:$0xff]  ;;  %vm284_vm0 = vcmask 523264  }
   0xe   : > { %v5210_v2 = vld [vmem:[%s9001_s1 + $0x100] sm:$0xff]  ;;  %v6790_v3 = vpack.c.bf16 %v4995_v1, %v4994_v0  ;;  %v5211_v4 = vld [vmem:[%s9001_s1 + $0x108] sm:$0xff]  ;;  %v4997_v6 = vld [vmem:[%s9001_s1 + $0x58] sm:$0xff] }
   0xf   : > { %v7133_v7 = vpack.c.bf16 %v5211_v4, %v5210_v2  ;;  %v6794_v8 = vpack.c.bf16 %v4997_v6, %v4996_v5  ;;  %v5212_v9 = vld [vmem:[%s9001_s1 + $0x110] sm:$0xff]  ;;  %v5213_v10 = vld [vmem:[%s9001_s1 + $0x118] sm:$0xff]  ;;  %v4998_v11 = vld [vmem:[%s9001_s1 + $0x60] sm:$0xff]  ;;  %s9135_s13 = smov (!%p161_p3, %s4986_s13), 1 }
  0x10   : > { %6791 = vmatprep.subr.bf16.mxu1 %v6790_v3  ;;  %v7146_v12 = vpack.c.bf16 %v5213_v10, %v5212_v9  ;;  %v4999_v13 = vld [vmem:[%s9001_s1 + $0x68] sm:$0xff]  ;;  %v5214_v14 = vld [vmem:[%s9001_s1 + $0x120] sm:$0xff]  ;;  %s7070_s11 = smul.u32 456, %s9135_s13  ;;  %v5000_v18 = vld [vmem:[%s9001_s1 + $0x70] sm:$0xff]  ;;  %s5493_s17 = sshll.u32 %s9135_s13, 4 }
  0x11   : > { %v5215_v15 = vld [vmem:[%s9001_s1 + $0x128] sm:$0xff]  ;;  %6855 = vmatprep.subr.bf16.mxu0 %v7133_v7  ;;  %6793 = vmatpush3.bf16.msra.mxu1 %v6790_v3  ;;  %v6798_v16 = vpack.c.bf16 %v4999_v13, %v4998_v11  ;;  %v5001_v19 = vld [vmem:[%s9001_s1 + $0x78] sm:$0xff]  ;;  %v5216_v20 = vld [vmem:[%s9001_s1 + $0x130] sm:$0xff]  ;;  %s8957_s19 = scalar_lea.vmem %s9003_s3, %s5493_s17 }
  0x12   : > { %9038 = vst [vmem:[#allocation3_spill] sm:$0xff] %v7146_v12  ;;  %6857 = vmatpush3.bf16.msra.mxu0 %v7133_v7  ;;  %6795 = vmatprep.subr.bf16.mxu1 %v6794_v8  ;;  %v7161_v17 = vpack.c.bf16 %v5215_v15, %v5214_v14  ;;  %s7175_s22 = scalar_lea.vmem %s9000_s0, %s7070_s11  ;;  %v5217_v21 = vld [vmem:[%s9001_s1 + $0x138] sm:$0xff]  ;;  %v6802_v24 = vpack.c.bf16 %v5001_v19, %v5000_v18  ;;  %v219_v26 = vld [vmem:[%s9001_s1] sm:$0xff]  ;;  %v220_v27 = vld [vmem:[%s9001_s1 + $0x8] sm:$0xff] }
  0x13   : > { %6859 = vmatprep.subr.bf16.mxu0 %v7146_v12  ;;  %v227_v22 = vld [vmem:[%s7175_s22 + $0x1] sm:$0xff]  ;;  %v2195_v23 = vld [vmem:[%s7175_s22 + $0x19] sm:$0xff]  ;;  %v7185_v25 = vpack.c.bf16 %v5217_v21, %v5216_v20  ;;  %v6806_v30 = vpack.c.bf16 %v220_v27, %v219_v26  ;;  %v221_v32 = vld [vmem:[%s9001_s1 + $0x10] sm:$0xff] }
  0x14   : > { %9039 = vst [vmem:[#allocation4_spill] sm:$0xff] %v7161_v17  ;;  %6014 = vmatprep.mubr.msk.f32.mxu1 %vm284_vm0, %v227_v22  ;;  %6366 = vmatprep.mubr.msk.f32.mxu0 %vm284_vm0, %v2195_v23  ;;  %v5266_v28 = vld [vmem:[%s9001_s1 + $0x140] sm:$0xff]  ;;  %v5267_v29 = vld [vmem:[%s9001_s1 + $0x148] sm:$0xff]  ;;  %v222_v33 = vld [vmem:[%s9001_s1 + $0x18] sm:$0xff] }
  0x15   : > { %6797 = vmatpush3.bf16.msra.mxu1 %v6794_v8  ;;  %9040 = vst [vmem:[#allocation5_spill] sm:$0xff] %v7185_v25  ;;  %v6870_v31 = vpack.c.bf16 %v5267_v29, %v5266_v28  ;;  %v228_v34 = vld [vmem:[%s7175_s22 + $0x9] sm:$0xff]  ;;  %v5269_v36 = vld [vmem:[%s9001_s1 + $0x158] sm:$0xff]  ;;  %v2196_v37 = vld [vmem:[%s7175_s22 + $0x21] sm:$0xff]  ;;  %v6810_v40 = vpack.c.bf16 %v222_v33, %v221_v32 }
  0x16   : > { %6861 = vmatpush3.bf16.msra.mxu0 %v7146_v12  ;;  %6799 = vmatprep.subr.bf16.mxu1 %v6798_v16  ;;  %v5268_v35 = vld [vmem:[%s9001_s1 + $0x150] sm:$0xff]  ;;  %v223_v42 = vld [vmem:[%s9001_s1 + $0x20] sm:$0xff]  ;;  %v224_v43 = vld [vmem:[%s9001_s1 + $0x28] sm:$0xff] }
  0x17   : > { %6863 = vmatprep.subr.bf16.mxu0 %v7161_v17  ;;  %v229_v38 = vld [vmem:[%s7175_s22 + $0x11] sm:$0xff]  ;;  %v2197_v39 = vld [vmem:[%s7175_s22 + $0x29] sm:$0xff]  ;;  %v6874_v41 = vpack.c.bf16 %v5269_v36, %v5268_v35  ;;  %v5270_v44 = vld [vmem:[%s9001_s1 + $0x160] sm:$0xff]  ;;  %v6814_v48 = vpack.c.bf16 %v224_v43, %v223_v42 }
  0x18   : > { %v5271_v45 = vld [vmem:[%s9001_s1 + $0x168] sm:$0xff]  ;;  %v2198_v46 = vld [vmem:[%s7175_s22 + $0x31] sm:$0xff]  ;;  %v2199_v47 = vld [vmem:[%s7175_s22 + $0x39] sm:$0xff] }
  0x19   : > { %6801 = vmatpush3.bf16.msra.mxu1 %v6798_v16  ;;  %v6878_v49 = vpack.c.bf16 %v5271_v45, %v5270_v44  ;;  %v5272_v50 = vld [vmem:[%s9001_s1 + $0x170] sm:$0xff]  ;;  %v5273_v51 = vld [vmem:[%s9001_s1 + $0x178] sm:$0xff]  ;;  %v2200_v52 = vld [vmem:[%s7175_s22 + $0x41] sm:$0xff] }
  0x1a   : > { %6865 = vmatpush3.bf16.msra.mxu0 %v7161_v17  ;;  %6803 = vmatprep.subr.bf16.mxu1 %v6802_v24  ;;  %v2201_v53 = vld [vmem:[%s7175_s22 + $0x49] sm:$0xff]  ;;  %v6882_v54 = vpack.c.bf16 %v5273_v51, %v5272_v50  ;;  %v5322_v56 = vld [vmem:[%s9001_s1 + $0x180] sm:$0xff]  ;;  %v226_v58 = vld [vmem:[%s9001_s1 + $0x38] sm:$0xff] }
  0x1b   : > { %6867 = vmatprep.subr.bf16.mxu0 %v7185_v25  ;;  %v225_v55 = vld [vmem:[%s9001_s1 + $0x30] sm:$0xff]  ;;  %v5323_v57 = vld [vmem:[%s9001_s1 + $0x188] sm:$0xff]  ;;  %v2203_v61 = vld [vmem:[%s7175_s22 + $0x59] sm:$0xff] }
  0x1c   : > { %v2202_v59 = vld [vmem:[%s7175_s22 + $0x51] sm:$0xff]  ;;  %v6818_v60 = vpack.c.bf16 %v226_v58, %v225_v55  ;;  %v7268_v62 = vpack.c.bf16 %v5323_v57, %v5322_v56  ;;  %v2204_v63 = vld [vmem:[%s7175_s22 + $0x61] sm:$0xff]  ;;  %v2205_v0 = vld [vmem:[%s7175_s22 + $0x69] sm:$0xff] }
  0x1d   : > { %6805 = vmatpush3.bf16.msra.mxu1 %v6802_v24  ;;  %v2206_v1 = vld [vmem:[%s7175_s22 + $0x71] sm:$0xff]  ;;  %v5098_v2 = vld [vmem:[%s9001_s1 + $0x80] sm:$0xff]  ;;  %v5099_v3 = vld [vmem:[%s9001_s1 + $0x88] sm:$0xff] }
  0x1e   : > { %6869 = vmatpush3.bf16.msra.mxu0 %v7185_v25  ;;  %6807 = vmatprep.subr.bf16.mxu1 %v6806_v30  ;;  %v2207_v4 = vld [vmem:[%s7175_s22 + $0x79] sm:$0xff]  ;;  %v7288_v5 = vpack.c.bf16 %v5099_v3, %v5098_v2  ;;  %v2208_v6 = vld [vmem:[%s7175_s22 + $0x81] sm:$0xff]  ;;  %v2209_v8 = vld [vmem:[%s7175_s22 + $0x89] sm:$0xff] }
  0x1f   : > { %6871 = vmatprep.subr.bf16.mxu0 %v6870_v31  ;;  %v2210_v9 = vld [vmem:[%s7175_s22 + $0x91] sm:$0xff]  ;;  %v2211_v10 = vld [vmem:[%s7175_s22 + $0x99] sm:$0xff]  ;;  %v2212_v11 = vld [vmem:[%s7175_s22 + $0xa1] sm:$0xff] }
  0x20   : > { %6015 = vmatmul.mubr.msk.f32.vlgmr.msra.gmra.mrb[0].mxu1 %vm284_vm0, %v228_v34  ;;  %v2213_v13 = vld [vmem:[%s7175_s22 + $0xa9] sm:$0xff]  ;;  %v2214_v14 = vld [vmem:[%s7175_s22 + $0xb1] sm:$0xff]  ;;  %v2215_v15 = vld [vmem:[%s7175_s22 + $0xb9] sm:$0xff] }
  0x21   : > { %6367 = vmatmul.mubr.msk.f32.vlgmr.msra.gmra.mrb[0].mxu0 %vm284_vm0, %v2196_v37  ;;  %6809 = vmatpush3.bf16.msra.mxu1 %v6806_v30  ;;  %v2216_v16 = vld [vmem:[%s7175_s22 + $0xc1] sm:$0xff]  ;;  %v2217_v18 = vld [vmem:[%s7175_s22 + $0xc9] sm:$0xff]  ;;  %v2218_v19 = vld [vmem:[%s7175_s22 + $0xd1] sm:$0xff] }
  0x22   : > { %6017 = vmatprep.mubr.msk.f32.mxu1 %vm284_vm0, %v229_v38  ;;  %6369 = vmatprep.mubr.msk.f32.mxu0 %vm284_vm0, %v2197_v39  ;;  %v7327_v20 = vld [vmem:[%s7175_s22 + $0x1a] sm:$0xff]  ;;  %v5324_v21 = vld [vmem:[%s9001_s1 + $0x190] sm:$0xff]  ;;  %v5327_v28 = vld [vmem:[%s9001_s1 + $0x1a8] sm:$0xff] }
  0x23   : > { %6873 = vmatpush3.bf16.msra.mxu0 %v6870_v31  ;;  %6811 = vmatprep.subr.bf16.mxu1 %v6810_v40  ;;  %v5325_v22 = vld [vmem:[%s9001_s1 + $0x198] sm:$0xff]  ;;  %v7344_v24 = vld [vmem:[%s7175_s22 + $0x2a] sm:$0xff]  ;;  %v5326_v27 = vld [vmem:[%s9001_s1 + $0x1a0] sm:$0xff] }
  0x24   : > { %6018 = vmatmul.mubr.msk.f32.gmra.mrb[2].mxu1 %vm284_vm0, %v2195_v23  ;;  %6875 = vmatprep.subr.bf16.mxu0 %v6874_v41  ;;  %v7341_v23 = vld [vmem:[%s7175_s22 + $0x22] sm:$0xff]  ;;  %v6890_v26 = vpack.c.bf16 %v5325_v22, %v5324_v21  ;;  %v254_v29 = vld [vmem:[%s7175_s22 + $0xd9] sm:$0xff]  ;;  %v6894_v33 = vpack.c.bf16 %v5327_v28, %v5326_v27  ;;  %v5328_v34 = vld [vmem:[%s9001_s1 + $0x1b0] sm:$0xff] }
  0x25   : > { %6370 = vmatmul.mubr.msk.f32.gmra.mrb[2].mxu0 %vm284_vm0, %v2198_v46  ;;  %6020 = vmatprep.mubr.msk.f32.mxu1 %vm284_vm0, %v2196_v37  ;;  %v7360_v30 = vld [vmem:[%s7175_s22 + $0x32] sm:$0xff]  ;;  %v255_v31 = vld [vmem:[%s7175_s22 + $0xe1] sm:$0xff]  ;;  %v256_v36 = vld [vmem:[%s7175_s22 + $0xe9] sm:$0xff] }
  0x26   : > { %6372 = vmatprep.mubr.msk.f32.mxu0 %vm284_vm0, %v2199_v47  ;;  %6813 = vmatpush3.bf16.msra.mxu1 %v6810_v40  ;;  %v7365_v32 = vld [vmem:[%s7175_s22 + $0x3a] sm:$0xff]  ;;  %v7381_v37 = vld [vmem:[%s7175_s22 + $0x42] sm:$0xff]  ;;  %v257_v38 = vld [vmem:[%s7175_s22 + $0xf1] sm:$0xff] }
  0x27   : > { %6877 = vmatpush3.bf16.msra.mxu0 %v6874_v41  ;;  %6815 = vmatprep.subr.bf16.mxu1 %v6814_v48  ;;  %v5329_v35 = vld [vmem:[%s9001_s1 + $0x1b8] sm:$0xff]  ;;  %v5378_v41 = vld [vmem:[%s9001_s1 + $0x1c0] sm:$0xff]  ;;  %v5379_v42 = vld [vmem:[%s9001_s1 + $0x1c8] sm:$0xff] }
  0x28   : > { %6021 = vmatmul.mubr.msk.f32.gmra.mrb[4].mxu1 %vm284_vm0, %v2197_v39  ;;  %6879 = vmatprep.subr.bf16.mxu0 %v6878_v49  ;;  %v7385_v39 = vld [vmem:[%s7175_s22 + $0x4a] sm:$0xff]  ;;  %v6898_v40 = vpack.c.bf16 %v5329_v35, %v5328_v34  ;;  %v258_v43 = vld [vmem:[%s7175_s22 + $0xf9] sm:$0xff]  ;;  %v259_v45 = vld [vmem:[%s7175_s22 + $0x101] sm:$0xff] }
  0x29   : > { %6373 = vmatmul.mubr.msk.f32.gmra.mrb[4].mxu0 %vm284_vm0, %v2200_v52  ;;  %6023 = vmatprep.mubr.msk.f32.mxu1 %vm284_vm0, %v2198_v46  ;;  %v7401_v44 = vld [vmem:[%s7175_s22 + $0x52] sm:$0xff]  ;;  %v7405_v46 = vld [vmem:[%s7175_s22 + $0x5a] sm:$0xff]  ;;  %v7421_v51 = vld [vmem:[%s7175_s22 + $0x6a] sm:$0xff] }
  0x2a   : > { %6375 = vmatprep.mubr.msk.f32.mxu0 %vm284_vm0, %v2201_v53  ;;  %6817 = vmatpush3.bf16.msra.mxu1 %v6814_v48  ;;  %v260_v48 = vld [vmem:[%s7175_s22 + $0x109] sm:$0xff]  ;;  %v261_v50 = vld [vmem:[%s7175_s22 + $0x111] sm:$0xff]  ;;  %v7436_v55 = vld [vmem:[%s7175_s22 + $0x7a] sm:$0xff] }
  0x2b   : > { %6881 = vmatpush3.bf16.msra.mxu0 %v6878_v49  ;;  %6819 = vmatprep.subr.bf16.mxu1 %v6818_v60  ;;  %v7417_v49 = vld [vmem:[%s7175_s22 + $0x62] sm:$0xff]  ;;  %v265_v58 = vld [vmem:[%s7175_s22 + $0x131] sm:$0xff] }
  0x2c   : > { %6024 = vmatmul.mubr.msk.f32.gmra.mrb[6].mxu1 %vm284_vm0, %v2199_v47  ;;  %6883 = vmatprep.subr.bf16.mxu0 %v6882_v54  ;;  %v7407_v47 = vpack.c.bf16 %v5379_v42, %v5378_v41  ;;  %v264_v56 = vld [vmem:[%s7175_s22 + $0x129] sm:$0xff]  ;;  %v269_v2 = vld [vmem:[%s7175_s22 + $0x151] sm:$0xff] }
  0x2d   : > { %6376 = vmatmul.mubr.msk.f32.gmra.mrb[6].mxu0 %vm284_vm0, %v2202_v59  ;;  %6026 = vmatprep.mubr.msk.f32.mxu1 %vm284_vm0, %v2200_v52  ;;  %v262_v52 = vld [vmem:[%s7175_s22 + $0x119] sm:$0xff]  ;;  %v7446_v57 = vld [vmem:[%s7175_s22 + $0x82] sm:$0xff]  ;;  %v7478_v3 = vld [vmem:[%s7175_s22 + $0xaa] sm:$0xff] }
  0x2e   : > { %6378 = vmatprep.mubr.msk.f32.mxu0 %vm284_vm0, %v2203_v61  ;;  %6821 = vmatpush3.bf16.msra.mxu1 %v6818_v60  ;;  %v266_v60 = vld [vmem:[%s7175_s22 + $0x139] sm:$0xff]  ;;  %v5100_v21 = vld [vmem:[%s9001_s1 + $0x90] sm:$0xff]  ;;  %v7536_v27 = vld [vmem:[%s7175_s22 + $0xe2] sm:$0xff] }
  0x2f   : > { %6885 = vmatpush3.bf16.msra.mxu0 %v6882_v54  ;;  %6823 = vmatprep.subr.bf16.mxu1 %v7288_v5  ;;  %v263_v54 = vld [vmem:[%s7175_s22 + $0x121] sm:$0xff]  ;;  %v5101_v22 = vld [vmem:[%s9001_s1 + $0x98] sm:$0xff]  ;;  %v173_v28 = vld [vmem:[%s7175_s22 + $0x10] sm:$0xff] }
  0x30   : > { %6027 = vmatmul.mubr.msk.f32.gmra.mrb[8].mxu1 %vm284_vm0, %v2201_v53  ;;  %6887 = vmatprep.subr.bf16.mxu0 %v7268_v62  ;;  %v7432_v53 = vld [vmem:[%s7175_s22 + $0x72] sm:$0xff]  ;;  %v5103_v34 = vld [vmem:[%s9001_s1 + $0xa8] sm:$0xff] }
  0x31   : > { %6379 = vmatmul.mubr.msk.f32.gmra.mrb[8].mxu0 %vm284_vm0, %v2204_v63  ;;  %6029 = vmatprep.mubr.msk.f32.mxu1 %vm284_vm0, %v2202_v59  ;;  %v7450_v59 = vld [vmem:[%s7175_s22 + $0x8a] sm:$0xff]  ;;  %v7553_v35 = vld [vmem:[%s7175_s22 + $0x18] sm:$0xff] }
  0x32   : > { %6381 = vmatprep.mubr.msk.f32.mxu0 %vm284_vm0, %v2205_v0  ;;  %9041 = vst [vmem:[#allocation6_spill] sm:$0xff] %v7553_v35  ;;  %v5105_v42 = vld [vmem:[%s9001_s1 + $0xb8] sm:$0xff]  ;;  %v7720_v25 = vld [vmem:[%s7175_s22 + $0x16a] sm:$0xff] }
  0x33   : > { %9064 = vst [vmem:[#allocation29_spill] sm:$0xff] %v7720_v25  ;;  %v7729_v17 = vld [vmem:[%s7175_s22 + $0x98] sm:$0xff] }
  0x34   : > { %6030 = vmatmul.mubr.msk.f32.gmra.mrb[10].mxu1 %vm284_vm0, %v2203_v61  ;;  %v7460_v61 = vld [vmem:[%s7175_s22 + $0x92] sm:$0xff]  ;;  %9065 = vst [vmem:[#allocation30_spill] sm:$0xff] %v7729_v17 }
  0x35   : > { %6382 = vmatmul.mubr.msk.f32.gmra.mrb[10].mxu0 %vm284_vm0, %v2206_v1  ;;  %6032 = vmatprep.mubr.msk.f32.mxu1 %vm284_vm0, %v2204_v63  ;;  %v7464_v63 = vld [vmem:[%s7175_s22 + $0x9a] sm:$0xff]  ;;  %v7734_v12 = vld [vmem:[%s7175_s22 + $0x172] sm:$0xff] }
  0x36   : > { %6384 = vmatprep.mubr.msk.f32.mxu0 %vm284_vm0, %v2207_v4  ;;  %9066 = vst [vmem:[#allocation31_spill] sm:$0xff] %v7734_v12 }
  0x38   : > { %6033 = vmatmul.mubr.msk.f32.gmra.mrb[12].mxu1 %vm284_vm0, %v2205_v0  ;;  %v268_v0 = vld [vmem:[%s7175_s22 + $0x149] sm:$0xff] }
  0x39   : > { %6385 = vmatmul.mubr.msk.f32.gmra.mrb[12].mxu0 %vm284_vm0, %v2208_v6  ;;  %6035 = vmatprep.mubr.msk.f32.mxu1 %vm284_vm0, %v2206_v1  ;;  %v7474_v1 = vld [vmem:[%s7175_s22 + $0xa2] sm:$0xff] }
  0x3a   : > { %6387 = vmatprep.mubr.msk.f32.mxu0 %vm284_vm0, %v2209_v8 }
  0x3c   : > { %6036 = vmatmul.mubr.msk.f32.gmra.mrb[14].mxu1 %vm284_vm0, %v2207_v4  ;;  %v270_v4 = vld [vmem:[%s7175_s22 + $0x159] sm:$0xff] }
  0x3d   : > { %6388 = vmatmul.mubr.msk.f32.gmra.mrb[14].mxu0 %vm284_vm0, %v2210_v9  ;;  %6038 = vmatprep.mubr.msk.f32.mxu1 %vm284_vm0, %v2208_v6  ;;  %v7488_v6 = vld [vmem:[%s7175_s22 + $0xb2] sm:$0xff] }
  0x3e   : > { %6390 = vmatprep.mubr.msk.f32.mxu0 %vm284_vm0, %v2211_v10 }
  0x40   : > { %6039 = vmatmul.mubr.msk.f32.gmra.mrb[16].mxu1 %vm284_vm0, %v2209_v8  ;;  %v271_v8 = vld [vmem:[%s7175_s22 + $0x161] sm:$0xff] }
  0x41   : > { %6391 = vmatmul.mubr.msk.f32.gmra.mrb[16].mxu0 %vm284_vm0, %v2212_v11  ;;  %6041 = vmatprep.mubr.msk.f32.mxu1 %vm284_vm0, %v2210_v9  ;;  %v7492_v9 = vld [vmem:[%s7175_s22 + $0xba] sm:$0xff] }
  0x42   : > { %6393 = vmatprep.mubr.msk.f32.mxu0 %vm284_vm0, %v2213_v13 }
  0x44   : > { %6042 = vmatmul.mubr.msk.f32.gmra.mrb[18].mxu1 %vm284_vm0, %v2211_v10  ;;  %v272_v10 = vld [vmem:[%s7175_s22 + $0x169] sm:$0xff] }
  0x45   : > { %6394 = vmatmul.mubr.msk.f32.gmra.mrb[18].mxu0 %vm284_vm0, %v2214_v14  ;;  %6044 = vmatprep.mubr.msk.f32.mxu1 %vm284_vm0, %v2212_v11  ;;  %v7502_v11 = vld [vmem:[%s7175_s22 + $0xc2] sm:$0xff] }
  0x46   : > { %6396 = vmatprep.mubr.msk.f32.mxu0 %vm284_vm0, %v2215_v15 }
  0x48   : > { %6045 = vmatmul.mubr.msk.f32.gmra.mrb[20].mxu1 %vm284_vm0, %v2213_v13  ;;  %v273_v13 = vld [vmem:[%s7175_s22 + $0x171] sm:$0xff] }
  0x49   : > { %6397 = vmatmul.mubr.msk.f32.gmra.mrb[20].mxu0 %vm284_vm0, %v2216_v16  ;;  %6047 = vmatprep.mubr.msk.f32.mxu1 %vm284_vm0, %v2214_v14  ;;  %v7506_v14 = vld [vmem:[%s7175_s22 + $0xca] sm:$0xff] }
  0x4a   : > { %6399 = vmatprep.mubr.msk.f32.mxu0 %vm284_vm0, %v2217_v18 }
  0x4c   : > { %6048 = vmatmul.mubr.msk.f32.gmra.mrb[22].mxu1 %vm284_vm0, %v2215_v15  ;;  %v274_v15 = vld [vmem:[%s7175_s22 + $0x179] sm:$0xff] }
  0x4d   : > { %6400 = vmatmul.mubr.msk.f32.gmra.mrb[22].mxu0 %vm284_vm0, %v2218_v19  ;;  %6050 = vmatprep.mubr.msk.f32.mxu1 %vm284_vm0, %v2216_v16  ;;  %v7516_v16 = vld [vmem:[%s7175_s22 + $0xd2] sm:$0xff] }
  0x4e   : > { %6454 = vmatprep.mubr.msk.f32.mxu0 %vm284_vm0, %v7327_v20 }
  0x50   : > { %6051 = vmatmul.mubr.msk.f32.gmra.mrb[24].mxu1 %vm284_vm0, %v2217_v18  ;;  %v171_v18 = vld [vmem:[%s7175_s22] sm:$0xff] }
  0x51   : > { %6455 = vmatmul.mubr.msk.f32.vlgmr.msra.gmra.mrb[0].mxu0 %vm284_vm0, %v7341_v23  ;;  %6053 = vmatprep.mubr.msk.f32.mxu1 %vm284_vm0, %v2218_v19  ;;  %v7520_v19 = vld [vmem:[%s7175_s22 + $0xda] sm:$0xff] }
  0x52   : > { %6457 = vmatprep.mubr.msk.f32.mxu0 %vm284_vm0, %v7344_v24  ;;  %6889 = vmatpush3.bf16.msra.mxu0 %v7268_v62  ;;  %v267_v62 = vld [vmem:[%s7175_s22 + $0x141] sm:$0xff] }
  0x53   : > { %6891 = vmatprep.subr.bf16.mxu0 %v6890_v26 }
  0x54   : > { %6054 = vmatmul.mubr.msk.f32.gmra.mrb[26].mxu1 %vm284_vm0, %v254_v29  ;;  %v7540_v29 = vld [vmem:[%s7175_s22 + $0xea] sm:$0xff] }
  0x55   : > { %6458 = vmatmul.mubr.msk.f32.gmra.mrb[24].mxu0 %vm284_vm0, %v7360_v30  ;;  %6056 = vmatprep.mubr.msk.f32.mxu1 %vm284_vm0, %v255_v31  ;;  %v6826_v31 = vpack.c.bf16 %v5101_v22, %v5100_v21  ;;  %v7657_v21 = vld [vmem:[%s7175_s22 + $0x60] sm:$0xff] }
  0x56   : > { %6460 = vmatprep.mubr.msk.f32.mxu0 %vm284_vm0, %v7365_v32  ;;  %6893 = vmatpush3.bf16.msra.mxu0 %v6890_v26  ;;  %v172_v26 = vld [vmem:[%s7175_s22 + $0x8] sm:$0xff]  ;;  %9052 = vst [vmem:[#allocation17_spill] sm:$0xff] %v7657_v21  ;;  %v7660_v22 = vld [vmem:[%s7175_s22 + $0x13a] sm:$0xff] }
  0x57   : > { %6895 = vmatprep.subr.bf16.mxu0 %v6894_v33  ;;  %9053 = vst [vmem:[#allocation18_spill] sm:$0xff] %v7660_v22 }
  0x58   : > { %6057 = vmatmul.mubr.msk.f32.gmra.mrb[28].mxu1 %vm284_vm0, %v256_v36  ;;  %v7559_v36 = vld [vmem:[%s7175_s22 + $0xf2] sm:$0xff] }
  0x59   : > { %6461 = vmatmul.mubr.msk.f32.gmra.mrb[26].mxu0 %vm284_vm0, %v7381_v37  ;;  %6059 = vmatprep.mubr.msk.f32.mxu1 %vm284_vm0, %v257_v38  ;;  %v7562_v38 = vld [vmem:[%s7175_s22 + $0x20] sm:$0xff] }
  0x5a   : > { %6463 = vmatprep.mubr.msk.f32.mxu0 %vm284_vm0, %v7385_v39  ;;  %6897 = vmatpush3.bf16.msra.mxu0 %v6894_v33  ;;  %v5102_v33 = vld [vmem:[%s9001_s1 + $0xa0] sm:$0xff]  ;;  %9042 = vst [vmem:[#allocation7_spill] sm:$0xff] %v7562_v38 }
  0x5b   : > { %6899 = vmatprep.subr.bf16.mxu0 %v6898_v40  ;;  %v6830_v41 = vpack.c.bf16 %v5103_v34, %v5102_v33  ;;  %v7680_v33 = vld [vmem:[%s7175_s22 + $0x14a] sm:$0xff]  ;;  %v7689_v34 = vld [vmem:[%s7175_s22 + $0x78] sm:$0xff] }
  0x5c   : > { %6060 = vmatmul.mubr.msk.f32.gmra.mrb[30].mxu1 %vm284_vm0, %v258_v43  ;;  %v7580_v43 = vld [vmem:[%s7175_s22 + $0x28] sm:$0xff]  ;;  %9057 = vst [vmem:[#allocation22_spill] sm:$0xff] %v7680_v33  ;;  %9058 = vst [vmem:[#allocation23_spill] sm:$0xff] %v7689_v34 }
  0x5d   : > { %6464 = vmatmul.mubr.msk.f32.gmra.mrb[6].mxu0 %vm284_vm0, %v7401_v44  ;;  %6062 = vmatprep.mubr.msk.f32.mxu1 %vm284_vm0, %v259_v45  ;;  %9043 = vst [vmem:[#allocation8_spill] sm:$0xff] %v7580_v43  ;;  %v7585_v45 = vld [vmem:[%s7175_s22 + $0x102] sm:$0xff] }
  0x5e   : > { %6466 = vmatprep.mubr.msk.f32.mxu0 %vm284_vm0, %v7405_v46  ;;  %6901 = vmatpush3.bf16.msra.mxu0 %v6898_v40  ;;  %v7565_v40 = vld [vmem:[%s7175_s22 + $0xfa] sm:$0xff] }
  0x5f   : > { %6903 = vmatprep.subr.bf16.mxu0 %v7407_v47 }
  0x60   : > { %6063 = vmatmul.mubr.msk.f32.gmra.mrb[32].mxu1 %vm284_vm0, %v260_v48  ;;  %v7588_v48 = vld [vmem:[%s7175_s22 + $0x30] sm:$0xff] }
  0x61   : > { %6467 = vmatmul.mubr.msk.f32.gmra.mrb[28].mxu0 %vm284_vm0, %v7417_v49  ;;  %6065 = vmatprep.mubr.msk.f32.mxu1 %vm284_vm0, %v261_v50  ;;  %9044 = vst [vmem:[#allocation9_spill] sm:$0xff] %v7588_v48  ;;  %v7591_v50 = vld [vmem:[%s7175_s22 + $0x10a] sm:$0xff] }
  0x62   : > { %6469 = vmatprep.mubr.msk.f32.mxu0 %vm284_vm0, %v7421_v51 }
  0x64   : > { %6066 = vmatmul.mubr.msk.f32.gmra.mrb[34].mxu1 %vm284_vm0, %v262_v52 }
  0x65   : > { %6470 = vmatmul.mubr.msk.f32.gmra.mrb[30].mxu0 %vm284_vm0, %v7432_v53  ;;  %6068 = vmatprep.mubr.msk.f32.mxu1 %vm284_vm0, %v263_v54  ;;  %v5154_v54 = vld [vmem:[%s9001_s1 + $0xc0] sm:$0xff] }
  0x66   : > { %6472 = vmatprep.mubr.msk.f32.mxu0 %vm284_vm0, %v7436_v55 }
  0x68   : > { %6069 = vmatmul.mubr.msk.f32.gmra.mrb[36].mxu1 %vm284_vm0, %v264_v56  ;;  %v5155_v56 = vld [vmem:[%s9001_s1 + $0xc8] sm:$0xff] }
  0x69   : > { %6473 = vmatmul.mubr.msk.f32.gmra.mrb[12].mxu0 %vm284_vm0, %v7446_v57  ;;  %6071 = vmatprep.mubr.msk.f32.mxu1 %vm284_vm0, %v265_v58  ;;  %v7606_v58 = vld [vmem:[%s7175_s22 + $0x38] sm:$0xff] }
  0x6a   : > { %6475 = vmatprep.mubr.msk.f32.mxu0 %vm284_vm0, %v7450_v59  ;;  %9045 = vst [vmem:[#allocation10_spill] sm:$0xff] %v7606_v58 }
  0x6c   : > { %6072 = vmatmul.mubr.msk.f32.gmra.mrb[38].mxu1 %vm284_vm0, %v266_v60  ;;  %v7611_v60 = vld [vmem:[%s7175_s22 + $0x112] sm:$0xff] }
  0x6d   : > { %6476 = vmatmul.mubr.msk.f32.gmra.mrb[32].mxu0 %vm284_vm0, %v7460_v61  ;;  %6074 = vmatprep.mubr.msk.f32.mxu1 %vm284_vm0, %v267_v62  ;;  %v7614_v62 = vld [vmem:[%s7175_s22 + $0x40] sm:$0xff] }
  0x6e   : > { %6478 = vmatprep.mubr.msk.f32.mxu0 %vm284_vm0, %v7464_v63  ;;  %9046 = vst [vmem:[#allocation11_spill] sm:$0xff] %v7614_v62 }
  0x70   : > { %6075 = vmatmul.mubr.msk.f32.gmra.mrb[40].mxu1 %vm284_vm0, %v268_v0  ;;  %v7617_v0 = vld [vmem:[%s7175_s22 + $0x11a] sm:$0xff] }
  0x71   : > { %6479 = vmatmul.mubr.msk.f32.gmra.mrb[34].mxu0 %vm284_vm0, %v7474_v1  ;;  %6077 = vmatprep.mubr.msk.f32.mxu1 %vm284_vm0, %v269_v2  ;;  %v7619_v2 = vpack.c.bf16 %v5155_v56, %v5154_v54  ;;  %v7714_v54 = vld [vmem:[%s7175_s22 + $0x162] sm:$0xff]  ;;  %v7717_v56 = vld [vmem:[%s7175_s22 + $0x90] sm:$0xff] }
  0x72   : > { %6481 = vmatprep.mubr.msk.f32.mxu0 %vm284_vm0, %v7478_v3  ;;  %9062 = vst [vmem:[#allocation27_spill] sm:$0xff] %v7714_v54  ;;  %9063 = vst [vmem:[#allocation28_spill] sm:$0xff] %v7717_v56 }
  0x74   : > { %6078 = vmatmul.mubr.msk.f32.gmra.mrb[42].mxu1 %vm284_vm0, %v270_v4  ;;  %v7628_v4 = vld [vmem:[%s7175_s22 + $0x48] sm:$0xff] }
  0x75   : > { %6482 = vmatmul.mubr.msk.f32.gmra.mrb[18].mxu0 %vm284_vm0, %v7488_v6  ;;  %6080 = vmatprep.mubr.msk.f32.mxu1 %vm284_vm0, %v271_v8  ;;  %9047 = vst [vmem:[#allocation12_spill] sm:$0xff] %v7628_v4  ;;  %v7633_v8 = vld [vmem:[%s7175_s22 + $0x122] sm:$0xff] }
  0x76   : > { %6484 = vmatprep.mubr.msk.f32.mxu0 %vm284_vm0, %v7492_v9 }
  0x78   : > { %6081 = vmatmul.mubr.msk.f32.gmra.mrb[44].mxu1 %vm284_vm0, %v272_v10  ;;  %v7636_v10 = vld [vmem:[%s7175_s22 + $0x50] sm:$0xff] }
  0x79   : > { %6485 = vmatmul.mubr.msk.f32.gmra.mrb[36].mxu0 %vm284_vm0, %v7502_v11  ;;  %6083 = vmatprep.mubr.msk.f32.mxu1 %vm284_vm0, %v273_v13  ;;  %9048 = vst [vmem:[#allocation13_spill] sm:$0xff] %v7636_v10  ;;  %v7639_v13 = vld [vmem:[%s7175_s22 + $0x12a] sm:$0xff] }
  0x7a   : > { %6487 = vmatprep.mubr.msk.f32.mxu0 %vm284_vm0, %v7506_v14  ;;  %9049 = vst [vmem:[#allocation14_spill] sm:$0xff] %v7639_v13 }
  0x7c   : > { %6084 = vmatmul.mubr.msk.f32.gmra.mrb[46].mxu1 %vm284_vm0, %v274_v15  ;;  %v7649_v15 = vld [vmem:[%s7175_s22 + $0x58] sm:$0xff] }
  0x7d   : > { %6488 = vmatmul.mubr.msk.f32.gmra.mrb[38].mxu0 %vm284_vm0, %v7516_v16  ;;  %6102 = vmatprep.mubr.msk.f32.mxu1 %vm284_vm0, %v171_v18  ;;  %9050 = vst [vmem:[#allocation15_spill] sm:$0xff] %v7649_v15  ;;  %v7654_v18 = vld [vmem:[%s7175_s22 + $0x132] sm:$0xff] }
  0x7e   : > { %6490 = vmatprep.mubr.msk.f32.mxu0 %vm284_vm0, %v7520_v19  ;;  %9051 = vst [vmem:[#allocation16_spill] sm:$0xff] %v7654_v18 }
  0x80   : > { %6103 = vmatmul.mubr.msk.f32.vlgmr.msra.gmra.mrb[0].mxu1 %vm284_vm0, %v172_v26  ;;  %v7669_v26 = vld [vmem:[%s7175_s22 + $0x68] sm:$0xff] }
  0x81   : > { %6491 = vmatmul.mubr.msk.f32.gmra.mrb[40].mxu0 %vm284_vm0, %v7536_v27  ;;  %6825 = vmatpush3.bf16.msra.mxu1 %v7288_v5  ;;  %v5104_v5 = vld [vmem:[%s9001_s1 + $0xb0] sm:$0xff]  ;;  %9054 = vst [vmem:[#allocation19_spill] sm:$0xff] %v7669_v26 }
  0x82   : > { %6105 = vmatprep.mubr.msk.f32.mxu1 %vm284_vm0, %v173_v28  ;;  %6493 = vmatprep.mubr.msk.f32.mxu0 %vm284_vm0, %v7540_v29  ;;  %v6834_v52 = vpack.c.bf16 %v5105_v42, %v5104_v5  ;;  %v7674_v28 = vld [vmem:[%s7175_s22 + $0x142] sm:$0xff]  ;;  %v7700_v42 = vld [vmem:[%s7175_s22 + $0x15a] sm:$0xff] }
  0x83   : > { %6827 = vmatprep.subr.bf16.mxu1 %v6826_v31  ;;  %9055 = vst [vmem:[#allocation20_spill] sm:$0xff] %v7674_v28  ;;  %v7697_v5 = vld [vmem:[%s7175_s22 + $0x80] sm:$0xff]  ;;  %9061 = vst [vmem:[#allocation26_spill] sm:$0xff] %v7700_v42 }
  0x84   : > { %6106 = vmatmul.mubr.msk.f32.gmra.mrb[48].mxu1 %vm284_vm0, %v7553_v35  ;;  %9060 = vst [vmem:[#allocation25_spill] sm:$0xff] %v7697_v5  ;;  %v7749_v35 = vld [vmem:[%s7175_s22 + $0xa8] sm:$0xff] }
  0x85   : > { %6494 = vmatmul.mubr.msk.f32.gmra.mrb[42].mxu0 %vm284_vm0, %v7559_v36  ;;  %6108 = vmatprep.mubr.msk.f32.mxu1 %vm284_vm0, %v7562_v38  ;;  %v7740_v38 = vld [vmem:[%s7175_s22 + $0x17a] sm:$0xff] }
  0x86   : > { %6496 = vmatprep.mubr.msk.f32.mxu0 %vm284_vm0, %v7565_v40  ;;  %6829 = vmatpush3.bf16.msra.mxu1 %v6826_v31  ;;  %v7677_v31 = vld [vmem:[%s7175_s22 + $0x70] sm:$0xff]  ;;  %9068 = vst [vmem:[#allocation33_spill] sm:$0xff] %v7740_v38 }
  0x87   : > { %6831 = vmatprep.subr.bf16.mxu1 %v6830_v41  ;;  %9056 = vst [vmem:[#allocation21_spill] sm:$0xff] %v7677_v31 }
  0x88   : > { %6109 = vmatmul.mubr.msk.f32.gmra.mrb[50].mxu1 %vm284_vm0, %v7580_v43  ;;  %v7737_v43 = vld [vmem:[%s7175_s22 + $0xa0] sm:$0xff] }
  0x89   : > { %6497 = vmatmul.mubr.msk.f32.gmra.mrb[44].mxu0 %vm284_vm0, %v7585_v45  ;;  %6111 = vmatprep.mubr.msk.f32.mxu1 %vm284_vm0, %v7588_v48  ;;  %9067 = vst [vmem:[#allocation32_spill] sm:$0xff] %v7737_v43 }
  0x8a   : > { %6499 = vmatprep.mubr.msk.f32.mxu0 %vm284_vm0, %v7591_v50  ;;  %6833 = vmatpush3.bf16.msra.mxu1 %v6830_v41  ;;  %v7694_v41 = vld [vmem:[%s7175_s22 + $0x152] sm:$0xff] }
  0x8b   : > { %6835 = vmatprep.subr.bf16.mxu1 %v6834_v52  ;;  %9059 = vst [vmem:[#allocation24_spill] sm:$0xff] %v7694_v41 }
  0x8c   : > { %6112 = vmatmul.mubr.msk.f32.gmra.mrb[6].mxu1 %vm284_vm0, %v7606_v58 }
  0x8d   : > { %6500 = vmatmul.mubr.msk.f32.gmra.mrb[46].mxu0 %vm284_vm0, %v7611_v60  ;;  %6114 = vmatprep.mubr.msk.f32.mxu1 %vm284_vm0, %v7614_v62 }
  0x8e   : > { %6502 = vmatprep.mubr.msk.f32.mxu0 %vm284_vm0, %v7617_v0  ;;  %6837 = vmatpush3.bf16.msra.mxu1 %v6834_v52  ;;  %v7709_v52 = vld [vmem:[%s7175_s22 + $0x88] sm:$0xff] }
  0x8f   : > { %6839 = vmatprep.subr.bf16.mxu1 %v7619_v2 }
  0x90   : > { %6115 = vmatmul.mubr.msk.f32.gmra.mrb[52].mxu1 %vm284_vm0, %v7628_v4 }
  0x91   : > { %6503 = vmatmul.mubr.msk.f32.gmra.mrb[48].mxu0 %vm284_vm0, %v7633_v8  ;;  %6117 = vmatprep.mubr.msk.f32.mxu1 %vm284_vm0, %v7636_v10 }
  0x92   : > { %6505 = vmatprep.mubr.msk.f32.mxu0 %vm284_vm0, %v7639_v13  ;;  %v5385_v13 = vld [vmem:[%s9001_s1 + $0x1f8] sm:$0xff] }
  0x94   : > { %6118 = vmatmul.mubr.msk.f32.gmra.mrb[54].mxu1 %vm284_vm0, %v7649_v15 }
  0x95   : > { %6506 = vmatmul.mubr.msk.f32.gmra.mrb[50].mxu0 %vm284_vm0, %v7654_v18  ;;  %6120 = vmatprep.mubr.msk.f32.mxu1 %vm284_vm0, %v7657_v21  ;;  %v5382_v18 = vld [vmem:[%s9001_s1 + $0x1e0] sm:$0xff] }
  0x96   : > { %6508 = vmatprep.mubr.msk.f32.mxu0 %vm284_vm0, %v7660_v22 }
  0x98   : > { %6121 = vmatmul.mubr.msk.f32.gmra.mrb[12].mxu1 %vm284_vm0, %v7669_v26 }
  0x99   : > { %6509 = vmatmul.mubr.msk.f32.gmra.mrb[52].mxu0 %vm284_vm0, %v7674_v28  ;;  %6123 = vmatprep.mubr.msk.f32.mxu1 %vm284_vm0, %v7677_v31  ;;  %v7788_v28 = vld [vmem:[%s7175_s22 + $0xd0] sm:$0xff] }
  0x9a   : > { %6511 = vmatprep.mubr.msk.f32.mxu0 %vm284_vm0, %v7680_v33  ;;  %v5380_v33 = vld [vmem:[%s9001_s1 + $0x1d0] sm:$0xff] }
  0x9c   : > { %6124 = vmatmul.mubr.msk.f32.gmra.mrb[56].mxu1 %vm284_vm0, %v7689_v34 }
  0x9d   : > { %6512 = vmatmul.mubr.msk.f32.gmra.mrb[54].mxu0 %vm284_vm0, %v7694_v41  ;;  %6126 = vmatprep.mubr.msk.f32.mxu1 %vm284_vm0, %v7697_v5  ;;  %v2764_v41 = vld [vmem:[%s7175_s22 + $0x192] sm:$0xff] }
  0x9e   : > { %6514 = vmatprep.mubr.msk.f32.mxu0 %vm284_vm0, %v7700_v42  ;;  %v2763_v42 = vld [vmem:[%s7175_s22 + $0x18a] sm:$0xff] }
  0xa0   : > { %6127 = vmatmul.mubr.msk.f32.gmra.mrb[58].mxu1 %vm284_vm0, %v7709_v52 }
  0xa1   : > { %6515 = vmatmul.mubr.msk.f32.gmra.mrb[56].mxu0 %vm284_vm0, %v7714_v54  ;;  %6129 = vmatprep.mubr.msk.f32.mxu1 %vm284_vm0, %v7717_v56  ;;  %v7755_v54 = vld [vmem:[%s7175_s22 + $0xb0] sm:$0xff] }
  0xa2   : > { %6517 = vmatprep.mubr.msk.f32.mxu0 %vm284_vm0, %v7720_v25  ;;  %v2762_v25 = vld [vmem:[%s7175_s22 + $0x182] sm:$0xff] }
  0xa4   : > { %6130 = vmatmul.mubr.msk.f32.gmra.mrb[18].mxu1 %vm284_vm0, %v7729_v17 }
  0xa5   : > { %6518 = vmatmul.mubr.msk.f32.gmra.mrb[58].mxu0 %vm284_vm0, %v7734_v12  ;;  %6132 = vmatprep.mubr.msk.f32.mxu1 %vm284_vm0, %v7737_v43  ;;  %v7764_v12 = vld [vmem:[%s7175_s22 + $0xb8] sm:$0xff] }
  0xa6   : > { %6520 = vmatprep.mubr.msk.f32.mxu0 %vm284_vm0, %v7740_v38  ;;  %v7769_v38 = vld [vmem:[%s7175_s22 + $0xc0] sm:$0xff] }
  0xa8   : > { %6133 = vmatmul.mubr.msk.f32.gmra.mrb[60].mxu1 %vm284_vm0, %v7749_v35 }
  0xa9   : > { %6521 = vmatmul.mubr.msk.f32.gmra.mrb[60].mxu0 %vm284_vm0, %v2762_v25  ;;  %6135 = vmatprep.mubr.msk.f32.mxu1 %vm284_vm0, %v7755_v54  ;;  %v5381_v25 = vld [vmem:[%s9001_s1 + $0x1d8] sm:$0xff] }
  0xaa   : > { %6523 = vmatprep.mubr.msk.f32.mxu0 %vm284_vm0, %v2763_v42  ;;  %v7783_v42 = vld [vmem:[%s7175_s22 + $0xc8] sm:$0xff]  ;;  %v6906_v22 = vpack.c.bf16 %v5381_v25, %v5380_v33  ;;  %v7803_v33 = vld [vmem:[%s7175_s22 + $0xd8] sm:$0xff]  ;;  %v7808_v25 = vld [vmem:[%s7175_s22 + $0xe0] sm:$0xff] }
  0xac   : > { %6136 = vmatmul.mubr.msk.f32.gmra.mrb[62].mxu1 %vm284_vm0, %v7764_v12 }
  0xad   : > { %6524 = vmatmul.mubr.msk.f32.gmra.mrb[62].mxu0 %vm284_vm0, %v2764_v41  ;;  %6138 = vmatprep.mubr.msk.f32.mxu1 %vm284_vm0, %v7769_v38  ;;  %v5383_v41 = vld [vmem:[%s9001_s1 + $0x1e8] sm:$0xff] }
  0xae   : > { %6542 = vmatprep.mubr.msk.f32.mxu0 %vm284_vm0, %v7588_v48  ;;  %v6910_v48 = vpack.c.bf16 %v5383_v41, %v5382_v18  ;;  %v7829_v18 = vld [vmem:[%s7175_s22 + $0xf0] sm:$0xff] }
  0xb0   : > { %6139 = vmatmul.mubr.msk.f32.gmra.mrb[24].mxu1 %vm284_vm0, %v7783_v42 }
  0xb1   : > { %6543 = vmatmul.mubr.msk.f32.vlgmr.msra.gmra.mrb[0].mxu0 %vm284_vm0, %v7606_v58  ;;  %6141 = vmatprep.mubr.msk.f32.mxu1 %vm284_vm0, %v7788_v28  ;;  %v5384_v58 = vld [vmem:[%s9001_s1 + $0x1f0] sm:$0xff] }
  0xb2   : > { %6545 = vmatprep.mubr.msk.f32.mxu0 %vm284_vm0, %v7614_v62  ;;  %6905 = vmatpush3.bf16.msra.mxu0 %v7407_v47  ;;  %v7824_v47 = vld [vmem:[%s7175_s22 + $0xe8] sm:$0xff]  ;;  %v6914_v41 = vpack.c.bf16 %v5385_v13, %v5384_v58  ;;  %v7849_v58 = vld [vmem:[%s7175_s22 + $0x100] sm:$0xff] }
  0xb3   : > { %6907 = vmatprep.subr.bf16.mxu0 %v6906_v22  ;;  %v5435_v62 = vld [vmem:[%s9001_s1 + $0x208] sm:$0xff] }
  0xb4   : > { %6142 = vmatmul.mubr.msk.f32.gmra.mrb[64].mxu1 %vm284_vm0, %v7803_v33 }
  0xb5   : > { %6546 = vmatmul.mubr.msk.f32.gmra.mrb[64].mxu0 %vm284_vm0, %v7628_v4  ;;  %6144 = vmatprep.mubr.msk.f32.mxu1 %vm284_vm0, %v7808_v25  ;;  %v5434_v4 = vld [vmem:[%s9001_s1 + $0x200] sm:$0xff] }
  0xb6   : > { %6548 = vmatprep.mubr.msk.f32.mxu0 %vm284_vm0, %v7636_v10  ;;  %6909 = vmatpush3.bf16.msra.mxu0 %v6906_v22  ;;  %v7844_v22 = vld [vmem:[%s7175_s22 + $0xf8] sm:$0xff]  ;;  %v7851_v13 = vpack.c.bf16 %v5435_v62, %v5434_v4  ;;  %v7880_v4 = vld [vmem:[%s7175_s22 + $0x120] sm:$0xff]  ;;  %v5159_v10 = vld [vmem:[%s9001_s1 + $0xe8] sm:$0xff] }
  0xb7   : > { %6911 = vmatprep.subr.bf16.mxu0 %v6910_v48  ;;  %v7875_v62 = vld [vmem:[%s7175_s22 + $0x118] sm:$0xff] }
  0xb8   : > { %6145 = vmatmul.mubr.msk.f32.gmra.mrb[66].mxu1 %vm284_vm0, %v7824_v47 }
  0xb9   : > { %6549 = vmatmul.mubr.msk.f32.gmra.mrb[66].mxu0 %vm284_vm0, %v7649_v15  ;;  %6147 = vmatprep.mubr.msk.f32.mxu1 %vm284_vm0, %v7829_v18  ;;  %v7860_v15 = vld [vmem:[%s7175_s22 + $0x108] sm:$0xff] }
  0xba   : > { %6551 = vmatprep.mubr.msk.f32.mxu0 %vm284_vm0, %v7657_v21  ;;  %6913 = vmatpush3.bf16.msra.mxu0 %v6910_v48  ;;  %v7865_v48 = vld [vmem:[%s7175_s22 + $0x110] sm:$0xff]  ;;  %v5158_v21 = vld [vmem:[%s9001_s1 + $0xe0] sm:$0xff] }
  0xbb   : > { %6915 = vmatprep.subr.bf16.mxu0 %v6914_v41 }
  0xbc   : > { %6148 = vmatmul.mubr.msk.f32.gmra.mrb[30].mxu1 %vm284_vm0, %v7844_v22 }
  0xbd   : > { %6552 = vmatmul.mubr.msk.f32.gmra.mrb[6].mxu0 %vm284_vm0, %v7669_v26  ;;  %6150 = vmatprep.mubr.msk.f32.mxu1 %vm284_vm0, %v7849_v58 }
  0xbe   : > { %6554 = vmatprep.mubr.msk.f32.mxu0 %vm284_vm0, %v7677_v31  ;;  %6917 = vmatpush3.bf16.msra.mxu0 %v6914_v41  ;;  %v7889_v41 = vld [vmem:[%s7175_s22 + $0x128] sm:$0xff] }
  0xbf   : > { %6919 = vmatprep.subr.bf16.mxu0 %v7851_v13  ;;  %v1152_v31 = vld [vmem:[%s7175_s22 + $0xa] sm:$0xff] }
  0xc0   : > { %6151 = vmatmul.mubr.msk.f32.gmra.mrb[68].mxu1 %vm284_vm0, %v7860_v15 }
  0xc1   : > { %6555 = vmatmul.mubr.msk.f32.gmra.mrb[68].mxu0 %vm284_vm0, %v7689_v34  ;;  %6153 = vmatprep.mubr.msk.f32.mxu1 %vm284_vm0, %v7865_v48  ;;  %v7894_v34 = vld [vmem:[%s7175_s22 + $0x130] sm:$0xff] }
  0xc2   : > { %6557 = vmatprep.mubr.msk.f32.mxu0 %vm284_vm0, %v7697_v5  ;;  %v7908_v5 = vld [vmem:[%s7175_s22 + $0x140] sm:$0xff] }
  0xc4   : > { %6154 = vmatmul.mubr.msk.f32.gmra.mrb[70].mxu1 %vm284_vm0, %v7875_v62 }
  0xc5   : > { %6558 = vmatmul.mubr.msk.f32.gmra.mrb[70].mxu0 %vm284_vm0, %v7709_v52  ;;  %6156 = vmatprep.mubr.msk.f32.mxu1 %vm284_vm0, %v7880_v4  ;;  %v7903_v52 = vld [vmem:[%s7175_s22 + $0x138] sm:$0xff] }
  0xc6   : > { %6560 = vmatprep.mubr.msk.f32.mxu0 %vm284_vm0, %v7717_v56  ;;  %v7922_v56 = vld [vmem:[%s7175_s22 + $0x150] sm:$0xff] }
  0xc8   : > { %6157 = vmatmul.mubr.msk.f32.gmra.mrb[36].mxu1 %vm284_vm0, %v7889_v41 }
  0xc9   : > { %6561 = vmatmul.mubr.msk.f32.gmra.mrb[12].mxu0 %vm284_vm0, %v7729_v17  ;;  %6159 = vmatprep.mubr.msk.f32.mxu1 %vm284_vm0, %v7894_v34  ;;  %v7917_v17 = vld [vmem:[%s7175_s22 + $0x148] sm:$0xff] }
  0xca   : > { %6563 = vmatprep.mubr.msk.f32.mxu0 %vm284_vm0, %v7737_v43  ;;  %v7936_v43 = vld [vmem:[%s7175_s22 + $0x160] sm:$0xff] }
  0xcc   : > { %6160 = vmatmul.mubr.msk.f32.gmra.mrb[72].mxu1 %vm284_vm0, %v7903_v52 }
  0xcd   : > { %6564 = vmatmul.mubr.msk.f32.gmra.mrb[72].mxu0 %vm284_vm0, %v7749_v35  ;;  %6162 = vmatprep.mubr.msk.f32.mxu1 %vm284_vm0, %v7908_v5  ;;  %v7931_v35 = vld [vmem:[%s7175_s22 + $0x158] sm:$0xff] }
  0xce   : > { %6566 = vmatprep.mubr.msk.f32.mxu0 %vm284_vm0, %v7755_v54  ;;  %v7950_v54 = vld [vmem:[%s7175_s22 + $0x170] sm:$0xff] }
  0xd0   : > { %6163 = vmatmul.mubr.msk.f32.gmra.mrb[74].mxu1 %vm284_vm0, %v7917_v17 }
  0xd1   : > { %6567 = vmatmul.mubr.msk.f32.gmra.mrb[74].mxu0 %vm284_vm0, %v7764_v12  ;;  %6165 = vmatprep.mubr.msk.f32.mxu1 %vm284_vm0, %v7922_v56  ;;  %v7945_v12 = vld [vmem:[%s7175_s22 + $0x168] sm:$0xff] }
  0xd2   : > { %6569 = vmatprep.mubr.msk.f32.mxu0 %vm284_vm0, %v7769_v38  ;;  %v7959_v38 = vld [vmem:[%s7175_s22 + $0x178] sm:$0xff] }
  0xd4   : > { %6166 = vmatmul.mubr.msk.f32.gmra.mrb[42].mxu1 %vm284_vm0, %v7931_v35 }
  0xd5   : > { %6570 = vmatmul.mubr.msk.f32.gmra.mrb[18].mxu0 %vm284_vm0, %v7783_v42  ;;  %6168 = vmatprep.mubr.msk.f32.mxu1 %vm284_vm0, %v7936_v43  ;;  %v1151_v42 = vld [vmem:[%s7175_s22 + $0x2] sm:$0xff] }
  0xd6   : > { %6572 = vmatprep.mubr.msk.f32.mxu0 %vm284_vm0, %v7788_v28  ;;  %v5156_v28 = vld [vmem:[%s9001_s1 + $0xd0] sm:$0xff] }
  0xd8   : > { %6169 = vmatmul.mubr.msk.f32.gmra.mrb[76].mxu1 %vm284_vm0, %v7945_v12 }
  0xd9   : > { %6573 = vmatmul.mubr.msk.f32.gmra.mrb[76].mxu0 %vm284_vm0, %v7803_v33  ;;  %6171 = vmatprep.mubr.msk.f32.mxu1 %vm284_vm0, %v7950_v54  ;;  %v5157_v33 = vld [vmem:[%s9001_s1 + $0xd8] sm:$0xff] }
  0xda   : > { %6575 = vmatprep.mubr.msk.f32.mxu0 %vm284_vm0, %v7808_v25  ;;  %v1153_v25 = vld [vmem:[%s7175_s22 + $0x12] sm:$0xff]  ;;  %v6842_v26 = vpack.c.bf16 %v5157_v33, %v5156_v28 }
  0xdb   : > { %v3769_v28 = vld [vmem:[%s7175_s22 + $0x71] sm:$0xff] }
  0xdc   : > { %6172 = vmatmul.mubr.msk.f32.gmra.mrb[78].mxu1 %vm284_vm0, %v7959_v38 }
  0xdd   : > { %6576 = vmatmul.mubr.msk.f32.gmra.mrb[78].mxu0 %vm284_vm0, %v7824_v47  ;;  %6190 = vmatprep.mubr.msk.f32.mxu1 %vm284_vm0, %v1151_v42  ;;  %v5160_v47 = vld [vmem:[%s9001_s1 + $0xf0] sm:$0xff] }
  0xde   : > { %6578 = vmatprep.mubr.msk.f32.mxu0 %vm284_vm0, %v7829_v18  ;;  %v5161_v18 = vld [vmem:[%s9001_s1 + $0xf8] sm:$0xff] }
  0xe0   : > { %6191 = vmatmul.mubr.msk.f32.vlgmr.msra.gmra.mrb[0].mxu1 %vm284_vm0, %v1152_v31  ;;  %v6846_v31 = vpack.c.bf16 %v5159_v10, %v5158_v21  ;;  %v3761_v21 = vld [vmem:[%s7175_s22 + $0x31] sm:$0xff] }
  0xe1   : > { %6579 = vmatmul.mubr.msk.f32.gmra.mrb[40].mxu0 %vm284_vm0, %v7844_v22  ;;  %6841 = vmatpush3.bf16.msra.mxu1 %v7619_v2  ;;  %v3285_v2 = vld [vmem:[%s7175_s22 + $0x1a0] sm:$0xff] }
  0xe2   : > { %6193 = vmatprep.mubr.msk.f32.mxu1 %vm284_vm0, %v1153_v25  ;;  %6581 = vmatprep.mubr.msk.f32.mxu0 %vm284_vm0, %v7849_v58  ;;  %v5438_v58 = vld [vmem:[%s9001_s1 + $0x220] sm:$0xff] }
  0xe3   : > { %6843 = vmatprep.subr.bf16.mxu1 %v6842_v26  ;;  %v3770_v25 = vld [vmem:[%s7175_s22 + $0x79] sm:$0xff] }
  0xe4   : > { %6194 = vmatmul.mubr.msk.f32.gmra.mrb[80].mxu1 %vm284_vm0, %v7327_v20  ;;  %v6850_v20 = vpack.c.bf16 %v5161_v18, %v5160_v47  ;;  %v3771_v47 = vld [vmem:[%s7175_s22 + $0x81] sm:$0xff] }
  0xe5   : > { %6582 = vmatmul.mubr.msk.f32.gmra.mrb[80].mxu0 %vm284_vm0, %v7860_v15  ;;  %6196 = vmatprep.mubr.msk.f32.mxu1 %vm284_vm0, %v7341_v23  ;;  %v3286_v15 = vld [vmem:[%s7175_s22 + $0x1a8] sm:$0xff] }
  0xe6   : > { %6584 = vmatprep.mubr.msk.f32.mxu0 %vm284_vm0, %v7865_v48  ;;  %6845 = vmatpush3.bf16.msra.mxu1 %v6842_v26  ;;  %v5437_v26 = vld [vmem:[%s9001_s1 + $0x218] sm:$0xff] }
  0xe7   : > { %6847 = vmatprep.subr.bf16.mxu1 %v6846_v31 }
  0xe8   : > { %6197 = vmatmul.mubr.msk.f32.gmra.mrb[82].mxu1 %vm284_vm0, %v7344_v24 }
  0xe9   : > { %6585 = vmatmul.mubr.msk.f32.gmra.mrb[82].mxu0 %vm284_vm0, %v7875_v62  ;;  %6199 = vmatprep.mubr.msk.f32.mxu1 %vm284_vm0, %v7360_v30 }
  0xea   : > { %6587 = vmatprep.mubr.msk.f32.mxu0 %vm284_vm0, %v7880_v4  ;;  %6849 = vmatpush3.bf16.msra.mxu1 %v6846_v31  ;;  %v3765_v4 = vld [vmem:[%s7175_s22 + $0x51] sm:$0xff] }
  0xeb   : > { %6851 = vmatprep.subr.bf16.mxu1 %v6850_v20 }
  0xec   : > { %6200 = vmatmul.mubr.msk.f32.gmra.mrb[6].mxu1 %vm284_vm0, %v7365_v32 }
  0xed   : > { %6588 = vmatmul.mubr.msk.f32.gmra.mrb[46].mxu0 %vm284_vm0, %v7889_v41  ;;  %6202 = vmatprep.mubr.msk.f32.mxu1 %vm284_vm0, %v7381_v37 }
  0xee   : > { %6590 = vmatprep.mubr.msk.f32.mxu0 %vm284_vm0, %v7894_v34  ;;  %6853 = vmatpush3.bf16.msra.mxu1 %v6850_v20  ;;  %v3772_v20 = vld [vmem:[%s7175_s22 + $0x89] sm:$0xff] }
  0xef   : > { %6934 = vmatprep.subr.bf16.mxu1 %v7133_v7 }
  0xf0   : > { %6203 = vmatmul.mubr.msk.f32.gmra.mrb[84].mxu1 %vm284_vm0, %v7385_v39 }
  0xf1   : > { %6591 = vmatmul.mubr.msk.f32.gmra.mrb[84].mxu0 %vm284_vm0, %v7903_v52  ;;  %6205 = vmatprep.mubr.msk.f32.mxu1 %vm284_vm0, %v7401_v44 }
  0xf2   : > { %6593 = vmatprep.mubr.msk.f32.mxu0 %vm284_vm0, %v7908_v5 }
  0xf4   : > { %6206 = vmatmul.mubr.msk.f32.gmra.mrb[86].mxu1 %vm284_vm0, %v7405_v46  ;;  %v8064_v46 = vld [vmem:[%s7175_s22 + $0x180] sm:$0xff] }
  0xf5   : > { %6594 = vmatmul.mubr.msk.f32.gmra.mrb[86].mxu0 %vm284_vm0, %v7917_v17  ;;  %6208 = vmatprep.mubr.msk.f32.mxu1 %vm284_vm0, %v7417_v49  ;;  %v8075_v49 = vld [vmem:[%s7175_s22 + $0x188] sm:$0xff] }
  0xf6   : > { %6596 = vmatprep.mubr.msk.f32.mxu0 %vm284_vm0, %v7922_v56 }
  0xf7   : > { %v8039_v23 = vpop.f32.mrb[2].mxu1 }
  0xf8   : > { %v505_v24 = vpop.f32.mrb[3].mxu1  ;;  %6209 = vmatmul.mubr.msk.f32.gmra.mrb[12].mxu1 %vm284_vm0, %v7421_v51  ;;  %v8043_v30 = vpop.f32.mrb[2].mxu0 }
  0xf9   : > { %6597 = vmatmul.mubr.msk.f32.gmra.mrb[52].mxu0 %vm284_vm0, %v7931_v35  ;;  %6211 = vmatprep.mubr.msk.f32.mxu1 %vm284_vm0, %v7432_v53  ;;  %v2472_v17 = vpop.f32.mrb[3].mxu0  ;;  %v8080_v53 = vld [vmem:[%s7175_s22 + $0x190] sm:$0xff] }
  0xfa   : > { %6599 = vmatprep.mubr.msk.f32.mxu0 %vm284_vm0, %v7936_v43  ;;  %v3773_v24 = vld [vmem:[%s7175_s22 + $0x91] sm:$0xff]  ;;  %v3775_v17 = vld [vmem:[%s7175_s22 + $0xa1] sm:$0xff] }
  0xfb   : > { %v6022_v32 = vpop.f32.mrb[4].mxu1 }
  0xfc   : > { %v8051_v37 = vpop.f32.mrb[5].mxu1  ;;  %6212 = vmatmul.mubr.msk.f32.gmra.mrb[88].mxu1 %vm284_vm0, %v7436_v55  ;;  %v6374_v39 = vpop.f32.mrb[4].mxu0 }
  0xfd   : > { %6600 = vmatmul.mubr.msk.f32.gmra.mrb[88].mxu0 %vm284_vm0, %v7945_v12  ;;  %6214 = vmatprep.mubr.msk.f32.mxu1 %vm284_vm0, %v7446_v57  ;;  %v8059_v44 = vpop.f32.mrb[5].mxu0  ;;  %v9073_v39 = vld [vmem:[#allocation14_spill] sm:$0xff] }
  0xfe   : > { %6602 = vmatprep.mubr.msk.f32.mxu0 %vm284_vm0, %v7950_v54  ;;  %v3767_v54 = vld [vmem:[%s7175_s22 + $0x61] sm:$0xff] }
 0x100   : > { %6215 = vmatmul.mubr.msk.f32.gmra.mrb[90].mxu1 %vm284_vm0, %v7450_v59 }
 0x101   : > { %6603 = vmatmul.mubr.msk.f32.gmra.mrb[90].mxu0 %vm284_vm0, %v7959_v38  ;;  %6217 = vmatprep.mubr.msk.f32.mxu1 %vm284_vm0, %v7460_v61  ;;  %v3284_v61 = vld [vmem:[%s7175_s22 + $0x198] sm:$0xff] }
 0x102   : > { %6605 = vmatprep.mubr.msk.f32.mxu0 %vm284_vm0, %v8064_v46 }
 0x103   : > { %v8077_v51 = vpop.f32.mrb[8].mxu1 }
 0x104   : > { %v533_v55 = vpop.f32.mrb[9].mxu1  ;;  %6218 = vmatmul.mubr.msk.f32.gmra.mrb[18].mxu1 %vm284_vm0, %v7464_v63  ;;  %v8084_v57 = vpop.f32.mrb[8].mxu0 }
 0x105   : > { %6606 = vmatmul.mubr.msk.f32.gmra.mrb[58].mxu0 %vm284_vm0, %v8075_v49  ;;  %6220 = vmatprep.mubr.msk.f32.mxu1 %vm284_vm0, %v7474_v1  ;;  %v2500_v59 = vpop.f32.mrb[9].mxu0 }
 0x106   : > { %6608 = vmatprep.mubr.msk.f32.mxu0 %vm284_vm0, %v8080_v53  ;;  %v3776_v59 = vld [vmem:[%s7175_s22 + $0xa9] sm:$0xff] }
 0x107   : > { %v6031_v43 = vpop.f32.mrb[10].mxu1 }
 0x108   : > { %v8094_v10 = vpop.f32.mrb[11].mxu1  ;;  %6221 = vmatmul.mubr.msk.f32.gmra.mrb[92].mxu1 %vm284_vm0, %v7478_v3  ;;  %v6383_v63 = vpop.f32.mrb[10].mxu0  ;;  %v5436_v3 = vld [vmem:[%s9001_s1 + $0x210] sm:$0xff] }
 0x109   : > { %6609 = vmatmul.mubr.msk.f32.gmra.mrb[92].mxu0 %vm284_vm0, %v3284_v61  ;;  %6223 = vmatprep.mubr.msk.f32.mxu1 %vm284_vm0, %v7488_v6  ;;  %v8101_v1 = vpop.f32.mrb[11].mxu0  ;;  %v3762_v6 = vld [vmem:[%s7175_s22 + $0x39] sm:$0xff]  ;;  %v6922_v5 = vpack.c.bf16 %v5437_v26, %v5436_v3  ;;  %v3777_v43 = vld [vmem:[%s7175_s22 + $0xb1] sm:$0xff] }
 0x10a   : > { %6611 = vmatprep.mubr.msk.f32.mxu0 %vm284_vm0, %v3285_v2  ;;  %v9075_v63 = vld [vmem:[#allocation18_spill] sm:$0xff] }
 0x10b   : > { %v3778_v26 = vld [vmem:[%s7175_s22 + $0xb9] sm:$0xff] }
 0x10c   : > { %6224 = vmatmul.mubr.msk.f32.gmra.mrb[94].mxu1 %vm284_vm0, %v7492_v9  ;;  %v3763_v9 = vld [vmem:[%s7175_s22 + $0x41] sm:$0xff] }
 0x10d   : > { %6612 = vmatmul.mubr.msk.f32.gmra.mrb[94].mxu0 %vm284_vm0, %v3286_v15  ;;  %6226 = vmatprep.mubr.msk.f32.mxu1 %vm284_vm0, %v7502_v11  ;;  %v5439_v11 = vld [vmem:[%s9001_s1 + $0x228] sm:$0xff] }
 0x10e   : > { %6630 = vmatprep.mubr.msk.f32.mxu0 %vm284_vm0, %v3761_v21  ;;  %v6926_v41 = vpack.c.bf16 %v5439_v11, %v5438_v58  ;;  %v9076_v21 = vld [vmem:[#allocation20_spill] sm:$0xff]  ;;  %v3781_v11 = vld [vmem:[%s7175_s22 + $0xd1] sm:$0xff] }
 0x10f   : > { %v8119_v34 = vpop.f32.mrb[14].mxu1 }
 0x110   : > { %v561_v56 = vpop.f32.mrb[15].mxu1  ;;  %6227 = vmatmul.mubr.msk.f32.gmra.mrb[24].mxu1 %vm284_vm0, %v7506_v14  ;;  %v8124_v22 = vpop.f32.mrb[14].mxu0  ;;  %v3764_v14 = vld [vmem:[%s7175_s22 + $0x49] sm:$0xff] }
 0x111   : > { %9069 = vst [vmem:[#allocation34_spill] sm:$0xff] %v8124_v22  ;;  %6631 = vmatmul.mubr.msk.f32.vlgmr.msra.gmra.mrb[0].mxu0 %vm284_vm0, %v3762_v6  ;;  %6229 = vmatprep.mubr.msk.f32.mxu1 %vm284_vm0, %v7516_v16  ;;  %v2528_v48 = vpop.f32.mrb[15].mxu0  ;;  %v5440_v16 = vld [vmem:[%s9001_s1 + $0x230] sm:$0xff]  ;;  %v3779_v6 = vld [vmem:[%s7175_s22 + $0xc1] sm:$0xff] }
 0x112   : > { %6633 = vmatprep.mubr.msk.f32.mxu0 %vm284_vm0, %v3763_v9  ;;  %6921 = vmatpush3.bf16.msra.mxu0 %v7851_v13  ;;  %v5441_v13 = vld [vmem:[%s9001_s1 + $0x238] sm:$0xff]  ;;  %v3780_v56 = vld [vmem:[%s7175_s22 + $0xc9] sm:$0xff] }
 0x113   : > { %v6040_v62 = vpop.f32.mrb[16].mxu1  ;;  %6923 = vmatprep.subr.bf16.mxu0 %v6922_v5  ;;  %v6930_v38 = vpack.c.bf16 %v5441_v13, %v5440_v16  ;;  %v9077_v9 = vld [vmem:[#allocation22_spill] sm:$0xff]  ;;  %v8243_v13 = vld [vmem:[%s7175_s22 + $0xe1] sm:$0xff] }
 0x114   : > { %v8139_v52 = vpop.f32.mrb[17].mxu1  ;;  %6230 = vmatmul.mubr.msk.f32.gmra.mrb[96].mxu1 %vm284_vm0, %v7520_v19  ;;  %v6392_v35 = vpop.f32.mrb[16].mxu0  ;;  %v3766_v19 = vld [vmem:[%s7175_s22 + $0x59] sm:$0xff]  ;;  %v4301_v22 = vld [vmem:[%s7175_s22 + $0xc2] sm:$0xff] }
 0x115   : > { %6634 = vmatmul.mubr.msk.f32.gmra.mrb[96].mxu0 %vm284_vm0, %v3764_v14  ;;  %6232 = vmatprep.mubr.msk.f32.mxu1 %vm284_vm0, %v7536_v27  ;;  %v8152_v12 = vpop.f32.mrb[17].mxu0  ;;  %v3768_v27 = vld [vmem:[%s7175_s22 + $0x69] sm:$0xff]  ;;  %v9079_v14 = vld [vmem:[#allocation26_spill] sm:$0xff] }
 0x116   : > { %9070 = vst [vmem:[#allocation35_spill] sm:$0xff] %v8152_v12  ;;  %6636 = vmatprep.mubr.msk.f32.mxu0 %vm284_vm0, %v3765_v4  ;;  %6925 = vmatpush3.bf16.msra.mxu0 %v6922_v5  ;;  %v9078_v5 = vld [vmem:[#allocation24_spill] sm:$0xff]  ;;  %v9080_v4 = vld [vmem:[#allocation27_spill] sm:$0xff]  ;;  %v1697_v12 = vld [vmem:[%s7175_s22 + $0xd8] sm:$0xff] }
 0x117   : > { %6927 = vmatprep.subr.bf16.mxu0 %v6926_v41  ;;  %v8240_v35 = vld [vmem:[%s7175_s22 + $0xd9] sm:$0xff] }
 0x118   : > { %6233 = vmatmul.mubr.msk.f32.gmra.mrb[98].mxu1 %vm284_vm0, %v7540_v29 }
 0x119   : > { %6637 = vmatmul.mubr.msk.f32.gmra.mrb[98].mxu0 %vm284_vm0, %v3766_v19  ;;  %6235 = vmatprep.mubr.msk.f32.mxu1 %vm284_vm0, %v7559_v36 }
 0x11a   : > { %6639 = vmatprep.mubr.msk.f32.mxu0 %vm284_vm0, %v3767_v54  ;;  %6929 = vmatpush3.bf16.msra.mxu0 %v6926_v41  ;;  %v9081_v54 = vld [vmem:[#allocation29_spill] sm:$0xff] }
 0x11b   : > { %v8164_v42 = vpop.f32.mrb[20].mxu1  ;;  %6931 = vmatprep.subr.bf16.mxu0 %v6930_v38 }
 0x11c   : > { %v589_v33 = vpop.f32.mrb[21].mxu1  ;;  %6236 = vmatmul.mubr.msk.f32.gmra.mrb[30].mxu1 %vm284_vm0, %v7565_v40  ;;  %v8169_v29 = vpop.f32.mrb[20].mxu0 }
 0x11d   : > { %9071 = vst [vmem:[#allocation36_spill] sm:$0xff] %v8169_v29  ;;  %6640 = vmatmul.mubr.msk.f32.gmra.mrb[6].mxu0 %vm284_vm0, %v3768_v27  ;;  %6238 = vmatprep.mubr.msk.f32.mxu1 %vm284_vm0, %v7585_v45  ;;  %v2556_v36 = vpop.f32.mrb[21].mxu0  ;;  %v9082_v27 = vld [vmem:[#allocation31_spill] sm:$0xff]  ;;  %v8258_v33 = vld [vmem:[%s7175_s22 + $0xe9] sm:$0xff] }
 0x11e   : > { %6642 = vmatprep.mubr.msk.f32.mxu0 %vm284_vm0, %v3769_v28  ;;  %6933 = vmatpush3.bf16.msra.mxu0 %v6930_v38  ;;  %v8261_v36 = vld [vmem:[%s7175_s22 + $0xf1] sm:$0xff] }
 0x11f   : > { %v6049_v31 = vpop.f32.mrb[22].mxu1 }
 0x120   : > { %v8177_v18 = vpop.f32.mrb[23].mxu1  ;;  %6239 = vmatmul.mubr.msk.f32.gmra.mrb[100].mxu1 %vm284_vm0, %v7591_v50  ;;  %v6401_v40 = vpop.f32.mrb[22].mxu0  ;;  %v3774_v50 = vld [vmem:[%s7175_s22 + $0x99] sm:$0xff] }
 0x121   : > { %6643 = vmatmul.mubr.msk.f32.gmra.mrb[100].mxu0 %vm284_vm0, %v3770_v25  ;;  %6241 = vmatprep.mubr.msk.f32.mxu1 %vm284_vm0, %v7611_v60  ;;  %v8184_v45 = vpop.f32.mrb[23].mxu0  ;;  %v9084_v25 = vld [vmem:[#allocation33_spill] sm:$0xff]  ;;  %v9085_v31 = vld [vmem:[#allocation6_spill] sm:$0xff] }
 0x122   : > { %9072 = vst [vmem:[#allocation37_spill] sm:$0xff] %v8184_v45  ;;  %6645 = vmatprep.mubr.msk.f32.mxu0 %vm284_vm0, %v3771_v47  ;;  %v8272_v47 = vld [vmem:[%s7175_s22 + $0xf9] sm:$0xff] }
 0x123   : > { %v1694_v45 = vld [vmem:[%s7175_s22 + $0xc0] sm:$0xff] }
 0x124   : > { %6242 = vmatmul.mubr.msk.f32.gmra.mrb[102].mxu1 %vm284_vm0, %v7617_v0  ;;  %v9074_v0 = vld [vmem:[#allocation16_spill] sm:$0xff] }
 0x125   : > { %6646 = vmatmul.mubr.msk.f32.gmra.mrb[102].mxu0 %vm284_vm0, %v3772_v20  ;;  %6244 = vmatprep.mubr.msk.f32.mxu1 %vm284_vm0, %v7633_v8  ;;  %v8277_v20 = vld [vmem:[%s7175_s22 + $0x101] sm:$0xff] }
 0x126   : > { %6648 = vmatprep.mubr.msk.f32.mxu0 %vm284_vm0, %v3773_v24 }
 0x127   : > { %v8196_v60 = vpop.f32.mrb[26].mxu1 }
 0x128   : > { %v617_v32 = vpop.f32.mrb[27].mxu1  ;;  %6245 = vmatmul.mubr.msk.f32.gmra.mrb[36].mxu1 %vm284_vm0, %v9073_v39  ;;  %v8201_v55 = vpop.f32.mrb[24].mxu0  ;;  %v9088_v39 = vld [vmem:[#allocation8_spill] sm:$0xff] }
 0x129   : > { %6649 = vmatmul.mubr.msk.f32.gmra.mrb[12].mxu0 %vm284_vm0, %v3774_v50  ;;  %6247 = vmatprep.mubr.msk.f32.mxu1 %vm284_vm0, %v9074_v0  ;;  %v2994_v8 = vpop.f32.mrb[25].mxu0  ;;  %v9086_v50 = vld [vmem:[#allocation7_spill] sm:$0xff]  ;;  %v8291_v0 = vld [vmem:[%s7175_s22 + $0x109] sm:$0xff] }
 0x12a   : > { %6651 = vmatprep.mubr.msk.f32.mxu0 %vm284_vm0, %v3775_v17 }
 0x12b   : > { %v6058_v61 = vpop.f32.mrb[28].mxu1 }
 0x12c   : > { %v8209_v2 = vpop.f32.mrb[29].mxu1  ;;  %6248 = vmatmul.mubr.msk.f32.gmra.mrb[104].mxu1 %vm284_vm0, %v9075_v63  ;;  %v6462_v15 = vpop.f32.mrb[26].mxu0  ;;  %v9089_v61 = vld [vmem:[#allocation3_spill] sm:$0xff]  ;;  %v9090_v63 = vld [vmem:[#allocation9_spill] sm:$0xff] }
 0x12d   : > { %6652 = vmatmul.mubr.msk.f32.gmra.mrb[104].mxu0 %vm284_vm0, %v3776_v59  ;;  %6250 = vmatprep.mubr.msk.f32.mxu1 %vm284_vm0, %v9076_v21  ;;  %v8216_v3 = vpop.f32.mrb[27].mxu0  ;;  %v8294_v59 = vld [vmem:[%s7175_s22 + $0x111] sm:$0xff] }
 0x12e   : > { %6654 = vmatprep.mubr.msk.f32.mxu0 %vm284_vm0, %v3777_v43  ;;  %v9091_v15 = vld [vmem:[#allocation10_spill] sm:$0xff] }
 0x130   : > { %6251 = vmatmul.mubr.msk.f32.gmra.mrb[106].mxu1 %vm284_vm0, %v9077_v9  ;;  %v9093_v9 = vld [vmem:[#allocation4_spill] sm:$0xff] }
 0x131   : > { %6655 = vmatmul.mubr.msk.f32.gmra.mrb[106].mxu0 %vm284_vm0, %v3778_v26  ;;  %6253 = vmatprep.mubr.msk.f32.mxu1 %vm284_vm0, %v9078_v5  ;;  %v8310_v26 = vld [vmem:[%s7175_s22 + $0x119] sm:$0xff] }
 0x132   : > { %6657 = vmatprep.mubr.msk.f32.mxu0 %vm284_vm0, %v3779_v6  ;;  %v8314_v6 = vld [vmem:[%s7175_s22 + $0x121] sm:$0xff] }
 0x133   : > { %v8228_v58 = vpop.f32.mrb[32].mxu1  ;;  %v9094_v5 = vld [vmem:[#allocation11_spill] sm:$0xff] }
 0x134   : > { %v645_v48 = vpop.f32.mrb[33].mxu1  ;;  %6254 = vmatmul.mubr.msk.f32.gmra.mrb[42].mxu1 %vm284_vm0, %v9079_v14  ;;  %v8233_v62 = vpop.f32.mrb[28].mxu0  ;;  %v8332_v14 = vld [vmem:[%s7175_s22 + $0x131] sm:$0xff] }
 0x135   : > { %6658 = vmatmul.mubr.msk.f32.gmra.mrb[18].mxu0 %vm284_vm0, %v3780_v56  ;;  %6256 = vmatprep.mubr.msk.f32.mxu1 %vm284_vm0, %v9080_v4  ;;  %v3022_v41 = vpop.f32.mrb[29].mxu0  ;;  %v9095_v56 = vld [vmem:[#allocation12_spill] sm:$0xff]  ;;  %v9096_v4 = vld [vmem:[#allocation5_spill] sm:$0xff] }
 0x136   : > { %6660 = vmatprep.mubr.msk.f32.mxu0 %vm284_vm0, %v3781_v11  ;;  %v8326_v11 = vld [vmem:[%s7175_s22 + $0x129] sm:$0xff] }
 0x137   : > { %v6067_v16 = vpop.f32.mrb[34].mxu1 }
 0x138   : > { %v8245_v19 = vpop.f32.mrb[35].mxu1  ;;  %6257 = vmatmul.mubr.msk.f32.gmra.mrb[108].mxu1 %vm284_vm0, %v9081_v54  ;;  %v6471_v38 = vpop.f32.mrb[30].mxu0  ;;  %v9097_v16 = vld [vmem:[#allocation13_spill] sm:$0xff] }
 0x139   : > { %6661 = vmatmul.mubr.msk.f32.gmra.mrb[108].mxu0 %vm284_vm0, %v8240_v35  ;;  %6259 = vmatprep.mubr.msk.f32.mxu1 %vm284_vm0, %v9082_v27  ;;  %v8253_v28 = vpop.f32.mrb[31].mxu0  ;;  %v9099_v38 = vld [vmem:[#allocation15_spill] sm:$0xff] }
 0x13a   : > { %9083 = vst [vmem:[#allocation14_spill] sm:$0xff] %v8253_v28  ;;  %6663 = vmatprep.mubr.msk.f32.mxu0 %vm284_vm0, %v8243_v13  ;;  %v4305_v28 = vld [vmem:[%s7175_s22 + $0xe2] sm:$0xff] }
 0x13c   : > { %6260 = vmatmul.mubr.msk.f32.gmra.mrb[110].mxu1 %vm284_vm0, %v9084_v25  ;;  %v8346_v25 = vld [vmem:[%s7175_s22 + $0x139] sm:$0xff] }
 0x13d   : > { %6664 = vmatmul.mubr.msk.f32.gmra.mrb[110].mxu0 %vm284_vm0, %v8258_v33  ;;  %6278 = vmatprep.mubr.msk.f32.mxu1 %vm284_vm0, %v9085_v31 }
 0x13e   : > { %6666 = vmatprep.mubr.msk.f32.mxu0 %vm284_vm0, %v8261_v36 }
 0x13f   : > { %v8274_v40 = vpop.f32.mrb[38].mxu1 }
 0x140   : > { %v673_v24 = vpop.f32.mrb[39].mxu1  ;;  %6279 = vmatmul.mubr.msk.f32.vlgmr.msra.gmra.mrb[0].mxu1 %vm284_vm0, %v9086_v50  ;;  %v8281_v17 = vpop.f32.mrb[32].mxu0 }
 0x141   : > { %9087 = vst [vmem:[#allocation16_spill] sm:$0xff] %v8281_v17  ;;  %6667 = vmatmul.mubr.msk.f32.gmra.mrb[40].mxu0 %vm284_vm0, %v8272_v47  ;;  %6938 = vmatpush3.bf16.msra.mxu1 %v7133_v7  ;;  %v3050_v32 = vpop.f32.mrb[33].mxu0  ;;  %v8350_v24 = vld [vmem:[%s7175_s22 + $0x141] sm:$0xff]  ;;  %v4283_v17 = vld [vmem:[%s7175_s22 + $0x32] sm:$0xff] }
 0x142   : > { %6281 = vmatprep.mubr.msk.f32.mxu1 %vm284_vm0, %v9088_v39  ;;  %6669 = vmatprep.mubr.msk.f32.mxu0 %vm284_vm0, %v8277_v20  ;;  %v9100_v32 = vld [vmem:[#allocation17_spill] sm:$0xff] }
 0x143   : > { %v6076_v8 = vpop.f32.mrb[40].mxu1  ;;  %6935 = vmatprep.subr.bf16.mxu1 %v9089_v61 }
 0x144   : > { %v8297_v43 = vpop.f32.mrb[41].mxu1  ;;  %6282 = vmatmul.mubr.msk.f32.gmra.mrb[112].mxu1 %vm284_vm0, %v9090_v63  ;;  %v6480_v7 = vpop.f32.mrb[34].mxu0  ;;  %v9101_v8 = vld [vmem:[#allocation19_spill] sm:$0xff]  ;;  %v8365_v63 = vld [vmem:[%s7175_s22 + $0x149] sm:$0xff] }
 0x145   : > { %6670 = vmatmul.mubr.msk.f32.gmra.mrb[112].mxu0 %vm284_vm0, %v8291_v0  ;;  %6284 = vmatprep.mubr.msk.f32.mxu1 %vm284_vm0, %v9091_v15  ;;  %v8305_v21 = vpop.f32.mrb[35].mxu0  ;;  %v8368_v7 = vld [vmem:[%s7175_s22 + $0x151] sm:$0xff] }
 0x146   : > { %9092 = vst [vmem:[#allocation18_spill] sm:$0xff] %v8305_v21  ;;  %6672 = vmatprep.mubr.msk.f32.mxu0 %vm284_vm0, %v8294_v59  ;;  %6939 = vmatpush3.bf16.msra.mxu1 %v9089_v61  ;;  %v9103_v15 = vld [vmem:[#allocation21_spill] sm:$0xff] }
 0x147   : > { %6936 = vmatprep.subr.bf16.mxu1 %v9093_v9 }
 0x148   : > { %6285 = vmatmul.mubr.msk.f32.gmra.mrb[114].mxu1 %vm284_vm0, %v9094_v5  ;;  %v8379_v5 = vld [vmem:[%s7175_s22 + $0x159] sm:$0xff] }
 0x149   : > { %6673 = vmatmul.mubr.msk.f32.gmra.mrb[114].mxu0 %vm284_vm0, %v8310_v26  ;;  %6287 = vmatprep.mubr.msk.f32.mxu1 %vm284_vm0, %v9095_v56  ;;  %v1687_v56 = vld [vmem:[%s7175_s22 + $0x88] sm:$0xff] }
 0x14a   : > { %6675 = vmatprep.mubr.msk.f32.mxu0 %vm284_vm0, %v8314_v6  ;;  %6940 = vmatpush3.bf16.msra.mxu1 %v9093_v9  ;;  %v9104_v9 = vld [vmem:[#allocation23_spill] sm:$0xff] }
 0x14b   : > { %v8329_v48 = vpop.f32.mrb[44].mxu1  ;;  %6937 = vmatprep.subr.bf16.mxu1 %v9096_v4 }
 0x14c   : > { %v701_v41 = vpop.f32.mrb[45].mxu1  ;;  %6288 = vmatmul.mubr.msk.f32.gmra.mrb[6].mxu1 %vm284_vm0, %v9097_v16  ;;  %v8337_v54 = vpop.f32.mrb[36].mxu0 }
 0x14d   : > { %9098 = vst [vmem:[#allocation20_spill] sm:$0xff] %v8337_v54  ;;  %6676 = vmatmul.mubr.msk.f32.gmra.mrb[46].mxu0 %vm284_vm0, %v8326_v11  ;;  %6290 = vmatprep.mubr.msk.f32.mxu1 %vm284_vm0, %v9099_v38  ;;  %v3078_v27 = vpop.f32.mrb[37].mxu0  ;;  %v8383_v41 = vld [vmem:[%s7175_s22 + $0x161] sm:$0xff] }
 0x14e   : > { %6678 = vmatprep.mubr.msk.f32.mxu0 %vm284_vm0, %v8332_v14  ;;  %6941 = vmatpush3.bf16.msra.mxu1 %v9096_v4  ;;  %v9105_v27 = vld [vmem:[#allocation25_spill] sm:$0xff] }
 0x14f   : > { %v6085_v31 = vpop.f32.mrb[46].mxu1 }
 0x150   : > { %v8352_v50 = vpop.f32.mrb[47].mxu1  ;;  %6291 = vmatmul.mubr.msk.f32.gmra.mrb[116].mxu1 %vm284_vm0, %v9100_v32  ;;  %v6489_v39 = vpop.f32.mrb[38].mxu0 }
 0x151   : > { %6679 = vmatmul.mubr.msk.f32.gmra.mrb[116].mxu0 %vm284_vm0, %v8346_v25  ;;  %6293 = vmatprep.mubr.msk.f32.mxu1 %vm284_vm0, %v9101_v8  ;;  %v8360_v61 = vpop.f32.mrb[39].mxu0  ;;  %v8401_v8 = vld [vmem:[%s7175_s22 + $0x171] sm:$0xff] }
 0x152   : > { %9102 = vst [vmem:[#allocation22_spill] sm:$0xff] %v8360_v61  ;;  %6681 = vmatprep.mubr.msk.f32.mxu0 %vm284_vm0, %v8350_v24 }
 0x154   : > { %6294 = vmatmul.mubr.msk.f32.gmra.mrb[118].mxu1 %vm284_vm0, %v9103_v15 }
 0x155   : > { %6682 = vmatmul.mubr.msk.f32.gmra.mrb[118].mxu0 %vm284_vm0, %v8365_v63  ;;  %6296 = vmatprep.mubr.msk.f32.mxu1 %vm284_vm0, %v9104_v9  ;;  %v9107_v9 = vld [vmem:[#allocation28_spill] sm:$0xff] }
 0x156   : > { %6684 = vmatprep.mubr.msk.f32.mxu0 %vm284_vm0, %v8368_v7 }
 0x157   : > { %v6107_v4 = vpop.f32.mrb[48].mxu1 }
 0x158   : > { %v8386_v16 = vadd.f32 %v6107_v4, %v8039_v23  ;;  %v938_v38 = vpop.f32.mrb[49].mxu1  ;;  %6297 = vmatmul.mubr.msk.f32.gmra.mrb[12].mxu1 %vm284_vm0, %v9105_v27  ;;  %v8390_v31 = vpop.f32.mrb[42].mxu0  ;;  %v8398_v23 = vld [vmem:[%s7175_s22 + $0x169] sm:$0xff] }
 0x159   : > { %9106 = vst [vmem:[#allocation24_spill] sm:$0xff] %v8390_v31  ;;  %6685 = vmatmul.mubr.msk.f32.gmra.mrb[52].mxu0 %vm284_vm0, %v8379_v5  ;;  %6299 = vmatprep.mubr.msk.f32.mxu1 %vm284_vm0, %v1687_v56  ;;  %v3106_v32 = vpop.f32.mrb[43].mxu0  ;;  %v9108_v38 = vld [vmem:[#allocation30_spill] sm:$0xff] }
 0x15a   : > { %6687 = vmatprep.mubr.msk.f32.mxu0 %vm284_vm0, %v8383_v41  ;;  %v8417_v32 = vld [vmem:[%s7175_s22 + $0x179] sm:$0xff]  ;;  %v8436_v31 = vld [vmem:[%s7175_s22 + $0x191] sm:$0xff] }
 0x15b   : > { %v6110_v39 = vpop.f32.mrb[50].mxu1 }
 0x15c   : > { %v947_v15 = vpop.f32.mrb[51].mxu1  ;;  %6300 = vmatmul.mubr.msk.f32.gmra.mrb[120].mxu1 %vm284_vm0, %v9107_v9  ;;  %v6498_v4 = vpop.f32.mrb[44].mxu0  ;;  %v1691_v39 = vld [vmem:[%s7175_s22 + $0xa8] sm:$0xff] }
 0x15d   : > { %v8406_v56 = vadd.f32 %v947_v15, %v8051_v37  ;;  %6688 = vmatmul.mubr.msk.f32.gmra.mrb[120].mxu0 %vm284_vm0, %v8398_v23  ;;  %6302 = vmatprep.mubr.msk.f32.mxu1 %vm284_vm0, %v9108_v38  ;;  %v8412_v27 = vpop.f32.mrb[45].mxu0  ;;  %v8421_v9 = vld [vmem:[%s7175_s22 + $0x181] sm:$0xff]  ;;  %v1692_v37 = vld [vmem:[%s7175_s22 + $0xb0] sm:$0xff]  ;;  %v1693_v38 = vld [vmem:[%s7175_s22 + $0xb8] sm:$0xff] }
 0x15e   : > { %9109 = vst [vmem:[#allocation26_spill] sm:$0xff] %v8412_v27  ;;  %6690 = vmatprep.mubr.msk.f32.mxu0 %vm284_vm0, %v8401_v8  ;;  %v9110_v4 = vld [vmem:[#allocation32_spill] sm:$0xff] }
 0x15f   : > { %v8432_v15 = vld [vmem:[%s7175_s22 + $0x189] sm:$0xff] }
 0x160   : > { %6303 = vmatmul.mubr.msk.f32.gmra.mrb[122].mxu1 %vm284_vm0, %v9110_v4 }
 0x161   : > { %6691 = vmatmul.mubr.msk.f32.gmra.mrb[122].mxu0 %vm284_vm0, %v8417_v32  ;;  %6305 = vmatprep.mubr.msk.f32.mxu1 %vm284_vm0, %v1691_v39 }
 0x162   : > { %6693 = vmatprep.mubr.msk.f32.mxu0 %vm284_vm0, %v8421_v9 }
 0x163   : > { %v6116_v27 = vpop.f32.mrb[52].mxu1 }
 0x164   : > { %v8439_v4 = vadd.f32 %v6116_v27, %v8077_v51  ;;  %v966_v61 = vpop.f32.mrb[53].mxu1  ;;  %6306 = vmatmul.mubr.msk.f32.gmra.mrb[18].mxu1 %vm284_vm0, %v1692_v37  ;;  %v8442_v39 = vpop.f32.mrb[48].mxu0  ;;  %v3806_v51 = vld [vmem:[%s7175_s22 + $0x199] sm:$0xff]  ;;  %v3807_v37 = vld [vmem:[%s7175_s22 + $0x1a1] sm:$0xff] }
 0x165   : > { %9111 = vst [vmem:[#allocation27_spill] sm:$0xff] %v8442_v39  ;;  %6694 = vmatmul.mubr.msk.f32.gmra.mrb[58].mxu0 %vm284_vm0, %v8432_v15  ;;  %6308 = vmatprep.mubr.msk.f32.mxu1 %vm284_vm0, %v1693_v38  ;;  %v3134_v54 = vpop.f32.mrb[49].mxu0  ;;  %v1695_v61 = vld [vmem:[%s7175_s22 + $0xc8] sm:$0xff] }
 0x166   : > { %6696 = vmatprep.mubr.msk.f32.mxu0 %vm284_vm0, %v8436_v31  ;;  %v1696_v54 = vld [vmem:[%s7175_s22 + $0xd0] sm:$0xff] }
 0x167   : > { %v6119_v27 = vpop.f32.mrb[54].mxu1 }
 0x168   : > { %v975_v39 = vpop.f32.mrb[55].mxu1  ;;  %6309 = vmatmul.mubr.msk.f32.gmra.mrb[124].mxu1 %vm284_vm0, %v1694_v45  ;;  %v6507_v29 = vpop.f32.mrb[50].mxu0  ;;  %v3808_v27 = vld [vmem:[%s7175_s22 + $0x1a9] sm:$0xff] }
 0x169   : > { %v8455_v38 = vadd.f32 %v975_v39, %v8094_v10  ;;  %6697 = vmatmul.mubr.msk.f32.gmra.mrb[124].mxu0 %vm284_vm0, %v3806_v51  ;;  %6311 = vmatprep.mubr.msk.f32.mxu1 %vm284_vm0, %v1695_v61  ;;  %v8460_v21 = vpop.f32.mrb[51].mxu0  ;;  %v1698_v10 = vld [vmem:[%s7175_s22 + $0xe0] sm:$0xff]  ;;  %v1699_v45 = vld [vmem:[%s7175_s22 + $0xe8] sm:$0xff] }
 0x16a   : > { %9112 = vst [vmem:[#allocation29_spill] sm:$0xff] %v8460_v21  ;;  %6699 = vmatprep.mubr.msk.f32.mxu0 %vm284_vm0, %v3807_v37  ;;  %v4284_v29 = vld [vmem:[%s7175_s22 + $0x3a] sm:$0xff]  ;;  %v4285_v51 = vld [vmem:[%s7175_s22 + $0x42] sm:$0xff] }
 0x16b   : > { %v4289_v21 = vld [vmem:[%s7175_s22 + $0x62] sm:$0xff] }
 0x16c   : > { %6312 = vmatmul.mubr.msk.f32.gmra.mrb[126].mxu1 %vm284_vm0, %v1696_v54 }
 0x16d   : > { %6700 = vmatmul.mubr.msk.f32.gmra.mrb[126].mxu0 %vm284_vm0, %v3808_v27  ;;  %6314 = vmatprep.mubr.msk.f32.mxu1 %vm284_vm0, %v1697_v12  ;;  %v1700_v12 = vld [vmem:[%s7175_s22 + $0xf0] sm:$0xff] }
 0x16e   : > { %6718 = vmatprep.mubr.msk.f32.mxu0 %vm284_vm0, %v4283_v17  ;;  %v4286_v27 = vld [vmem:[%s7175_s22 + $0x4a] sm:$0xff] }
 0x16f   : > { %v6125_v39 = vpop.f32.mrb[56].mxu1 }
 0x170   : > { %v8475_v61 = vadd.f32 %v6125_v39, %v8119_v34  ;;  %v994_v37 = vpop.f32.mrb[57].mxu1  ;;  %6315 = vmatmul.mubr.msk.f32.gmra.mrb[24].mxu1 %vm284_vm0, %v1698_v10  ;;  %v8478_v54 = vpop.f32.mrb[54].mxu0  ;;  %v1701_v34 = vld [vmem:[%s7175_s22 + $0xf8] sm:$0xff] }
 0x171   : > { %9113 = vst [vmem:[#allocation31_spill] sm:$0xff] %v8478_v54  ;;  %6719 = vmatmul.mubr.msk.f32.vlgmr.msra.gmra.mrb[0].mxu0 %vm284_vm0, %v4284_v29  ;;  %6317 = vmatprep.mubr.msk.f32.mxu1 %vm284_vm0, %v1699_v45  ;;  %v3162_v17 = vpop.f32.mrb[55].mxu0  ;;  %v4287_v37 = vld [vmem:[%s7175_s22 + $0x52] sm:$0xff]  ;;  %v1702_v45 = vld [vmem:[%s7175_s22 + $0x100] sm:$0xff] }
 0x172   : > { %6721 = vmatprep.mubr.msk.f32.mxu0 %vm284_vm0, %v4285_v51  ;;  %v4288_v17 = vld [vmem:[%s7175_s22 + $0x5a] sm:$0xff] }
 0x173   : > { %v6128_v39 = vpop.f32.mrb[58].mxu1 }
 0x174   : > { %v1003_v10 = vpop.f32.mrb[59].mxu1  ;;  %6318 = vmatmul.mubr.msk.f32.gmra.mrb[128].mxu1 %vm284_vm0, %v1700_v12  ;;  %v6516_v54 = vpop.f32.mrb[56].mxu0  ;;  %v1703_v39 = vld [vmem:[%s7175_s22 + $0x108] sm:$0xff]  ;;  %v1705_v12 = vld [vmem:[%s7175_s22 + $0x118] sm:$0xff] }
 0x175   : > { %v8489_v29 = vadd.f32 %v1003_v10, %v8139_v52  ;;  %6722 = vmatmul.mubr.msk.f32.gmra.mrb[128].mxu0 %vm284_vm0, %v4286_v27  ;;  %6320 = vmatprep.mubr.msk.f32.mxu1 %vm284_vm0, %v1701_v34  ;;  %v8494_v51 = vpop.f32.mrb[57].mxu0  ;;  %v1704_v52 = vld [vmem:[%s7175_s22 + $0x110] sm:$0xff] }
 0x176   : > { %9114 = vst [vmem:[#allocation33_spill] sm:$0xff] %v8494_v51  ;;  %6724 = vmatprep.mubr.msk.f32.mxu0 %vm284_vm0, %v4287_v37  ;;  %v4290_v54 = vld [vmem:[%s7175_s22 + $0x6a] sm:$0xff]  ;;  %v4291_v34 = vld [vmem:[%s7175_s22 + $0x72] sm:$0xff] }
 0x177   : > { %v4295_v51 = vld [vmem:[%s7175_s22 + $0x92] sm:$0xff] }
 0x178   : > { %6321 = vmatmul.mubr.msk.f32.gmra.mrb[130].mxu1 %vm284_vm0, %v1702_v45 }
 0x179   : > { %6725 = vmatmul.mubr.msk.f32.gmra.mrb[130].mxu0 %vm284_vm0, %v4288_v17  ;;  %6323 = vmatprep.mubr.msk.f32.mxu1 %vm284_vm0, %v1703_v39  ;;  %v1706_v17 = vld [vmem:[%s7175_s22 + $0x120] sm:$0xff] }
 0x17a   : > { %6727 = vmatprep.mubr.msk.f32.mxu0 %vm284_vm0, %v4289_v21  ;;  %v4292_v39 = vld [vmem:[%s7175_s22 + $0x7a] sm:$0xff] }
 0x17b   : > { %v6134_v27 = vpop.f32.mrb[60].mxu1 }
 0x17c   : > { %v8509_v37 = vadd.f32 %v6134_v27, %v8164_v42  ;;  %v1022_v10 = vpop.f32.mrb[61].mxu1  ;;  %6324 = vmatmul.mubr.msk.f32.gmra.mrb[30].mxu1 %vm284_vm0, %v1704_v52  ;;  %v8512_v45 = vpop.f32.mrb[60].mxu0  ;;  %v1707_v42 = vld [vmem:[%s7175_s22 + $0x128] sm:$0xff] }
 0x17d   : > { %9115 = vst [vmem:[#allocation6_spill] sm:$0xff] %v8512_v45  ;;  %6728 = vmatmul.mubr.msk.f32.gmra.mrb[6].mxu0 %vm284_vm0, %v4290_v54  ;;  %6326 = vmatprep.mubr.msk.f32.mxu1 %vm284_vm0, %v1705_v12  ;;  %v3190_v21 = vpop.f32.mrb[61].mxu0  ;;  %v4293_v10 = vld [vmem:[%s7175_s22 + $0x82] sm:$0xff]  ;;  %v1708_v12 = vld [vmem:[%s7175_s22 + $0x130] sm:$0xff] }
 0x17e   : > { %6730 = vmatprep.mubr.msk.f32.mxu0 %vm284_vm0, %v4291_v34  ;;  %v4294_v21 = vld [vmem:[%s7175_s22 + $0x8a] sm:$0xff] }
 0x17f   : > { %v6137_v27 = vpop.f32.mrb[62].mxu1 }
 0x180   : > { %v1031_v52 = vpop.f32.mrb[63].mxu1  ;;  %6327 = vmatmul.mubr.msk.f32.gmra.mrb[132].mxu1 %vm284_vm0, %v1706_v17  ;;  %v6525_v45 = vpop.f32.mrb[62].mxu0  ;;  %v1709_v27 = vld [vmem:[%s7175_s22 + $0x138] sm:$0xff]  ;;  %v1711_v17 = vld [vmem:[%s7175_s22 + $0x148] sm:$0xff] }
 0x181   : > { %v8523_v54 = vadd.f32 %v1031_v52, %v8177_v18  ;;  %6731 = vmatmul.mubr.msk.f32.gmra.mrb[132].mxu0 %vm284_vm0, %v4292_v39  ;;  %6329 = vmatprep.mubr.msk.f32.mxu1 %vm284_vm0, %v1707_v42  ;;  %v8528_v34 = vpop.f32.mrb[63].mxu0  ;;  %v1710_v18 = vld [vmem:[%s7175_s22 + $0x140] sm:$0xff] }
 0x182   : > { %9116 = vst [vmem:[#allocation7_spill] sm:$0xff] %v8528_v34  ;;  %6733 = vmatprep.mubr.msk.f32.mxu0 %vm284_vm0, %v4293_v10  ;;  %v4296_v45 = vld [vmem:[%s7175_s22 + $0x9a] sm:$0xff]  ;;  %v4297_v42 = vld [vmem:[%s7175_s22 + $0xa2] sm:$0xff] }
 0x184   : > { %6330 = vmatmul.mubr.msk.f32.gmra.mrb[134].mxu1 %vm284_vm0, %v1708_v12 }
 0x185   : > { %6734 = vmatmul.mubr.msk.f32.gmra.mrb[134].mxu0 %vm284_vm0, %v4294_v21  ;;  %6332 = vmatprep.mubr.msk.f32.mxu1 %vm284_vm0, %v1709_v27  ;;  %v1712_v21 = vld [vmem:[%s7175_s22 + $0x150] sm:$0xff] }
 0x186   : > { %6736 = vmatprep.mubr.msk.f32.mxu0 %vm284_vm0, %v4295_v51  ;;  %v4298_v27 = vld [vmem:[%s7175_s22 + $0xaa] sm:$0xff] }
 0x187   : > { %v6143_v39 = vpop.f32.mrb[64].mxu1 }
 0x188   : > { %v8543_v10 = vadd.f32 %v6143_v39, %v8196_v60  ;;  %v1050_v52 = vpop.f32.mrb[65].mxu1  ;;  %6333 = vmatmul.mubr.msk.f32.gmra.mrb[36].mxu1 %vm284_vm0, %v1710_v18  ;;  %v8546_v12 = vpop.f32.mrb[64].mxu0  ;;  %v1713_v60 = vld [vmem:[%s7175_s22 + $0x158] sm:$0xff] }
 0x189   : > { %6737 = vmatmul.mubr.msk.f32.gmra.mrb[12].mxu0 %vm284_vm0, %v4296_v45  ;;  %6335 = vmatprep.mubr.msk.f32.mxu1 %vm284_vm0, %v1711_v17  ;;  %v3516_v51 = vpop.f32.mrb[65].mxu0  ;;  %v4299_v52 = vld [vmem:[%s7175_s22 + $0xb2] sm:$0xff]  ;;  %v1714_v17 = vld [vmem:[%s7175_s22 + $0x160] sm:$0xff] }
 0x18a   : > { %6739 = vmatprep.mubr.msk.f32.mxu0 %vm284_vm0, %v4297_v42  ;;  %v4300_v51 = vld [vmem:[%s7175_s22 + $0xba] sm:$0xff] }
 0x18b   : > { %v6146_v39 = vpop.f32.mrb[66].mxu1 }
 0x18c   : > { %v1059_v18 = vpop.f32.mrb[67].mxu1  ;;  %6336 = vmatmul.mubr.msk.f32.gmra.mrb[136].mxu1 %vm284_vm0, %v1712_v21  ;;  %v6550_v34 = vpop.f32.mrb[66].mxu0  ;;  %v1715_v39 = vld [vmem:[%s7175_s22 + $0x168] sm:$0xff]  ;;  %v1717_v21 = vld [vmem:[%s7175_s22 + $0x178] sm:$0xff] }
 0x18d   : > { %v8557_v45 = vadd.f32 %v1059_v18, %v8209_v2  ;;  %6740 = vmatmul.mubr.msk.f32.gmra.mrb[136].mxu0 %vm284_vm0, %v4298_v27  ;;  %6338 = vmatprep.mubr.msk.f32.mxu1 %vm284_vm0, %v1713_v60  ;;  %v8562_v42 = vpop.f32.mrb[67].mxu0  ;;  %v1716_v2 = vld [vmem:[%s7175_s22 + $0x170] sm:$0xff] }
 0x18e   : > { %6742 = vmatprep.mubr.msk.f32.mxu0 %vm284_vm0, %v4299_v52  ;;  %v4302_v34 = vld [vmem:[%s7175_s22 + $0xca] sm:$0xff]  ;;  %v4303_v60 = vld [vmem:[%s7175_s22 + $0xd2] sm:$0xff] }
 0x190   : > { %6339 = vmatmul.mubr.msk.f32.gmra.mrb[138].mxu1 %vm284_vm0, %v1714_v17 }
 0x191   : > { %6743 = vmatmul.mubr.msk.f32.gmra.mrb[138].mxu0 %vm284_vm0, %v4300_v51  ;;  %6341 = vmatprep.mubr.msk.f32.mxu1 %vm284_vm0, %v1715_v39 }
 0x192   : > { %6745 = vmatprep.mubr.msk.f32.mxu0 %vm284_vm0, %v4301_v22  ;;  %v4304_v22 = vld [vmem:[%s7175_s22 + $0xda] sm:$0xff] }
 0x193   : > { %v6152_v27 = vpop.f32.mrb[68].mxu1 }
 0x194   : > { %v8577_v52 = vadd.f32 %v6152_v27, %v8228_v58  ;;  %v1078_v18 = vpop.f32.mrb[69].mxu1  ;;  %6342 = vmatmul.mubr.msk.f32.gmra.mrb[42].mxu1 %vm284_vm0, %v1716_v2  ;;  %v8580_v17 = vpop.f32.mrb[68].mxu0 }
 0x195   : > { %6746 = vmatmul.mubr.msk.f32.gmra.mrb[18].mxu0 %vm284_vm0, %v4302_v34  ;;  %6344 = vmatprep.mubr.msk.f32.mxu1 %vm284_vm0, %v1717_v21  ;;  %v3544_v51 = vpop.f32.mrb[69].mxu0  ;;  %v4306_v21 = vld [vmem:[%s7175_s22 + $0xea] sm:$0xff] }
 0x196   : > { %6748 = vmatprep.mubr.msk.f32.mxu0 %vm284_vm0, %v4303_v60  ;;  %v4307_v60 = vld [vmem:[%s7175_s22 + $0xf2] sm:$0xff] }
 0x197   : > { %v6155_v39 = vpop.f32.mrb[70].mxu1 }
 0x198   : > { %v1087_v58 = vpop.f32.mrb[71].mxu1  ;;  %6345 = vmatmul.mubr.msk.f32.gmra.mrb[140].mxu1 %vm284_vm0, %v8064_v46  ;;  %v6559_v2 = vpop.f32.mrb[70].mxu0  ;;  %v4308_v46 = vld [vmem:[%s7175_s22 + $0xfa] sm:$0xff] }
 0x199   : > { %v8590_v27 = vadd.f32 %v1087_v58, %v8245_v19  ;;  %6749 = vmatmul.mubr.msk.f32.gmra.mrb[140].mxu0 %vm284_vm0, %v4304_v22  ;;  %6347 = vmatprep.mubr.msk.f32.mxu1 %vm284_vm0, %v8075_v49  ;;  %v8595_v34 = vpop.f32.mrb[71].mxu0  ;;  %v4309_v19 = vld [vmem:[%s7175_s22 + $0x102] sm:$0xff]  ;;  %v4312_v2 = vld [vmem:[%s7175_s22 + $0x11a] sm:$0xff] }
 0x19a   : > { %6751 = vmatprep.mubr.msk.f32.mxu0 %vm284_vm0, %v4305_v28 }
 0x19c   : > { %6348 = vmatmul.mubr.msk.f32.gmra.mrb[142].mxu1 %vm284_vm0, %v8080_v53 }
 0x19d   : > { %6752 = vmatmul.mubr.msk.f32.gmra.mrb[142].mxu0 %vm284_vm0, %v4306_v21  ;;  %6402 = vmatprep.mubr.msk.f32.mxu1 %vm284_vm0, %v8240_v35  ;;  %v4310_v35 = vld [vmem:[%s7175_s22 + $0x10a] sm:$0xff]  ;;  %v4313_v21 = vld [vmem:[%s7175_s22 + $0x122] sm:$0xff] }
 0x19e   : > { %6754 = vmatprep.mubr.msk.f32.mxu0 %vm284_vm0, %v4307_v60 }
 0x19f   : > { %v6161_v49 = vpop.f32.mrb[72].mxu1 }
 0x1a0   : > { %v8609_v18 = vadd.f32 %v6161_v49, %v8274_v40  ;;  %v1106_v28 = vpop.f32.mrb[73].mxu1  ;;  %6403 = vmatmul.mubr.msk.f32.vlgmr.msra.gmra.mrb[24].mxu1 %vm284_vm0, %v8243_v13  ;;  %v8613_v51 = vpop.f32.mrb[72].mxu0  ;;  %v4311_v40 = vld [vmem:[%s7175_s22 + $0x112] sm:$0xff] }
 0x1a1   : > { %6755 = vmatmul.mubr.msk.f32.gmra.mrb[40].mxu0 %vm284_vm0, %v4308_v46  ;;  %6405 = vmatprep.mubr.msk.f32.mxu1 %vm284_vm0, %v8258_v33  ;;  %v3572_v53 = vpop.f32.mrb[73].mxu0 }
 0x1a2   : > { %6757 = vmatprep.mubr.msk.f32.mxu0 %vm284_vm0, %v4309_v19 }
 0x1a3   : > { %v6164_v22 = vpop.f32.mrb[74].mxu1 }
 0x1a4   : > { %v1115_v39 = vpop.f32.mrb[75].mxu1  ;;  %6406 = vmatmul.mubr.msk.f32.gmra.mrb[144].mxu1 %vm284_vm0, %v8261_v36  ;;  %v6568_v13 = vpop.f32.mrb[74].mxu0  ;;  %v4314_v36 = vld [vmem:[%s7175_s22 + $0x12a] sm:$0xff]  ;;  %v4319_v22 = vld [vmem:[%s7175_s22 + $0x152] sm:$0xff] }
 0x1a5   : > { %v8624_v58 = vadd.f32 %v1115_v39, %v8297_v43  ;;  %6758 = vmatmul.mubr.msk.f32.gmra.mrb[144].mxu0 %vm284_vm0, %v4310_v35  ;;  %6408 = vmatprep.mubr.msk.f32.mxu1 %vm284_vm0, %v8272_v47  ;;  %v8629_v33 = vpop.f32.mrb[75].mxu0  ;;  %v4315_v43 = vld [vmem:[%s7175_s22 + $0x132] sm:$0xff]  ;;  %v4318_v35 = vld [vmem:[%s7175_s22 + $0x14a] sm:$0xff] }
 0x1a6   : > { %6760 = vmatprep.mubr.msk.f32.mxu0 %vm284_vm0, %v4311_v40 }
 0x1a8   : > { %6409 = vmatmul.mubr.msk.f32.gmra.mrb[146].mxu1 %vm284_vm0, %v8277_v20 }
 0x1a9   : > { %6761 = vmatmul.mubr.msk.f32.gmra.mrb[146].mxu0 %vm284_vm0, %v4312_v2  ;;  %6411 = vmatprep.mubr.msk.f32.mxu1 %vm284_vm0, %v8291_v0  ;;  %v4316_v0 = vld [vmem:[%s7175_s22 + $0x13a] sm:$0xff] }
 0x1aa   : > { %6763 = vmatprep.mubr.msk.f32.mxu0 %vm284_vm0, %v4313_v21 }
 0x1ab   : > { %v6170_v47 = vpop.f32.mrb[76].mxu1 }
 0x1ac   : > { %v8643_v60 = vadd.f32 %v6170_v47, %v8329_v48  ;;  %v1134_v46 = vpop.f32.mrb[77].mxu1  ;;  %6412 = vmatmul.mubr.msk.f32.gmra.mrb[30].mxu1 %vm284_vm0, %v8294_v59  ;;  %v8647_v49 = vpop.f32.mrb[76].mxu0  ;;  %v4317_v48 = vld [vmem:[%s7175_s22 + $0x142] sm:$0xff]  ;;  %v4324_v47 = vld [vmem:[%s7175_s22 + $0x17a] sm:$0xff] }
 0x1ad   : > { %6764 = vmatmul.mubr.msk.f32.gmra.mrb[46].mxu0 %vm284_vm0, %v4314_v36  ;;  %6414 = vmatprep.mubr.msk.f32.mxu1 %vm284_vm0, %v8310_v26  ;;  %v3600_v20 = vpop.f32.mrb[77].mxu0 }
 0x1ae   : > { %6766 = vmatprep.mubr.msk.f32.mxu0 %vm284_vm0, %v4315_v43  ;;  %v4325_v43 = vld [vmem:[%s7175_s22 + $0x182] sm:$0xff] }
 0x1af   : > { %v6173_v19 = vpop.f32.mrb[78].mxu1 }
 0x1b0   : > { %v1143_v28 = vpop.f32.mrb[79].mxu1  ;;  %6415 = vmatmul.mubr.msk.f32.gmra.mrb[148].mxu1 %vm284_vm0, %v8314_v6  ;;  %v6577_v59 = vpop.f32.mrb[78].mxu0  ;;  %v4320_v6 = vld [vmem:[%s7175_s22 + $0x15a] sm:$0xff] }
 0x1b1   : > { %v8658_v53 = vadd.f32 %v1143_v28, %v8352_v50  ;;  %6767 = vmatmul.mubr.msk.f32.gmra.mrb[148].mxu0 %vm284_vm0, %v4316_v0  ;;  %6417 = vmatprep.mubr.msk.f32.mxu1 %vm284_vm0, %v8326_v11  ;;  %v8663_v26 = vpop.f32.mrb[79].mxu0  ;;  %v4321_v50 = vld [vmem:[%s7175_s22 + $0x162] sm:$0xff] }
 0x1b2   : > { %6769 = vmatprep.mubr.msk.f32.mxu0 %vm284_vm0, %v4317_v48  ;;  %v4329_v48 = vld [vmem:[%s7175_s22 + $0x1a2] sm:$0xff] }
 0x1b4   : > { %6418 = vmatmul.mubr.msk.f32.gmra.mrb[150].mxu1 %vm284_vm0, %v8332_v14 }
 0x1b5   : > { %6770 = vmatmul.mubr.msk.f32.gmra.mrb[150].mxu0 %vm284_vm0, %v4318_v35  ;;  %6420 = vmatprep.mubr.msk.f32.mxu1 %vm284_vm0, %v8346_v25  ;;  %v4322_v25 = vld [vmem:[%s7175_s22 + $0x16a] sm:$0xff] }
 0x1b6   : > { %6772 = vmatprep.mubr.msk.f32.mxu0 %vm284_vm0, %v4319_v22 }
 0x1b7   : > { %v6195_v11 = vpop.f32.mrb[80].mxu1 }
 0x1b8   : > { %v8677_v40 = vadd.f32 %v6195_v11, %v8386_v16  ;;  %v1428_v39 = vpop.f32.mrb[81].mxu1  ;;  %6421 = vmatmul.mubr.msk.f32.gmra.mrb[36].mxu1 %vm284_vm0, %v8350_v24  ;;  %v8681_v13 = vpop.f32.mrb[80].mxu0  ;;  %v4323_v16 = vld [vmem:[%s7175_s22 + $0x172] sm:$0xff] }
 0x1b9   : > { %6773 = vmatmul.mubr.msk.f32.gmra.mrb[52].mxu0 %vm284_vm0, %v4320_v6  ;;  %6423 = vmatprep.mubr.msk.f32.mxu1 %vm284_vm0, %v8365_v63  ;;  %v3628_v14 = vpop.f32.mrb[81].mxu0 }
 0x1ba   : > { %6775 = vmatprep.mubr.msk.f32.mxu0 %vm284_vm0, %v4321_v50 }
 0x1bb   : > { %v6198_v2 = vpop.f32.mrb[82].mxu1 }
 0x1bc   : > { %v1437_v21 = vpop.f32.mrb[83].mxu1  ;;  %6424 = vmatmul.mubr.msk.f32.gmra.mrb[152].mxu1 %vm284_vm0, %v8368_v7  ;;  %v6586_v24 = vpop.f32.mrb[82].mxu0  ;;  %v4326_v7 = vld [vmem:[%s7175_s22 + $0x18a] sm:$0xff] }
 0x1bd   : > { %v8692_v36 = vadd.f32 %v1437_v21, %v8406_v56  ;;  %6776 = vmatmul.mubr.msk.f32.gmra.mrb[152].mxu0 %vm284_vm0, %v4322_v25  ;;  %6426 = vmatprep.mubr.msk.f32.mxu1 %vm284_vm0, %v8379_v5  ;;  %v8697_v63 = vpop.f32.mrb[83].mxu0  ;;  %v4327_v56 = vld [vmem:[%s7175_s22 + $0x192] sm:$0xff] }
 0x1be   : > { %6778 = vmatprep.mubr.msk.f32.mxu0 %vm284_vm0, %v4323_v16 }
 0x1c0   : > { %6427 = vmatmul.mubr.msk.f32.gmra.mrb[154].mxu1 %vm284_vm0, %v8383_v41 }
 0x1c1   : > { %6779 = vmatmul.mubr.msk.f32.gmra.mrb[154].mxu0 %vm284_vm0, %v4324_v47  ;;  %6429 = vmatprep.mubr.msk.f32.mxu1 %vm284_vm0, %v8398_v23  ;;  %v4328_v23 = vld [vmem:[%s7175_s22 + $0x19a] sm:$0xff] }
 0x1c2   : > { %6781 = vmatprep.mubr.msk.f32.mxu0 %vm284_vm0, %v4325_v43 }
 0x1c3   : > { %v6204_v5 = vpop.f32.mrb[84].mxu1 }
 0x1c4   : > { %v8711_v46 = vadd.f32 %v6204_v5, %v8439_v4  ;;  %v1456_v20 = vpop.f32.mrb[85].mxu1  ;;  %6430 = vmatmul.mubr.msk.f32.gmra.mrb[42].mxu1 %vm284_vm0, %v8401_v8  ;;  %v8715_v0 = vpop.f32.mrb[84].mxu0 }
 0x1c5   : > { %6782 = vmatmul.mubr.msk.f32.gmra.mrb[58].mxu0 %vm284_vm0, %v4326_v7  ;;  %6432 = vmatprep.mubr.msk.f32.mxu1 %vm284_vm0, %v8417_v32  ;;  %v3656_v41 = vpop.f32.mrb[85].mxu0  ;;  %v4330_v32 = vld [vmem:[%s7175_s22 + $0x1aa] sm:$0xff] }
 0x1c6   : > { %6784 = vmatprep.mubr.msk.f32.mxu0 %vm284_vm0, %v4327_v56 }
 0x1c7   : > { %v6207_v19 = vpop.f32.mrb[86].mxu1 }
 0x1c8   : > { %v1465_v4 = vpop.f32.mrb[87].mxu1  ;;  %6433 = vmatmul.mubr.msk.f32.gmra.mrb[156].mxu1 %vm284_vm0, %v8421_v9  ;;  %v6595_v28 = vpop.f32.mrb[86].mxu0 }
 0x1c9   : > { %v8726_v8 = vadd.f32 %v1465_v4, %v8455_v38  ;;  %6435 = vmatprep.mubr.msk.f32.mxu1 %vm284_vm0, %v8432_v15  ;;  %v8730_v59 = vpop.f32.mrb[87].mxu0  ;;  %6785 = vmatmul.mubr.msk.f32.gmra.mrb[156].mxu0 %vm284_vm0, %v4328_v23 }
 0x1ca   : > { %6787 = vmatprep.mubr.msk.f32.mxu0 %vm284_vm0, %v4329_v48 }
 0x1cc   : > { %6436 = vmatmul.mubr.msk.f32.gmra.mrb[158].mxu1 %vm284_vm0, %v8436_v31 }
 0x1cd   : > { %6788 = vmatmul.mubr.msk.f32.gmra.mrb[158].mxu0 %vm284_vm0, %v4330_v32 }
 0x1cf   : > { %v6213_v9 = vpop.f32.mrb[88].mxu1 }
 0x1d0   : > { %v8739_v35 = vadd.f32 %v6213_v9, %v8475_v61  ;;  %v1484_v38 = vpop.f32.mrb[89].mxu1  ;;  %v8741_v22 = vpop.f32.mrb[88].mxu0 }
 0x1d1   : > { %v3684_v15 = vpop.f32.mrb[89].mxu0 }
 0x1d3   : > { %v6216_v6 = vpop.f32.mrb[90].mxu1 }
 0x1d4   : > { %v1493_v11 = vpop.f32.mrb[91].mxu1  ;;  %v6604_v50 = vpop.f32.mrb[90].mxu0 }
 0x1d5   : > { %v8744_v39 = vadd.f32 %v1493_v11, %v8489_v29  ;;  %v8746_v14 = vpop.f32.mrb[91].mxu0 }
 0x1db   : > { %v6222_v25 = vpop.f32.mrb[92].mxu1 }
 0x1dc   : > { %v8749_v31 = vadd.f32 %v6222_v25, %v8509_v37  ;;  %v1512_v2 = vpop.f32.mrb[93].mxu1  ;;  %v8751_v16 = vpop.f32.mrb[92].mxu0 }
 0x1dd   : > { %v3712_v61 = vpop.f32.mrb[93].mxu0 }
 0x1df   : > { %v6225_v21 = vpop.f32.mrb[94].mxu1 }
 0x1e0   : > { %v1521_v24 = vpop.f32.mrb[95].mxu1  ;;  %v6613_v47 = vpop.f32.mrb[94].mxu0 }
 0x1e1   : > { %v8754_v43 = vadd.f32 %v1521_v24, %v8523_v54  ;;  %v8756_v7 = vpop.f32.mrb[95].mxu0 }
 0x1e7   : > { %v6231_v29 = vpop.f32.mrb[96].mxu1 }
 0x1e8   : > { %v8759_v5 = vadd.f32 %v6231_v29, %v8543_v10  ;;  %v1540_v56 = vpop.f32.mrb[97].mxu1  ;;  %v6635_v20 = vpop.f32.mrb[96].mxu0 }
 0x1e9   : > { %v4038_v37 = vpop.f32.mrb[97].mxu0 }
 0x1eb   : > { %v6234_v41 = vpop.f32.mrb[98].mxu1 }
 0x1ec   : > { %v1549_v23 = vpop.f32.mrb[99].mxu1  ;;  %v6638_v19 = vpop.f32.mrb[98].mxu0 }
 0x1ed   : > { %v8762_v48 = vadd.f32 %v1549_v23, %v8557_v45  ;;  %v4047_v4 = vpop.f32.mrb[99].mxu0 }
 0x1f3   : > { %v6240_v28 = vpop.f32.mrb[100].mxu1 }
 0x1f4   : > { %v8765_v54 = vadd.f32 %v6240_v28, %v8577_v52  ;;  %v1568_v32 = vpop.f32.mrb[101].mxu1  ;;  %v8767_v9 = vpop.f32.mrb[100].mxu0 }
 0x1f5   : > { %v4066_v38 = vpop.f32.mrb[101].mxu0 }
 0x1f7   : > { %v6243_v10 = vpop.f32.mrb[102].mxu1 }
 0x1f8   : > { %v1577_v15 = vpop.f32.mrb[103].mxu1  ;;  %v6647_v6 = vpop.f32.mrb[102].mxu0 }
 0x1f9   : > { %v8770_v11 = vadd.f32 %v1577_v15, %v8590_v27  ;;  %v8772_v50 = vpop.f32.mrb[103].mxu0 }
 0x1ff   : > { %v6249_v25 = vpop.f32.mrb[104].mxu1 }
 0x200   : > { %v8775_v45 = vadd.f32 %v6249_v25, %v8609_v18  ;;  %v1596_v2 = vpop.f32.mrb[105].mxu1  ;;  %v8777_v61 = vpop.f32.mrb[104].mxu0 }
 0x201   : > { %v4094_v52 = vpop.f32.mrb[105].mxu0 }
 0x203   : > { %v6252_v21 = vpop.f32.mrb[106].mxu1 }
 0x204   : > { %v1605_v24 = vpop.f32.mrb[107].mxu1  ;;  %v6656_v47 = vpop.f32.mrb[106].mxu0 }
 0x205   : > { %v8780_v29 = vadd.f32 %v1605_v24, %v8624_v58  ;;  %v8782_v56 = vpop.f32.mrb[107].mxu0 }
 0x20b   : > { %v6258_v27 = vpop.f32.mrb[108].mxu1 }
 0x20c   : > { %v8785_v37 = vadd.f32 %v6258_v27, %v8643_v60  ;;  %v1624_v41 = vpop.f32.mrb[109].mxu1  ;;  %v8787_v23 = vpop.f32.mrb[108].mxu0 }
 0x20d   : > { %v4122_v18 = vpop.f32.mrb[109].mxu0 }
 0x20f   : > { %v6261_v19 = vpop.f32.mrb[110].mxu1 }
 0x210   : > { %v1633_v28 = vpop.f32.mrb[111].mxu1  ;;  %v6665_v32 = vpop.f32.mrb[110].mxu0 }
 0x211   : > { %v8790_v38 = vadd.f32 %v1633_v28, %v8658_v53  ;;  %v8792_v10 = vpop.f32.mrb[111].mxu0 }
 0x213   : > { %v8794_v58 = vpop.f32.mrb[0].mxu1 }
 0x214   : > { %v8796_v15 = vpop.f32.mrb[1].mxu1 }
 0x217   : > { %v6283_v6 = vpop.f32.mrb[112].mxu1 }
 0x218   : > { %v2165_v60 = vadd.f32 %v6283_v6, %v8677_v40  ;;  %v1950_v25 = vpop.f32.mrb[113].mxu1  ;;  %v8799_v2 = vpop.f32.mrb[112].mxu0 }
 0x219   : > { %v4150_v52 = vpop.f32.mrb[113].mxu0 }
 0x21a   : > { %v2687_v21 = vadd.f32 %v8043_v30, %v2165_v60 }
 0x21b   : > { %v6286_v24 = vpop.f32.mrb[114].mxu1 }
 0x21c   : > { %v3209_v47 = vadd.f32 %v8201_v55, %v2687_v21  ;;  %v1959_v53 = vpop.f32.mrb[115].mxu1  ;;  %v6674_v27 = vpop.f32.mrb[114].mxu0 }
 0x21d   : > { %v2166_v41 = vadd.f32 %v1959_v53, %v8692_v36  ;;  %v8804_v18 = vpop.f32.mrb[115].mxu0 }
 0x21e   : > { %v3731_v19 = vadd.f32 %v8546_v12, %v3209_v47 }
 0x21f   : > { %v2688_v28 = vadd.f32 %v8059_v44, %v2166_v41  ;;  %v8808_v40 = vpop.f32.mrb[6].mxu1 }
 0x220   : > { %v8810_v32 = vpop.f32.mrb[7].mxu1  ;;  %v8812_v6 = vadd.f32 %v6635_v20, %v3731_v19 }
 0x221   : > { %v3210_v30 = vadd.f32 %v8216_v3, %v2688_v28 }
 0x223   : > { %v6292_v60 = vpop.f32.mrb[116].mxu1  ;;  %v3732_v55 = vadd.f32 %v8562_v42, %v3210_v30 }
 0x224   : > { %v2169_v25 = vadd.f32 %v6292_v60, %v8711_v46  ;;  %v1978_v36 = vpop.f32.mrb[117].mxu1  ;;  %v8817_v52 = vpop.f32.mrb[116].mxu0 }
 0x225   : > { %v4178_v21 = vpop.f32.mrb[117].mxu0  ;;  %v8819_v12 = vadd.f32 %v4047_v4, %v3732_v55 }
 0x226   : > { %v2691_v44 = vadd.f32 %v8084_v57, %v2169_v25  ;;  %v9117_v57 = vld [vmem:[#allocation14_spill] sm:$0xff] }
 0x227   : > { %v6295_v24 = vpop.f32.mrb[118].mxu1  ;;  %v9118_v25 = vld [vmem:[#allocation34_spill] sm:$0xff] }
 0x228   : > { %v3213_v47 = vadd.f32 %v8233_v62, %v2691_v44  ;;  %v1987_v20 = vpop.f32.mrb[119].mxu1  ;;  %v6683_v53 = vpop.f32.mrb[118].mxu0  ;;  %v9119_v44 = vld [vmem:[#allocation16_spill] sm:$0xff] }
 0x229   : > { %v2170_v3 = vadd.f32 %v1987_v20, %v8726_v8  ;;  %v8824_v27 = vpop.f32.mrb[119].mxu0 }
 0x22a   : > { %v3735_v42 = vadd.f32 %v8580_v17, %v3213_v47 }
 0x22b   : > { %v2692_v46 = vadd.f32 %v8101_v1, %v2170_v3  ;;  %v8828_v41 = vpop.f32.mrb[12].mxu1 }
 0x22c   : > { %v8830_v19 = vpop.f32.mrb[13].mxu1  ;;  %v8833_v4 = vadd.f32 %v8767_v9, %v3735_v42 }
 0x22d   : > { %v3214_v28 = vadd.f32 %v9117_v57, %v2692_v46  ;;  %v9121_v57 = vld [vmem:[#allocation18_spill] sm:$0xff] }
 0x22f   : > { %v6301_v62 = vpop.f32.mrb[120].mxu1  ;;  %v3736_v30 = vadd.f32 %v8595_v34, %v3214_v28 }
 0x230   : > { %v2173_v8 = vadd.f32 %v6301_v62, %v8739_v35  ;;  %v2006_v60 = vpop.f32.mrb[121].mxu1  ;;  %v8838_v55 = vpop.f32.mrb[120].mxu0  ;;  %v9120_v35 = vld [vmem:[#allocation35_spill] sm:$0xff] }
 0x231   : > { %v4206_v17 = vpop.f32.mrb[121].mxu0  ;;  %v8841_v1 = vadd.f32 %v8772_v50, %v3736_v30 }
 0x232   : > { %v2695_v36 = vadd.f32 %v9118_v25, %v2173_v8  ;;  %v9122_v25 = vld [vmem:[#allocation36_spill] sm:$0xff] }
 0x233   : > { %v6304_v21 = vpop.f32.mrb[122].mxu1 }
 0x234   : > { %v3217_v9 = vadd.f32 %v9119_v44, %v2695_v36  ;;  %v2015_v24 = vpop.f32.mrb[123].mxu1  ;;  %v6692_v47 = vpop.f32.mrb[122].mxu0  ;;  %v9123_v44 = vld [vmem:[#allocation20_spill] sm:$0xff] }
 0x235   : > { %v2174_v20 = vadd.f32 %v2015_v24, %v8744_v39  ;;  %v8846_v53 = vpop.f32.mrb[123].mxu0 }
 0x236   : > { %v3739_v34 = vadd.f32 %v8613_v51, %v3217_v9 }
 0x237   : > { %v2696_v3 = vadd.f32 %v9120_v35, %v2174_v20  ;;  %v8850_v42 = vpop.f32.mrb[18].mxu1 }
 0x238   : > { %v8852_v46 = vpop.f32.mrb[19].mxu1  ;;  %v8855_v50 = vadd.f32 %v8777_v61, %v3739_v34 }
 0x239   : > { %v3218_v28 = vadd.f32 %v9121_v57, %v2696_v3 }
 0x23b   : > { %v6310_v62 = vpop.f32.mrb[124].mxu1  ;;  %v3740_v30 = vadd.f32 %v8629_v33, %v3218_v28 }
 0x23c   : > { %v2177_v39 = vadd.f32 %v6310_v62, %v8749_v31  ;;  %v2034_v8 = vpop.f32.mrb[125].mxu1  ;;  %v8860_v60 = vpop.f32.mrb[124].mxu0  ;;  %v9124_v31 = vld [vmem:[#allocation37_spill] sm:$0xff] }
 0x23d   : > { %v4234_v51 = vpop.f32.mrb[125].mxu0  ;;  %v8863_v17 = vadd.f32 %v8782_v56, %v3740_v30  ;;  %v9125_v56 = vld [vmem:[#allocation22_spill] sm:$0xff]  ;;  %v8880_v30 = vld [vmem:[%s9002_s2] ss:$0 sm:$0xff] }
 0x23e   : > { %v2699_v36 = vadd.f32 %v9122_v25, %v2177_v39 }
 0x23f   : > { %v6313_v21 = vpop.f32.mrb[126].mxu1 }
 0x240   : > { %v3221_v61 = vadd.f32 %v9123_v44, %v2699_v36  ;;  %v2043_v9 = vpop.f32.mrb[127].mxu1  ;;  %v6701_v24 = vpop.f32.mrb[126].mxu0 }
 0x241   : > { %v2178_v47 = vadd.f32 %v2043_v9, %v8754_v43  ;;  %v8868_v20 = vpop.f32.mrb[127].mxu0 }
 0x242   : > { %v3743_v33 = vadd.f32 %v8647_v49, %v3221_v61 }
 0x243   : > { %v2700_v34 = vadd.f32 %v9124_v31, %v2178_v47 }
 0x244   : > { %v6720_v35 = vpop.f32.mrb[0].mxu0  ;;  %v8873_v3 = vadd.f32 %v8787_v23, %v3743_v33 }
 0x245   : > { %v3222_v57 = vadd.f32 %v9125_v56, %v2700_v34  ;;  %v6942_v28 = vadd.f32 %v6720_v35, %v8794_v58  ;;  %v4550_v62 = vpop.f32.mrb[1].mxu0 }
 0x246   : > { %v6943_v43 = vadd.f32 %v4550_v62, %v8796_v15 }
 0x247   : > { %v6319_v39 = vpop.f32.mrb[128].mxu1  ;;  %v3744_v49 = vadd.f32 %v8663_v26, %v3222_v57  ;;  %v4813_v33 = vadd.f32 %v6942_v28, %v8880_v30 }
 0x248   : > { %v8885_v8 = vadd.f32 %v6319_v39, %v8759_v5  ;;  %v6723_v23 = vpop.f32.mrb[128].mxu0  ;;  %v2062_v51 = vpop.f32.mrb[129].mxu1  ;;  %v4812_v25 = vadd.f32 %v6943_v43, %v8880_v30 }
 0x249   : > { %v4775_v58 = vadd.f32 %v6723_v23, %v8812_v6  ;;  %v4560_v36 = vpop.f32.mrb[129].mxu0  ;;  %v8890_v21 = vadd.f32 %v8792_v10, %v3744_v49  ;;  %v4845_v57 = vmax.f32 %v4813_v33, 0.0 }
 0x24a   : > { %v4844_v24 = vmax.f32 %v4812_v25, 0.0 }
 0x24b   : > { %v4814_v44 = vadd.f32 %v8880_v30, %v4775_v58  ;;  %v6322_v61 = vpop.f32.mrb[130].mxu1 }
 0x24c   : > { %v6726_v15 = vpop.f32.mrb[130].mxu0  ;;  %v2071_v9 = vpop.f32.mrb[131].mxu1 }
 0x24d   : > { %v4846_v26 = vmax.f32 %v4814_v44, 0.0  ;;  %v8894_v5 = vadd.f32 %v2071_v9, %v8762_v48  ;;  %v4569_v47 = vpop.f32.mrb[131].mxu0 }
 0x24e   : > { %v4776_v31 = vadd.f32 %v4569_v47, %v8819_v12 }
 0x24f   : > { %v4876_v6 = vmax.f32 %v4844_v24, %v4846_v26 }
 0x250   : > { %v4815_v34 = vadd.f32 %v8880_v30, %v4776_v31  ;;  %v6729_v10 = vpop.f32.mrb[6].mxu0 }
 0x251   : > { %v6944_v35 = vadd.f32 %v6729_v10, %v8808_v40  ;;  %v4578_v56 = vpop.f32.mrb[7].mxu0 }
 0x252   : > { %v4847_v62 = vmax.f32 %v4815_v34, 0.0  ;;  %v6945_v43 = vadd.f32 %v4578_v56, %v8810_v32 }
 0x253   : > { %v6328_v39 = vpop.f32.mrb[132].mxu1 }
 0x254   : > { %v4877_v49 = vmax.f32 %v4845_v57, %v4847_v62  ;;  %v8902_v48 = vadd.f32 %v6328_v39, %v8765_v54  ;;  %v6732_v23 = vpop.f32.mrb[132].mxu0  ;;  %v2090_v28 = vpop.f32.mrb[133].mxu1  ;;  %v4816_v12 = vadd.f32 %v6945_v43, %v8880_v30  ;;  %v4817_v54 = vadd.f32 %v6944_v35, %v8880_v30 }
 0x255   : > { %v4779_v51 = vadd.f32 %v6732_v23, %v8833_v4  ;;  %v4588_v25 = vpop.f32.mrb[133].mxu0 }
 0x256   : > { %v4848_v61 = vmax.f32 %v4816_v12, 0.0  ;;  %v4849_v10 = vmax.f32 %v4817_v54, 0.0 }
 0x257   : > { %v4818_v58 = vadd.f32 %v8880_v30, %v4779_v51  ;;  %v6331_v40 = vpop.f32.mrb[134].mxu1 }
 0x258   : > { %v6735_v36 = vpop.f32.mrb[134].mxu0  ;;  %v2099_v44 = vpop.f32.mrb[135].mxu1 }
 0x259   : > { %v4850_v15 = vmax.f32 %v4818_v58, 0.0  ;;  %v8908_v32 = vadd.f32 %v2099_v44, %v8770_v11  ;;  %v4597_v9 = vpop.f32.mrb[135].mxu0 }
 0x25a   : > { %v4780_v24 = vadd.f32 %v4597_v9, %v8841_v1 }
 0x25b   : > { %v4884_v26 = vmax.f32 %v4848_v61, %v4850_v15 }
 0x25c   : > { %v4819_v47 = vadd.f32 %v8880_v30, %v4780_v24  ;;  %v6738_v4 = vpop.f32.mrb[12].mxu0 }
 0x25d   : > { %v4892_v33 = vmax.f32 %v4876_v6, %v4884_v26  ;;  %v6946_v31 = vadd.f32 %v6738_v4, %v8828_v41  ;;  %v4606_v34 = vpop.f32.mrb[13].mxu0 }
 0x25e   : > { %v4851_v56 = vmax.f32 %v4819_v47, 0.0  ;;  %v6947_v57 = vadd.f32 %v4606_v34, %v8830_v19 }
 0x25f   : > { %4900 = vst [vmem:[#allocation2] sm:$0xff] %v4892_v33  ;;  %v6337_v11 = vpop.f32.mrb[136].mxu1  ;;  %v4821_v36 = vadd.f32 %v6946_v31, %v8880_v30 }
 0x260   : > { %v4885_v62 = vmax.f32 %v4849_v10, %v4851_v56  ;;  %v8916_v43 = vadd.f32 %v6337_v11, %v8775_v45  ;;  %v6741_v35 = vpop.f32.mrb[136].mxu0  ;;  %v2118_v1 = vpop.f32.mrb[137].mxu1  ;;  %v4820_v39 = vadd.f32 %v6947_v57, %v8880_v30 }
 0x261   : > { %v4783_v23 = vadd.f32 %v6741_v35, %v8855_v50  ;;  %v4616_v6 = vpop.f32.mrb[137].mxu0  ;;  %v4853_v54 = vmax.f32 %v4821_v36, 0.0 }
 0x262   : > { %v4893_v28 = vmax.f32 %v4877_v49, %v4885_v62  ;;  %v4852_v25 = vmax.f32 %v4820_v39, 0.0 }
 0x263   : > { %v4822_v41 = vadd.f32 %v8880_v30, %v4783_v23  ;;  %v6340_v12 = vpop.f32.mrb[138].mxu1 }
 0x264   : > { %4901 = vst [vmem:[#allocation2 + $0x8] sm:$0xff] %v4893_v28  ;;  %v6744_v51 = vpop.f32.mrb[138].mxu0  ;;  %v2127_v19 = vpop.f32.mrb[139].mxu1 }
 0x265   : > { %v4854_v58 = vmax.f32 %v4822_v41, 0.0  ;;  %v8922_v40 = vadd.f32 %v2127_v19, %v8780_v29  ;;  %v4625_v45 = vpop.f32.mrb[139].mxu0 }
 0x266   : > { %v4784_v44 = vadd.f32 %v4625_v45, %v8863_v17 }
 0x267   : > { %v4878_v61 = vmax.f32 %v4852_v25, %v4854_v58 }
 0x268   : > { %v4823_v50 = vadd.f32 %v8880_v30, %v4784_v44  ;;  %v6747_v49 = vpop.f32.mrb[18].mxu0 }
 0x269   : > { %v6948_v15 = vadd.f32 %v6747_v49, %v8850_v42  ;;  %v4634_v9 = vpop.f32.mrb[19].mxu0 }
 0x26a   : > { %v4855_v24 = vmax.f32 %v4823_v50, 0.0  ;;  %v6949_v26 = vadd.f32 %v4634_v9, %v8852_v46  ;;  %v9126_v9 = vld [vmem:[#allocation24_spill] sm:$0xff] }
 0x26b   : > { %v6346_v47 = vpop.f32.mrb[140].mxu1 }
 0x26c   : > { %v4879_v4 = vmax.f32 %v4853_v54, %v4855_v24  ;;  %v8930_v29 = vadd.f32 %v6346_v47, %v8785_v37  ;;  %v6750_v33 = vpop.f32.mrb[140].mxu0  ;;  %v2146_v31 = vpop.f32.mrb[141].mxu1  ;;  %v4824_v17 = vadd.f32 %v6949_v26, %v8880_v30  ;;  %v4825_v37 = vadd.f32 %v6948_v15, %v8880_v30 }
 0x26d   : > { %v4787_v34 = vadd.f32 %v6750_v33, %v8873_v3  ;;  %v4644_v10 = vpop.f32.mrb[141].mxu0 }
 0x26e   : > { %v4856_v62 = vmax.f32 %v4824_v17, 0.0  ;;  %v4857_v25 = vmax.f32 %v4825_v37, 0.0 }
 0x26f   : > { %v4826_v56 = vadd.f32 %v8880_v30, %v4787_v34  ;;  %v6349_v42 = vpop.f32.mrb[142].mxu1  ;;  %v9127_v34 = vld [vmem:[#allocation26_spill] sm:$0xff] }
 0x270   : > { %v6753_v57 = vpop.f32.mrb[142].mxu0  ;;  %v2155_v11 = vpop.f32.mrb[143].mxu1 }
 0x271   : > { %v4858_v35 = vmax.f32 %v4826_v56, 0.0  ;;  %v8936_v46 = vadd.f32 %v2155_v11, %v8790_v38  ;;  %v4653_v1 = vpop.f32.mrb[143].mxu0 }
 0x272   : > { %v4788_v39 = vadd.f32 %v4653_v1, %v8890_v21 }
 0x273   : > { %v4886_v23 = vmax.f32 %v4856_v62, %v4858_v35  ;;  %v6404_v6 = vpop.f32.mrb[24].mxu1 }
 0x274   : > { %v4827_v3 = vadd.f32 %v8880_v30, %v4788_v39  ;;  %v6756_v28 = vpop.f32.mrb[40].mxu0  ;;  %v2574_v41 = vpop.f32.mrb[25].mxu1 }
 0x275   : > { %v4894_v12 = vmax.f32 %v4878_v61, %v4886_v23  ;;  %v6950_v51 = vadd.f32 %v6756_v28, %v6404_v6  ;;  %v4662_v19 = vpop.f32.mrb[41].mxu0 }
 0x276   : > { %v4859_v58 = vmax.f32 %v4827_v3, 0.0  ;;  %v6951_v45 = vadd.f32 %v4662_v19, %v2574_v41 }
 0x277   : > { %4902 = vst [vmem:[#allocation2 + $0x10] sm:$0xff] %v4894_v12  ;;  %v6407_v38 = vpop.f32.mrb[144].mxu1 }
 0x278   : > { %v4887_v36 = vmax.f32 %v4857_v25, %v4859_v58  ;;  %v2703_v44 = vadd.f32 %v6407_v38, %v8885_v8  ;;  %v2584_v50 = vpop.f32.mrb[145].mxu1  ;;  %v6759_v49 = vpop.f32.mrb[144].mxu0  ;;  %v4828_v56 = vadd.f32 %v6951_v45, %v8880_v30 }
 0x279   : > { %v4672_v21 = vpop.f32.mrb[145].mxu0  ;;  %v9128_v50 = vld [vmem:[#allocation27_spill] sm:$0xff] }
 0x27a   : > { %v4895_v15 = vmax.f32 %v4879_v4, %v4887_v36  ;;  %v3225_v54 = vadd.f32 %v9126_v9, %v2703_v44  ;;  %v4860_v3 = vmax.f32 %v4828_v56, 0.0 }
 0x27b   : > { %v6410_v24 = vpop.f32.mrb[146].mxu1 }
 0x27c   : > { %4903 = vst [vmem:[#allocation2 + $0x18] sm:$0xff] %v4895_v15  ;;  %v3747_v61 = vadd.f32 %v8681_v13, %v3225_v54  ;;  %v2593_v26 = vpop.f32.mrb[147].mxu1  ;;  %v6762_v47 = vpop.f32.mrb[146].mxu0 }
 0x27d   : > { %v2704_v33 = vadd.f32 %v2593_v26, %v8894_v5  ;;  %v4681_v31 = vpop.f32.mrb[147].mxu0 }
 0x27e   : > { %v4269_v17 = vadd.f32 %v8799_v2, %v3747_v61 }
 0x27f   : > { %v3226_v8 = vadd.f32 %v9127_v34, %v2704_v33  ;;  %v6413_v10 = vpop.f32.mrb[30].mxu1  ;;  %v9129_v33 = vld [vmem:[#allocation29_spill] sm:$0xff] }
 0x280   : > { %v4791_v4 = vadd.f32 %v6759_v49, %v4269_v17  ;;  %v6765_v42 = vpop.f32.mrb[46].mxu0  ;;  %v2602_v57 = vpop.f32.mrb[31].mxu1 }
 0x281   : > { %v3748_v11 = vadd.f32 %v8697_v63, %v3226_v8  ;;  %v6952_v62 = vadd.f32 %v6765_v42, %v6413_v10  ;;  %v4690_v35 = vpop.f32.mrb[47].mxu0  ;;  %v4829_v63 = vadd.f32 %v6950_v51, %v8880_v30 }
 0x282   : > { %v4830_v13 = vadd.f32 %v8880_v30, %v4791_v4  ;;  %v6953_v1 = vadd.f32 %v4690_v35, %v2602_v57 }
 0x283   : > { %v4908_v5 = vld [vmem:[#allocation2] ss:$4 sm:$0xff]  ;;  %v4912_v37 = vld [vmem:[#allocation2 + $0x1] ss:$4 sm:$0xff]  ;;  %v4918_v39 = vld [vmem:[#allocation2 + $0x2] ss:$4 sm:$0xff]  ;;  %v4270_v2 = vadd.f32 %v8804_v18, %v3748_v11 }
 0x284   : > { %v4915_v23 = vmax.f32 %v4908_v5, %v4912_v37  ;;  %v4922_v6 = vld [vmem:[#allocation2 + $0x3] ss:$4 sm:$0xff]  ;;  %v4862_v28 = vmax.f32 %v4830_v13, 0.0  ;;  %v6416_v41 = vpop.f32.mrb[148].mxu1  ;;  %v6768_v12 = vpop.f32.mrb[148].mxu0  ;;  %v4861_v9 = vmax.f32 %v4829_v63, 0.0  ;;  %v4832_v10 = vadd.f32 %v6953_v1, %v8880_v30 }
 0x285   : > { %v4925_v19 = vmax.f32 %v4918_v39, %v4922_v6  ;;  %v4792_v25 = vadd.f32 %v4681_v31, %v4270_v2  ;;  %v2707_v58 = vadd.f32 %v6416_v41, %v8902_v48  ;;  %v2612_v45 = vpop.f32.mrb[149].mxu1  ;;  %v4700_v38 = vpop.f32.mrb[149].mxu0  ;;  %v4833_v37 = vadd.f32 %v6952_v62, %v8880_v30  ;;  %v9130_v6 = vld [vmem:[#allocation31_spill] sm:$0xff] }
 0x286   : > { %v4880_v18 = vmax.f32 %v4860_v3, %v4862_v28  ;;  %v4864_v39 = vmax.f32 %v4832_v10, 0.0  ;;  %v9132_v10 = vld [vmem:[#allocation6_spill] sm:$0xff] }
 0x287   : > { %v4927_v36 = vmax.f32 %v4915_v23, %v4925_v19  ;;  %v4831_v44 = vadd.f32 %v8880_v30, %v4792_v25  ;;  %v3229_v49 = vadd.f32 %v9128_v50, %v2707_v58  ;;  %v6419_v21 = vpop.f32.mrb[150].mxu1  ;;  %v4865_v63 = vmax.f32 %v4833_v37, 0.0 }
 0x288   : > { %v2621_v15 = vpop.f32.mrb[151].mxu1  ;;  %v6771_v51 = vpop.f32.mrb[150].mxu0 }
 0x289   : > { %4929 = vst [vmem:[%s8957_s19] sm:$0xff] %v4927_v36  ;;  %v4863_v48 = vmax.f32 %v4831_v44, 0.0  ;;  %v3751_v54 = vadd.f32 %v8715_v0, %v3229_v49  ;;  %v2708_v24 = vadd.f32 %v2621_v15, %v8908_v32  ;;  %v4709_v61 = vpop.f32.mrb[151].mxu0  ;;  %v9131_v36 = vld [vmem:[#allocation33_spill] sm:$0xff] }
 0x28b   : > { %v4881_v26 = vmax.f32 %v4861_v9, %v4863_v48  ;;  %v4273_v47 = vadd.f32 %v8817_v52, %v3751_v54  ;;  %v3230_v31 = vadd.f32 %v9129_v33, %v2708_v24  ;;  %v6422_v17 = vpop.f32.mrb[36].mxu1 }
 0x28c   : > { %v6774_v34 = vpop.f32.mrb[52].mxu0  ;;  %v2630_v8 = vpop.f32.mrb[37].mxu1 }
 0x28d   : > { %v4795_v56 = vadd.f32 %v6768_v12, %v4273_v47  ;;  %v3752_v4 = vadd.f32 %v8730_v59, %v3230_v31  ;;  %v6954_v42 = vadd.f32 %v6774_v34, %v6422_v17  ;;  %v4718_v57 = vpop.f32.mrb[53].mxu0 }
 0x28e   : > { %v6955_v11 = vadd.f32 %v4718_v57, %v2630_v8 }
 0x28f   : > { %v4834_v0 = vadd.f32 %v8880_v30, %v4795_v56  ;;  %v4274_v32 = vadd.f32 %v8824_v27, %v3752_v4  ;;  %v6425_v35 = vpop.f32.mrb[152].mxu1  ;;  %v4837_v34 = vadd.f32 %v6954_v42, %v8880_v30 }
 0x290   : > { %v2711_v52 = vadd.f32 %v6425_v35, %v8916_v43  ;;  %v2640_v13 = vpop.f32.mrb[153].mxu1  ;;  %v6777_v5 = vpop.f32.mrb[152].mxu0  ;;  %v4836_v49 = vadd.f32 %v6955_v11, %v8880_v30 }
 0x291   : > { %v4866_v2 = vmax.f32 %v4834_v0, 0.0  ;;  %v4796_v1 = vadd.f32 %v4709_v61, %v4274_v32  ;;  %v4728_v23 = vpop.f32.mrb[153].mxu0  ;;  %v4869_v32 = vmax.f32 %v4837_v34, 0.0 }
 0x292   : > { %v3233_v59 = vadd.f32 %v9130_v6, %v2711_v52  ;;  %v4868_v61 = vmax.f32 %v4836_v49, 0.0 }
 0x293   : > { %v4888_v3 = vmax.f32 %v4864_v39, %v4866_v2  ;;  %v4835_v28 = vadd.f32 %v8880_v30, %v4796_v1  ;;  %v6428_v41 = vpop.f32.mrb[154].mxu1 }
 0x294   : > { %v3755_v12 = vadd.f32 %v8741_v22, %v3233_v59  ;;  %v2649_v27 = vpop.f32.mrb[155].mxu1  ;;  %v6780_v19 = vpop.f32.mrb[154].mxu0 }
 0x295   : > { %v4896_v43 = vmax.f32 %v4880_v18, %v4888_v3  ;;  %v4867_v25 = vmax.f32 %v4835_v28, 0.0  ;;  %v2712_v58 = vadd.f32 %v2649_v27, %v8922_v40  ;;  %v4737_v62 = vpop.f32.mrb[155].mxu0 }
 0x296   : > { %v4277_v45 = vadd.f32 %v8838_v55, %v3755_v12 }
 0x297   : > { %4904 = vst [vmem:[#allocation2 + $0x20] sm:$0xff] %v4896_v43  ;;  %v4889_v38 = vmax.f32 %v4865_v63, %v4867_v25  ;;  %v3234_v44 = vadd.f32 %v9131_v36, %v2712_v58  ;;  %v6431_v50 = vpop.f32.mrb[42].mxu1 }
 0x298   : > { %v4799_v21 = vadd.f32 %v6777_v5, %v4277_v45  ;;  %v6783_v15 = vpop.f32.mrb[58].mxu0  ;;  %v2658_v22 = vpop.f32.mrb[43].mxu1  ;;  %v9133_v5 = vld [vmem:[#allocation7_spill] sm:$0xff] }
 0x299   : > { %v4897_v51 = vmax.f32 %v4881_v26, %v4889_v38  ;;  %v3756_v9 = vadd.f32 %v8746_v14, %v3234_v44  ;;  %v6956_v18 = vadd.f32 %v6783_v15, %v6431_v50  ;;  %v4746_v48 = vpop.f32.mrb[59].mxu0 }
 0x29a   : > { %v4838_v40 = vadd.f32 %v8880_v30, %v4799_v21  ;;  %v6957_v54 = vadd.f32 %v4746_v48, %v2658_v22 }
 0x29b   : > { %4905 = vst [vmem:[#allocation2 + $0x28] sm:$0xff] %v4897_v51  ;;  %v4278_v55 = vadd.f32 %v8846_v53, %v3756_v9  ;;  %v6434_v24 = vpop.f32.mrb[156].mxu1  ;;  %v4841_v3 = vadd.f32 %v6956_v18, %v8880_v30 }
 0x29c   : > { %v4870_v47 = vmax.f32 %v4838_v40, 0.0  ;;  %v2715_v33 = vadd.f32 %v6434_v24, %v8930_v29  ;;  %v2668_v31 = vpop.f32.mrb[157].mxu1  ;;  %v6786_v17 = vpop.f32.mrb[156].mxu0  ;;  %v4840_v39 = vadd.f32 %v6957_v54, %v8880_v30 }
 0x29d   : > { %v4800_v26 = vadd.f32 %v4737_v62, %v4278_v55  ;;  %v4756_v8 = vpop.f32.mrb[157].mxu0  ;;  %v4873_v12 = vmax.f32 %v4841_v3, 0.0 }
 0x29e   : > { %v4882_v14 = vmax.f32 %v4868_v61, %v4870_v47  ;;  %v3237_v56 = vadd.f32 %v9132_v10, %v2715_v33  ;;  %v4872_v6 = vmax.f32 %v4840_v39, 0.0 }
 0x29f   : > { %v4839_v4 = vadd.f32 %v8880_v30, %v4800_v26  ;;  %v6437_v57 = vpop.f32.mrb[158].mxu1 }
 0x2a0   : > { %v2677_v11 = vpop.f32.mrb[159].mxu1  ;;  %v3759_v53 = vadd.f32 %v8751_v16, %v3237_v56  ;;  %v6789_v0 = vpop.f32.mrb[158].mxu0 }
 0x2a1   : > { %v4871_v35 = vmax.f32 %v4839_v4, 0.0  ;;  %v2716_v29 = vadd.f32 %v2677_v11, %v8936_v46  ;;  %v4765_v52 = vpop.f32.mrb[159].mxu0 }
 0x2a2   : > { %v4281_v13 = vadd.f32 %v8860_v60, %v3759_v53 }
 0x2a3   : > { %v4883_v42 = vmax.f32 %v4869_v32, %v4871_v35  ;;  %v3238_v37 = vadd.f32 %v9133_v5, %v2716_v29 }
 0x2a4   : > { %v4803_v2 = vadd.f32 %v6786_v17, %v4281_v13 }
 0x2a5   : > { %v3760_v1 = vadd.f32 %v8756_v7, %v3238_v37 }
 0x2a6   : > { %v4842_v23 = vadd.f32 %v8880_v30, %v4803_v2 }
 0x2a7   : > { %v4282_v16 = vadd.f32 %v8868_v20, %v3760_v1 }
 0x2a8   : > { %v4874_v59 = vmax.f32 %v4842_v23, 0.0 }
 0x2a9   : > { %v4804_v46 = vadd.f32 %v4765_v52, %v4282_v16 }
 0x2aa   : > { %v4890_v28 = vmax.f32 %v4872_v6, %v4874_v59 }
 0x2ab   : > { %v4843_v60 = vadd.f32 %v8880_v30, %v4804_v46 }
 0x2ac   : > { %v4898_v41 = vmax.f32 %v4882_v14, %v4890_v28 }
 0x2ad   : > { %v4875_v27 = vmax.f32 %v4843_v60, 0.0 }
 0x2ae   : > { %4906 = vst [vmem:[#allocation2 + $0x30] sm:$0xff] %v4898_v41 }
 0x2af   : > { %v4891_v19 = vmax.f32 %v4873_v12, %v4875_v27 }
 0x2b1   : > { %v4899_v63 = vmax.f32 %v4883_v42, %v4891_v19 }
 0x2b3   : > { %4907 = vst [vmem:[#allocation2 + $0x38] sm:$0xff] %v4899_v63 }
 0x2ba   : > { %v4910_v7 = vld [vmem:[#allocation2 + $0x20] ss:$4 sm:$0xff]  ;;  %v4914_v43 = vld [vmem:[#allocation2 + $0x21] ss:$4 sm:$0xff]  ;;  %v4920_v25 = vld [vmem:[#allocation2 + $0x22] ss:$4 sm:$0xff] }
 0x2bb   : > { %v4916_v20 = vmax.f32 %v4910_v7, %v4914_v43  ;;  %v4924_v58 = vld [vmem:[#allocation2 + $0x23] ss:$4 sm:$0xff] }
 0x2bc   : > { %v4926_v62 = vmax.f32 %v4920_v25, %v4924_v58 }
 0x2be   : > { %v4928_v45 = vmax.f32 %v4916_v20, %v4926_v62 }
 0x2c0   : > { %4930 = vst [vmem:[%s8957_s19 + $0x8] sm:$0xff] %v4928_v45 }
 0x2c1 PF: > { %s13_s12 = sadd.s32 1, %s7085_s12  }
 0x2c2   : > { %p10_p4 = scmp.ge.s32.totalorder %s13_s12, 4  }
 0x2c4   :  { %12 = sbr.rel (!%p10_p4) target bundleno = 1 (0x1), region = 77 }

// kernel: forward.5
= control target key start
LH: loop header
LB: loop body
LE: loop exit
PB: predicated region body
PF: predicated region fallthrough
CT: control target
= control target key end

     0   :  { %10 = vsyncpa [#allocation4], 0  ;;  %s4418_s18 = smov 0   ;;  %s4420_s19 = smov 0   ;;  %s5381_s0 = inlined_call_operand.vmem [shape: f32[2,2048], index: 0, kind: input, shape index: {}]   ;;  %s5382_s1 = inlined_call_operand.vmem [shape: bf16[2048,1024], index: 1, kind: input, shape index: {}]   ;;  %s5383_s2 = inlined_call_operand.vmem [shape: f32[1,1024], index: 2, kind: input, shape index: {}]   ;;  %s5384_s3 = inlined_call_operand.vmem [shape: bf16[1024,100], index: 3, kind: input, shape index: {}]   ;;  %s5385_s4 = inlined_call_operand.vmem [shape: f32[1,100], index: 4, kind: input, shape index: {}]   ;;  %s5386_s5 = inlined_call_operand.hbm [shape: f32[2,100], index: 5, kind: output, shape index: {}]  }
   0x1   :  { %s4422_s20 = smov 0  }
   0x2 LB: > { %s4434_s21 = sadd.s32 4294967295, %s4384_s20   ;;  %s4437_s22 = sadd.s32 1, %s4384_s20   ;;  %s4384_s20 = sphi %s4422_s20, %s5389_s20   ;;  %s4380_s19 = sphi %s4420_s19, %s5388_s19   ;;  %s4376_s18 = sphi %s4418_s18, %s5387_s18  }
   0x3   : > { %s41_s23 = ssub.s32 %s4384_s20, %s4437_s22  ;;  %s44_s24 = sadd.s32 1, %s4380_s19 }
   0x4   : > { %p42_p0 = scmp.eq.s32.totalorder %s41_s23, 0  ;;  %p51_p1 = scmp.ne.s32.totalorder %s4380_s19, %s4376_s18 }
   0x5   : > { %p52_p2 = scmp.eq.s32.totalorder %s4384_s20, 0  ;;  %p3558_p4 = scmp.ge.s32.totalorder %s4384_s20, 4 }
   0x6   : > { %s4446_s25 = scalar_select %p42_p0, %s4380_s19, %s44_s24  }
   0x7   : > { %p53_p3 = por %p52_p2, %p51_p1  ;;  %177 = sbr.rel (%p3558_p4) target bundleno = 274 (0x112), region = 24 }
   0xe   : > { %180 = sbr.rel (!%p53_p3) target bundleno = 274 (0x112), region = 28  ;;  %s182_s26 = sand.u32 (%p53_p3), 1, %s4380_s19  }
   0xf   : > { %s3845_s27 = sshll.u32 (%p53_p3), %s4384_s20, 3  ;;  %s3559_s28 = sshll.u32 (%p53_p3), %s182_s26, 11 }
  0x10   : > { %s4454_s6 = scalar_lea.vmem (%p53_p3), %s5382_s1, %s3845_s27  ;;  %s4459_s7 = scalar_lea.vmem (%p53_p3), [#allocation2], %s3559_s28 }
  0x11   : > { %v725_v0 = vld [vmem:[%s4454_s6] sm:$0xff] (%p53_p3) }
  0x12   : > { %v727_v1 = vld [vmem:[%s4454_s6 + $0x20] sm:$0xff] (%p53_p3)  ;;  %726 = vst [vmem:[%s4459_s7] sm:$0xff] (%p53_p3), %v725_v0 }
  0x13   : > { %v729_v2 = vld [vmem:[%s4454_s6 + $0x40] sm:$0xff] (%p53_p3)  ;;  %728 = vst [vmem:[%s4459_s7 + $0x8] sm:$0xff] (%p53_p3), %v727_v1 }
  0x14   : > { %730 = vst [vmem:[%s4459_s7 + $0x10] sm:$0xff] (%p53_p3), %v729_v2  ;;  %v731_v3 = vld [vmem:[%s4454_s6 + $0x60] sm:$0xff] (%p53_p3) }
  0x15   : > { %v733_v4 = vld [vmem:[%s4454_s6 + $0x80] sm:$0xff]  ;;  %732 = vst [vmem:[%s4459_s7 + $0x18] sm:$0xff] %v731_v3 }
  0x16   : > { %v735_v5 = vld [vmem:[%s4454_s6 + $0xa0] sm:$0xff]  ;;  %734 = vst [vmem:[%s4459_s7 + $0x20] sm:$0xff] %v733_v4 }
  0x17   : > { %736 = vst [vmem:[%s4459_s7 + $0x28] sm:$0xff] %v735_v5  ;;  %v737_v6 = vld [vmem:[%s4454_s6 + $0xc0] sm:$0xff] }
  0x18   : > { %v739_v7 = vld [vmem:[%s4454_s6 + $0xe0] sm:$0xff]  ;;  %738 = vst [vmem:[%s4459_s7 + $0x30] sm:$0xff] %v737_v6 }
  0x19   : > { %v741_v8 = vld [vmem:[%s4454_s6 + $0x100] sm:$0xff]  ;;  %740 = vst [vmem:[%s4459_s7 + $0x38] sm:$0xff] %v739_v7 }
  0x1a   : > { %742 = vst [vmem:[%s4459_s7 + $0x40] sm:$0xff] %v741_v8  ;;  %v743_v9 = vld [vmem:[%s4454_s6 + $0x120] sm:$0xff] }
  0x1b   : > { %v745_v10 = vld [vmem:[%s4454_s6 + $0x140] sm:$0xff]  ;;  %744 = vst [vmem:[%s4459_s7 + $0x48] sm:$0xff] %v743_v9 }
  0x1c   : > { %v747_v11 = vld [vmem:[%s4454_s6 + $0x160] sm:$0xff]  ;;  %746 = vst [vmem:[%s4459_s7 + $0x50] sm:$0xff] %v745_v10 }
  0x1d   : > { %748 = vst [vmem:[%s4459_s7 + $0x58] sm:$0xff] %v747_v11  ;;  %v749_v12 = vld [vmem:[%s4454_s6 + $0x180] sm:$0xff] }
  0x1e   : > { %v751_v13 = vld [vmem:[%s4454_s6 + $0x1a0] sm:$0xff]  ;;  %750 = vst [vmem:[%s4459_s7 + $0x60] sm:$0xff] %v749_v12 }
  0x1f   : > { %v753_v14 = vld [vmem:[%s4454_s6 + $0x1c0] sm:$0xff]  ;;  %752 = vst [vmem:[%s4459_s7 + $0x68] sm:$0xff] %v751_v13 }
  0x20   : > { %754 = vst [vmem:[%s4459_s7 + $0x70] sm:$0xff] %v753_v14  ;;  %v755_v15 = vld [vmem:[%s4454_s6 + $0x1e0] sm:$0xff] }
  0x21   : > { %v757_v16 = vld [vmem:[%s4454_s6 + $0x200] sm:$0xff]  ;;  %756 = vst [vmem:[%s4459_s7 + $0x78] sm:$0xff] %v755_v15 }
  0x22   : > { %v759_v17 = vld [vmem:[%s4454_s6 + $0x220] sm:$0xff]  ;;  %758 = vst [vmem:[%s4459_s7 + $0x80] sm:$0xff] %v757_v16 }
  0x23   : > { %760 = vst [vmem:[%s4459_s7 + $0x88] sm:$0xff] %v759_v17  ;;  %v761_v18 = vld [vmem:[%s4454_s6 + $0x240] sm:$0xff] }
  0x24   : > { %v763_v19 = vld [vmem:[%s4454_s6 + $0x260] sm:$0xff]  ;;  %762 = vst [vmem:[%s4459_s7 + $0x90] sm:$0xff] %v761_v18 }
  0x25   : > { %v765_v20 = vld [vmem:[%s4454_s6 + $0x280] sm:$0xff]  ;;  %764 = vst [vmem:[%s4459_s7 + $0x98] sm:$0xff] %v763_v19 }
  0x26   : > { %766 = vst [vmem:[%s4459_s7 + $0xa0] sm:$0xff] %v765_v20  ;;  %v767_v21 = vld [vmem:[%s4454_s6 + $0x2a0] sm:$0xff] }
  0x27   : > { %v769_v22 = vld [vmem:[%s4454_s6 + $0x2c0] sm:$0xff]  ;;  %768 = vst [vmem:[%s4459_s7 + $0xa8] sm:$0xff] %v767_v21 }
  0x28   : > { %v771_v23 = vld [vmem:[%s4454_s6 + $0x2e0] sm:$0xff]  ;;  %770 = vst [vmem:[%s4459_s7 + $0xb0] sm:$0xff] %v769_v22 }
  0x29   : > { %772 = vst [vmem:[%s4459_s7 + $0xb8] sm:$0xff] %v771_v23  ;;  %v773_v24 = vld [vmem:[%s4454_s6 + $0x300] sm:$0xff] }
  0x2a   : > { %v775_v25 = vld [vmem:[%s4454_s6 + $0x320] sm:$0xff]  ;;  %774 = vst [vmem:[%s4459_s7 + $0xc0] sm:$0xff] %v773_v24 }
  0x2b   : > { %v777_v26 = vld [vmem:[%s4454_s6 + $0x340] sm:$0xff]  ;;  %776 = vst [vmem:[%s4459_s7 + $0xc8] sm:$0xff] %v775_v25 }
  0x2c   : > { %778 = vst [vmem:[%s4459_s7 + $0xd0] sm:$0xff] %v777_v26  ;;  %v779_v27 = vld [vmem:[%s4454_s6 + $0x360] sm:$0xff] }
  0x2d   : > { %v781_v28 = vld [vmem:[%s4454_s6 + $0x380] sm:$0xff]  ;;  %780 = vst [vmem:[%s4459_s7 + $0xd8] sm:$0xff] %v779_v27 }
  0x2e   : > { %v783_v29 = vld [vmem:[%s4454_s6 + $0x3a0] sm:$0xff]  ;;  %782 = vst [vmem:[%s4459_s7 + $0xe0] sm:$0xff] %v781_v28 }
  0x2f   : > { %784 = vst [vmem:[%s4459_s7 + $0xe8] sm:$0xff] %v783_v29  ;;  %v785_v30 = vld [vmem:[%s4454_s6 + $0x3c0] sm:$0xff] }
  0x30   : > { %v787_v31 = vld [vmem:[%s4454_s6 + $0x3e0] sm:$0xff]  ;;  %786 = vst [vmem:[%s4459_s7 + $0xf0] sm:$0xff] %v785_v30 }
  0x31   : > { %v789_v32 = vld [vmem:[%s4454_s6 + $0x400] sm:$0xff]  ;;  %788 = vst [vmem:[%s4459_s7 + $0xf8] sm:$0xff] %v787_v31 }
  0x32   : > { %790 = vst [vmem:[%s4459_s7 + $0x100] sm:$0xff] %v789_v32  ;;  %v791_v33 = vld [vmem:[%s4454_s6 + $0x420] sm:$0xff] }
  0x33   : > { %v793_v34 = vld [vmem:[%s4454_s6 + $0x440] sm:$0xff]  ;;  %792 = vst [vmem:[%s4459_s7 + $0x108] sm:$0xff] %v791_v33 }
  0x34   : > { %v795_v35 = vld [vmem:[%s4454_s6 + $0x460] sm:$0xff]  ;;  %794 = vst [vmem:[%s4459_s7 + $0x110] sm:$0xff] %v793_v34 }
  0x35   : > { %796 = vst [vmem:[%s4459_s7 + $0x118] sm:$0xff] %v795_v35  ;;  %v797_v36 = vld [vmem:[%s4454_s6 + $0x480] sm:$0xff] }
  0x36   : > { %v799_v37 = vld [vmem:[%s4454_s6 + $0x4a0] sm:$0xff]  ;;  %798 = vst [vmem:[%s4459_s7 + $0x120] sm:$0xff] %v797_v36 }
  0x37   : > { %v801_v38 = vld [vmem:[%s4454_s6 + $0x4c0] sm:$0xff]  ;;  %800 = vst [vmem:[%s4459_s7 + $0x128] sm:$0xff] %v799_v37 }
  0x38   : > { %802 = vst [vmem:[%s4459_s7 + $0x130] sm:$0xff] %v801_v38  ;;  %v803_v39 = vld [vmem:[%s4454_s6 + $0x4e0] sm:$0xff] }
  0x39   : > { %v805_v40 = vld [vmem:[%s4454_s6 + $0x500] sm:$0xff]  ;;  %804 = vst [vmem:[%s4459_s7 + $0x138] sm:$0xff] %v803_v39 }
  0x3a   : > { %v807_v41 = vld [vmem:[%s4454_s6 + $0x520] sm:$0xff]  ;;  %806 = vst [vmem:[%s4459_s7 + $0x140] sm:$0xff] %v805_v40 }
  0x3b   : > { %808 = vst [vmem:[%s4459_s7 + $0x148] sm:$0xff] %v807_v41  ;;  %v809_v42 = vld [vmem:[%s4454_s6 + $0x540] sm:$0xff] }
  0x3c   : > { %v811_v43 = vld [vmem:[%s4454_s6 + $0x560] sm:$0xff]  ;;  %810 = vst [vmem:[%s4459_s7 + $0x150] sm:$0xff] %v809_v42 }
  0x3d   : > { %v813_v44 = vld [vmem:[%s4454_s6 + $0x580] sm:$0xff]  ;;  %812 = vst [vmem:[%s4459_s7 + $0x158] sm:$0xff] %v811_v43 }
  0x3e   : > { %814 = vst [vmem:[%s4459_s7 + $0x160] sm:$0xff] %v813_v44  ;;  %v815_v45 = vld [vmem:[%s4454_s6 + $0x5a0] sm:$0xff] }
  0x3f   : > { %v817_v46 = vld [vmem:[%s4454_s6 + $0x5c0] sm:$0xff]  ;;  %816 = vst [vmem:[%s4459_s7 + $0x168] sm:$0xff] %v815_v45 }
  0x40   : > { %v819_v47 = vld [vmem:[%s4454_s6 + $0x5e0] sm:$0xff]  ;;  %818 = vst [vmem:[%s4459_s7 + $0x170] sm:$0xff] %v817_v46 }
  0x41   : > { %820 = vst [vmem:[%s4459_s7 + $0x178] sm:$0xff] %v819_v47  ;;  %v821_v48 = vld [vmem:[%s4454_s6 + $0x600] sm:$0xff] }
  0x42   : > { %v823_v49 = vld [vmem:[%s4454_s6 + $0x620] sm:$0xff]  ;;  %822 = vst [vmem:[%s4459_s7 + $0x180] sm:$0xff] %v821_v48 }
  0x43   : > { %v825_v50 = vld [vmem:[%s4454_s6 + $0x640] sm:$0xff]  ;;  %824 = vst [vmem:[%s4459_s7 + $0x188] sm:$0xff] %v823_v49 }
  0x44   : > { %826 = vst [vmem:[%s4459_s7 + $0x190] sm:$0xff] %v825_v50  ;;  %v827_v51 = vld [vmem:[%s4454_s6 + $0x660] sm:$0xff] }
  0x45   : > { %v829_v52 = vld [vmem:[%s4454_s6 + $0x680] sm:$0xff]  ;;  %828 = vst [vmem:[%s4459_s7 + $0x198] sm:$0xff] %v827_v51 }
  0x46   : > { %v831_v53 = vld [vmem:[%s4454_s6 + $0x6a0] sm:$0xff]  ;;  %830 = vst [vmem:[%s4459_s7 + $0x1a0] sm:$0xff] %v829_v52 }
  0x47   : > { %832 = vst [vmem:[%s4459_s7 + $0x1a8] sm:$0xff] %v831_v53  ;;  %v833_v54 = vld [vmem:[%s4454_s6 + $0x6c0] sm:$0xff] }
  0x48   : > { %v835_v55 = vld [vmem:[%s4454_s6 + $0x6e0] sm:$0xff]  ;;  %834 = vst [vmem:[%s4459_s7 + $0x1b0] sm:$0xff] %v833_v54 }
  0x49   : > { %v837_v56 = vld [vmem:[%s4454_s6 + $0x700] sm:$0xff]  ;;  %836 = vst [vmem:[%s4459_s7 + $0x1b8] sm:$0xff] %v835_v55 }
  0x4a   : > { %838 = vst [vmem:[%s4459_s7 + $0x1c0] sm:$0xff] %v837_v56  ;;  %v839_v57 = vld [vmem:[%s4454_s6 + $0x720] sm:$0xff] }
  0x4b   : > { %v841_v58 = vld [vmem:[%s4454_s6 + $0x740] sm:$0xff]  ;;  %840 = vst [vmem:[%s4459_s7 + $0x1c8] sm:$0xff] %v839_v57 }
  0x4c   : > { %v843_v59 = vld [vmem:[%s4454_s6 + $0x760] sm:$0xff]  ;;  %842 = vst [vmem:[%s4459_s7 + $0x1d0] sm:$0xff] %v841_v58 }
  0x4d   : > { %844 = vst [vmem:[%s4459_s7 + $0x1d8] sm:$0xff] %v843_v59  ;;  %v845_v60 = vld [vmem:[%s4454_s6 + $0x780] sm:$0xff] }
  0x4e   : > { %v847_v61 = vld [vmem:[%s4454_s6 + $0x7a0] sm:$0xff]  ;;  %846 = vst [vmem:[%s4459_s7 + $0x1e0] sm:$0xff] %v845_v60 }
  0x4f   : > { %v849_v62 = vld [vmem:[%s4454_s6 + $0x7c0] sm:$0xff]  ;;  %848 = vst [vmem:[%s4459_s7 + $0x1e8] sm:$0xff] %v847_v61 }
  0x50   : > { %850 = vst [vmem:[%s4459_s7 + $0x1f0] sm:$0xff] %v849_v62  ;;  %v851_v63 = vld [vmem:[%s4454_s6 + $0x7e0] sm:$0xff] }
  0x51   : > { %v853_v0 = vld [vmem:[%s4454_s6 + $0x800] sm:$0xff]  ;;  %852 = vst [vmem:[%s4459_s7 + $0x1f8] sm:$0xff] %v851_v63 }
  0x52   : > { %v855_v1 = vld [vmem:[%s4454_s6 + $0x820] sm:$0xff]  ;;  %854 = vst [vmem:[%s4459_s7 + $0x200] sm:$0xff] %v853_v0 }
  0x53   : > { %856 = vst [vmem:[%s4459_s7 + $0x208] sm:$0xff] %v855_v1  ;;  %v857_v2 = vld [vmem:[%s4454_s6 + $0x840] sm:$0xff] }
  0x54   : > { %v859_v3 = vld [vmem:[%s4454_s6 + $0x860] sm:$0xff]  ;;  %858 = vst [vmem:[%s4459_s7 + $0x210] sm:$0xff] %v857_v2 }
  0x55   : > { %v861_v4 = vld [vmem:[%s4454_s6 + $0x880] sm:$0xff]  ;;  %860 = vst [vmem:[%s4459_s7 + $0x218] sm:$0xff] %v859_v3 }
  0x56   : > { %862 = vst [vmem:[%s4459_s7 + $0x220] sm:$0xff] %v861_v4  ;;  %v863_v5 = vld [vmem:[%s4454_s6 + $0x8a0] sm:$0xff] }
  0x57   : > { %v865_v6 = vld [vmem:[%s4454_s6 + $0x8c0] sm:$0xff]  ;;  %864 = vst [vmem:[%s4459_s7 + $0x228] sm:$0xff] %v863_v5 }
  0x58   : > { %v867_v7 = vld [vmem:[%s4454_s6 + $0x8e0] sm:$0xff]  ;;  %866 = vst [vmem:[%s4459_s7 + $0x230] sm:$0xff] %v865_v6 }
  0x59   : > { %868 = vst [vmem:[%s4459_s7 + $0x238] sm:$0xff] %v867_v7  ;;  %v869_v8 = vld [vmem:[%s4454_s6 + $0x900] sm:$0xff] }
  0x5a   : > { %v871_v9 = vld [vmem:[%s4454_s6 + $0x920] sm:$0xff]  ;;  %870 = vst [vmem:[%s4459_s7 + $0x240] sm:$0xff] %v869_v8 }
  0x5b   : > { %v873_v10 = vld [vmem:[%s4454_s6 + $0x940] sm:$0xff]  ;;  %872 = vst [vmem:[%s4459_s7 + $0x248] sm:$0xff] %v871_v9 }
  0x5c   : > { %874 = vst [vmem:[%s4459_s7 + $0x250] sm:$0xff] %v873_v10  ;;  %v875_v11 = vld [vmem:[%s4454_s6 + $0x960] sm:$0xff] }
  0x5d   : > { %v877_v12 = vld [vmem:[%s4454_s6 + $0x980] sm:$0xff]  ;;  %876 = vst [vmem:[%s4459_s7 + $0x258] sm:$0xff] %v875_v11 }
  0x5e   : > { %v879_v13 = vld [vmem:[%s4454_s6 + $0x9a0] sm:$0xff]  ;;  %878 = vst [vmem:[%s4459_s7 + $0x260] sm:$0xff] %v877_v12 }
  0x5f   : > { %880 = vst [vmem:[%s4459_s7 + $0x268] sm:$0xff] %v879_v13  ;;  %v881_v14 = vld [vmem:[%s4454_s6 + $0x9c0] sm:$0xff] }
  0x60   : > { %v883_v15 = vld [vmem:[%s4454_s6 + $0x9e0] sm:$0xff]  ;;  %882 = vst [vmem:[%s4459_s7 + $0x270] sm:$0xff] %v881_v14 }
  0x61   : > { %v885_v16 = vld [vmem:[%s4454_s6 + $0xa00] sm:$0xff]  ;;  %884 = vst [vmem:[%s4459_s7 + $0x278] sm:$0xff] %v883_v15 }
  0x62   : > { %886 = vst [vmem:[%s4459_s7 + $0x280] sm:$0xff] %v885_v16  ;;  %v887_v17 = vld [vmem:[%s4454_s6 + $0xa20] sm:$0xff] }
  0x63   : > { %v889_v18 = vld [vmem:[%s4454_s6 + $0xa40] sm:$0xff]  ;;  %888 = vst [vmem:[%s4459_s7 + $0x288] sm:$0xff] %v887_v17 }
  0x64   : > { %v891_v19 = vld [vmem:[%s4454_s6 + $0xa60] sm:$0xff]  ;;  %890 = vst [vmem:[%s4459_s7 + $0x290] sm:$0xff] %v889_v18 }
  0x65   : > { %892 = vst [vmem:[%s4459_s7 + $0x298] sm:$0xff] %v891_v19  ;;  %v893_v20 = vld [vmem:[%s4454_s6 + $0xa80] sm:$0xff] }
  0x66   : > { %v895_v21 = vld [vmem:[%s4454_s6 + $0xaa0] sm:$0xff]  ;;  %894 = vst [vmem:[%s4459_s7 + $0x2a0] sm:$0xff] %v893_v20 }
  0x67   : > { %v897_v22 = vld [vmem:[%s4454_s6 + $0xac0] sm:$0xff]  ;;  %896 = vst [vmem:[%s4459_s7 + $0x2a8] sm:$0xff] %v895_v21 }
  0x68   : > { %898 = vst [vmem:[%s4459_s7 + $0x2b0] sm:$0xff] %v897_v22  ;;  %v899_v23 = vld [vmem:[%s4454_s6 + $0xae0] sm:$0xff] }
  0x69   : > { %v901_v24 = vld [vmem:[%s4454_s6 + $0xb00] sm:$0xff]  ;;  %900 = vst [vmem:[%s4459_s7 + $0x2b8] sm:$0xff] %v899_v23 }
  0x6a   : > { %v903_v25 = vld [vmem:[%s4454_s6 + $0xb20] sm:$0xff]  ;;  %902 = vst [vmem:[%s4459_s7 + $0x2c0] sm:$0xff] %v901_v24 }
  0x6b   : > { %904 = vst [vmem:[%s4459_s7 + $0x2c8] sm:$0xff] %v903_v25  ;;  %v905_v26 = vld [vmem:[%s4454_s6 + $0xb40] sm:$0xff] }
  0x6c   : > { %v907_v27 = vld [vmem:[%s4454_s6 + $0xb60] sm:$0xff]  ;;  %906 = vst [vmem:[%s4459_s7 + $0x2d0] sm:$0xff] %v905_v26 }
  0x6d   : > { %v909_v28 = vld [vmem:[%s4454_s6 + $0xb80] sm:$0xff]  ;;  %908 = vst [vmem:[%s4459_s7 + $0x2d8] sm:$0xff] %v907_v27 }
  0x6e   : > { %910 = vst [vmem:[%s4459_s7 + $0x2e0] sm:$0xff] %v909_v28  ;;  %v911_v29 = vld [vmem:[%s4454_s6 + $0xba0] sm:$0xff] }
  0x6f   : > { %v913_v30 = vld [vmem:[%s4454_s6 + $0xbc0] sm:$0xff]  ;;  %912 = vst [vmem:[%s4459_s7 + $0x2e8] sm:$0xff] %v911_v29 }
  0x70   : > { %v915_v31 = vld [vmem:[%s4454_s6 + $0xbe0] sm:$0xff]  ;;  %914 = vst [vmem:[%s4459_s7 + $0x2f0] sm:$0xff] %v913_v30 }
  0x71   : > { %916 = vst [vmem:[%s4459_s7 + $0x2f8] sm:$0xff] %v915_v31  ;;  %v917_v32 = vld [vmem:[%s4454_s6 + $0xc00] sm:$0xff] }
  0x72   : > { %v919_v33 = vld [vmem:[%s4454_s6 + $0xc20] sm:$0xff]  ;;  %918 = vst [vmem:[%s4459_s7 + $0x300] sm:$0xff] %v917_v32 }
  0x73   : > { %v921_v34 = vld [vmem:[%s4454_s6 + $0xc40] sm:$0xff]  ;;  %920 = vst [vmem:[%s4459_s7 + $0x308] sm:$0xff] %v919_v33 }
  0x74   : > { %922 = vst [vmem:[%s4459_s7 + $0x310] sm:$0xff] %v921_v34  ;;  %v923_v35 = vld [vmem:[%s4454_s6 + $0xc60] sm:$0xff] }
  0x75   : > { %v925_v36 = vld [vmem:[%s4454_s6 + $0xc80] sm:$0xff]  ;;  %924 = vst [vmem:[%s4459_s7 + $0x318] sm:$0xff] %v923_v35 }
  0x76   : > { %v927_v37 = vld [vmem:[%s4454_s6 + $0xca0] sm:$0xff]  ;;  %926 = vst [vmem:[%s4459_s7 + $0x320] sm:$0xff] %v925_v36 }
  0x77   : > { %928 = vst [vmem:[%s4459_s7 + $0x328] sm:$0xff] %v927_v37  ;;  %v929_v38 = vld [vmem:[%s4454_s6 + $0xcc0] sm:$0xff] }
  0x78   : > { %v931_v39 = vld [vmem:[%s4454_s6 + $0xce0] sm:$0xff]  ;;  %930 = vst [vmem:[%s4459_s7 + $0x330] sm:$0xff] %v929_v38 }
  0x79   : > { %v933_v40 = vld [vmem:[%s4454_s6 + $0xd00] sm:$0xff]  ;;  %932 = vst [vmem:[%s4459_s7 + $0x338] sm:$0xff] %v931_v39 }
  0x7a   : > { %934 = vst [vmem:[%s4459_s7 + $0x340] sm:$0xff] %v933_v40  ;;  %v935_v41 = vld [vmem:[%s4454_s6 + $0xd20] sm:$0xff] }
  0x7b   : > { %v937_v42 = vld [vmem:[%s4454_s6 + $0xd40] sm:$0xff]  ;;  %936 = vst [vmem:[%s4459_s7 + $0x348] sm:$0xff] %v935_v41 }
  0x7c   : > { %v939_v43 = vld [vmem:[%s4454_s6 + $0xd60] sm:$0xff]  ;;  %938 = vst [vmem:[%s4459_s7 + $0x350] sm:$0xff] %v937_v42 }
  0x7d   : > { %940 = vst [vmem:[%s4459_s7 + $0x358] sm:$0xff] %v939_v43  ;;  %v941_v44 = vld [vmem:[%s4454_s6 + $0xd80] sm:$0xff] }
  0x7e   : > { %v943_v45 = vld [vmem:[%s4454_s6 + $0xda0] sm:$0xff]  ;;  %942 = vst [vmem:[%s4459_s7 + $0x360] sm:$0xff] %v941_v44 }
  0x7f   : > { %v945_v46 = vld [vmem:[%s4454_s6 + $0xdc0] sm:$0xff]  ;;  %944 = vst [vmem:[%s4459_s7 + $0x368] sm:$0xff] %v943_v45 }
  0x80   : > { %946 = vst [vmem:[%s4459_s7 + $0x370] sm:$0xff] %v945_v46  ;;  %v947_v47 = vld [vmem:[%s4454_s6 + $0xde0] sm:$0xff] }
  0x81   : > { %v949_v48 = vld [vmem:[%s4454_s6 + $0xe00] sm:$0xff]  ;;  %948 = vst [vmem:[%s4459_s7 + $0x378] sm:$0xff] %v947_v47 }
  0x82   : > { %v951_v49 = vld [vmem:[%s4454_s6 + $0xe20] sm:$0xff]  ;;  %950 = vst [vmem:[%s4459_s7 + $0x380] sm:$0xff] %v949_v48 }
  0x83   : > { %952 = vst [vmem:[%s4459_s7 + $0x388] sm:$0xff] %v951_v49  ;;  %v953_v50 = vld [vmem:[%s4454_s6 + $0xe40] sm:$0xff] }
  0x84   : > { %v955_v51 = vld [vmem:[%s4454_s6 + $0xe60] sm:$0xff]  ;;  %954 = vst [vmem:[%s4459_s7 + $0x390] sm:$0xff] %v953_v50 }
  0x85   : > { %v957_v52 = vld [vmem:[%s4454_s6 + $0xe80] sm:$0xff]  ;;  %956 = vst [vmem:[%s4459_s7 + $0x398] sm:$0xff] %v955_v51 }
  0x86   : > { %958 = vst [vmem:[%s4459_s7 + $0x3a0] sm:$0xff] %v957_v52  ;;  %v959_v53 = vld [vmem:[%s4454_s6 + $0xea0] sm:$0xff] }
  0x87   : > { %v961_v54 = vld [vmem:[%s4454_s6 + $0xec0] sm:$0xff]  ;;  %960 = vst [vmem:[%s4459_s7 + $0x3a8] sm:$0xff] %v959_v53 }
  0x88   : > { %v963_v55 = vld [vmem:[%s4454_s6 + $0xee0] sm:$0xff]  ;;  %962 = vst [vmem:[%s4459_s7 + $0x3b0] sm:$0xff] %v961_v54 }
  0x89   : > { %964 = vst [vmem:[%s4459_s7 + $0x3b8] sm:$0xff] %v963_v55  ;;  %v965_v56 = vld [vmem:[%s4454_s6 + $0xf00] sm:$0xff] }
  0x8a   : > { %v967_v57 = vld [vmem:[%s4454_s6 + $0xf20] sm:$0xff]  ;;  %966 = vst [vmem:[%s4459_s7 + $0x3c0] sm:$0xff] %v965_v56 }
  0x8b   : > { %v969_v58 = vld [vmem:[%s4454_s6 + $0xf40] sm:$0xff]  ;;  %968 = vst [vmem:[%s4459_s7 + $0x3c8] sm:$0xff] %v967_v57 }
  0x8c   : > { %970 = vst [vmem:[%s4459_s7 + $0x3d0] sm:$0xff] %v969_v58  ;;  %v971_v59 = vld [vmem:[%s4454_s6 + $0xf60] sm:$0xff] }
  0x8d   : > { %v973_v60 = vld [vmem:[%s4454_s6 + $0xf80] sm:$0xff]  ;;  %972 = vst [vmem:[%s4459_s7 + $0x3d8] sm:$0xff] %v971_v59 }
  0x8e   : > { %v975_v61 = vld [vmem:[%s4454_s6 + $0xfa0] sm:$0xff]  ;;  %974 = vst [vmem:[%s4459_s7 + $0x3e0] sm:$0xff] %v973_v60 }
  0x8f   : > { %976 = vst [vmem:[%s4459_s7 + $0x3e8] sm:$0xff] %v975_v61  ;;  %v977_v62 = vld [vmem:[%s4454_s6 + $0xfc0] sm:$0xff] }
  0x90   : > { %v979_v63 = vld [vmem:[%s4454_s6 + $0xfe0] sm:$0xff]  ;;  %978 = vst [vmem:[%s4459_s7 + $0x3f0] sm:$0xff] %v977_v62 }
  0x91   : > { %v981_v0 = vld [vmem:[%s4454_s6 + $0x1000] sm:$0xff]  ;;  %980 = vst [vmem:[%s4459_s7 + $0x3f8] sm:$0xff] %v979_v63 }
  0x92   : > { %982 = vst [vmem:[%s4459_s7 + $0x400] sm:$0xff] %v981_v0  ;;  %v983_v1 = vld [vmem:[%s4454_s6 + $0x1020] sm:$0xff] }
  0x93   : > { %v985_v2 = vld [vmem:[%s4454_s6 + $0x1040] sm:$0xff]  ;;  %984 = vst [vmem:[%s4459_s7 + $0x408] sm:$0xff] %v983_v1 }
  0x94   : > { %v987_v3 = vld [vmem:[%s4454_s6 + $0x1060] sm:$0xff]  ;;  %986 = vst [vmem:[%s4459_s7 + $0x410] sm:$0xff] %v985_v2 }
  0x95   : > { %988 = vst [vmem:[%s4459_s7 + $0x418] sm:$0xff] %v987_v3  ;;  %v989_v4 = vld [vmem:[%s4454_s6 + $0x1080] sm:$0xff] }
  0x96   : > { %v991_v5 = vld [vmem:[%s4454_s6 + $0x10a0] sm:$0xff]  ;;  %990 = vst [vmem:[%s4459_s7 + $0x420] sm:$0xff] %v989_v4 }
  0x97   : > { %v993_v6 = vld [vmem:[%s4454_s6 + $0x10c0] sm:$0xff]  ;;  %992 = vst [vmem:[%s4459_s7 + $0x428] sm:$0xff] %v991_v5 }
  0x98   : > { %994 = vst [vmem:[%s4459_s7 + $0x430] sm:$0xff] %v993_v6  ;;  %v995_v7 = vld [vmem:[%s4454_s6 + $0x10e0] sm:$0xff] }
  0x99   : > { %v997_v8 = vld [vmem:[%s4454_s6 + $0x1100] sm:$0xff]  ;;  %996 = vst [vmem:[%s4459_s7 + $0x438] sm:$0xff] %v995_v7 }
  0x9a   : > { %v999_v9 = vld [vmem:[%s4454_s6 + $0x1120] sm:$0xff]  ;;  %998 = vst [vmem:[%s4459_s7 + $0x440] sm:$0xff] %v997_v8 }
  0x9b   : > { %1000 = vst [vmem:[%s4459_s7 + $0x448] sm:$0xff] %v999_v9  ;;  %v1001_v10 = vld [vmem:[%s4454_s6 + $0x1140] sm:$0xff] }
  0x9c   : > { %v1003_v11 = vld [vmem:[%s4454_s6 + $0x1160] sm:$0xff]  ;;  %1002 = vst [vmem:[%s4459_s7 + $0x450] sm:$0xff] %v1001_v10 }
  0x9d   : > { %v1005_v12 = vld [vmem:[%s4454_s6 + $0x1180] sm:$0xff]  ;;  %1004 = vst [vmem:[%s4459_s7 + $0x458] sm:$0xff] %v1003_v11 }
  0x9e   : > { %1006 = vst [vmem:[%s4459_s7 + $0x460] sm:$0xff] %v1005_v12  ;;  %v1007_v13 = vld [vmem:[%s4454_s6 + $0x11a0] sm:$0xff] }
  0x9f   : > { %v1009_v14 = vld [vmem:[%s4454_s6 + $0x11c0] sm:$0xff]  ;;  %1008 = vst [vmem:[%s4459_s7 + $0x468] sm:$0xff] %v1007_v13 }
  0xa0   : > { %v1011_v15 = vld [vmem:[%s4454_s6 + $0x11e0] sm:$0xff]  ;;  %1010 = vst [vmem:[%s4459_s7 + $0x470] sm:$0xff] %v1009_v14 }
  0xa1   : > { %1012 = vst [vmem:[%s4459_s7 + $0x478] sm:$0xff] %v1011_v15  ;;  %v1013_v16 = vld [vmem:[%s4454_s6 + $0x1200] sm:$0xff] }
  0xa2   : > { %v1015_v17 = vld [vmem:[%s4454_s6 + $0x1220] sm:$0xff]  ;;  %1014 = vst [vmem:[%s4459_s7 + $0x480] sm:$0xff] %v1013_v16 }
  0xa3   : > { %v1017_v18 = vld [vmem:[%s4454_s6 + $0x1240] sm:$0xff]  ;;  %1016 = vst [vmem:[%s4459_s7 + $0x488] sm:$0xff] %v1015_v17 }
  0xa4   : > { %1018 = vst [vmem:[%s4459_s7 + $0x490] sm:$0xff] %v1017_v18  ;;  %v1019_v19 = vld [vmem:[%s4454_s6 + $0x1260] sm:$0xff] }
  0xa5   : > { %v1021_v20 = vld [vmem:[%s4454_s6 + $0x1280] sm:$0xff]  ;;  %1020 = vst [vmem:[%s4459_s7 + $0x498] sm:$0xff] %v1019_v19 }
  0xa6   : > { %v1023_v21 = vld [vmem:[%s4454_s6 + $0x12a0] sm:$0xff]  ;;  %1022 = vst [vmem:[%s4459_s7 + $0x4a0] sm:$0xff] %v1021_v20 }
  0xa7   : > { %1024 = vst [vmem:[%s4459_s7 + $0x4a8] sm:$0xff] %v1023_v21  ;;  %v1025_v22 = vld [vmem:[%s4454_s6 + $0x12c0] sm:$0xff] }
  0xa8   : > { %v1027_v23 = vld [vmem:[%s4454_s6 + $0x12e0] sm:$0xff]  ;;  %1026 = vst [vmem:[%s4459_s7 + $0x4b0] sm:$0xff] %v1025_v22 }
  0xa9   : > { %v1029_v24 = vld [vmem:[%s4454_s6 + $0x1300] sm:$0xff]  ;;  %1028 = vst [vmem:[%s4459_s7 + $0x4b8] sm:$0xff] %v1027_v23 }
  0xaa   : > { %1030 = vst [vmem:[%s4459_s7 + $0x4c0] sm:$0xff] %v1029_v24  ;;  %v1031_v25 = vld [vmem:[%s4454_s6 + $0x1320] sm:$0xff] }
  0xab   : > { %v1033_v26 = vld [vmem:[%s4454_s6 + $0x1340] sm:$0xff]  ;;  %1032 = vst [vmem:[%s4459_s7 + $0x4c8] sm:$0xff] %v1031_v25 }
  0xac   : > { %v1035_v27 = vld [vmem:[%s4454_s6 + $0x1360] sm:$0xff]  ;;  %1034 = vst [vmem:[%s4459_s7 + $0x4d0] sm:$0xff] %v1033_v26 }
  0xad   : > { %1036 = vst [vmem:[%s4459_s7 + $0x4d8] sm:$0xff] %v1035_v27  ;;  %v1037_v28 = vld [vmem:[%s4454_s6 + $0x1380] sm:$0xff] }
  0xae   : > { %v1039_v29 = vld [vmem:[%s4454_s6 + $0x13a0] sm:$0xff]  ;;  %1038 = vst [vmem:[%s4459_s7 + $0x4e0] sm:$0xff] %v1037_v28 }
  0xaf   : > { %v1041_v30 = vld [vmem:[%s4454_s6 + $0x13c0] sm:$0xff]  ;;  %1040 = vst [vmem:[%s4459_s7 + $0x4e8] sm:$0xff] %v1039_v29 }
  0xb0   : > { %1042 = vst [vmem:[%s4459_s7 + $0x4f0] sm:$0xff] %v1041_v30  ;;  %v1043_v31 = vld [vmem:[%s4454_s6 + $0x13e0] sm:$0xff] }
  0xb1   : > { %v1045_v32 = vld [vmem:[%s4454_s6 + $0x1400] sm:$0xff]  ;;  %1044 = vst [vmem:[%s4459_s7 + $0x4f8] sm:$0xff] %v1043_v31 }
  0xb2   : > { %v1047_v33 = vld [vmem:[%s4454_s6 + $0x1420] sm:$0xff]  ;;  %1046 = vst [vmem:[%s4459_s7 + $0x500] sm:$0xff] %v1045_v32 }
  0xb3   : > { %1048 = vst [vmem:[%s4459_s7 + $0x508] sm:$0xff] %v1047_v33  ;;  %v1049_v34 = vld [vmem:[%s4454_s6 + $0x1440] sm:$0xff] }
  0xb4   : > { %v1051_v35 = vld [vmem:[%s4454_s6 + $0x1460] sm:$0xff]  ;;  %1050 = vst [vmem:[%s4459_s7 + $0x510] sm:$0xff] %v1049_v34 }
  0xb5   : > { %v1053_v36 = vld [vmem:[%s4454_s6 + $0x1480] sm:$0xff]  ;;  %1052 = vst [vmem:[%s4459_s7 + $0x518] sm:$0xff] %v1051_v35 }
  0xb6   : > { %1054 = vst [vmem:[%s4459_s7 + $0x520] sm:$0xff] %v1053_v36  ;;  %v1055_v37 = vld [vmem:[%s4454_s6 + $0x14a0] sm:$0xff] }
  0xb7   : > { %v1057_v38 = vld [vmem:[%s4454_s6 + $0x14c0] sm:$0xff]  ;;  %1056 = vst [vmem:[%s4459_s7 + $0x528] sm:$0xff] %v1055_v37 }
  0xb8   : > { %v1059_v39 = vld [vmem:[%s4454_s6 + $0x14e0] sm:$0xff]  ;;  %1058 = vst [vmem:[%s4459_s7 + $0x530] sm:$0xff] %v1057_v38 }
  0xb9   : > { %1060 = vst [vmem:[%s4459_s7 + $0x538] sm:$0xff] %v1059_v39  ;;  %v1061_v40 = vld [vmem:[%s4454_s6 + $0x1500] sm:$0xff] }
  0xba   : > { %v1063_v41 = vld [vmem:[%s4454_s6 + $0x1520] sm:$0xff]  ;;  %1062 = vst [vmem:[%s4459_s7 + $0x540] sm:$0xff] %v1061_v40 }
  0xbb   : > { %v1065_v42 = vld [vmem:[%s4454_s6 + $0x1540] sm:$0xff]  ;;  %1064 = vst [vmem:[%s4459_s7 + $0x548] sm:$0xff] %v1063_v41 }
  0xbc   : > { %1066 = vst [vmem:[%s4459_s7 + $0x550] sm:$0xff] %v1065_v42  ;;  %v1067_v43 = vld [vmem:[%s4454_s6 + $0x1560] sm:$0xff] }
  0xbd   : > { %v1069_v44 = vld [vmem:[%s4454_s6 + $0x1580] sm:$0xff]  ;;  %1068 = vst [vmem:[%s4459_s7 + $0x558] sm:$0xff] %v1067_v43 }
  0xbe   : > { %v1071_v45 = vld [vmem:[%s4454_s6 + $0x15a0] sm:$0xff]  ;;  %1070 = vst [vmem:[%s4459_s7 + $0x560] sm:$0xff] %v1069_v44 }
  0xbf   : > { %1072 = vst [vmem:[%s4459_s7 + $0x568] sm:$0xff] %v1071_v45  ;;  %v1073_v46 = vld [vmem:[%s4454_s6 + $0x15c0] sm:$0xff] }
  0xc0   : > { %v1075_v47 = vld [vmem:[%s4454_s6 + $0x15e0] sm:$0xff]  ;;  %1074 = vst [vmem:[%s4459_s7 + $0x570] sm:$0xff] %v1073_v46 }
  0xc1   : > { %v1077_v48 = vld [vmem:[%s4454_s6 + $0x1600] sm:$0xff]  ;;  %1076 = vst [vmem:[%s4459_s7 + $0x578] sm:$0xff] %v1075_v47 }
  0xc2   : > { %1078 = vst [vmem:[%s4459_s7 + $0x580] sm:$0xff] %v1077_v48  ;;  %v1079_v49 = vld [vmem:[%s4454_s6 + $0x1620] sm:$0xff] }
  0xc3   : > { %v1081_v50 = vld [vmem:[%s4454_s6 + $0x1640] sm:$0xff]  ;;  %1080 = vst [vmem:[%s4459_s7 + $0x588] sm:$0xff] %v1079_v49 }
  0xc4   : > { %v1083_v51 = vld [vmem:[%s4454_s6 + $0x1660] sm:$0xff]  ;;  %1082 = vst [vmem:[%s4459_s7 + $0x590] sm:$0xff] %v1081_v50 }
  0xc5   : > { %1084 = vst [vmem:[%s4459_s7 + $0x598] sm:$0xff] %v1083_v51  ;;  %v1085_v52 = vld [vmem:[%s4454_s6 + $0x1680] sm:$0xff] }
  0xc6   : > { %v1087_v53 = vld [vmem:[%s4454_s6 + $0x16a0] sm:$0xff]  ;;  %1086 = vst [vmem:[%s4459_s7 + $0x5a0] sm:$0xff] %v1085_v52 }
  0xc7   : > { %v1089_v54 = vld [vmem:[%s4454_s6 + $0x16c0] sm:$0xff]  ;;  %1088 = vst [vmem:[%s4459_s7 + $0x5a8] sm:$0xff] %v1087_v53 }
  0xc8   : > { %1090 = vst [vmem:[%s4459_s7 + $0x5b0] sm:$0xff] %v1089_v54  ;;  %v1091_v55 = vld [vmem:[%s4454_s6 + $0x16e0] sm:$0xff] }
  0xc9   : > { %v1093_v56 = vld [vmem:[%s4454_s6 + $0x1700] sm:$0xff]  ;;  %1092 = vst [vmem:[%s4459_s7 + $0x5b8] sm:$0xff] %v1091_v55 }
  0xca   : > { %v1095_v57 = vld [vmem:[%s4454_s6 + $0x1720] sm:$0xff]  ;;  %1094 = vst [vmem:[%s4459_s7 + $0x5c0] sm:$0xff] %v1093_v56 }
  0xcb   : > { %1096 = vst [vmem:[%s4459_s7 + $0x5c8] sm:$0xff] %v1095_v57  ;;  %v1097_v58 = vld [vmem:[%s4454_s6 + $0x1740] sm:$0xff] }
  0xcc   : > { %v1099_v59 = vld [vmem:[%s4454_s6 + $0x1760] sm:$0xff]  ;;  %1098 = vst [vmem:[%s4459_s7 + $0x5d0] sm:$0xff] %v1097_v58 }
  0xcd   : > { %v1101_v60 = vld [vmem:[%s4454_s6 + $0x1780] sm:$0xff]  ;;  %1100 = vst [vmem:[%s4459_s7 + $0x5d8] sm:$0xff] %v1099_v59 }
  0xce   : > { %1102 = vst [vmem:[%s4459_s7 + $0x5e0] sm:$0xff] %v1101_v60  ;;  %v1103_v61 = vld [vmem:[%s4454_s6 + $0x17a0] sm:$0xff] }
  0xcf   : > { %v1105_v62 = vld [vmem:[%s4454_s6 + $0x17c0] sm:$0xff]  ;;  %1104 = vst [vmem:[%s4459_s7 + $0x5e8] sm:$0xff] %v1103_v61 }
  0xd0   : > { %v1107_v63 = vld [vmem:[%s4454_s6 + $0x17e0] sm:$0xff]  ;;  %1106 = vst [vmem:[%s4459_s7 + $0x5f0] sm:$0xff] %v1105_v62 }
  0xd1   : > { %1108 = vst [vmem:[%s4459_s7 + $0x5f8] sm:$0xff] %v1107_v63  ;;  %v1109_v0 = vld [vmem:[%s4454_s6 + $0x1800] sm:$0xff] }
  0xd2   : > { %v1111_v1 = vld [vmem:[%s4454_s6 + $0x1820] sm:$0xff]  ;;  %1110 = vst [vmem:[%s4459_s7 + $0x600] sm:$0xff] %v1109_v0 }
  0xd3   : > { %v1113_v2 = vld [vmem:[%s4454_s6 + $0x1840] sm:$0xff]  ;;  %1112 = vst [vmem:[%s4459_s7 + $0x608] sm:$0xff] %v1111_v1 }
  0xd4   : > { %1114 = vst [vmem:[%s4459_s7 + $0x610] sm:$0xff] %v1113_v2  ;;  %v1115_v3 = vld [vmem:[%s4454_s6 + $0x1860] sm:$0xff] }
  0xd5   : > { %v1117_v4 = vld [vmem:[%s4454_s6 + $0x1880] sm:$0xff]  ;;  %1116 = vst [vmem:[%s4459_s7 + $0x618] sm:$0xff] %v1115_v3 }
  0xd6   : > { %v1119_v5 = vld [vmem:[%s4454_s6 + $0x18a0] sm:$0xff]  ;;  %1118 = vst [vmem:[%s4459_s7 + $0x620] sm:$0xff] %v1117_v4 }
  0xd7   : > { %1120 = vst [vmem:[%s4459_s7 + $0x628] sm:$0xff] %v1119_v5  ;;  %v1121_v6 = vld [vmem:[%s4454_s6 + $0x18c0] sm:$0xff] }
  0xd8   : > { %v1123_v7 = vld [vmem:[%s4454_s6 + $0x18e0] sm:$0xff]  ;;  %1122 = vst [vmem:[%s4459_s7 + $0x630] sm:$0xff] %v1121_v6 }
  0xd9   : > { %v1125_v8 = vld [vmem:[%s4454_s6 + $0x1900] sm:$0xff]  ;;  %1124 = vst [vmem:[%s4459_s7 + $0x638] sm:$0xff] %v1123_v7 }
  0xda   : > { %1126 = vst [vmem:[%s4459_s7 + $0x640] sm:$0xff] %v1125_v8  ;;  %v1127_v9 = vld [vmem:[%s4454_s6 + $0x1920] sm:$0xff] }
  0xdb   : > { %v1129_v10 = vld [vmem:[%s4454_s6 + $0x1940] sm:$0xff]  ;;  %1128 = vst [vmem:[%s4459_s7 + $0x648] sm:$0xff] %v1127_v9 }
  0xdc   : > { %v1131_v11 = vld [vmem:[%s4454_s6 + $0x1960] sm:$0xff]  ;;  %1130 = vst [vmem:[%s4459_s7 + $0x650] sm:$0xff] %v1129_v10 }
  0xdd   : > { %1132 = vst [vmem:[%s4459_s7 + $0x658] sm:$0xff] %v1131_v11  ;;  %v1133_v12 = vld [vmem:[%s4454_s6 + $0x1980] sm:$0xff] }
  0xde   : > { %v1135_v13 = vld [vmem:[%s4454_s6 + $0x19a0] sm:$0xff]  ;;  %1134 = vst [vmem:[%s4459_s7 + $0x660] sm:$0xff] %v1133_v12 }
  0xdf   : > { %v1137_v14 = vld [vmem:[%s4454_s6 + $0x19c0] sm:$0xff]  ;;  %1136 = vst [vmem:[%s4459_s7 + $0x668] sm:$0xff] %v1135_v13 }
  0xe0   : > { %1138 = vst [vmem:[%s4459_s7 + $0x670] sm:$0xff] %v1137_v14  ;;  %v1139_v15 = vld [vmem:[%s4454_s6 + $0x19e0] sm:$0xff] }
  0xe1   : > { %v1141_v16 = vld [vmem:[%s4454_s6 + $0x1a00] sm:$0xff]  ;;  %1140 = vst [vmem:[%s4459_s7 + $0x678] sm:$0xff] %v1139_v15 }
  0xe2   : > { %v1143_v17 = vld [vmem:[%s4454_s6 + $0x1a20] sm:$0xff]  ;;  %1142 = vst [vmem:[%s4459_s7 + $0x680] sm:$0xff] %v1141_v16 }
  0xe3   : > { %1144 = vst [vmem:[%s4459_s7 + $0x688] sm:$0xff] %v1143_v17  ;;  %v1145_v18 = vld [vmem:[%s4454_s6 + $0x1a40] sm:$0xff] }
  0xe4   : > { %v1147_v19 = vld [vmem:[%s4454_s6 + $0x1a60] sm:$0xff]  ;;  %1146 = vst [vmem:[%s4459_s7 + $0x690] sm:$0xff] %v1145_v18 }
  0xe5   : > { %v1149_v20 = vld [vmem:[%s4454_s6 + $0x1a80] sm:$0xff]  ;;  %1148 = vst [vmem:[%s4459_s7 + $0x698] sm:$0xff] %v1147_v19 }
  0xe6   : > { %1150 = vst [vmem:[%s4459_s7 + $0x6a0] sm:$0xff] %v1149_v20  ;;  %v1151_v21 = vld [vmem:[%s4454_s6 + $0x1aa0] sm:$0xff] }
  0xe7   : > { %v1153_v22 = vld [vmem:[%s4454_s6 + $0x1ac0] sm:$0xff]  ;;  %1152 = vst [vmem:[%s4459_s7 + $0x6a8] sm:$0xff] %v1151_v21 }
  0xe8   : > { %v1155_v23 = vld [vmem:[%s4454_s6 + $0x1ae0] sm:$0xff]  ;;  %1154 = vst [vmem:[%s4459_s7 + $0x6b0] sm:$0xff] %v1153_v22 }
  0xe9   : > { %1156 = vst [vmem:[%s4459_s7 + $0x6b8] sm:$0xff] %v1155_v23  ;;  %v1157_v24 = vld [vmem:[%s4454_s6 + $0x1b00] sm:$0xff] }
  0xea   : > { %v1159_v25 = vld [vmem:[%s4454_s6 + $0x1b20] sm:$0xff]  ;;  %1158 = vst [vmem:[%s4459_s7 + $0x6c0] sm:$0xff] %v1157_v24 }
  0xeb   : > { %v1161_v26 = vld [vmem:[%s4454_s6 + $0x1b40] sm:$0xff]  ;;  %1160 = vst [vmem:[%s4459_s7 + $0x6c8] sm:$0xff] %v1159_v25 }
  0xec   : > { %1162 = vst [vmem:[%s4459_s7 + $0x6d0] sm:$0xff] %v1161_v26  ;;  %v1163_v27 = vld [vmem:[%s4454_s6 + $0x1b60] sm:$0xff] }
  0xed   : > { %v1165_v28 = vld [vmem:[%s4454_s6 + $0x1b80] sm:$0xff]  ;;  %1164 = vst [vmem:[%s4459_s7 + $0x6d8] sm:$0xff] %v1163_v27 }
  0xee   : > { %v1167_v29 = vld [vmem:[%s4454_s6 + $0x1ba0] sm:$0xff]  ;;  %1166 = vst [vmem:[%s4459_s7 + $0x6e0] sm:$0xff] %v1165_v28 }
  0xef   : > { %1168 = vst [vmem:[%s4459_s7 + $0x6e8] sm:$0xff] %v1167_v29  ;;  %v1169_v30 = vld [vmem:[%s4454_s6 + $0x1bc0] sm:$0xff] }
  0xf0   : > { %v1171_v31 = vld [vmem:[%s4454_s6 + $0x1be0] sm:$0xff]  ;;  %1170 = vst [vmem:[%s4459_s7 + $0x6f0] sm:$0xff] %v1169_v30 }
  0xf1   : > { %v1173_v32 = vld [vmem:[%s4454_s6 + $0x1c00] sm:$0xff]  ;;  %1172 = vst [vmem:[%s4459_s7 + $0x6f8] sm:$0xff] %v1171_v31 }
  0xf2   : > { %1174 = vst [vmem:[%s4459_s7 + $0x700] sm:$0xff] %v1173_v32  ;;  %v1175_v33 = vld [vmem:[%s4454_s6 + $0x1c20] sm:$0xff] }
  0xf3   : > { %v1177_v34 = vld [vmem:[%s4454_s6 + $0x1c40] sm:$0xff]  ;;  %1176 = vst [vmem:[%s4459_s7 + $0x708] sm:$0xff] %v1175_v33 }
  0xf4   : > { %v1179_v35 = vld [vmem:[%s4454_s6 + $0x1c60] sm:$0xff]  ;;  %1178 = vst [vmem:[%s4459_s7 + $0x710] sm:$0xff] %v1177_v34 }
  0xf5   : > { %1180 = vst [vmem:[%s4459_s7 + $0x718] sm:$0xff] %v1179_v35  ;;  %v1181_v36 = vld [vmem:[%s4454_s6 + $0x1c80] sm:$0xff] }
  0xf6   : > { %v1183_v37 = vld [vmem:[%s4454_s6 + $0x1ca0] sm:$0xff]  ;;  %1182 = vst [vmem:[%s4459_s7 + $0x720] sm:$0xff] %v1181_v36 }
  0xf7   : > { %v1185_v38 = vld [vmem:[%s4454_s6 + $0x1cc0] sm:$0xff]  ;;  %1184 = vst [vmem:[%s4459_s7 + $0x728] sm:$0xff] %v1183_v37 }
  0xf8   : > { %1186 = vst [vmem:[%s4459_s7 + $0x730] sm:$0xff] %v1185_v38  ;;  %v1187_v39 = vld [vmem:[%s4454_s6 + $0x1ce0] sm:$0xff] }
  0xf9   : > { %v1189_v40 = vld [vmem:[%s4454_s6 + $0x1d00] sm:$0xff]  ;;  %1188 = vst [vmem:[%s4459_s7 + $0x738] sm:$0xff] %v1187_v39 }
  0xfa   : > { %v1191_v41 = vld [vmem:[%s4454_s6 + $0x1d20] sm:$0xff]  ;;  %1190 = vst [vmem:[%s4459_s7 + $0x740] sm:$0xff] %v1189_v40 }
  0xfb   : > { %1192 = vst [vmem:[%s4459_s7 + $0x748] sm:$0xff] %v1191_v41  ;;  %v1193_v42 = vld [vmem:[%s4454_s6 + $0x1d40] sm:$0xff] }
  0xfc   : > { %v1195_v43 = vld [vmem:[%s4454_s6 + $0x1d60] sm:$0xff]  ;;  %1194 = vst [vmem:[%s4459_s7 + $0x750] sm:$0xff] %v1193_v42 }
  0xfd   : > { %v1197_v44 = vld [vmem:[%s4454_s6 + $0x1d80] sm:$0xff]  ;;  %1196 = vst [vmem:[%s4459_s7 + $0x758] sm:$0xff] %v1195_v43 }
  0xfe   : > { %1198 = vst [vmem:[%s4459_s7 + $0x760] sm:$0xff] %v1197_v44  ;;  %v1199_v45 = vld [vmem:[%s4454_s6 + $0x1da0] sm:$0xff] }
  0xff   : > { %v1201_v46 = vld [vmem:[%s4454_s6 + $0x1dc0] sm:$0xff]  ;;  %1200 = vst [vmem:[%s4459_s7 + $0x768] sm:$0xff] %v1199_v45 }
 0x100   : > { %v1203_v47 = vld [vmem:[%s4454_s6 + $0x1de0] sm:$0xff]  ;;  %1202 = vst [vmem:[%s4459_s7 + $0x770] sm:$0xff] %v1201_v46 }
 0x101   : > { %1204 = vst [vmem:[%s4459_s7 + $0x778] sm:$0xff] %v1203_v47  ;;  %v1205_v48 = vld [vmem:[%s4454_s6 + $0x1e00] sm:$0xff] }
 0x102   : > { %v1207_v49 = vld [vmem:[%s4454_s6 + $0x1e20] sm:$0xff]  ;;  %1206 = vst [vmem:[%s4459_s7 + $0x780] sm:$0xff] %v1205_v48 }
 0x103   : > { %v1209_v50 = vld [vmem:[%s4454_s6 + $0x1e40] sm:$0xff]  ;;  %1208 = vst [vmem:[%s4459_s7 + $0x788] sm:$0xff] %v1207_v49 }
 0x104   : > { %1210 = vst [vmem:[%s4459_s7 + $0x790] sm:$0xff] %v1209_v50  ;;  %v1211_v51 = vld [vmem:[%s4454_s6 + $0x1e60] sm:$0xff] }
 0x105   : > { %v1213_v52 = vld [vmem:[%s4454_s6 + $0x1e80] sm:$0xff]  ;;  %1212 = vst [vmem:[%s4459_s7 + $0x798] sm:$0xff] %v1211_v51 }
 0x106   : > { %v1215_v53 = vld [vmem:[%s4454_s6 + $0x1ea0] sm:$0xff]  ;;  %1214 = vst [vmem:[%s4459_s7 + $0x7a0] sm:$0xff] %v1213_v52 }
 0x107   : > { %1216 = vst [vmem:[%s4459_s7 + $0x7a8] sm:$0xff] %v1215_v53  ;;  %v1217_v54 = vld [vmem:[%s4454_s6 + $0x1ec0] sm:$0xff] }
 0x108   : > { %v1219_v55 = vld [vmem:[%s4454_s6 + $0x1ee0] sm:$0xff]  ;;  %1218 = vst [vmem:[%s4459_s7 + $0x7b0] sm:$0xff] %v1217_v54 }
 0x109   : > { %v1221_v56 = vld [vmem:[%s4454_s6 + $0x1f00] sm:$0xff]  ;;  %1220 = vst [vmem:[%s4459_s7 + $0x7b8] sm:$0xff] %v1219_v55 }
 0x10a   : > { %1222 = vst [vmem:[%s4459_s7 + $0x7c0] sm:$0xff] %v1221_v56  ;;  %v1223_v57 = vld [vmem:[%s4454_s6 + $0x1f20] sm:$0xff] }
 0x10b   : > { %v1225_v58 = vld [vmem:[%s4454_s6 + $0x1f40] sm:$0xff]  ;;  %1224 = vst [vmem:[%s4459_s7 + $0x7c8] sm:$0xff] %v1223_v57 }
 0x10c   : > { %v1227_v59 = vld [vmem:[%s4454_s6 + $0x1f60] sm:$0xff]  ;;  %1226 = vst [vmem:[%s4459_s7 + $0x7d0] sm:$0xff] %v1225_v58 }
 0x10d   : > { %1228 = vst [vmem:[%s4459_s7 + $0x7d8] sm:$0xff] %v1227_v59  ;;  %v1229_v60 = vld [vmem:[%s4454_s6 + $0x1f80] sm:$0xff] }
 0x10e   : > { %v1231_v61 = vld [vmem:[%s4454_s6 + $0x1fa0] sm:$0xff]  ;;  %1230 = vst [vmem:[%s4459_s7 + $0x7e0] sm:$0xff] %v1229_v60 }
 0x10f   : > { %v1233_v62 = vld [vmem:[%s4454_s6 + $0x1fc0] sm:$0xff]  ;;  %1232 = vst [vmem:[%s4459_s7 + $0x7e8] sm:$0xff] %v1231_v61 }
 0x110   : > { %1234 = vst [vmem:[%s4459_s7 + $0x7f0] sm:$0xff] %v1233_v62  ;;  %v1235_v63 = vld [vmem:[%s4454_s6 + $0x1fe0] sm:$0xff] }
 0x111   : > { %1236 = vst [vmem:[%s4459_s7 + $0x7f8] sm:$0xff] %v1235_v63 }
 0x112 PF: > { %p3562_p5 = scmp.ge.s32.totalorder %s4384_s20, 1  ;;  %p1258_p6 = scmp.lt.s32.totalorder %s4384_s20, 5 }
 0x114   : > { %p1259_p7 = pnand %p3562_p5, %p1258_p6 }
 0x115   : > { %s1265_s8 = sand.u32 (!%p1259_p7), 1, %s4376_s18   ;;  %s3564_s9 = sshll.u32 (!%p1259_p7), %s4434_s21, 1 }
 0x116   : > { %1262 = sbr.rel (%p1259_p7) target bundleno = 1005 (0x3ed), region = 74  ;;  %s3563_s10 = sshll.u32 (!%p1259_p7), %s1265_s8, 11 }
 0x117   : > { %p1298_p8 = scmp.lt.s32.totalorder (!%p1259_p7), %s3564_s9, 7  ;;  %s3565_s11 = sshll.u32 (!%p1259_p7), %s4434_s21, 5 }
 0x118   : > { %p1303_p9 = scmp.lt.s32.totalorder (!%p1259_p7), %s3565_s11, 127  ;;  %s4986_s18 = scalar_lea.vmem (!%p1259_p7), [#allocation2], %s3563_s10 }
 0x119   : > { %p3567_p10 = scmp.ne.s32.totalorder (!%p1259_p7), %s4434_s21, 0 }
 0x11d   : > { %s5391_s9 = smov (!%p1298_p8, %s3564_s9), 7  ;;  %s5393_s11 = smov (!%p1303_p9, %s3565_s11), 127 }
 0x11e   : > { %s1300_s14 = scalar_lea.vmem %s5383_s2, %s5391_s9  ;;  %s3566_s15 = sshll.u32 %s5393_s11, 2  ;;  %v3568_v0 = vld [vmem:[%s5385_s4] ss:$0 sm:$0xff] (!%p3567_p10)  ;;  %vm1321_vm0 = vcmask (!%p3567_p10), 812032  }
 0x11f   : > { %s4984_s20 = scalar_lea.vmem %s5384_s3, %s3566_s15  ;;  %1312 = sbr.rel (%p3567_p10) target bundleno = 294 (0x126), region = 82  ;;  %1322 = vst.msk [vmem:[#allocation3] sm:$0x3] (!%p3567_p10), %vm1321_vm0, %v3568_v0 }
 0x126 PF: > { %v3928_v1 = vld [vmem:[%s4986_s18 + $0x4] ss:$8 sps:$4 sm:$0xff]   ;;  %v3932_v3 = vld [vmem:[%s4986_s18] ss:$8 sps:$4 sm:$0xff]   ;;  %v3934_v5 = vld [vmem:[%s4986_s18 + $0x14] ss:$8 sps:$4 sm:$0xff]   ;;  %v1335_v39 = vlaneseq }
 0x127   : > { %v3930_v2 = vld [vmem:[%s4986_s18 + $0x404] ss:$8 sps:$4 sm:$0xff]   ;;  %2979 = vmatprep.subr.bf16.mxu1 %v3928_v1  ;;  %v3933_v4 = vld [vmem:[%s4986_s18 + $0x400] ss:$8 sps:$4 sm:$0xff]   ;;  %v3936_v6 = vld [vmem:[%s4986_s18 + $0x414] ss:$8 sps:$4 sm:$0xff]  }
 0x128   : > { %3143 = vmatprep.subr.bf16.mxu0 %v3930_v2  ;;  %2980 = vmatpush1.bf16.msra.mxu1 %v3932_v3  ;;  %v3938_v7 = vld [vmem:[%s4986_s18 + $0x10] ss:$8 sps:$4 sm:$0xff]   ;;  %v3940_v9 = vld [vmem:[%s4986_s18 + $0x24] ss:$8 sps:$4 sm:$0xff]   ;;  %v3944_v11 = vld [vmem:[%s4986_s18 + $0x20] ss:$8 sps:$4 sm:$0xff]  }
 0x129   : > { %3144 = vmatpush1.bf16.msra.mxu0 %v3933_v4  ;;  %2981 = vmatprep.subr.bf16.mxu1 %v3934_v5  ;;  %v3939_v8 = vld [vmem:[%s4986_s18 + $0x410] ss:$8 sps:$4 sm:$0xff]   ;;  %v3942_v10 = vld [vmem:[%s4986_s18 + $0x424] ss:$8 sps:$4 sm:$0xff]   ;;  %v3945_v12 = vld [vmem:[%s4986_s18 + $0x420] ss:$8 sps:$4 sm:$0xff]  }
 0x12a   : > { %3145 = vmatprep.subr.bf16.mxu0 %v3936_v6  ;;  %v3946_v13 = vld [vmem:[%s4986_s18 + $0x34] ss:$8 sps:$4 sm:$0xff]   ;;  %v3950_v15 = vld [vmem:[%s4986_s18 + $0x30] ss:$8 sps:$4 sm:$0xff]   ;;  %v3952_v17 = vld [vmem:[%s4986_s18 + $0x44] ss:$8 sps:$4 sm:$0xff]  }
 0x12b   : > { %v3948_v14 = vld [vmem:[%s4986_s18 + $0x434] ss:$8 sps:$4 sm:$0xff]   ;;  %v3951_v16 = vld [vmem:[%s4986_s18 + $0x430] ss:$8 sps:$4 sm:$0xff]   ;;  %v3954_v18 = vld [vmem:[%s4986_s18 + $0x444] ss:$8 sps:$4 sm:$0xff]  }
 0x12c   : > { %2982 = vmatpush1.bf16.msra.mxu1 %v3938_v7  ;;  %v3956_v19 = vld [vmem:[%s4986_s18 + $0x40] ss:$8 sps:$4 sm:$0xff]   ;;  %v3958_v21 = vld [vmem:[%s4986_s18 + $0x54] ss:$8 sps:$4 sm:$0xff]   ;;  %v3962_v23 = vld [vmem:[%s4986_s18 + $0x50] ss:$8 sps:$4 sm:$0xff]  }
 0x12d   : > { %3146 = vmatpush1.bf16.msra.mxu0 %v3939_v8  ;;  %2983 = vmatprep.subr.bf16.mxu1 %v3940_v9  ;;  %v3957_v20 = vld [vmem:[%s4986_s18 + $0x440] ss:$8 sps:$4 sm:$0xff]   ;;  %v3960_v22 = vld [vmem:[%s4986_s18 + $0x454] ss:$8 sps:$4 sm:$0xff]   ;;  %v3963_v24 = vld [vmem:[%s4986_s18 + $0x450] ss:$8 sps:$4 sm:$0xff]  }
 0x12e   : > { %3147 = vmatprep.subr.bf16.mxu0 %v3942_v10  ;;  %v3964_v25 = vld [vmem:[%s4986_s18 + $0x64] ss:$8 sps:$4 sm:$0xff]   ;;  %v3968_v27 = vld [vmem:[%s4986_s18 + $0x60] ss:$8 sps:$4 sm:$0xff]   ;;  %v3970_v29 = vld [vmem:[%s4986_s18 + $0x74] ss:$8 sps:$4 sm:$0xff]  }
 0x12f   : > { %v3966_v26 = vld [vmem:[%s4986_s18 + $0x464] ss:$8 sps:$4 sm:$0xff]   ;;  %v3969_v28 = vld [vmem:[%s4986_s18 + $0x460] ss:$8 sps:$4 sm:$0xff]   ;;  %v3972_v30 = vld [vmem:[%s4986_s18 + $0x474] ss:$8 sps:$4 sm:$0xff]  }
 0x130   : > { %2984 = vmatpush1.bf16.msra.mxu1 %v3944_v11  ;;  %v3974_v31 = vld [vmem:[%s4986_s18 + $0x70] ss:$8 sps:$4 sm:$0xff]   ;;  %v3976_v33 = vld [vmem:[%s4986_s18 + $0x84] ss:$8 sps:$4 sm:$0xff]   ;;  %v3980_v35 = vld [vmem:[%s4986_s18 + $0x80] ss:$8 sps:$4 sm:$0xff]  }
 0x131   : > { %3148 = vmatpush1.bf16.msra.mxu0 %v3945_v12  ;;  %2985 = vmatprep.subr.bf16.mxu1 %v3946_v13  ;;  %v3975_v32 = vld [vmem:[%s4986_s18 + $0x470] ss:$8 sps:$4 sm:$0xff]   ;;  %v3978_v34 = vld [vmem:[%s4986_s18 + $0x484] ss:$8 sps:$4 sm:$0xff]   ;;  %v3981_v36 = vld [vmem:[%s4986_s18 + $0x480] ss:$8 sps:$4 sm:$0xff]  }
 0x132   : > { %3149 = vmatprep.subr.bf16.mxu0 %v3948_v14  ;;  %v4386_v37 = vmov 1983009808   ;;  %v3982_v40 = vld [vmem:[%s4986_s18 + $0x94] ss:$8 sps:$4 sm:$0xff]   ;;  %v3986_v42 = vld [vmem:[%s4986_s18 + $0x90] ss:$8 sps:$4 sm:$0xff]  }
 0x133   : > { %v1333_v38 = vunpack.c.l.s4 %v4386_v37  ;;  %v3984_v41 = vld [vmem:[%s4986_s18 + $0x494] ss:$8 sps:$4 sm:$0xff]   ;;  %v5031_v44 = vshrl.u32 %v1335_v39, 7  ;;  %v3987_v45 = vld [vmem:[%s4986_s18 + $0x490] ss:$8 sps:$4 sm:$0xff]   ;;  %v1323_v53 = vld [vmem:[%s5381_s0] sm:$0xff] }
 0x134   : > { %2986 = vmatpush1.bf16.msra.mxu1 %v3950_v15  ;;  %v3988_v46 = vld [vmem:[%s4986_s18 + $0xa4] ss:$8 sps:$4 sm:$0xff]   ;;  %v3992_v48 = vld [vmem:[%s4986_s18 + $0xa0] ss:$8 sps:$4 sm:$0xff]   ;;  %v3994_v51 = vld [vmem:[%s4986_s18 + $0xb4] ss:$8 sps:$4 sm:$0xff]   ;;  %v1331_v9 = vcombine.high %v1323_v53, %v1323_v53 }
 0x135   : > { %3150 = vmatpush1.bf16.msra.mxu0 %v3951_v16  ;;  %2987 = vmatprep.subr.bf16.mxu1 %v3952_v17  ;;  %v1334_v43 = vunpack.c.0.s8 %v1333_v38  ;;  %v3990_v47 = vld [vmem:[%s4986_s18 + $0x4a4] ss:$8 sps:$4 sm:$0xff]   ;;  %v3993_v49 = vld [vmem:[%s4986_s18 + $0x4a0] ss:$8 sps:$4 sm:$0xff]   ;;  %v3996_v52 = vld [vmem:[%s4986_s18 + $0x4b4] ss:$8 sps:$4 sm:$0xff]  }
 0x136   : > { %3151 = vmatprep.subr.bf16.mxu0 %v3954_v18  ;;  %v3998_v54 = vld [vmem:[%s4986_s18 + $0xb0] ss:$8 sps:$4 sm:$0xff]   ;;  %v4000_v58 = vld [vmem:[%s4986_s18 + $0xc4] ss:$8 sps:$4 sm:$0xff]   ;;  %v4004_v0 = vld [vmem:[%s4986_s18 + $0xc0] ss:$8 sps:$4 sm:$0xff]  }
 0x137   : > { %v5039_v50 = vsub.s32 %v1334_v43, %v5031_v44  ;;  %v3999_v56 = vld [vmem:[%s4986_s18 + $0x4b0] ss:$8 sps:$4 sm:$0xff]   ;;  %v4002_v59 = vld [vmem:[%s4986_s18 + $0x4c4] ss:$8 sps:$4 sm:$0xff]   ;;  %v4005_v1 = vld [vmem:[%s4986_s18 + $0x4c0] ss:$8 sps:$4 sm:$0xff]  }
 0x138   : > { %2988 = vmatpush1.bf16.msra.mxu1 %v3956_v19  ;;  %v1325_v57 = vld [vmem:[%s5381_s0 + $0x10] sm:$0xff]  ;;  %v4012_v7 = vld [vmem:[%s4986_s18 + $0xe4] ss:$8 sps:$4 sm:$0xff]   ;;  %v4016_v11 = vld [vmem:[%s4986_s18 + $0xe0] ss:$8 sps:$4 sm:$0xff]   ;;  %s4387_s9 = smov [#allocation3]  }
 0x139   : > { %3152 = vmatpush1.bf16.msra.mxu0 %v3957_v20  ;;  %2989 = vmatprep.subr.bf16.mxu1 %v3958_v21  ;;  %v5048_v55 = vrot.slane %v1323_v53, %v5039_v50  ;;  %v1372_v61 = vrot.slane %v1325_v57, %v5039_v50  ;;  %v4006_v2 = vld [vmem:[%s4986_s18 + $0xd4] ss:$8 sps:$4 sm:$0xff]   ;;  %v4010_v5 = vld [vmem:[%s4986_s18 + $0xd0] ss:$8 sps:$4 sm:$0xff]   ;;  %v4014_v8 = vld [vmem:[%s4986_s18 + $0x4e4] ss:$8 sps:$4 sm:$0xff]   ;;  %v1365_v10 = vcombine.high %v1325_v57, %v1325_v57 }
 0x13a   : > { %3153 = vmatprep.subr.bf16.mxu0 %v3960_v22  ;;  %v4008_v3 = vld [vmem:[%s4986_s18 + $0x4d4] ss:$8 sps:$4 sm:$0xff]   ;;  %v4011_v6 = vld [vmem:[%s4986_s18 + $0x4d0] ss:$8 sps:$4 sm:$0xff]   ;;  %v4017_v12 = vld [vmem:[%s4986_s18 + $0x4e0] ss:$8 sps:$4 sm:$0xff]   ;;  %v5072_v15 = vrot.slane %v1331_v9, %v5039_v50 }
 0x13b   : > { %v1346_v60 = vcombine.high %v5048_v55, %v5048_v55  ;;  %v1380_v63 = vcombine.high %v1372_v61, %v1372_v61  ;;  %v4018_v13 = vld [vmem:[%s4986_s18 + $0xf4] ss:$8 sps:$4 sm:$0xff]   ;;  %v5075_v16 = vrot.slane %v1365_v10, %v5039_v50  ;;  %v4022_v17 = vld [vmem:[%s4986_s18 + $0xf0] ss:$8 sps:$4 sm:$0xff]   ;;  %v4027_v19 = vld [vmem:[%s4986_s18 + $0x104] ss:$8 sps:$4 sm:$0xff]  }
 0x13c   : > { %2990 = vmatpush1.bf16.msra.mxu1 %v3962_v23  ;;  %v4020_v14 = vld [vmem:[%s4986_s18 + $0x4f4] ss:$8 sps:$4 sm:$0xff]   ;;  %v4023_v18 = vld [vmem:[%s4986_s18 + $0x4f0] ss:$8 sps:$4 sm:$0xff]   ;;  %v4031_v20 = vld [vmem:[%s4986_s18 + $0x504] ss:$8 sps:$4 sm:$0xff]   ;;  %v1347_v21 = vcombine.high %v5072_v15, %v5072_v15  ;;  %v1415_v23 = vpack.c.bf16 %v5048_v55, %v5048_v55 }
 0x13d   : > { %3154 = vmatpush1.bf16.msra.mxu0 %v3963_v24  ;;  %2991 = vmatprep.subr.bf16.mxu1 %v3964_v25  ;;  %v1416_v62 = vpack.c.bf16 %v1346_v60, %v1346_v60  ;;  %v1424_v4 = vpack.c.bf16 %v1380_v63, %v1380_v63  ;;  %v1381_v22 = vcombine.high %v5075_v16, %v5075_v16  ;;  %v4025_v25 = vld [vmem:[%s4986_s18 + $0x100] ss:$8 sps:$4 sm:$0xff]   ;;  %v4046_v37 = vld [vmem:[%s4986_s18 + $0x134] ss:$8 sps:$4 sm:$0xff]   ;;  %v4044_v39 = vld [vmem:[%s4986_s18 + $0x130] ss:$8 sps:$4 sm:$0xff]  }
 0x13e   : > { %3155 = vmatprep.subr.bf16.mxu0 %v3966_v26  ;;  %v1423_v24 = vpack.c.bf16 %v1372_v61, %v1372_v61  ;;  %v4029_v26 = vld [vmem:[%s4986_s18 + $0x500] ss:$8 sps:$4 sm:$0xff]   ;;  %v4049_v38 = vld [vmem:[%s4986_s18 + $0x534] ss:$8 sps:$4 sm:$0xff]   ;;  %v4068_v57 = vld [vmem:[%s4986_s18 + $0x170] ss:$8 sps:$4 sm:$0xff]  }
 0x13f   : > { %3011 = vmatprep.mubr.bf16.mxu1 %v1416_v62  ;;  %3175 = vmatprep.mubr.bf16.mxu0 %v1424_v4  ;;  %v4050_v43 = vld [vmem:[%s4986_s18 + $0x140] ss:$8 sps:$4 sm:$0xff]   ;;  %v4070_v55 = vld [vmem:[%s4986_s18 + $0x174] ss:$8 sps:$4 sm:$0xff]   ;;  %v4079_v60 = vld [vmem:[%s4986_s18 + $0x584] ss:$8 sps:$4 sm:$0xff]  }
 0x140   : > { %2992 = vmatpush1.bf16.msra.mxu1 %v3968_v27  ;;  %v4034_v27 = vld [vmem:[%s4986_s18 + $0x114] ss:$8 sps:$4 sm:$0xff]   ;;  %v4062_v53 = vld [vmem:[%s4986_s18 + $0x160] ss:$8 sps:$4 sm:$0xff]   ;;  %v4091_v4 = vld [vmem:[%s4986_s18 + $0x5a4] ss:$8 sps:$4 sm:$0xff]  }
 0x141   : > { %3156 = vmatpush1.bf16.msra.mxu0 %v3969_v28  ;;  %2993 = vmatprep.subr.bf16.mxu1 %v3970_v29  ;;  %v4037_v28 = vld [vmem:[%s4986_s18 + $0x514] ss:$8 sps:$4 sm:$0xff]   ;;  %v1418_v29 = vpack.c.bf16 %v1347_v21, %v1347_v21  ;;  %v4074_v61 = vld [vmem:[%s4986_s18 + $0x180] ss:$8 sps:$4 sm:$0xff]   ;;  %v4092_v9 = vld [vmem:[%s4986_s18 + $0x1b0] ss:$8 sps:$4 sm:$0xff]  }
 0x142   : > { %3157 = vmatprep.subr.bf16.mxu0 %v3972_v30  ;;  %v1426_v30 = vpack.c.bf16 %v1381_v22, %v1381_v22  ;;  %v4077_v62 = vld [vmem:[%s4986_s18 + $0x580] ss:$8 sps:$4 sm:$0xff]   ;;  %v4082_v63 = vld [vmem:[%s4986_s18 + $0x194] ss:$8 sps:$4 sm:$0xff]   ;;  %v4095_v10 = vld [vmem:[%s4986_s18 + $0x5b0] ss:$8 sps:$4 sm:$0xff]  }
 0x143   : > { %v4112_v21 = vld [vmem:[%s4986_s18 + $0x1e4] ss:$8 sps:$4 sm:$0xff]   ;;  %s3490_s12 = sshll.u32 %s4387_s9, 4  ;;  %vm3481_vm1 = vcmask 812032   ;;  %p3900_p11 = scmp.eq.s32.totalorder %s4434_s21, 3  ;;  %s3491_s12 = int_to_ptr.vmem [resolvable:$true] %s3490_s12 }
 0x144   : > { %2994 = vmatpush1.bf16.msra.mxu1 %v3974_v31  ;;  %v4032_v31 = vld [vmem:[%s4986_s18 + $0x110] ss:$8 sps:$4 sm:$0xff]   ;;  %v4115_v22 = vld [vmem:[%s4986_s18 + $0x5e4] ss:$8 sps:$4 sm:$0xff]   ;;  %s4332_s13 = scalar_lea.vmem %s3491_s12, 32  ;;  %p4339_p1 = scmp.lt.s32.totalorder %s3491_s12, %s3491_s12 }
 0x145   : > { %3158 = vmatpush1.bf16.msra.mxu0 %v3975_v32  ;;  %2995 = vmatprep.subr.bf16.mxu1 %v3976_v33  ;;  %v4035_v32 = vld [vmem:[%s4986_s18 + $0x510] ss:$8 sps:$4 sm:$0xff]   ;;  %v4040_v33 = vld [vmem:[%s4986_s18 + $0x124] ss:$8 sps:$4 sm:$0xff]   ;;  %p4333_p12 = scmp.ne.s32.totalorder %s3491_s12, %s4332_s13  ;;  %p4340_p2 = scmp.lt.s32.totalorder %s4332_s13, %s4332_s13 }
 0x146   : > { %3159 = vmatprep.subr.bf16.mxu0 %v3978_v34  ;;  %v4043_v34 = vld [vmem:[%s4986_s18 + $0x524] ss:$8 sps:$4 sm:$0xff]  }
 0x147   : > { %p4334_p13 = pnand %p4333_p12, %p3900_p11  ;;  %p4341_p3 = por %p4340_p2, %p4339_p1 }
 0x148   : > { %2996 = vmatpush1.bf16.msra.mxu1 %v3980_v35  ;;  %v4038_v35 = vld [vmem:[%s4986_s18 + $0x120] ss:$8 sps:$4 sm:$0xff]  }
 0x149   : > { %3160 = vmatpush1.bf16.msra.mxu0 %v3981_v36  ;;  %2997 = vmatprep.subr.bf16.mxu1 %v3982_v40  ;;  %v4041_v36 = vld [vmem:[%s4986_s18 + $0x520] ss:$8 sps:$4 sm:$0xff]   ;;  %v4047_v40 = vld [vmem:[%s4986_s18 + $0x530] ss:$8 sps:$4 sm:$0xff]   ;;  %p4335_p0 = pneg %p4334_p13 }
 0x14a   : > { %3161 = vmatprep.subr.bf16.mxu0 %v3984_v41  ;;  %v4052_v41 = vld [vmem:[%s4986_s18 + $0x144] ss:$8 sps:$4 sm:$0xff]  }
 0x14b   : > { %p4342_p4 = pnand %p4341_p3, %p4335_p0 }
 0x14c   : > { %2998 = vmatpush1.bf16.msra.mxu1 %v3986_v42  ;;  %v4055_v42 = vld [vmem:[%s4986_s18 + $0x544] ss:$8 sps:$4 sm:$0xff]  }
 0x14d   : > { %3162 = vmatpush1.bf16.msra.mxu0 %v3987_v45  ;;  %2999 = vmatprep.subr.bf16.mxu1 %v3988_v46  ;;  %v4053_v45 = vld [vmem:[%s4986_s18 + $0x540] ss:$8 sps:$4 sm:$0xff]   ;;  %v4058_v46 = vld [vmem:[%s4986_s18 + $0x154] ss:$8 sps:$4 sm:$0xff]  }
 0x14e   : > { %3163 = vmatprep.subr.bf16.mxu0 %v3990_v47  ;;  %v4061_v47 = vld [vmem:[%s4986_s18 + $0x554] ss:$8 sps:$4 sm:$0xff]  }
 0x150   : > { %3000 = vmatpush1.bf16.msra.mxu1 %v3992_v48  ;;  %v4056_v48 = vld [vmem:[%s4986_s18 + $0x150] ss:$8 sps:$4 sm:$0xff]  }
 0x151   : > { %3164 = vmatpush1.bf16.msra.mxu0 %v3993_v49  ;;  %3001 = vmatprep.subr.bf16.mxu1 %v3994_v51  ;;  %v4059_v49 = vld [vmem:[%s4986_s18 + $0x550] ss:$8 sps:$4 sm:$0xff]   ;;  %v4064_v51 = vld [vmem:[%s4986_s18 + $0x164] ss:$8 sps:$4 sm:$0xff]  }
 0x152   : > { %3165 = vmatprep.subr.bf16.mxu0 %v3996_v52  ;;  %v4067_v52 = vld [vmem:[%s4986_s18 + $0x564] ss:$8 sps:$4 sm:$0xff]  }
 0x154   : > { %3002 = vmatpush1.bf16.msra.mxu1 %v3998_v54  ;;  %v4065_v54 = vld [vmem:[%s4986_s18 + $0x560] ss:$8 sps:$4 sm:$0xff]  }
 0x155   : > { %3166 = vmatpush1.bf16.msra.mxu0 %v3999_v56  ;;  %3003 = vmatprep.subr.bf16.mxu1 %v4000_v58  ;;  %v4073_v56 = vld [vmem:[%s4986_s18 + $0x574] ss:$8 sps:$4 sm:$0xff]   ;;  %v4071_v58 = vld [vmem:[%s4986_s18 + $0x570] ss:$8 sps:$4 sm:$0xff]  }
 0x156   : > { %3167 = vmatprep.subr.bf16.mxu0 %v4002_v59  ;;  %v4076_v59 = vld [vmem:[%s4986_s18 + $0x184] ss:$8 sps:$4 sm:$0xff]  }
 0x158   : > { %3004 = vmatpush1.bf16.msra.mxu1 %v4004_v0  ;;  %v4085_v0 = vld [vmem:[%s4986_s18 + $0x594] ss:$8 sps:$4 sm:$0xff]  }
 0x159   : > { %3168 = vmatpush1.bf16.msra.mxu0 %v4005_v1  ;;  %3005 = vmatprep.subr.bf16.mxu1 %v4006_v2  ;;  %v4080_v1 = vld [vmem:[%s4986_s18 + $0x190] ss:$8 sps:$4 sm:$0xff]  }
 0x15a   : > { %3169 = vmatprep.subr.bf16.mxu0 %v4008_v3  ;;  %v4083_v2 = vld [vmem:[%s4986_s18 + $0x590] ss:$8 sps:$4 sm:$0xff]   ;;  %v4088_v3 = vld [vmem:[%s4986_s18 + $0x1a4] ss:$8 sps:$4 sm:$0xff]  }
 0x15c   : > { %3006 = vmatpush1.bf16.msra.mxu1 %v4010_v5  ;;  %v4086_v5 = vld [vmem:[%s4986_s18 + $0x1a0] ss:$8 sps:$4 sm:$0xff]  }
 0x15d   : > { %3170 = vmatpush1.bf16.msra.mxu0 %v4011_v6  ;;  %3007 = vmatprep.subr.bf16.mxu1 %v4012_v7  ;;  %v4089_v6 = vld [vmem:[%s4986_s18 + $0x5a0] ss:$8 sps:$4 sm:$0xff]   ;;  %v4094_v7 = vld [vmem:[%s4986_s18 + $0x1b4] ss:$8 sps:$4 sm:$0xff]  }
 0x15e   : > { %3171 = vmatprep.subr.bf16.mxu0 %v4014_v8  ;;  %v4097_v8 = vld [vmem:[%s4986_s18 + $0x5b4] ss:$8 sps:$4 sm:$0xff]  }
 0x160   : > { %3008 = vmatpush1.bf16.msra.mxu1 %v4016_v11  ;;  %v4100_v11 = vld [vmem:[%s4986_s18 + $0x1c4] ss:$8 sps:$4 sm:$0xff]  }
 0x161   : > { %3172 = vmatpush1.bf16.msra.mxu0 %v4017_v12  ;;  %3009 = vmatprep.subr.bf16.mxu1 %v4018_v13  ;;  %v4103_v12 = vld [vmem:[%s4986_s18 + $0x5c4] ss:$8 sps:$4 sm:$0xff]   ;;  %v4098_v13 = vld [vmem:[%s4986_s18 + $0x1c0] ss:$8 sps:$4 sm:$0xff]  }
 0x162   : > { %3173 = vmatprep.subr.bf16.mxu0 %v4020_v14  ;;  %v4101_v14 = vld [vmem:[%s4986_s18 + $0x5c0] ss:$8 sps:$4 sm:$0xff]  }
 0x164   : > { %3010 = vmatpush1.bf16.msra.mxu1 %v4022_v17  ;;  %v4106_v17 = vld [vmem:[%s4986_s18 + $0x1d4] ss:$8 sps:$4 sm:$0xff]  }
 0x165   : > { %3174 = vmatpush1.bf16.msra.mxu0 %v4023_v18  ;;  %3020 = vmatprep.subr.bf16.mxu1 %v4027_v19  ;;  %v4109_v18 = vld [vmem:[%s4986_s18 + $0x5d4] ss:$8 sps:$4 sm:$0xff]   ;;  %v4104_v19 = vld [vmem:[%s4986_s18 + $0x1d0] ss:$8 sps:$4 sm:$0xff]  }
 0x166   : > { %3184 = vmatprep.subr.bf16.mxu0 %v4031_v20  ;;  %v4107_v20 = vld [vmem:[%s4986_s18 + $0x5d0] ss:$8 sps:$4 sm:$0xff]  }
 0x167   : > { %3012 = vmatmul.mubr.bf16.vlgmr.msra.gmra.mrb[0].mxu1 %v1415_v23  ;;  %v4110_v23 = vld [vmem:[%s4986_s18 + $0x1e0] ss:$8 sps:$4 sm:$0xff]  }
 0x168   : > { %3176 = vmatmul.mubr.bf16.vlgmr.msra.gmra.mrb[0].mxu0 %v1423_v24  ;;  %3021 = vmatpush1.bf16.msra.mxu1 %v4025_v25  ;;  %v4113_v24 = vld [vmem:[%s4986_s18 + $0x5e0] ss:$8 sps:$4 sm:$0xff]   ;;  %v4118_v25 = vld [vmem:[%s4986_s18 + $0x1f4] ss:$8 sps:$4 sm:$0xff]  }
 0x169   : > { %3185 = vmatpush1.bf16.msra.mxu0 %v4029_v26  ;;  %3022 = vmatprep.subr.bf16.mxu1 %v4034_v27  ;;  %v4121_v26 = vld [vmem:[%s4986_s18 + $0x5f4] ss:$8 sps:$4 sm:$0xff]   ;;  %v4116_v27 = vld [vmem:[%s4986_s18 + $0x1f0] ss:$8 sps:$4 sm:$0xff]  }
 0x16a   : > { %3186 = vmatprep.subr.bf16.mxu0 %v4037_v28  ;;  %3052 = vmatprep.mubr.bf16.mxu1 %v1418_v29  ;;  %v4119_v28 = vld [vmem:[%s4986_s18 + $0x5f0] ss:$8 sps:$4 sm:$0xff]   ;;  %v4124_v29 = vld [vmem:[%s4986_s18 + $0x204] ss:$8 sps:$4 sm:$0xff]  }
 0x16b   : > { %3216 = vmatprep.mubr.bf16.mxu0 %v1426_v30  ;;  %v4127_v30 = vld [vmem:[%s4986_s18 + $0x604] ss:$8 sps:$4 sm:$0xff]  }
 0x16c   : > { %3023 = vmatpush1.bf16.msra.mxu1 %v4032_v31  ;;  %v4122_v31 = vld [vmem:[%s4986_s18 + $0x200] ss:$8 sps:$4 sm:$0xff]  }
 0x16d   : > { %3187 = vmatpush1.bf16.msra.mxu0 %v4035_v32  ;;  %3024 = vmatprep.subr.bf16.mxu1 %v4040_v33  ;;  %v1417_v32 = vpack.c.bf16 %v5072_v15, %v5072_v15  ;;  %v1425_v33 = vpack.c.bf16 %v5075_v16, %v5075_v16  ;;  %v5171_v16 = vld [vmem:[%s5381_s0 + $0x18] sm:$0xff] }
 0x16e   : > { %3188 = vmatprep.subr.bf16.mxu0 %v4043_v34  ;;  %v4125_v34 = vld [vmem:[%s4986_s18 + $0x600] ss:$8 sps:$4 sm:$0xff]  }
 0x170   : > { %3025 = vmatpush1.bf16.msra.mxu1 %v4038_v35  ;;  %v4130_v35 = vld [vmem:[%s4986_s18 + $0x214] ss:$8 sps:$4 sm:$0xff]  }
 0x171   : > { %3189 = vmatpush1.bf16.msra.mxu0 %v4041_v36  ;;  %3026 = vmatprep.subr.bf16.mxu1 %v4046_v37  ;;  %v5161_v36 = vld [vmem:[%s5381_s0 + $0x8] sm:$0xff]  ;;  %v4133_v37 = vld [vmem:[%s4986_s18 + $0x614] ss:$8 sps:$4 sm:$0xff]  }
 0x172   : > { %3190 = vmatprep.subr.bf16.mxu0 %v4049_v38  ;;  %v5166_v15 = vrot.slane %v5161_v36, %v5039_v50  ;;  %v4128_v38 = vld [vmem:[%s4986_s18 + $0x210] ss:$8 sps:$4 sm:$0xff]  }
 0x174   : > { %3027 = vmatpush1.bf16.msra.mxu1 %v4044_v39  ;;  %v4131_v39 = vld [vmem:[%s4986_s18 + $0x610] ss:$8 sps:$4 sm:$0xff]  }
 0x175   : > { %3191 = vmatpush1.bf16.msra.mxu0 %v4047_v40  ;;  %3028 = vmatprep.subr.bf16.mxu1 %v4052_v41  ;;  %v1363_v40 = vcombine.high %v5166_v15, %v5166_v15  ;;  %v5179_v41 = vrot.slane %v5171_v16, %v5039_v50 }
 0x176   : > { %3192 = vmatprep.subr.bf16.mxu0 %v4055_v42  ;;  %v4136_v42 = vld [vmem:[%s4986_s18 + $0x224] ss:$8 sps:$4 sm:$0xff]  }
 0x178   : > { %3029 = vmatpush1.bf16.msra.mxu1 %v4050_v43  ;;  %v4139_v43 = vld [vmem:[%s4986_s18 + $0x624] ss:$8 sps:$4 sm:$0xff]  }
 0x179   : > { %3193 = vmatpush1.bf16.msra.mxu0 %v4053_v45  ;;  %3030 = vmatprep.subr.bf16.mxu1 %v4058_v46  ;;  %v1420_v45 = vpack.c.bf16 %v1363_v40, %v1363_v40  ;;  %v1397_v46 = vcombine.high %v5179_v41, %v5179_v41  ;;  %v4214_v40 = vld [vmem:[%s4986_s18 + $0x2f4] ss:$8 sps:$4 sm:$0xff]  }
 0x17a   : > { %3194 = vmatprep.subr.bf16.mxu0 %v4061_v47  ;;  %v4134_v47 = vld [vmem:[%s4986_s18 + $0x220] ss:$8 sps:$4 sm:$0xff]  }
 0x17c   : > { %3031 = vmatpush1.bf16.msra.mxu1 %v4056_v48  ;;  %v4137_v48 = vld [vmem:[%s4986_s18 + $0x620] ss:$8 sps:$4 sm:$0xff]  }
 0x17d   : > { %3195 = vmatpush1.bf16.msra.mxu0 %v4059_v49  ;;  %3032 = vmatprep.subr.bf16.mxu1 %v4064_v51  ;;  %v1428_v49 = vpack.c.bf16 %v1397_v46, %v1397_v46  ;;  %v4142_v51 = vld [vmem:[%s4986_s18 + $0x234] ss:$8 sps:$4 sm:$0xff]   ;;  %v4220_v46 = vld [vmem:[%s4986_s18 + $0x304] ss:$8 sps:$4 sm:$0xff]  }
 0x17e   : > { %3196 = vmatprep.subr.bf16.mxu0 %v4067_v52  ;;  %v4145_v52 = vld [vmem:[%s4986_s18 + $0x634] ss:$8 sps:$4 sm:$0xff]  }
 0x180   : > { %3033 = vmatpush1.bf16.msra.mxu1 %v4062_v53  ;;  %v4140_v53 = vld [vmem:[%s4986_s18 + $0x230] ss:$8 sps:$4 sm:$0xff]  }
 0x181   : > { %3197 = vmatpush1.bf16.msra.mxu0 %v4065_v54  ;;  %3034 = vmatprep.subr.bf16.mxu1 %v4070_v55  ;;  %v4143_v54 = vld [vmem:[%s4986_s18 + $0x630] ss:$8 sps:$4 sm:$0xff]   ;;  %v4148_v55 = vld [vmem:[%s4986_s18 + $0x244] ss:$8 sps:$4 sm:$0xff]  }
 0x182   : > { %3198 = vmatprep.subr.bf16.mxu0 %v4073_v56  ;;  %v4151_v56 = vld [vmem:[%s4986_s18 + $0x644] ss:$8 sps:$4 sm:$0xff]  }
 0x184   : > { %3035 = vmatpush1.bf16.msra.mxu1 %v4068_v57  ;;  %v4146_v57 = vld [vmem:[%s4986_s18 + $0x240] ss:$8 sps:$4 sm:$0xff]  }
 0x185   : > { %3199 = vmatpush1.bf16.msra.mxu0 %v4071_v58  ;;  %3036 = vmatprep.subr.bf16.mxu1 %v4076_v59  ;;  %v4149_v58 = vld [vmem:[%s4986_s18 + $0x640] ss:$8 sps:$4 sm:$0xff]   ;;  %v4154_v59 = vld [vmem:[%s4986_s18 + $0x254] ss:$8 sps:$4 sm:$0xff]  }
 0x186   : > { %3200 = vmatprep.subr.bf16.mxu0 %v4079_v60  ;;  %v4157_v60 = vld [vmem:[%s4986_s18 + $0x654] ss:$8 sps:$4 sm:$0xff]  }
 0x188   : > { %3037 = vmatpush1.bf16.msra.mxu1 %v4074_v61  ;;  %v4152_v61 = vld [vmem:[%s4986_s18 + $0x250] ss:$8 sps:$4 sm:$0xff]  }
 0x189   : > { %3201 = vmatpush1.bf16.msra.mxu0 %v4077_v62  ;;  %3038 = vmatprep.subr.bf16.mxu1 %v4082_v63  ;;  %v4155_v62 = vld [vmem:[%s4986_s18 + $0x650] ss:$8 sps:$4 sm:$0xff]   ;;  %v4160_v63 = vld [vmem:[%s4986_s18 + $0x264] ss:$8 sps:$4 sm:$0xff]  }
 0x18a   : > { %3202 = vmatprep.subr.bf16.mxu0 %v4085_v0  ;;  %v4163_v0 = vld [vmem:[%s4986_s18 + $0x664] ss:$8 sps:$4 sm:$0xff]  }
 0x18c   : > { %3039 = vmatpush1.bf16.msra.mxu1 %v4080_v1  ;;  %v4158_v1 = vld [vmem:[%s4986_s18 + $0x260] ss:$8 sps:$4 sm:$0xff]  }
 0x18d   : > { %3203 = vmatpush1.bf16.msra.mxu0 %v4083_v2  ;;  %3040 = vmatprep.subr.bf16.mxu1 %v4088_v3  ;;  %v4161_v2 = vld [vmem:[%s4986_s18 + $0x660] ss:$8 sps:$4 sm:$0xff]   ;;  %v4166_v3 = vld [vmem:[%s4986_s18 + $0x274] ss:$8 sps:$4 sm:$0xff]  }
 0x18e   : > { %3204 = vmatprep.subr.bf16.mxu0 %v4091_v4  ;;  %v4169_v4 = vld [vmem:[%s4986_s18 + $0x674] ss:$8 sps:$4 sm:$0xff]  }
 0x190   : > { %3041 = vmatpush1.bf16.msra.mxu1 %v4086_v5  ;;  %v4164_v5 = vld [vmem:[%s4986_s18 + $0x270] ss:$8 sps:$4 sm:$0xff]  }
 0x191   : > { %3205 = vmatpush1.bf16.msra.mxu0 %v4089_v6  ;;  %3042 = vmatprep.subr.bf16.mxu1 %v4094_v7  ;;  %v4167_v6 = vld [vmem:[%s4986_s18 + $0x670] ss:$8 sps:$4 sm:$0xff]   ;;  %v4172_v7 = vld [vmem:[%s4986_s18 + $0x284] ss:$8 sps:$4 sm:$0xff]  }
 0x192   : > { %3206 = vmatprep.subr.bf16.mxu0 %v4097_v8  ;;  %v4175_v8 = vld [vmem:[%s4986_s18 + $0x684] ss:$8 sps:$4 sm:$0xff]  }
 0x194   : > { %3043 = vmatpush1.bf16.msra.mxu1 %v4092_v9  ;;  %v4170_v9 = vld [vmem:[%s4986_s18 + $0x280] ss:$8 sps:$4 sm:$0xff]  }
 0x195   : > { %3207 = vmatpush1.bf16.msra.mxu0 %v4095_v10  ;;  %3044 = vmatprep.subr.bf16.mxu1 %v4100_v11  ;;  %v4173_v10 = vld [vmem:[%s4986_s18 + $0x680] ss:$8 sps:$4 sm:$0xff]   ;;  %v4178_v11 = vld [vmem:[%s4986_s18 + $0x294] ss:$8 sps:$4 sm:$0xff]  }
 0x196   : > { %3208 = vmatprep.subr.bf16.mxu0 %v4103_v12  ;;  %v4181_v12 = vld [vmem:[%s4986_s18 + $0x694] ss:$8 sps:$4 sm:$0xff]  }
 0x198   : > { %3045 = vmatpush1.bf16.msra.mxu1 %v4098_v13  ;;  %v4176_v13 = vld [vmem:[%s4986_s18 + $0x290] ss:$8 sps:$4 sm:$0xff]  }
 0x199   : > { %3209 = vmatpush1.bf16.msra.mxu0 %v4101_v14  ;;  %3046 = vmatprep.subr.bf16.mxu1 %v4106_v17  ;;  %v4179_v14 = vld [vmem:[%s4986_s18 + $0x690] ss:$8 sps:$4 sm:$0xff]   ;;  %v4184_v17 = vld [vmem:[%s4986_s18 + $0x2a4] ss:$8 sps:$4 sm:$0xff]  }
 0x19a   : > { %3210 = vmatprep.subr.bf16.mxu0 %v4109_v18  ;;  %v4187_v18 = vld [vmem:[%s4986_s18 + $0x6a4] ss:$8 sps:$4 sm:$0xff]  }
 0x19c   : > { %3047 = vmatpush1.bf16.msra.mxu1 %v4104_v19  ;;  %v4182_v19 = vld [vmem:[%s4986_s18 + $0x2a0] ss:$8 sps:$4 sm:$0xff]  }
 0x19d   : > { %3211 = vmatpush1.bf16.msra.mxu0 %v4107_v20  ;;  %3048 = vmatprep.subr.bf16.mxu1 %v4112_v21  ;;  %v4185_v20 = vld [vmem:[%s4986_s18 + $0x6a0] ss:$8 sps:$4 sm:$0xff]   ;;  %v4190_v21 = vld [vmem:[%s4986_s18 + $0x2b4] ss:$8 sps:$4 sm:$0xff]  }
 0x19e   : > { %3212 = vmatprep.subr.bf16.mxu0 %v4115_v22  ;;  %v4193_v22 = vld [vmem:[%s4986_s18 + $0x6b4] ss:$8 sps:$4 sm:$0xff]  }
 0x1a0   : > { %3049 = vmatpush1.bf16.msra.mxu1 %v4110_v23  ;;  %v4188_v23 = vld [vmem:[%s4986_s18 + $0x2b0] ss:$8 sps:$4 sm:$0xff]  }
 0x1a1   : > { %3213 = vmatpush1.bf16.msra.mxu0 %v4113_v24  ;;  %3050 = vmatprep.subr.bf16.mxu1 %v4118_v25  ;;  %v4191_v24 = vld [vmem:[%s4986_s18 + $0x6b0] ss:$8 sps:$4 sm:$0xff]   ;;  %v4196_v25 = vld [vmem:[%s4986_s18 + $0x2c4] ss:$8 sps:$4 sm:$0xff]  }
 0x1a2   : > { %3214 = vmatprep.subr.bf16.mxu0 %v4121_v26  ;;  %v4199_v26 = vld [vmem:[%s4986_s18 + $0x6c4] ss:$8 sps:$4 sm:$0xff]  }
 0x1a4   : > { %3051 = vmatpush1.bf16.msra.mxu1 %v4116_v27  ;;  %v4194_v27 = vld [vmem:[%s4986_s18 + $0x2c0] ss:$8 sps:$4 sm:$0xff]  }
 0x1a5   : > { %3215 = vmatpush1.bf16.msra.mxu0 %v4119_v28  ;;  %3061 = vmatprep.subr.bf16.mxu1 %v4124_v29  ;;  %v4197_v28 = vld [vmem:[%s4986_s18 + $0x6c0] ss:$8 sps:$4 sm:$0xff]   ;;  %v4202_v29 = vld [vmem:[%s4986_s18 + $0x2d4] ss:$8 sps:$4 sm:$0xff]  }
 0x1a6   : > { %3225 = vmatprep.subr.bf16.mxu0 %v4127_v30  ;;  %v4205_v30 = vld [vmem:[%s4986_s18 + $0x6d4] ss:$8 sps:$4 sm:$0xff]  }
 0x1a7   : > { %3053 = vmatmul.mubr.bf16.vlgmr.msra.gmra.mrb[0].mxu1 %v1417_v32  ;;  %v4203_v32 = vld [vmem:[%s4986_s18 + $0x6d0] ss:$8 sps:$4 sm:$0xff]  }
 0x1a8   : > { %3217 = vmatmul.mubr.bf16.vlgmr.msra.gmra.mrb[0].mxu0 %v1425_v33  ;;  %3062 = vmatpush1.bf16.msra.mxu1 %v4122_v31  ;;  %v4200_v31 = vld [vmem:[%s4986_s18 + $0x2d0] ss:$8 sps:$4 sm:$0xff]   ;;  %v4208_v33 = vld [vmem:[%s4986_s18 + $0x2e4] ss:$8 sps:$4 sm:$0xff]  }
 0x1a9   : > { %3226 = vmatpush1.bf16.msra.mxu0 %v4125_v34  ;;  %3063 = vmatprep.subr.bf16.mxu1 %v4130_v35  ;;  %v4211_v34 = vld [vmem:[%s4986_s18 + $0x6e4] ss:$8 sps:$4 sm:$0xff]   ;;  %v4206_v35 = vld [vmem:[%s4986_s18 + $0x2e0] ss:$8 sps:$4 sm:$0xff]  }
 0x1aa   : > { %3227 = vmatprep.subr.bf16.mxu0 %v4133_v37  ;;  %3093 = vmatprep.mubr.bf16.mxu1 %v1420_v45  ;;  %v4209_v37 = vld [vmem:[%s4986_s18 + $0x6e0] ss:$8 sps:$4 sm:$0xff]  }
 0x1ab   : > { %3257 = vmatprep.mubr.bf16.mxu0 %v1428_v49 }
 0x1ac   : > { %3064 = vmatpush1.bf16.msra.mxu1 %v4128_v38  ;;  %v1348_v38 = vcombine.high %v5161_v36, %v5161_v36  ;;  %v4212_v36 = vld [vmem:[%s4986_s18 + $0x2f0] ss:$8 sps:$4 sm:$0xff]  }
 0x1ad   : > { %3228 = vmatpush1.bf16.msra.mxu0 %v4131_v39  ;;  %3065 = vmatprep.subr.bf16.mxu1 %v4136_v42  ;;  %v1382_v39 = vcombine.high %v5171_v16, %v5171_v16  ;;  %v4217_v42 = vld [vmem:[%s4986_s18 + $0x6f4] ss:$8 sps:$4 sm:$0xff]   ;;  %v4215_v16 = vld [vmem:[%s4986_s18 + $0x6f0] ss:$8 sps:$4 sm:$0xff]  }
 0x1ae   : > { %3229 = vmatprep.subr.bf16.mxu0 %v4139_v43  ;;  %v5242_v43 = vrot.slane %v1348_v38, %v5039_v50  ;;  %v4295_v38 = vld [vmem:[%s4986_s18 + $0x7c4] ss:$8 sps:$4 sm:$0xff]  }
 0x1af   : > { %v5245_v45 = vrot.slane %v1382_v39, %v5039_v50  ;;  %v1419_v50 = vpack.c.bf16 %v5166_v15, %v5166_v15  ;;  %v4224_v15 = vld [vmem:[%s4986_s18 + $0x310] ss:$8 sps:$4 sm:$0xff]   ;;  %v4290_v39 = vld [vmem:[%s4986_s18 + $0x3c0] ss:$8 sps:$4 sm:$0xff]  }
 0x1b0   : > { %3066 = vmatpush1.bf16.msra.mxu1 %v4134_v47  ;;  %v4223_v47 = vld [vmem:[%s4986_s18 + $0x704] ss:$8 sps:$4 sm:$0xff]  }
 0x1b1   : > { %3230 = vmatpush1.bf16.msra.mxu0 %v4137_v48  ;;  %3067 = vmatprep.subr.bf16.mxu1 %v4142_v51  ;;  %v1364_v48 = vcombine.high %v5242_v43, %v5242_v43  ;;  %v1398_v49 = vcombine.high %v5245_v45, %v5245_v45  ;;  %v1427_v51 = vpack.c.bf16 %v5179_v41, %v5179_v41  ;;  %v4227_v41 = vld [vmem:[%s4986_s18 + $0x710] ss:$8 sps:$4 sm:$0xff]  }
 0x1b2   : > { %3231 = vmatprep.subr.bf16.mxu0 %v4145_v52  ;;  %v4218_v52 = vld [vmem:[%s4986_s18 + $0x300] ss:$8 sps:$4 sm:$0xff]  }
 0x1b4   : > { %3068 = vmatpush1.bf16.msra.mxu1 %v4140_v53  ;;  %v4221_v53 = vld [vmem:[%s4986_s18 + $0x700] ss:$8 sps:$4 sm:$0xff]  }
 0x1b5   : > { %3232 = vmatpush1.bf16.msra.mxu0 %v4143_v54  ;;  %3069 = vmatprep.subr.bf16.mxu1 %v4148_v55  ;;  %v4226_v54 = vld [vmem:[%s4986_s18 + $0x314] ss:$8 sps:$4 sm:$0xff]  }
 0x1b6   : > { %3233 = vmatprep.subr.bf16.mxu0 %v4151_v56  ;;  %v4229_v55 = vld [vmem:[%s4986_s18 + $0x714] ss:$8 sps:$4 sm:$0xff]   ;;  %v1422_v56 = vpack.c.bf16 %v1364_v48, %v1364_v48  ;;  %v4307_v48 = vld [vmem:[%s4986_s18 + $0x7e4] ss:$8 sps:$4 sm:$0xff]  }
 0x1b8   : > { %3070 = vmatpush1.bf16.msra.mxu1 %v4146_v57  ;;  %v1430_v57 = vpack.c.bf16 %v1398_v49, %v1398_v49  ;;  %v4302_v49 = vld [vmem:[%s4986_s18 + $0x3e0] ss:$8 sps:$4 sm:$0xff]  }
 0x1b9   : > { %3234 = vmatpush1.bf16.msra.mxu0 %v4149_v58  ;;  %3071 = vmatprep.subr.bf16.mxu1 %v4154_v59  ;;  %v4232_v58 = vld [vmem:[%s4986_s18 + $0x324] ss:$8 sps:$4 sm:$0xff]  }
 0x1ba   : > { %3235 = vmatprep.subr.bf16.mxu0 %v4157_v60  ;;  %v4235_v59 = vld [vmem:[%s4986_s18 + $0x724] ss:$8 sps:$4 sm:$0xff]   ;;  %v4230_v60 = vld [vmem:[%s4986_s18 + $0x320] ss:$8 sps:$4 sm:$0xff]  }
 0x1bc   : > { %3072 = vmatpush1.bf16.msra.mxu1 %v4152_v61  ;;  %v4233_v61 = vld [vmem:[%s4986_s18 + $0x720] ss:$8 sps:$4 sm:$0xff]  }
 0x1bd   : > { %3236 = vmatpush1.bf16.msra.mxu0 %v4155_v62  ;;  %3073 = vmatprep.subr.bf16.mxu1 %v4160_v63  ;;  %v4238_v62 = vld [vmem:[%s4986_s18 + $0x334] ss:$8 sps:$4 sm:$0xff]  }
 0x1be   : > { %3237 = vmatprep.subr.bf16.mxu0 %v4163_v0  ;;  %v4241_v63 = vld [vmem:[%s4986_s18 + $0x734] ss:$8 sps:$4 sm:$0xff]   ;;  %v4236_v0 = vld [vmem:[%s4986_s18 + $0x330] ss:$8 sps:$4 sm:$0xff]  }
 0x1c0   : > { %3074 = vmatpush1.bf16.msra.mxu1 %v4158_v1  ;;  %v4239_v1 = vld [vmem:[%s4986_s18 + $0x730] ss:$8 sps:$4 sm:$0xff]  }
 0x1c1   : > { %3238 = vmatpush1.bf16.msra.mxu0 %v4161_v2  ;;  %3075 = vmatprep.subr.bf16.mxu1 %v4166_v3  ;;  %v4244_v2 = vld [vmem:[%s4986_s18 + $0x344] ss:$8 sps:$4 sm:$0xff]  }
 0x1c2   : > { %3239 = vmatprep.subr.bf16.mxu0 %v4169_v4  ;;  %v4247_v3 = vld [vmem:[%s4986_s18 + $0x744] ss:$8 sps:$4 sm:$0xff]   ;;  %v4242_v4 = vld [vmem:[%s4986_s18 + $0x340] ss:$8 sps:$4 sm:$0xff]  }
 0x1c4   : > { %3076 = vmatpush1.bf16.msra.mxu1 %v4164_v5  ;;  %v4245_v5 = vld [vmem:[%s4986_s18 + $0x740] ss:$8 sps:$4 sm:$0xff]  }
 0x1c5   : > { %3240 = vmatpush1.bf16.msra.mxu0 %v4167_v6  ;;  %3077 = vmatprep.subr.bf16.mxu1 %v4172_v7  ;;  %v4250_v6 = vld [vmem:[%s4986_s18 + $0x354] ss:$8 sps:$4 sm:$0xff]  }
 0x1c6   : > { %3241 = vmatprep.subr.bf16.mxu0 %v4175_v8  ;;  %v4253_v7 = vld [vmem:[%s4986_s18 + $0x754] ss:$8 sps:$4 sm:$0xff]   ;;  %v4248_v8 = vld [vmem:[%s4986_s18 + $0x350] ss:$8 sps:$4 sm:$0xff]  }
 0x1c8   : > { %3078 = vmatpush1.bf16.msra.mxu1 %v4170_v9  ;;  %v4251_v9 = vld [vmem:[%s4986_s18 + $0x750] ss:$8 sps:$4 sm:$0xff]  }
 0x1c9   : > { %3242 = vmatpush1.bf16.msra.mxu0 %v4173_v10  ;;  %3079 = vmatprep.subr.bf16.mxu1 %v4178_v11  ;;  %v4256_v10 = vld [vmem:[%s4986_s18 + $0x364] ss:$8 sps:$4 sm:$0xff]  }
 0x1ca   : > { %3243 = vmatprep.subr.bf16.mxu0 %v4181_v12  ;;  %v4259_v11 = vld [vmem:[%s4986_s18 + $0x764] ss:$8 sps:$4 sm:$0xff]   ;;  %v4254_v12 = vld [vmem:[%s4986_s18 + $0x360] ss:$8 sps:$4 sm:$0xff]  }
 0x1cc   : > { %3080 = vmatpush1.bf16.msra.mxu1 %v4176_v13  ;;  %v4257_v13 = vld [vmem:[%s4986_s18 + $0x760] ss:$8 sps:$4 sm:$0xff]  }
 0x1cd   : > { %3244 = vmatpush1.bf16.msra.mxu0 %v4179_v14  ;;  %3081 = vmatprep.subr.bf16.mxu1 %v4184_v17  ;;  %v4262_v14 = vld [vmem:[%s4986_s18 + $0x374] ss:$8 sps:$4 sm:$0xff]  }
 0x1ce   : > { %3245 = vmatprep.subr.bf16.mxu0 %v4187_v18  ;;  %v4265_v17 = vld [vmem:[%s4986_s18 + $0x774] ss:$8 sps:$4 sm:$0xff]   ;;  %v4260_v18 = vld [vmem:[%s4986_s18 + $0x370] ss:$8 sps:$4 sm:$0xff]  }
 0x1d0   : > { %3082 = vmatpush1.bf16.msra.mxu1 %v4182_v19  ;;  %v4263_v19 = vld [vmem:[%s4986_s18 + $0x770] ss:$8 sps:$4 sm:$0xff]  }
 0x1d1   : > { %3246 = vmatpush1.bf16.msra.mxu0 %v4185_v20  ;;  %3083 = vmatprep.subr.bf16.mxu1 %v4190_v21  ;;  %v4268_v20 = vld [vmem:[%s4986_s18 + $0x384] ss:$8 sps:$4 sm:$0xff]  }
 0x1d2   : > { %3247 = vmatprep.subr.bf16.mxu0 %v4193_v22  ;;  %v4271_v21 = vld [vmem:[%s4986_s18 + $0x784] ss:$8 sps:$4 sm:$0xff]   ;;  %v4266_v22 = vld [vmem:[%s4986_s18 + $0x380] ss:$8 sps:$4 sm:$0xff]  }
 0x1d4   : > { %3084 = vmatpush1.bf16.msra.mxu1 %v4188_v23  ;;  %v4269_v23 = vld [vmem:[%s4986_s18 + $0x780] ss:$8 sps:$4 sm:$0xff]  }
 0x1d5   : > { %3248 = vmatpush1.bf16.msra.mxu0 %v4191_v24  ;;  %3085 = vmatprep.subr.bf16.mxu1 %v4196_v25  ;;  %v4274_v24 = vld [vmem:[%s4986_s18 + $0x394] ss:$8 sps:$4 sm:$0xff]  }
 0x1d6   : > { %3249 = vmatprep.subr.bf16.mxu0 %v4199_v26  ;;  %v4277_v25 = vld [vmem:[%s4986_s18 + $0x794] ss:$8 sps:$4 sm:$0xff]   ;;  %v4272_v26 = vld [vmem:[%s4986_s18 + $0x390] ss:$8 sps:$4 sm:$0xff]  }
 0x1d8   : > { %3086 = vmatpush1.bf16.msra.mxu1 %v4194_v27  ;;  %v4275_v27 = vld [vmem:[%s4986_s18 + $0x790] ss:$8 sps:$4 sm:$0xff]  }
 0x1d9   : > { %3250 = vmatpush1.bf16.msra.mxu0 %v4197_v28  ;;  %3087 = vmatprep.subr.bf16.mxu1 %v4202_v29  ;;  %v4280_v28 = vld [vmem:[%s4986_s18 + $0x3a4] ss:$8 sps:$4 sm:$0xff]  }
 0x1da   : > { %3251 = vmatprep.subr.bf16.mxu0 %v4205_v30  ;;  %v4283_v29 = vld [vmem:[%s4986_s18 + $0x7a4] ss:$8 sps:$4 sm:$0xff]   ;;  %v4278_v30 = vld [vmem:[%s4986_s18 + $0x3a0] ss:$8 sps:$4 sm:$0xff]  }
 0x1dc   : > { %3088 = vmatpush1.bf16.msra.mxu1 %v4200_v31  ;;  %v4281_v31 = vld [vmem:[%s4986_s18 + $0x7a0] ss:$8 sps:$4 sm:$0xff]  }
 0x1dd   : > { %3252 = vmatpush1.bf16.msra.mxu0 %v4203_v32  ;;  %3089 = vmatprep.subr.bf16.mxu1 %v4208_v33  ;;  %v4286_v32 = vld [vmem:[%s4986_s18 + $0x3b4] ss:$8 sps:$4 sm:$0xff]  }
 0x1de   : > { %3253 = vmatprep.subr.bf16.mxu0 %v4211_v34  ;;  %v4289_v33 = vld [vmem:[%s4986_s18 + $0x7b4] ss:$8 sps:$4 sm:$0xff]   ;;  %v4284_v34 = vld [vmem:[%s4986_s18 + $0x3b0] ss:$8 sps:$4 sm:$0xff]  }
 0x1e0   : > { %3090 = vmatpush1.bf16.msra.mxu1 %v4206_v35  ;;  %v4287_v35 = vld [vmem:[%s4986_s18 + $0x7b0] ss:$8 sps:$4 sm:$0xff]  }
 0x1e1   : > { %3254 = vmatpush1.bf16.msra.mxu0 %v4209_v37  ;;  %3091 = vmatprep.subr.bf16.mxu1 %v4214_v40  ;;  %v4292_v37 = vld [vmem:[%s4986_s18 + $0x3c4] ss:$8 sps:$4 sm:$0xff]   ;;  %v4293_v40 = vld [vmem:[%s4986_s18 + $0x7c0] ss:$8 sps:$4 sm:$0xff]  }
 0x1e2   : > { %3255 = vmatprep.subr.bf16.mxu0 %v4217_v42  ;;  %v4298_v42 = vld [vmem:[%s4986_s18 + $0x3d4] ss:$8 sps:$4 sm:$0xff]  }
 0x1e4   : > { %3092 = vmatpush1.bf16.msra.mxu1 %v4212_v36  ;;  %v4301_v36 = vld [vmem:[%s4986_s18 + $0x7d4] ss:$8 sps:$4 sm:$0xff]  }
 0x1e5   : > { %3256 = vmatpush1.bf16.msra.mxu0 %v4215_v16  ;;  %3102 = vmatprep.subr.bf16.mxu1 %v4220_v46  ;;  %v4296_v16 = vld [vmem:[%s4986_s18 + $0x3d0] ss:$8 sps:$4 sm:$0xff]  }
 0x1e6   : > { %3266 = vmatprep.subr.bf16.mxu0 %v4223_v47  ;;  %v4299_v46 = vld [vmem:[%s4986_s18 + $0x7d0] ss:$8 sps:$4 sm:$0xff]   ;;  %v4304_v47 = vld [vmem:[%s4986_s18 + $0x3e4] ss:$8 sps:$4 sm:$0xff]  }
 0x1e7   : > { %3094 = vmatmul.mubr.bf16.vlgmr.msra.gmra.mrb[0].mxu1 %v1419_v50  ;;  %v4305_v50 = vld [vmem:[%s4986_s18 + $0x7e0] ss:$8 sps:$4 sm:$0xff]  }
 0x1e8   : > { %3258 = vmatmul.mubr.bf16.vlgmr.msra.gmra.mrb[0].mxu0 %v1427_v51  ;;  %3103 = vmatpush1.bf16.msra.mxu1 %v4218_v52  ;;  %v4310_v51 = vld [vmem:[%s4986_s18 + $0x3f4] ss:$8 sps:$4 sm:$0xff]  }
 0x1e9   : > { %3267 = vmatpush1.bf16.msra.mxu0 %v4221_v53  ;;  %3104 = vmatprep.subr.bf16.mxu1 %v4226_v54  ;;  %v4313_v52 = vld [vmem:[%s4986_s18 + $0x7f4] ss:$8 sps:$4 sm:$0xff]   ;;  %v4308_v53 = vld [vmem:[%s4986_s18 + $0x3f0] ss:$8 sps:$4 sm:$0xff]  }
 0x1ea   : > { %3268 = vmatprep.subr.bf16.mxu0 %v4229_v55  ;;  %3134 = vmatprep.mubr.bf16.mxu1 %v1422_v56  ;;  %v4311_v54 = vld [vmem:[%s4986_s18 + $0x7f0] ss:$8 sps:$4 sm:$0xff]   ;;  %v4316_v55 = vld [vmem:[%s4984_s20 + $0x40] sm:$0xff]   ;;  %v1421_v56 = vpack.c.bf16 %v5242_v43, %v5242_v43 }
 0x1eb   : > { %3298 = vmatprep.mubr.bf16.mxu0 %v1430_v57  ;;  %v1429_v57 = vpack.c.bf16 %v5245_v45, %v5245_v45  ;;  %v4320_v43 = vld [vmem:[%s4984_s20 + $0x50] sm:$0xff]   ;;  %v4322_v45 = vld [vmem:[%s4984_s20 + $0x58] sm:$0xff]  }
 0x1ec   : > { %3105 = vmatpush1.bf16.msra.mxu1 %v4224_v15  ;;  %v4317_v15 = vld [vmem:[%s4984_s20] sm:$0xff]  }
 0x1ed   : > { %3269 = vmatpush1.bf16.msra.mxu0 %v4227_v41  ;;  %3106 = vmatprep.subr.bf16.mxu1 %v4232_v58  ;;  %v4318_v41 = vld [vmem:[%s4984_s20 + $0x48] sm:$0xff]  }
 0x1ee   : > { %3270 = vmatprep.subr.bf16.mxu0 %v4235_v59  ;;  %v4319_v58 = vld [vmem:[%s4984_s20 + $0x8] sm:$0xff]   ;;  %v4321_v59 = vld [vmem:[%s4984_s20 + $0x10] sm:$0xff]  }
 0x1f0   : > { %3107 = vmatpush1.bf16.msra.mxu1 %v4230_v60  ;;  %v4323_v60 = vld [vmem:[%s4984_s20 + $0x18] sm:$0xff]  }
 0x1f1   : > { %3271 = vmatpush1.bf16.msra.mxu0 %v4233_v61  ;;  %3108 = vmatprep.subr.bf16.mxu1 %v4238_v62  ;;  %v4324_v61 = vld [vmem:[%s4984_s20 + $0x60] sm:$0xff]  }
 0x1f2   : > { %3272 = vmatprep.subr.bf16.mxu0 %v4241_v63  ;;  %v4325_v62 = vld [vmem:[%s4984_s20 + $0x20] sm:$0xff]   ;;  %v4326_v63 = vld [vmem:[%s4984_s20 + $0x68] sm:$0xff]  }
 0x1f4   : > { %3109 = vmatpush1.bf16.msra.mxu1 %v4236_v0  ;;  %v4327_v0 = vld [vmem:[%s4984_s20 + $0x28] sm:$0xff]  }
 0x1f5   : > { %3273 = vmatpush1.bf16.msra.mxu0 %v4239_v1  ;;  %3110 = vmatprep.subr.bf16.mxu1 %v4244_v2  ;;  %v4328_v1 = vld [vmem:[%s4984_s20 + $0x70] sm:$0xff]  }
 0x1f6   : > { %3274 = vmatprep.subr.bf16.mxu0 %v4247_v3  ;;  %v4329_v2 = vld [vmem:[%s4984_s20 + $0x30] sm:$0xff]   ;;  %v4330_v3 = vld [vmem:[%s4984_s20 + $0x78] sm:$0xff]  }
 0x1f8   : > { %3111 = vmatpush1.bf16.msra.mxu1 %v4242_v4  ;;  %v4331_v4 = vld [vmem:[%s4984_s20 + $0x38] sm:$0xff]  }
 0x1f9   : > { %3275 = vmatpush1.bf16.msra.mxu0 %v4245_v5  ;;  %3112 = vmatprep.subr.bf16.mxu1 %v4250_v6  ;;  %v1691_v5 = vsub.s32 0, %v5031_v44  ;;  %v1687_v6 = vld [vmem:[%s1300_s14] sm:$0x3] }
 0x1fa   : > { %3276 = vmatprep.subr.bf16.mxu0 %v4253_v7  ;;  %v1695_v7 = vsub.s32 1, %v5031_v44 }
 0x1fc   : > { %3113 = vmatpush1.bf16.msra.mxu1 %v4248_v8  ;;  %v1692_v8 = vrot.slane %v1687_v6, %v1691_v5 }
 0x1fd   : > { %3277 = vmatpush1.bf16.msra.mxu0 %v4251_v9  ;;  %3114 = vmatprep.subr.bf16.mxu1 %v4256_v10  ;;  %v1696_v9 = vrot.slane %v1687_v6, %v1695_v7 }
 0x1fe   : > { %3278 = vmatprep.subr.bf16.mxu0 %v4259_v11 }
 0x200   : > { %3115 = vmatpush1.bf16.msra.mxu1 %v4254_v12 }
 0x201   : > { %3279 = vmatpush1.bf16.msra.mxu0 %v4257_v13  ;;  %3116 = vmatprep.subr.bf16.mxu1 %v4262_v14 }
 0x202   : > { %3280 = vmatprep.subr.bf16.mxu0 %v4265_v17 }
 0x204   : > { %3117 = vmatpush1.bf16.msra.mxu1 %v4260_v18 }
 0x205   : > { %3281 = vmatpush1.bf16.msra.mxu0 %v4263_v19  ;;  %3118 = vmatprep.subr.bf16.mxu1 %v4268_v20 }
 0x206   : > { %3282 = vmatprep.subr.bf16.mxu0 %v4271_v21 }
 0x208   : > { %3119 = vmatpush1.bf16.msra.mxu1 %v4266_v22 }
 0x209   : > { %3283 = vmatpush1.bf16.msra.mxu0 %v4269_v23  ;;  %3120 = vmatprep.subr.bf16.mxu1 %v4274_v24 }
 0x20a   : > { %3284 = vmatprep.subr.bf16.mxu0 %v4277_v25 }
 0x20c   : > { %3121 = vmatpush1.bf16.msra.mxu1 %v4272_v26 }
 0x20d   : > { %3285 = vmatpush1.bf16.msra.mxu0 %v4275_v27  ;;  %3122 = vmatprep.subr.bf16.mxu1 %v4280_v28  ;;  %v3309_v28 = vld [vmem:[#allocation3] sm:$0x3] }
 0x20e   : > { %3286 = vmatprep.subr.bf16.mxu0 %v4283_v29 }
 0x210   : > { %3123 = vmatpush1.bf16.msra.mxu1 %v4278_v30 }
 0x211   : > { %3287 = vmatpush1.bf16.msra.mxu0 %v4281_v31  ;;  %3124 = vmatprep.subr.bf16.mxu1 %v4286_v32 }
 0x212   : > { %3288 = vmatprep.subr.bf16.mxu0 %v4289_v33 }
 0x214   : > { %3125 = vmatpush1.bf16.msra.mxu1 %v4284_v34 }
 0x215   : > { %3289 = vmatpush1.bf16.msra.mxu0 %v4287_v35  ;;  %3126 = vmatprep.subr.bf16.mxu1 %v4292_v37 }
 0x216   : > { %3290 = vmatprep.subr.bf16.mxu0 %v4295_v38 }
 0x218   : > { %3127 = vmatpush1.bf16.msra.mxu1 %v4290_v39 }
 0x219   : > { %3291 = vmatpush1.bf16.msra.mxu0 %v4293_v40  ;;  %3128 = vmatprep.subr.bf16.mxu1 %v4298_v42 }
 0x21a   : > { %3292 = vmatprep.subr.bf16.mxu0 %v4301_v36 }
 0x21c   : > { %3129 = vmatpush1.bf16.msra.mxu1 %v4296_v16 }
 0x21d   : > { %3293 = vmatpush1.bf16.msra.mxu0 %v4299_v46  ;;  %3130 = vmatprep.subr.bf16.mxu1 %v4304_v47 }
 0x21e   : > { %3294 = vmatprep.subr.bf16.mxu0 %v4307_v48 }
 0x220   : > { %3131 = vmatpush1.bf16.msra.mxu1 %v4302_v49 }
 0x221   : > { %3295 = vmatpush1.bf16.msra.mxu0 %v4305_v50  ;;  %3132 = vmatprep.subr.bf16.mxu1 %v4310_v51 }
 0x222   : > { %3296 = vmatprep.subr.bf16.mxu0 %v4313_v52 }
 0x224   : > { %3133 = vmatpush1.bf16.msra.mxu1 %v4308_v53 }
 0x225   : > { %3297 = vmatpush1.bf16.msra.mxu0 %v4311_v54  ;;  %3846 = vmatprep.subr.bf16.mxu1 %v4316_v55 }
 0x227   : > { %3135 = vmatmul.mubr.bf16.vlgmr.msra.gmra.mrb[0].mxu1 %v1421_v56 }
 0x228   : > { %3299 = vmatmul.mubr.bf16.vlgmr.msra.gmra.mrb[0].mxu0 %v1429_v57  ;;  %3847 = vmatpush3.bf16.msra.mxu1 %v4317_v15 }
 0x229   : > { %3848 = vmatprep.subr.bf16.mxu1 %v4318_v41 }
 0x22c   : > { %3849 = vmatpush3.bf16.msra.mxu1 %v4319_v58 }
 0x22d   : > { %3850 = vmatprep.subr.bf16.mxu1 %v4320_v43 }
 0x230   : > { %3851 = vmatpush3.bf16.msra.mxu1 %v4321_v59 }
 0x231   : > { %3852 = vmatprep.subr.bf16.mxu1 %v4322_v45 }
 0x234   : > { %3853 = vmatpush3.bf16.msra.mxu1 %v4323_v60 }
 0x235   : > { %3854 = vmatprep.subr.bf16.mxu1 %v4324_v61 }
 0x238   : > { %3855 = vmatpush3.bf16.msra.mxu1 %v4325_v62 }
 0x239   : > { %3856 = vmatprep.subr.bf16.mxu1 %v4326_v63 }
 0x23c   : > { %3857 = vmatpush3.bf16.msra.mxu1 %v4327_v0 }
 0x23d   : > { %3858 = vmatprep.subr.bf16.mxu1 %v4328_v1 }
 0x240   : > { %3859 = vmatpush3.bf16.msra.mxu1 %v4329_v2 }
 0x241   : > { %3860 = vmatprep.subr.bf16.mxu1 %v4330_v3 }
 0x244   : > { %3861 = vmatpush3.bf16.msra.mxu1 %v4331_v4 }
 0x2fa   : > { %v3136_v10 = vpop.f32.mrb[0].mxu1 }
 0x2fb   : > { %v3300_v11 = vpop.f32.mrb[0].mxu0  ;;  %v3868_v12 = vadd.f32 %v3136_v10, %v1692_v8  ;;  %v3138_v13 = vpop.f32.mrb[1].mxu1 }
 0x2fc   : > { %v3302_v14 = vpop.f32.mrb[1].mxu0  ;;  %v3870_v17 = vadd.f32 %v3138_v13, %v1696_v9  ;;  %v3140_v18 = vpop.f32.mrb[2].mxu1 }
 0x2fd   : > { %v3304_v19 = vpop.f32.mrb[2].mxu0  ;;  %v3869_v20 = vadd.f32 %v3868_v12, %v3300_v11  ;;  %v3141_v21 = vpop.f32.mrb[3].mxu1 }
 0x2fe   : > { %v3305_v22 = vpop.f32.mrb[3].mxu0  ;;  %v3871_v23 = vadd.f32 %v3870_v17, %v3302_v14 }
 0x2ff   : > { %v3307_v24 = vmax.f32 %v3869_v20, 0.0 }
 0x300   : > { %v3308_v25 = vmax.f32 %v3871_v23, 0.0 }
 0x301   : > { %v3310_v27 = vpack.c.bf16 %v3307_v24, %v3307_v24 }
 0x302   : > { %v3311_v26 = vpack.c.bf16 %v3308_v25, %v3308_v25 }
 0x304   : > { %3472 = vmatprep.mubr.bf16.mxu1 %v3311_v26 }
 0x305   : > { %3473 = vmatmul.mubr.bf16.vlgmr.msra.gmra.mrb[4].mxu1 %v3310_v27 }
 0x3d8   : > { %v3862_v44 = vpop.f32.mrb[4].mxu1 }
 0x3d9   : > { %v3863_v29 = vpop.f32.mrb[5].mxu1 }
 0x3da   : > { %v3864_v30 = vadd.f32 %v3863_v29, %v3862_v44  ;;  %v3865_v31 = vpop.f32.mrb[6].mxu1 }
 0x3db   : > { %v3866_v32 = vpop.f32.mrb[7].mxu1 }
 0x3dc   : > { %v3480_v33 = vadd.f32 %v3864_v30, %v3309_v28 }
 0x3de   : > { %3482 = vst.msk [vmem:[#allocation3] sm:$0x3] %vm3481_vm1, %v3480_v33 }
 0x3df   : > { %4345 = shalt.err (!%p4342_p4)
}
 0x3e0   : > { %s4346_s16 = scalar_lea.hbm %s5386_s5, 32 }
 0x3e1   : > { %p4347_p5 = scmp.ne.s32.totalorder %s5386_s5, %s4346_s16  ;;  %p4352_p8 = scmp.lt.u32.totalorder %s4346_s16, %s5386_s5 }
 0x3e3   : > { %p4348_p6 = pnand %p4347_p5, %p3900_p11 }
 0x3e5   : > { %p4349_p7 = pneg %p4348_p6 }
 0x3e7   : > { %p4354_p9 = pnand %p4352_p8, %p4349_p7 }
 0x3e9   : > { %4357 = shalt.err (!%p4354_p9)
}
 0x3ea   : > { %3897 = dma.vmem_to_hbm [thread:$0]  (%p3900_p11), %s3491_s12, 32, %s5386_s5, [#allocation4]  }
 0x3eb   : > { %4371 = dma.done.wait (%p3900_p11), [#allocation4], 32  }
 0x3ec   : > { %4373 = vsyncadd (%p3900_p11), [#allocation4], 4294967264 }
 0x3ed PF: > { %p13_p10 = scmp.ge.s32.totalorder %s4437_s22, 6   ;;  %s5387_s18 = smov %s4380_s19 }
 0x3ee   : > { %s5388_s19 = smov %s4446_s25  ;;  %s5389_s20 = smov %s4437_s22 }
 0x3ef   :  { %15 = sbr.rel (!%p13_p10) target bundleno = 2 (0x2), region = 120 }
 0x3f6   :  { %3503 = vsyncpa [#allocation4], 1 }
 0x3f7   :  { %3505 = vsyncpa [#allocation4 + $0x1], 1 }

</bundles_post_ra>
